<compile_context>
chip_gen: v6e
topology: v6e:2x2x1
jax: 0.10.0
libtpu: 0.0.40
codegen_flags: <defaults>
</compile_context>

<pallas_src>
import functools
from typing import NamedTuple

import numpy as np
import jax
import jax.numpy as jnp
from jax import lax
from jax.experimental import pallas as pl
from jax.experimental.pallas import tpu as pltpu


class LayerDims(NamedTuple):
    lf: int       # per-sample flattened conv output length = D_out*H_out*W_out*C_out
    groups: int   # GroupNorm groups


# ----------------------------------------------------------------------------
# Pallas kernel: whole network, Bt samples per grid step, everything in VMEM/vregs
# ----------------------------------------------------------------------------
def _conv_gn_relu(act, w_ref, aff_ref, m_ref, mt_ref, dl, eps):
    """One fused Conv3d(+bias) + GroupNorm + ReLU stage operating on values.

    act     : (Bt, Din*Hin*Win*Cin) bf16   previous activation, (d,h,w,c) lane order
    w_ref   : (Din*Hin*Win*Cin, Lf) bf16   conv weight with taps/stride/padding folded in
    aff_ref : (3, Lf) f32                  rows: conv bias, gamma, beta (per output lane)
    m_ref   : (Lf, G)  f32                 group-membership mask
    mt_ref  : (G, Lf)  f32                 its transpose (group -> lanes broadcast)
    """
    bt = act.shape[0]
    lf, g = dl.lf, dl.groups

    # Conv3d: ONE MXU matmul per layer (all taps + stride + zero padding live in w_ref).
    y = jnp.dot(act, w_ref[...], preferred_element_type=jnp.float32)        # (Bt, Lf) f32
    y = y + aff_ref[0:1, :]                                                  # + conv bias

    gamma = aff_ref[1:2, :]
    beta = aff_ref[2:3, :]

    # GroupNorm statistics: one stacked f32 matmul gives per-group (sum, sum of squares),
    # one stacked f32 matmul broadcasts (mean, rstd) back to every lane.
    inv_count = 1.0 / float(lf // g)
    stats = jnp.dot(jnp.concatenate([y, y * y], axis=0), m_ref[...],
                    preferred_element_type=jnp.float32)                      # (2*Bt, G)
    mean_g = stats[:bt] * inv_count
    var_g = jnp.maximum(stats[bt:] * inv_count - mean_g * mean_g, 0.0)       # biased var
    inv_g = lax.rsqrt(var_g + eps)
    bcast = jnp.dot(jnp.concatenate([mean_g, inv_g], axis=0), mt_ref[...],
                    preferred_element_type=jnp.float32)                      # (2*Bt, Lf)

    out = (y - bcast[:bt]) * (bcast[bt:] * gamma) + beta
    return jnp.maximum(out, 0.0).astype(jnp.bfloat16)                        # (Bt, Lf) bf16


def _voxelnet_kernel(*refs, dims, eps):
    nl = len(dims)
    x_ref = refs[0]
    layer_refs = refs[1:1 + 4 * nl]
    fc1w_ref, fc1b_ref, fc2w_ref, fc2b_ref = refs[1 + 4 * nl:5 + 4 * nl]
    o_ref = refs[5 + 4 * nl]

    act = x_ref[...].astype(jnp.bfloat16)                   # (Bt, D*H*W*C), lane order (d,h,w,c)
    for li, dl in enumerate(dims):
        w_ref, aff_ref, m_ref, mt_ref = layer_refs[4 * li:4 * li + 4]
        act = _conv_gn_relu(act, w_ref, aff_ref, m_ref, mt_ref, dl, eps)

    # Flatten (already flat, fc1 rows are permuted to lane order) + Linear+ReLU + Linear+ReLU.
    h = jnp.dot(act, fc1w_ref[...], preferred_element_type=jnp.float32) + fc1b_ref[...]
    h = jnp.maximum(h, 0.0)
    o = jnp.dot(h.astype(jnp.bfloat16), fc2w_ref[...],
                preferred_element_type=jnp.float32) + fc2b_ref[...]
    o_ref[...] = jnp.maximum(o, 0.0)


# ----------------------------------------------------------------------------
# Host-side weight packing (pure layout plumbing, done once at init)
# ----------------------------------------------------------------------------
def _build_wfull(w_oidhw, in_spatial, stride, pad):
    """torch (Cout,Cin,k,k,k) weight -> (Din*Hin*Win*Cin, Dout*Hout*Wout*Cout) matrix that
    folds every tap, the stride and the zero padding.  Both sides use (d,h,w,c) lane order."""
    w = np.asarray(w_oidhw, np.float32)
    cout, cin, k = w.shape[0], w.shape[1], w.shape[2]
    d_in, h_in, w_in = in_spatial
    d_out = (d_in + 2 * pad - k) // stride + 1
    h_out = (h_in + 2 * pad - k) // stride + 1
    w_out = (w_in + 2 * pad - k) // stride + 1
    wf = np.zeros((d_in * h_in * w_in * cin, d_out * h_out * w_out * cout), np.float32)
    for kd in range(k):
        for kh in range(k):
            for kw in range(k):
                tap = w[:, :, kd, kh, kw].T                        # (Cin, Cout)
                for do in range(d_out):
                    dd = stride * do + kd - pad
                    if dd < 0 or dd >= d_in:
                        continue
                    for ho in range(h_out):
                        hh = stride * ho + kh - pad
                        if hh < 0 or hh >= h_in:
                            continue
                        for wo in range(w_out):
                            ww = stride * wo + kw - pad
                            if ww < 0 or ww >= w_in:
                                continue
                            r0 = ((dd * h_in + hh) * w_in + ww) * cin
                            c0 = ((do * h_out + ho) * w_out + wo) * cout
                            wf[r0:r0 + cin, c0:c0 + cout] = tap
    return wf


def _pack_params(layers, fc1_w, fc1_b, fc2_w, fc2_b):
    dims, packed = [], []
    for layer in layers:
        s, p, cout, g = layer["stride"], layer["pad"], layer["cout"], layer["groups"]
        d_out, h_out, w_out = layer["out_spatial"]
        lf = d_out * h_out * w_out * cout

        wfull = _build_wfull(layer["w_torch"], layer["in_spatial"], s, p)

        ch = np.tile(np.arange(cout), d_out * h_out * w_out)       # channel of each lane
        grp = ch // (cout // g)
        aff = np.stack([np.asarray(layer["b_torch"], np.float32)[ch],
                        np.asarray(layer["gamma"], np.float32)[ch],
                        np.asarray(layer["beta"], np.float32)[ch]], axis=0)    # (3, Lf)
        mask = (grp[:, None] == np.arange(g)[None, :]).astype(np.float32)      # (Lf, G)

        packed += [jnp.asarray(wfull, jnp.bfloat16),
                   jnp.asarray(aff, jnp.float32),
                   jnp.asarray(mask, jnp.float32),
                   jnp.asarray(np.ascontiguousarray(mask.T), jnp.float32)]
        dims.append(LayerDims(lf=lf, groups=g))

    # fc1: permute rows from torch's flatten order (c,d,h,w) to our lane order (d,h,w,c),
    # so the head is exact for any final spatial extent (identity when spatial is 1x1x1).
    d_o, h_o, w_o = layers[-1]["out_spatial"]
    c_o = layers[-1]["cout"]
    lane = np.arange(d_o * h_o * w_o * c_o)
    c_idx = lane % c_o
    dhw = lane // c_o
    w_idx = dhw % w_o
    h_idx = (dhw // w_o) % h_o
    d_idx = dhw // (w_o * h_o)
    torch_idx = ((c_idx * d_o + d_idx) * h_o + h_idx) * w_o + w_idx

    fc1_np = np.asarray(fc1_w, np.float32)                          # torch layout (out, in)
    packed += [jnp.asarray(np.ascontiguousarray(fc1_np[:, torch_idx].T), jnp.bfloat16),
               jnp.asarray(np.asarray(fc1_b, np.float32)[None, :], jnp.float32),
               jnp.asarray(np.asarray(fc2_w, np.float32).T, jnp.bfloat16),
               jnp.asarray(np.asarray(fc2_b, np.float32)[None, :], jnp.float32)]
    return tuple(dims), packed


def init_params(key, input_spatial_shape, in_channels, base_planes, ngroups, output_size):
    kernel_sizes = [5, 5, 5, 3, 3]
    strides = [2, 2, 2, 1, 1]
    pads = [k // 2 for k in kernel_sizes]
    channels = [in_channels, base_planes, base_planes * 2, base_planes * 2 * 2,
                base_planes * 2, base_planes]

    def kaiming(k_, shape, fan_in):   # kaiming_normal_(nonlinearity='relu'), bias = 0
        return jax.random.normal(k_, shape, jnp.float32) * np.sqrt(2.0 / fan_in)

    keys = jax.random.split(key, len(kernel_sizes) + 2)
    layers = []
    d, h, w = input_spatial_shape
    for i, (k, s, p) in enumerate(zip(kernel_sizes, strides, pads)):
        cin, cout = channels[i], channels[i + 1]
        layer = dict(
            w_torch=kaiming(keys[i], (cout, cin, k, k, k), cin * k * k * k),  # OIDHW
            b_torch=jnp.zeros((cout,), jnp.float32),
            gamma=jnp.ones((cout,), jnp.float32),
            beta=jnp.zeros((cout,), jnp.float32),
            k=k, stride=s, pad=p, cin=cin, cout=cout, groups=ngroups,
            in_spatial=(d, h, w),
        )
        d = (d + 2 * p - k) // s + 1
        h = (h + 2 * p - k) // s + 1
        w = (w + 2 * p - k) // s + 1
        layer["out_spatial"] = (d, h, w)
        layers.append(layer)

    flat_dim = d * h * w * channels[-1]
    hidden = output_size * 2
    fc1_w = kaiming(keys[-2], (hidden, flat_dim), flat_dim)      # torch (out, in)
    fc1_b = jnp.zeros((hidden,), jnp.float32)
    fc2_w = kaiming(keys[-1], (output_size, hidden), hidden)
    fc2_b = jnp.zeros((output_size,), jnp.float32)

    dims, packed = _pack_params(layers, fc1_w, fc1_b, fc2_w, fc2_b)
    return dict(layers=layers, fc1_w_torch=fc1_w, fc1_b=fc1_b,
                fc2_w_torch=fc2_w, fc2_b=fc2_b, output_size=output_size,
                dims=dims, packed=packed)


# ----------------------------------------------------------------------------
# Forward pass (single fused, batch-tiled pallas_call) and a pure-JAX reference
# ----------------------------------------------------------------------------
def voxelnet_forward(params, x, block_batch=8):
    """x: (N, C, D, H, W), same as the PyTorch module.  Returns (N, output_size)."""
    dims, packed = params["dims"], params["packed"]
    out_size = params["output_size"]
    n, c, d, h, w = x.shape
    lin = d * h * w * c

    # VoxelNet.forward: x.float(); per-sample flat (d, h, w, c) lane layout.
    x_flat = jnp.transpose(x.astype(jnp.float32), (0, 2, 3, 4, 1)).reshape(n, lin)

    bt = int(max(1, min(block_batch, n)))          # Bt samples per grid step (8 fills f32 sublanes)
    n_pad = ((n + bt - 1) // bt) * bt
    if n_pad != n:
        x_flat = jnp.pad(x_flat, ((0, n_pad - n), (0, 0)))
    grid = (n_pad // bt,)

    in_specs = [pl.BlockSpec((bt, lin), lambda i: (i, 0))]
    for op in packed:                               # every packed operand is 2D and grid-constant
        in_specs.append(pl.BlockSpec(op.shape, lambda i: (0, 0)))

    # Advisory cost estimate for XLA scheduling around the custom call.
    nl = len(dims)
    conv_flops = sum(2 * packed[4 * i].shape[0] * packed[4 * i].shape[1] for i in range(nl))
    gn_flops = sum(8 * dl.lf * dl.groups for dl in dims)
    fc_flops = (2 * packed[4 * nl].shape[0] * packed[4 * nl].shape[1]
                + 2 * packed[4 * nl + 2].shape[0] * packed[4 * nl + 2].shape[1])
    weight_bytes = sum(int(np.prod(op.shape)) * op.dtype.itemsize for op in packed)
    cost = pl.CostEstimate(
        flops=int(n_pad * (conv_flops + gn_flops + fc_flops)),
        transcendentals=int(n_pad * sum(dl.groups for dl in dims)),
        bytes_accessed=int(n_pad * lin * 4 + n_pad * out_size * 4 + weight_bytes))

    out = pl.pallas_call(
        functools.partial(_voxelnet_kernel, dims=dims, eps=1e-5),
        out_shape=jax.ShapeDtypeStruct((n_pad, out_size), jnp.float32),
        grid=grid,
        in_specs=in_specs,
        out_specs=pl.BlockSpec((bt, out_size), lambda i: (i, 0)),
        compiler_params=pltpu.CompilerParams(
            dimension_semantics=("parallel",),
            vmem_limit_bytes=32 * 1024 * 1024),
        cost_estimate=cost,
    )(x_flat, *packed)
    return out[:n]


def voxelnet_reference(params, x):
    """Plain-XLA reference of the same math (f32), for a sanity check."""
    x = x.astype(jnp.float32)
    for layer in params["layers"]:
        s, p, g = layer["stride"], layer["pad"], layer["groups"]
        x = lax.conv_general_dilated(
            x, layer["w_torch"], window_strides=(s, s, s), padding=[(p, p)] * 3,
            dimension_numbers=("NCDHW", "OIDHW", "NCDHW"))
        x = x + layer["b_torch"][None, :, None, None, None]
        n, c, d, h, w = x.shape
        xg = x.reshape(n, g, (c // g) * d * h * w)
        xg = (xg - xg.mean(axis=2, keepdims=True)) / jnp.sqrt(xg.var(axis=2, keepdims=True) + 1e-5)
        x = xg.reshape(n, c, d, h, w)
        x = x * layer["gamma"][None, :, None, None, None] + layer["beta"][None, :, None, None, None]
        x = jnp.maximum(x, 0.0)
    x = x.reshape(x.shape[0], -1)
    x = jnp.maximum(x @ params["fc1_w_torch"].T + params["fc1_b"], 0.0)
    x = jnp.maximum(x @ params["fc2_w_torch"].T + params["fc2_b"], 0.0)
    return x


if __name__ == "__main__":
    # Small config: batch=16 (two 8-sample grid steps -> both v7x TensorCores get work),
    # in_channels=4, base_planes=16, ngroups=4, output_size=32, spatial (8,8,8)
    # -> conv spatial path 8 -> 4 -> 2 -> 1 -> 1 -> 1, flatten dim 16.
    batch, in_ch, base_planes, ngroups, out_size = 16, 4, 16, 4, 32
    spatial = (8, 8, 8)

    key = jax.random.PRNGKey(0)
    k_param, k_x = jax.random.split(key)
    params = init_params(k_param, spatial, in_ch, base_planes, ngroups, out_size)
    x = jax.random.normal(k_x, (batch, in_ch) + spatial, jnp.float32)

    y = jax.block_until_ready(voxelnet_forward(params, x, block_batch=8))
    assert y.shape == (batch, out_size), y.shape
    assert bool(jnp.all(jnp.isfinite(y)))

    # Sanity check vs. the pure-JAX reference (kernel uses bf16 matmul operands -> loose tol).
    y_ref = jax.block_until_ready(voxelnet_reference(params, x))
    err = float(jnp.max(jnp.abs(y - y_ref)) / (jnp.max(jnp.abs(y_ref)) + 1e-6))
    assert err < 0.1, f"mismatch vs reference: rel-max-err={err:.4f}"

    print("KERNEL_OK")
</pallas_src>

<mosaic_0001>
module attributes {stable_mosaic.version = 11 : i64} {
  func.func @_voxelnet_kernel(%arg0: i32, %arg1: memref<8x2048xf32, #tpu.memory_space<vmem>>, %arg2: memref<2048x1024xbf16, #tpu.memory_space<vmem>>, %arg3: memref<3x1024xf32, #tpu.memory_space<vmem>>, %arg4: memref<1024x4xf32, #tpu.memory_space<vmem>>, %arg5: memref<4x1024xf32, #tpu.memory_space<vmem>>, %arg6: memref<1024x256xbf16, #tpu.memory_space<vmem>>, %arg7: memref<3x256xf32, #tpu.memory_space<vmem>>, %arg8: memref<256x4xf32, #tpu.memory_space<vmem>>, %arg9: memref<4x256xf32, #tpu.memory_space<vmem>>, %arg10: memref<256x64xbf16, #tpu.memory_space<vmem>>, %arg11: memref<3x64xf32, #tpu.memory_space<vmem>>, %arg12: memref<64x4xf32, #tpu.memory_space<vmem>>, %arg13: memref<4x64xf32, #tpu.memory_space<vmem>>, %arg14: memref<64x32xbf16, #tpu.memory_space<vmem>>, %arg15: memref<3x32xf32, #tpu.memory_space<vmem>>, %arg16: memref<32x4xf32, #tpu.memory_space<vmem>>, %arg17: memref<4x32xf32, #tpu.memory_space<vmem>>, %arg18: memref<32x16xbf16, #tpu.memory_space<vmem>>, %arg19: memref<3x16xf32, #tpu.memory_space<vmem>>, %arg20: memref<16x4xf32, #tpu.memory_space<vmem>>, %arg21: memref<4x16xf32, #tpu.memory_space<vmem>>, %arg22: memref<16x64xbf16, #tpu.memory_space<vmem>>, %arg23: memref<1x64xf32, #tpu.memory_space<vmem>>, %arg24: memref<64x32xbf16, #tpu.memory_space<vmem>>, %arg25: memref<1x32xf32, #tpu.memory_space<vmem>>, %arg26: memref<8x32xf32, #tpu.memory_space<vmem>>) attributes {dimension_semantics = [#tpu.dimension_semantics<parallel>], iteration_bounds = array<i64: 2>, scalar_prefetch = 0 : i64, scratch_operands = 0 : i64, tpu.core_type = #tpu.core_type<tc>, window_params = [{transform_indices = @transform_0, window_bounds = array<i64: 8, 2048>}, {pipeline_mode = #tpu.pipeline_mode<synchronous>, transform_indices = @transform_1, window_bounds = array<i64: 2048, 1024>}, {pipeline_mode = #tpu.pipeline_mode<synchronous>, transform_indices = @transform_2, window_bounds = array<i64: 3, 1024>}, {pipeline_mode = #tpu.pipeline_mode<synchronous>, transform_indices = @transform_3, window_bounds = array<i64: 1024, 4>}, {pipeline_mode = #tpu.pipeline_mode<synchronous>, transform_indices = @transform_4, window_bounds = array<i64: 4, 1024>}, {pipeline_mode = #tpu.pipeline_mode<synchronous>, transform_indices = @transform_5, window_bounds = array<i64: 1024, 256>}, {pipeline_mode = #tpu.pipeline_mode<synchronous>, transform_indices = @transform_6, window_bounds = array<i64: 3, 256>}, {pipeline_mode = #tpu.pipeline_mode<synchronous>, transform_indices = @transform_7, window_bounds = array<i64: 256, 4>}, {pipeline_mode = #tpu.pipeline_mode<synchronous>, transform_indices = @transform_8, window_bounds = array<i64: 4, 256>}, {pipeline_mode = #tpu.pipeline_mode<synchronous>, transform_indices = @transform_9, window_bounds = array<i64: 256, 64>}, {pipeline_mode = #tpu.pipeline_mode<synchronous>, transform_indices = @transform_10, window_bounds = array<i64: 3, 64>}, {pipeline_mode = #tpu.pipeline_mode<synchronous>, transform_indices = @transform_11, window_bounds = array<i64: 64, 4>}, {pipeline_mode = #tpu.pipeline_mode<synchronous>, transform_indices = @transform_12, window_bounds = array<i64: 4, 64>}, {pipeline_mode = #tpu.pipeline_mode<synchronous>, transform_indices = @transform_13, window_bounds = array<i64: 64, 32>}, {pipeline_mode = #tpu.pipeline_mode<synchronous>, transform_indices = @transform_14, window_bounds = array<i64: 3, 32>}, {pipeline_mode = #tpu.pipeline_mode<synchronous>, transform_indices = @transform_15, window_bounds = array<i64: 32, 4>}, {pipeline_mode = #tpu.pipeline_mode<synchronous>, transform_indices = @transform_16, window_bounds = array<i64: 4, 32>}, {pipeline_mode = #tpu.pipeline_mode<synchronous>, transform_indices = @transform_17, window_bounds = array<i64: 32, 16>}, {pipeline_mode = #tpu.pipeline_mode<synchronous>, transform_indices = @transform_18, window_bounds = array<i64: 3, 16>}, {pipeline_mode = #tpu.pipeline_mode<synchronous>, transform_indices = @transform_19, window_bounds = array<i64: 16, 4>}, {pipeline_mode = #tpu.pipeline_mode<synchronous>, transform_indices = @transform_20, window_bounds = array<i64: 4, 16>}, {pipeline_mode = #tpu.pipeline_mode<synchronous>, transform_indices = @transform_21, window_bounds = array<i64: 16, 64>}, {pipeline_mode = #tpu.pipeline_mode<synchronous>, transform_indices = @transform_22, window_bounds = array<i64: 1, 64>}, {pipeline_mode = #tpu.pipeline_mode<synchronous>, transform_indices = @transform_23, window_bounds = array<i64: 64, 32>}, {pipeline_mode = #tpu.pipeline_mode<synchronous>, transform_indices = @transform_24, window_bounds = array<i64: 1, 32>}, {transform_indices = @transform_25, window_bounds = array<i64: 8, 32>}]} {
    %c0 = arith.constant 0 : index
    %c0_0 = arith.constant 0 : index
    %0 = vector.load %arg1[%c0, %c0_0] : memref<8x2048xf32, #tpu.memory_space<vmem>>, vector<8x2048xf32>
    %1 = arith.truncf %0 : vector<8x2048xf32> to vector<8x2048xbf16>
    %c0_1 = arith.constant 0 : index
    %c0_2 = arith.constant 0 : index
    %2 = vector.load %arg2[%c0_1, %c0_2] : memref<2048x1024xbf16, #tpu.memory_space<vmem>>, vector<2048x1024xbf16>
    %cst = arith.constant dense<0.000000e+00> : vector<8x1024xf32>
    %3 = tpu.matmul %1, %2, %cst {dimension_numbers = #tpu.dot_dimension_numbers<[1], [0], [0], [1], [0, 0, 1, 1], [], []>} : vector<8x2048xbf16>, vector<2048x1024xbf16>, vector<8x1024xf32> -> vector<8x1024xf32>
    %c0_3 = arith.constant 0 : index
    %c0_4 = arith.constant 0 : index
    %4 = vector.load %arg3[%c0_3, %c0_4] : memref<3x1024xf32, #tpu.memory_space<vmem>>, vector<1x1024xf32>
    %5 = vector.broadcast %4 : vector<1x1024xf32> to vector<8x1024xf32>
    %6 = arith.addf %3, %5 : vector<8x1024xf32>
    %c1 = arith.constant 1 : index
    %c0_5 = arith.constant 0 : index
    %7 = vector.load %arg3[%c1, %c0_5] : memref<3x1024xf32, #tpu.memory_space<vmem>>, vector<1x1024xf32>
    %c2 = arith.constant 2 : index
    %c0_6 = arith.constant 0 : index
    %8 = vector.load %arg3[%c2, %c0_6] : memref<3x1024xf32, #tpu.memory_space<vmem>>, vector<1x1024xf32>
    %9 = arith.mulf %6, %6 : vector<8x1024xf32>
    %10 = tpu.concatenate %6, %9 in 0 : vector<8x1024xf32>, vector<8x1024xf32> -> vector<16x1024xf32>
    %c0_7 = arith.constant 0 : index
    %c0_8 = arith.constant 0 : index
    %11 = vector.load %arg4[%c0_7, %c0_8] : memref<1024x4xf32, #tpu.memory_space<vmem>>, vector<1024x4xf32>
    %cst_9 = arith.constant dense<0.000000e+00> : vector<16x4xf32>
    %12 = tpu.matmul %10, %11, %cst_9 {dimension_numbers = #tpu.dot_dimension_numbers<[1], [0], [0], [1], [0, 0, 1, 1], [], []>} : vector<16x1024xf32>, vector<1024x4xf32>, vector<16x4xf32> -> vector<16x4xf32>
    %13 = vector.extract_strided_slice %12 {offsets = [0, 0], sizes = [8, 4], strides = [1, 1]} : vector<16x4xf32> to vector<8x4xf32>
    %cst_10 = arith.constant 3.906250e-03 : f32
    %14 = vector.broadcast %cst_10 : f32 to vector<8x4xf32>
    %15 = arith.mulf %13, %14 : vector<8x4xf32>
    %16 = vector.extract_strided_slice %12 {offsets = [8, 0], sizes = [8, 4], strides = [1, 1]} : vector<16x4xf32> to vector<8x4xf32>
    %cst_11 = arith.constant 3.906250e-03 : f32
    %17 = vector.broadcast %cst_11 : f32 to vector<8x4xf32>
    %18 = arith.mulf %16, %17 : vector<8x4xf32>
    %19 = arith.mulf %15, %15 : vector<8x4xf32>
    %20 = arith.subf %18, %19 : vector<8x4xf32>
    %cst_12 = arith.constant 0.000000e+00 : f32
    %21 = vector.broadcast %cst_12 : f32 to vector<8x4xf32>
    %22 = arith.maximumf %20, %21 : vector<8x4xf32>
    %cst_13 = arith.constant 9.99999974E-6 : f32
    %23 = vector.broadcast %cst_13 : f32 to vector<8x4xf32>
    %24 = arith.addf %22, %23 : vector<8x4xf32>
    %25 = math.rsqrt %24 : vector<8x4xf32>
    %26 = tpu.concatenate %15, %25 in 0 : vector<8x4xf32>, vector<8x4xf32> -> vector<16x4xf32>
    %c0_14 = arith.constant 0 : index
    %c0_15 = arith.constant 0 : index
    %27 = vector.load %arg5[%c0_14, %c0_15] : memref<4x1024xf32, #tpu.memory_space<vmem>>, vector<4x1024xf32>
    %cst_16 = arith.constant dense<0.000000e+00> : vector<16x1024xf32>
    %28 = tpu.matmul %26, %27, %cst_16 {dimension_numbers = #tpu.dot_dimension_numbers<[1], [0], [0], [1], [0, 0, 1, 1], [], []>} : vector<16x4xf32>, vector<4x1024xf32>, vector<16x1024xf32> -> vector<16x1024xf32>
    %29 = vector.extract_strided_slice %28 {offsets = [0, 0], sizes = [8, 1024], strides = [1, 1]} : vector<16x1024xf32> to vector<8x1024xf32>
    %30 = arith.subf %6, %29 : vector<8x1024xf32>
    %31 = vector.extract_strided_slice %28 {offsets = [8, 0], sizes = [8, 1024], strides = [1, 1]} : vector<16x1024xf32> to vector<8x1024xf32>
    %32 = vector.broadcast %7 : vector<1x1024xf32> to vector<8x1024xf32>
    %33 = arith.mulf %31, %32 : vector<8x1024xf32>
    %34 = arith.mulf %30, %33 : vector<8x1024xf32>
    %35 = vector.broadcast %8 : vector<1x1024xf32> to vector<8x1024xf32>
    %36 = arith.addf %34, %35 : vector<8x1024xf32>
    %cst_17 = arith.constant 0.000000e+00 : f32
    %37 = vector.broadcast %cst_17 : f32 to vector<8x1024xf32>
    %38 = arith.maximumf %36, %37 : vector<8x1024xf32>
    %39 = arith.truncf %38 : vector<8x1024xf32> to vector<8x1024xbf16>
    %c0_18 = arith.constant 0 : index
    %c0_19 = arith.constant 0 : index
    %40 = vector.load %arg6[%c0_18, %c0_19] : memref<1024x256xbf16, #tpu.memory_space<vmem>>, vector<1024x256xbf16>
    %cst_20 = arith.constant dense<0.000000e+00> : vector<8x256xf32>
    %41 = tpu.matmul %39, %40, %cst_20 {dimension_numbers = #tpu.dot_dimension_numbers<[1], [0], [0], [1], [0, 0, 1, 1], [], []>} : vector<8x1024xbf16>, vector<1024x256xbf16>, vector<8x256xf32> -> vector<8x256xf32>
    %c0_21 = arith.constant 0 : index
    %c0_22 = arith.constant 0 : index
    %42 = vector.load %arg7[%c0_21, %c0_22] : memref<3x256xf32, #tpu.memory_space<vmem>>, vector<1x256xf32>
    %43 = vector.broadcast %42 : vector<1x256xf32> to vector<8x256xf32>
    %44 = arith.addf %41, %43 : vector<8x256xf32>
    %c1_23 = arith.constant 1 : index
    %c0_24 = arith.constant 0 : index
    %45 = vector.load %arg7[%c1_23, %c0_24] : memref<3x256xf32, #tpu.memory_space<vmem>>, vector<1x256xf32>
    %c2_25 = arith.constant 2 : index
    %c0_26 = arith.constant 0 : index
    %46 = vector.load %arg7[%c2_25, %c0_26] : memref<3x256xf32, #tpu.memory_space<vmem>>, vector<1x256xf32>
    %47 = arith.mulf %44, %44 : vector<8x256xf32>
    %48 = tpu.concatenate %44, %47 in 0 : vector<8x256xf32>, vector<8x256xf32> -> vector<16x256xf32>
    %c0_27 = arith.constant 0 : index
    %c0_28 = arith.constant 0 : index
    %49 = vector.load %arg8[%c0_27, %c0_28] : memref<256x4xf32, #tpu.memory_space<vmem>>, vector<256x4xf32>
    %cst_29 = arith.constant dense<0.000000e+00> : vector<16x4xf32>
    %50 = tpu.matmul %48, %49, %cst_29 {dimension_numbers = #tpu.dot_dimension_numbers<[1], [0], [0], [1], [0, 0, 1, 1], [], []>} : vector<16x256xf32>, vector<256x4xf32>, vector<16x4xf32> -> vector<16x4xf32>
    %51 = vector.extract_strided_slice %50 {offsets = [0, 0], sizes = [8, 4], strides = [1, 1]} : vector<16x4xf32> to vector<8x4xf32>
    %cst_30 = arith.constant 1.562500e-02 : f32
    %52 = vector.broadcast %cst_30 : f32 to vector<8x4xf32>
    %53 = arith.mulf %51, %52 : vector<8x4xf32>
    %54 = vector.extract_strided_slice %50 {offsets = [8, 0], sizes = [8, 4], strides = [1, 1]} : vector<16x4xf32> to vector<8x4xf32>
    %cst_31 = arith.constant 1.562500e-02 : f32
    %55 = vector.broadcast %cst_31 : f32 to vector<8x4xf32>
    %56 = arith.mulf %54, %55 : vector<8x4xf32>
    %57 = arith.mulf %53, %53 : vector<8x4xf32>
    %58 = arith.subf %56, %57 : vector<8x4xf32>
    %cst_32 = arith.constant 0.000000e+00 : f32
    %59 = vector.broadcast %cst_32 : f32 to vector<8x4xf32>
    %60 = arith.maximumf %58, %59 : vector<8x4xf32>
    %cst_33 = arith.constant 9.99999974E-6 : f32
    %61 = vector.broadcast %cst_33 : f32 to vector<8x4xf32>
    %62 = arith.addf %60, %61 : vector<8x4xf32>
    %63 = math.rsqrt %62 : vector<8x4xf32>
    %64 = tpu.concatenate %53, %63 in 0 : vector<8x4xf32>, vector<8x4xf32> -> vector<16x4xf32>
    %c0_34 = arith.constant 0 : index
    %c0_35 = arith.constant 0 : index
    %65 = vector.load %arg9[%c0_34, %c0_35] : memref<4x256xf32, #tpu.memory_space<vmem>>, vector<4x256xf32>
    %cst_36 = arith.constant dense<0.000000e+00> : vector<16x256xf32>
    %66 = tpu.matmul %64, %65, %cst_36 {dimension_numbers = #tpu.dot_dimension_numbers<[1], [0], [0], [1], [0, 0, 1, 1], [], []>} : vector<16x4xf32>, vector<4x256xf32>, vector<16x256xf32> -> vector<16x256xf32>
    %67 = vector.extract_strided_slice %66 {offsets = [0, 0], sizes = [8, 256], strides = [1, 1]} : vector<16x256xf32> to vector<8x256xf32>
    %68 = arith.subf %44, %67 : vector<8x256xf32>
    %69 = vector.extract_strided_slice %66 {offsets = [8, 0], sizes = [8, 256], strides = [1, 1]} : vector<16x256xf32> to vector<8x256xf32>
    %70 = vector.broadcast %45 : vector<1x256xf32> to vector<8x256xf32>
    %71 = arith.mulf %69, %70 : vector<8x256xf32>
    %72 = arith.mulf %68, %71 : vector<8x256xf32>
    %73 = vector.broadcast %46 : vector<1x256xf32> to vector<8x256xf32>
    %74 = arith.addf %72, %73 : vector<8x256xf32>
    %cst_37 = arith.constant 0.000000e+00 : f32
    %75 = vector.broadcast %cst_37 : f32 to vector<8x256xf32>
    %76 = arith.maximumf %74, %75 : vector<8x256xf32>
    %77 = arith.truncf %76 : vector<8x256xf32> to vector<8x256xbf16>
    %c0_38 = arith.constant 0 : index
    %c0_39 = arith.constant 0 : index
    %78 = vector.load %arg10[%c0_38, %c0_39] : memref<256x64xbf16, #tpu.memory_space<vmem>>, vector<256x64xbf16>
    %cst_40 = arith.constant dense<0.000000e+00> : vector<8x64xf32>
    %79 = tpu.matmul %77, %78, %cst_40 {dimension_numbers = #tpu.dot_dimension_numbers<[1], [0], [0], [1], [0, 0, 1, 1], [], []>} : vector<8x256xbf16>, vector<256x64xbf16>, vector<8x64xf32> -> vector<8x64xf32>
    %c0_41 = arith.constant 0 : index
    %c0_42 = arith.constant 0 : index
    %80 = vector.load %arg11[%c0_41, %c0_42] : memref<3x64xf32, #tpu.memory_space<vmem>>, vector<1x64xf32>
    %81 = vector.broadcast %80 : vector<1x64xf32> to vector<8x64xf32>
    %82 = arith.addf %79, %81 : vector<8x64xf32>
    %c1_43 = arith.constant 1 : index
    %c0_44 = arith.constant 0 : index
    %83 = vector.load %arg11[%c1_43, %c0_44] : memref<3x64xf32, #tpu.memory_space<vmem>>, vector<1x64xf32>
    %c2_45 = arith.constant 2 : index
    %c0_46 = arith.constant 0 : index
    %84 = vector.load %arg11[%c2_45, %c0_46] : memref<3x64xf32, #tpu.memory_space<vmem>>, vector<1x64xf32>
    %85 = arith.mulf %82, %82 : vector<8x64xf32>
    %86 = tpu.concatenate %82, %85 in 0 : vector<8x64xf32>, vector<8x64xf32> -> vector<16x64xf32>
    %c0_47 = arith.constant 0 : index
    %c0_48 = arith.constant 0 : index
    %87 = vector.load %arg12[%c0_47, %c0_48] : memref<64x4xf32, #tpu.memory_space<vmem>>, vector<64x4xf32>
    %cst_49 = arith.constant dense<0.000000e+00> : vector<16x4xf32>
    %88 = tpu.matmul %86, %87, %cst_49 {dimension_numbers = #tpu.dot_dimension_numbers<[1], [0], [0], [1], [0, 0, 1, 1], [], []>} : vector<16x64xf32>, vector<64x4xf32>, vector<16x4xf32> -> vector<16x4xf32>
    %89 = vector.extract_strided_slice %88 {offsets = [0, 0], sizes = [8, 4], strides = [1, 1]} : vector<16x4xf32> to vector<8x4xf32>
    %cst_50 = arith.constant 6.250000e-02 : f32
    %90 = vector.broadcast %cst_50 : f32 to vector<8x4xf32>
    %91 = arith.mulf %89, %90 : vector<8x4xf32>
    %92 = vector.extract_strided_slice %88 {offsets = [8, 0], sizes = [8, 4], strides = [1, 1]} : vector<16x4xf32> to vector<8x4xf32>
    %cst_51 = arith.constant 6.250000e-02 : f32
    %93 = vector.broadcast %cst_51 : f32 to vector<8x4xf32>
    %94 = arith.mulf %92, %93 : vector<8x4xf32>
    %95 = arith.mulf %91, %91 : vector<8x4xf32>
    %96 = arith.subf %94, %95 : vector<8x4xf32>
    %cst_52 = arith.constant 0.000000e+00 : f32
    %97 = vector.broadcast %cst_52 : f32 to vector<8x4xf32>
    %98 = arith.maximumf %96, %97 : vector<8x4xf32>
    %cst_53 = arith.constant 9.99999974E-6 : f32
    %99 = vector.broadcast %cst_53 : f32 to vector<8x4xf32>
    %100 = arith.addf %98, %99 : vector<8x4xf32>
    %101 = math.rsqrt %100 : vector<8x4xf32>
    %102 = tpu.concatenate %91, %101 in 0 : vector<8x4xf32>, vector<8x4xf32> -> vector<16x4xf32>
    %c0_54 = arith.constant 0 : index
    %c0_55 = arith.constant 0 : index
    %103 = vector.load %arg13[%c0_54, %c0_55] : memref<4x64xf32, #tpu.memory_space<vmem>>, vector<4x64xf32>
    %cst_56 = arith.constant dense<0.000000e+00> : vector<16x64xf32>
    %104 = tpu.matmul %102, %103, %cst_56 {dimension_numbers = #tpu.dot_dimension_numbers<[1], [0], [0], [1], [0, 0, 1, 1], [], []>} : vector<16x4xf32>, vector<4x64xf32>, vector<16x64xf32> -> vector<16x64xf32>
    %105 = vector.extract_strided_slice %104 {offsets = [0, 0], sizes = [8, 64], strides = [1, 1]} : vector<16x64xf32> to vector<8x64xf32>
    %106 = arith.subf %82, %105 : vector<8x64xf32>
    %107 = vector.extract_strided_slice %104 {offsets = [8, 0], sizes = [8, 64], strides = [1, 1]} : vector<16x64xf32> to vector<8x64xf32>
    %108 = vector.broadcast %83 : vector<1x64xf32> to vector<8x64xf32>
    %109 = arith.mulf %107, %108 : vector<8x64xf32>
    %110 = arith.mulf %106, %109 : vector<8x64xf32>
    %111 = vector.broadcast %84 : vector<1x64xf32> to vector<8x64xf32>
    %112 = arith.addf %110, %111 : vector<8x64xf32>
    %cst_57 = arith.constant 0.000000e+00 : f32
    %113 = vector.broadcast %cst_57 : f32 to vector<8x64xf32>
    %114 = arith.maximumf %112, %113 : vector<8x64xf32>
    %115 = arith.truncf %114 : vector<8x64xf32> to vector<8x64xbf16>
    %c0_58 = arith.constant 0 : index
    %c0_59 = arith.constant 0 : index
    %116 = vector.load %arg14[%c0_58, %c0_59] : memref<64x32xbf16, #tpu.memory_space<vmem>>, vector<64x32xbf16>
    %cst_60 = arith.constant dense<0.000000e+00> : vector<8x32xf32>
    %117 = tpu.matmul %115, %116, %cst_60 {dimension_numbers = #tpu.dot_dimension_numbers<[1], [0], [0], [1], [0, 0, 1, 1], [], []>} : vector<8x64xbf16>, vector<64x32xbf16>, vector<8x32xf32> -> vector<8x32xf32>
    %c0_61 = arith.constant 0 : index
    %c0_62 = arith.constant 0 : index
    %118 = vector.load %arg15[%c0_61, %c0_62] : memref<3x32xf32, #tpu.memory_space<vmem>>, vector<1x32xf32>
    %119 = vector.broadcast %118 : vector<1x32xf32> to vector<8x32xf32>
    %120 = arith.addf %117, %119 : vector<8x32xf32>
    %c1_63 = arith.constant 1 : index
    %c0_64 = arith.constant 0 : index
    %121 = vector.load %arg15[%c1_63, %c0_64] : memref<3x32xf32, #tpu.memory_space<vmem>>, vector<1x32xf32>
    %c2_65 = arith.constant 2 : index
    %c0_66 = arith.constant 0 : index
    %122 = vector.load %arg15[%c2_65, %c0_66] : memref<3x32xf32, #tpu.memory_space<vmem>>, vector<1x32xf32>
    %123 = arith.mulf %120, %120 : vector<8x32xf32>
    %124 = tpu.concatenate %120, %123 in 0 : vector<8x32xf32>, vector<8x32xf32> -> vector<16x32xf32>
    %c0_67 = arith.constant 0 : index
    %c0_68 = arith.constant 0 : index
    %125 = vector.load %arg16[%c0_67, %c0_68] : memref<32x4xf32, #tpu.memory_space<vmem>>, vector<32x4xf32>
    %cst_69 = arith.constant dense<0.000000e+00> : vector<16x4xf32>
    %126 = tpu.matmul %124, %125, %cst_69 {dimension_numbers = #tpu.dot_dimension_numbers<[1], [0], [0], [1], [0, 0, 1, 1], [], []>} : vector<16x32xf32>, vector<32x4xf32>, vector<16x4xf32> -> vector<16x4xf32>
    %127 = vector.extract_strided_slice %126 {offsets = [0, 0], sizes = [8, 4], strides = [1, 1]} : vector<16x4xf32> to vector<8x4xf32>
    %cst_70 = arith.constant 1.250000e-01 : f32
    %128 = vector.broadcast %cst_70 : f32 to vector<8x4xf32>
    %129 = arith.mulf %127, %128 : vector<8x4xf32>
    %130 = vector.extract_strided_slice %126 {offsets = [8, 0], sizes = [8, 4], strides = [1, 1]} : vector<16x4xf32> to vector<8x4xf32>
    %cst_71 = arith.constant 1.250000e-01 : f32
    %131 = vector.broadcast %cst_71 : f32 to vector<8x4xf32>
    %132 = arith.mulf %130, %131 : vector<8x4xf32>
    %133 = arith.mulf %129, %129 : vector<8x4xf32>
    %134 = arith.subf %132, %133 : vector<8x4xf32>
    %cst_72 = arith.constant 0.000000e+00 : f32
    %135 = vector.broadcast %cst_72 : f32 to vector<8x4xf32>
    %136 = arith.maximumf %134, %135 : vector<8x4xf32>
    %cst_73 = arith.constant 9.99999974E-6 : f32
    %137 = vector.broadcast %cst_73 : f32 to vector<8x4xf32>
    %138 = arith.addf %136, %137 : vector<8x4xf32>
    %139 = math.rsqrt %138 : vector<8x4xf32>
    %140 = tpu.concatenate %129, %139 in 0 : vector<8x4xf32>, vector<8x4xf32> -> vector<16x4xf32>
    %c0_74 = arith.constant 0 : index
    %c0_75 = arith.constant 0 : index
    %141 = vector.load %arg17[%c0_74, %c0_75] : memref<4x32xf32, #tpu.memory_space<vmem>>, vector<4x32xf32>
    %cst_76 = arith.constant dense<0.000000e+00> : vector<16x32xf32>
    %142 = tpu.matmul %140, %141, %cst_76 {dimension_numbers = #tpu.dot_dimension_numbers<[1], [0], [0], [1], [0, 0, 1, 1], [], []>} : vector<16x4xf32>, vector<4x32xf32>, vector<16x32xf32> -> vector<16x32xf32>
    %143 = vector.extract_strided_slice %142 {offsets = [0, 0], sizes = [8, 32], strides = [1, 1]} : vector<16x32xf32> to vector<8x32xf32>
    %144 = arith.subf %120, %143 : vector<8x32xf32>
    %145 = vector.extract_strided_slice %142 {offsets = [8, 0], sizes = [8, 32], strides = [1, 1]} : vector<16x32xf32> to vector<8x32xf32>
    %146 = vector.broadcast %121 : vector<1x32xf32> to vector<8x32xf32>
    %147 = arith.mulf %145, %146 : vector<8x32xf32>
    %148 = arith.mulf %144, %147 : vector<8x32xf32>
    %149 = vector.broadcast %122 : vector<1x32xf32> to vector<8x32xf32>
    %150 = arith.addf %148, %149 : vector<8x32xf32>
    %cst_77 = arith.constant 0.000000e+00 : f32
    %151 = vector.broadcast %cst_77 : f32 to vector<8x32xf32>
    %152 = arith.maximumf %150, %151 : vector<8x32xf32>
    %153 = arith.truncf %152 : vector<8x32xf32> to vector<8x32xbf16>
    %c0_78 = arith.constant 0 : index
    %c0_79 = arith.constant 0 : index
    %154 = vector.load %arg18[%c0_78, %c0_79] : memref<32x16xbf16, #tpu.memory_space<vmem>>, vector<32x16xbf16>
    %cst_80 = arith.constant dense<0.000000e+00> : vector<8x16xf32>
    %155 = tpu.matmul %153, %154, %cst_80 {dimension_numbers = #tpu.dot_dimension_numbers<[1], [0], [0], [1], [0, 0, 1, 1], [], []>} : vector<8x32xbf16>, vector<32x16xbf16>, vector<8x16xf32> -> vector<8x16xf32>
    %c0_81 = arith.constant 0 : index
    %c0_82 = arith.constant 0 : index
    %156 = vector.load %arg19[%c0_81, %c0_82] : memref<3x16xf32, #tpu.memory_space<vmem>>, vector<1x16xf32>
    %157 = vector.broadcast %156 : vector<1x16xf32> to vector<8x16xf32>
    %158 = arith.addf %155, %157 : vector<8x16xf32>
    %c1_83 = arith.constant 1 : index
    %c0_84 = arith.constant 0 : index
    %159 = vector.load %arg19[%c1_83, %c0_84] : memref<3x16xf32, #tpu.memory_space<vmem>>, vector<1x16xf32>
    %c2_85 = arith.constant 2 : index
    %c0_86 = arith.constant 0 : index
    %160 = vector.load %arg19[%c2_85, %c0_86] : memref<3x16xf32, #tpu.memory_space<vmem>>, vector<1x16xf32>
    %161 = arith.mulf %158, %158 : vector<8x16xf32>
    %162 = tpu.concatenate %158, %161 in 0 : vector<8x16xf32>, vector<8x16xf32> -> vector<16x16xf32>
    %c0_87 = arith.constant 0 : index
    %c0_88 = arith.constant 0 : index
    %163 = vector.load %arg20[%c0_87, %c0_88] : memref<16x4xf32, #tpu.memory_space<vmem>>, vector<16x4xf32>
    %cst_89 = arith.constant dense<0.000000e+00> : vector<16x4xf32>
    %164 = tpu.matmul %162, %163, %cst_89 {dimension_numbers = #tpu.dot_dimension_numbers<[1], [0], [0], [1], [0, 0, 1, 1], [], []>} : vector<16x16xf32>, vector<16x4xf32>, vector<16x4xf32> -> vector<16x4xf32>
    %165 = vector.extract_strided_slice %164 {offsets = [0, 0], sizes = [8, 4], strides = [1, 1]} : vector<16x4xf32> to vector<8x4xf32>
    %cst_90 = arith.constant 2.500000e-01 : f32
    %166 = vector.broadcast %cst_90 : f32 to vector<8x4xf32>
    %167 = arith.mulf %165, %166 : vector<8x4xf32>
    %168 = vector.extract_strided_slice %164 {offsets = [8, 0], sizes = [8, 4], strides = [1, 1]} : vector<16x4xf32> to vector<8x4xf32>
    %cst_91 = arith.constant 2.500000e-01 : f32
    %169 = vector.broadcast %cst_91 : f32 to vector<8x4xf32>
    %170 = arith.mulf %168, %169 : vector<8x4xf32>
    %171 = arith.mulf %167, %167 : vector<8x4xf32>
    %172 = arith.subf %170, %171 : vector<8x4xf32>
    %cst_92 = arith.constant 0.000000e+00 : f32
    %173 = vector.broadcast %cst_92 : f32 to vector<8x4xf32>
    %174 = arith.maximumf %172, %173 : vector<8x4xf32>
    %cst_93 = arith.constant 9.99999974E-6 : f32
    %175 = vector.broadcast %cst_93 : f32 to vector<8x4xf32>
    %176 = arith.addf %174, %175 : vector<8x4xf32>
    %177 = math.rsqrt %176 : vector<8x4xf32>
    %178 = tpu.concatenate %167, %177 in 0 : vector<8x4xf32>, vector<8x4xf32> -> vector<16x4xf32>
    %c0_94 = arith.constant 0 : index
    %c0_95 = arith.constant 0 : index
    %179 = vector.load %arg21[%c0_94, %c0_95] : memref<4x16xf32, #tpu.memory_space<vmem>>, vector<4x16xf32>
    %cst_96 = arith.constant dense<0.000000e+00> : vector<16x16xf32>
    %180 = tpu.matmul %178, %179, %cst_96 {dimension_numbers = #tpu.dot_dimension_numbers<[1], [0], [0], [1], [0, 0, 1, 1], [], []>} : vector<16x4xf32>, vector<4x16xf32>, vector<16x16xf32> -> vector<16x16xf32>
    %181 = vector.extract_strided_slice %180 {offsets = [0, 0], sizes = [8, 16], strides = [1, 1]} : vector<16x16xf32> to vector<8x16xf32>
    %182 = arith.subf %158, %181 : vector<8x16xf32>
    %183 = vector.extract_strided_slice %180 {offsets = [8, 0], sizes = [8, 16], strides = [1, 1]} : vector<16x16xf32> to vector<8x16xf32>
    %184 = vector.broadcast %159 : vector<1x16xf32> to vector<8x16xf32>
    %185 = arith.mulf %183, %184 : vector<8x16xf32>
    %186 = arith.mulf %182, %185 : vector<8x16xf32>
    %187 = vector.broadcast %160 : vector<1x16xf32> to vector<8x16xf32>
    %188 = arith.addf %186, %187 : vector<8x16xf32>
    %cst_97 = arith.constant 0.000000e+00 : f32
    %189 = vector.broadcast %cst_97 : f32 to vector<8x16xf32>
    %190 = arith.maximumf %188, %189 : vector<8x16xf32>
    %191 = arith.truncf %190 : vector<8x16xf32> to vector<8x16xbf16>
    %c0_98 = arith.constant 0 : index
    %c0_99 = arith.constant 0 : index
    %192 = vector.load %arg22[%c0_98, %c0_99] : memref<16x64xbf16, #tpu.memory_space<vmem>>, vector<16x64xbf16>
    %cst_100 = arith.constant dense<0.000000e+00> : vector<8x64xf32>
    %193 = tpu.matmul %191, %192, %cst_100 {dimension_numbers = #tpu.dot_dimension_numbers<[1], [0], [0], [1], [0, 0, 1, 1], [], []>} : vector<8x16xbf16>, vector<16x64xbf16>, vector<8x64xf32> -> vector<8x64xf32>
    %c0_101 = arith.constant 0 : index
    %c0_102 = arith.constant 0 : index
    %194 = vector.load %arg23[%c0_101, %c0_102] : memref<1x64xf32, #tpu.memory_space<vmem>>, vector<1x64xf32>
    %195 = vector.broadcast %194 : vector<1x64xf32> to vector<8x64xf32>
    %196 = arith.addf %193, %195 : vector<8x64xf32>
    %cst_103 = arith.constant 0.000000e+00 : f32
    %197 = vector.broadcast %cst_103 : f32 to vector<8x64xf32>
    %198 = arith.maximumf %196, %197 : vector<8x64xf32>
    %199 = arith.truncf %198 : vector<8x64xf32> to vector<8x64xbf16>
    %c0_104 = arith.constant 0 : index
    %c0_105 = arith.constant 0 : index
    %200 = vector.load %arg24[%c0_104, %c0_105] : memref<64x32xbf16, #tpu.memory_space<vmem>>, vector<64x32xbf16>
    %cst_106 = arith.constant dense<0.000000e+00> : vector<8x32xf32>
    %201 = tpu.matmul %199, %200, %cst_106 {dimension_numbers = #tpu.dot_dimension_numbers<[1], [0], [0], [1], [0, 0, 1, 1], [], []>} : vector<8x64xbf16>, vector<64x32xbf16>, vector<8x32xf32> -> vector<8x32xf32>
    %c0_107 = arith.constant 0 : index
    %c0_108 = arith.constant 0 : index
    %202 = vector.load %arg25[%c0_107, %c0_108] : memref<1x32xf32, #tpu.memory_space<vmem>>, vector<1x32xf32>
    %203 = vector.broadcast %202 : vector<1x32xf32> to vector<8x32xf32>
    %204 = arith.addf %201, %203 : vector<8x32xf32>
    %cst_109 = arith.constant 0.000000e+00 : f32
    %205 = vector.broadcast %cst_109 : f32 to vector<8x32xf32>
    %206 = arith.maximumf %204, %205 : vector<8x32xf32>
    %c0_110 = arith.constant 0 : index
    %c0_111 = arith.constant 0 : index
    %207 = vector.load %arg26[%c0_110, %c0_111] : memref<8x32xf32, #tpu.memory_space<vmem>>, vector<8x32xf32>
    tpu.vector_store %arg26[%c0_110, %c0_111], %206 {strides = array<i32>} : memref<8x32xf32, #tpu.memory_space<vmem>>, vector<8x32xf32>,
    return
  }
  func.func @transform_0(%arg0: i32) -> (i32, i32) {
    %c0_i32 = arith.constant 0 : i32
    %c0_i32_0 = arith.constant 0 : i32
    return %arg0, %c0_i32 : i32, i32
  }
  func.func @transform_1(%arg0: i32) -> (i32, i32) {
    %c0_i32 = arith.constant 0 : i32
    %c0_i32_0 = arith.constant 0 : i32
    %c0_i32_1 = arith.constant 0 : i32
    return %c0_i32, %c0_i32_0 : i32, i32
  }
  func.func @transform_2(%arg0: i32) -> (i32, i32) {
    %c0_i32 = arith.constant 0 : i32
    %c0_i32_0 = arith.constant 0 : i32
    %c0_i32_1 = arith.constant 0 : i32
    return %c0_i32, %c0_i32_0 : i32, i32
  }
  func.func @transform_3(%arg0: i32) -> (i32, i32) {
    %c0_i32 = arith.constant 0 : i32
    %c0_i32_0 = arith.constant 0 : i32
    %c0_i32_1 = arith.constant 0 : i32
    return %c0_i32, %c0_i32_0 : i32, i32
  }
  func.func @transform_4(%arg0: i32) -> (i32, i32) {
    %c0_i32 = arith.constant 0 : i32
    %c0_i32_0 = arith.constant 0 : i32
    %c0_i32_1 = arith.constant 0 : i32
    return %c0_i32, %c0_i32_0 : i32, i32
  }
  func.func @transform_5(%arg0: i32) -> (i32, i32) {
    %c0_i32 = arith.constant 0 : i32
    %c0_i32_0 = arith.constant 0 : i32
    %c0_i32_1 = arith.constant 0 : i32
    return %c0_i32, %c0_i32_0 : i32, i32
  }
  func.func @transform_6(%arg0: i32) -> (i32, i32) {
    %c0_i32 = arith.constant 0 : i32
    %c0_i32_0 = arith.constant 0 : i32
    %c0_i32_1 = arith.constant 0 : i32
    return %c0_i32, %c0_i32_0 : i32, i32
  }
  func.func @transform_7(%arg0: i32) -> (i32, i32) {
    %c0_i32 = arith.constant 0 : i32
    %c0_i32_0 = arith.constant 0 : i32
    %c0_i32_1 = arith.constant 0 : i32
    return %c0_i32, %c0_i32_0 : i32, i32
  }
  func.func @transform_8(%arg0: i32) -> (i32, i32) {
    %c0_i32 = arith.constant 0 : i32
    %c0_i32_0 = arith.constant 0 : i32
    %c0_i32_1 = arith.constant 0 : i32
    return %c0_i32, %c0_i32_0 : i32, i32
  }
  func.func @transform_9(%arg0: i32) -> (i32, i32) {
    %c0_i32 = arith.constant 0 : i32
    %c0_i32_0 = arith.constant 0 : i32
    %c0_i32_1 = arith.constant 0 : i32
    return %c0_i32, %c0_i32_0 : i32, i32
  }
  func.func @transform_10(%arg0: i32) -> (i32, i32) {
    %c0_i32 = arith.constant 0 : i32
    %c0_i32_0 = arith.constant 0 : i32
    %c0_i32_1 = arith.constant 0 : i32
    return %c0_i32, %c0_i32_0 : i32, i32
  }
  func.func @transform_11(%arg0: i32) -> (i32, i32) {
    %c0_i32 = arith.constant 0 : i32
    %c0_i32_0 = arith.constant 0 : i32
    %c0_i32_1 = arith.constant 0 : i32
    return %c0_i32, %c0_i32_0 : i32, i32
  }
  func.func @transform_12(%arg0: i32) -> (i32, i32) {
    %c0_i32 = arith.constant 0 : i32
    %c0_i32_0 = arith.constant 0 : i32
    %c0_i32_1 = arith.constant 0 : i32
    return %c0_i32, %c0_i32_0 : i32, i32
  }
  func.func @transform_13(%arg0: i32) -> (i32, i32) {
    %c0_i32 = arith.constant 0 : i32
    %c0_i32_0 = arith.constant 0 : i32
    %c0_i32_1 = arith.constant 0 : i32
    return %c0_i32, %c0_i32_0 : i32, i32
  }
  func.func @transform_14(%arg0: i32) -> (i32, i32) {
    %c0_i32 = arith.constant 0 : i32
    %c0_i32_0 = arith.constant 0 : i32
    %c0_i32_1 = arith.constant 0 : i32
    return %c0_i32, %c0_i32_0 : i32, i32
  }
  func.func @transform_15(%arg0: i32) -> (i32, i32) {
    %c0_i32 = arith.constant 0 : i32
    %c0_i32_0 = arith.constant 0 : i32
    %c0_i32_1 = arith.constant 0 : i32
    return %c0_i32, %c0_i32_0 : i32, i32
  }
  func.func @transform_16(%arg0: i32) -> (i32, i32) {
    %c0_i32 = arith.constant 0 : i32
    %c0_i32_0 = arith.constant 0 : i32
    %c0_i32_1 = arith.constant 0 : i32
    return %c0_i32, %c0_i32_0 : i32, i32
  }
  func.func @transform_17(%arg0: i32) -> (i32, i32) {
    %c0_i32 = arith.constant 0 : i32
    %c0_i32_0 = arith.constant 0 : i32
    %c0_i32_1 = arith.constant 0 : i32
    return %c0_i32, %c0_i32_0 : i32, i32
  }
  func.func @transform_18(%arg0: i32) -> (i32, i32) {
    %c0_i32 = arith.constant 0 : i32
    %c0_i32_0 = arith.constant 0 : i32
    %c0_i32_1 = arith.constant 0 : i32
    return %c0_i32, %c0_i32_0 : i32, i32
  }
  func.func @transform_19(%arg0: i32) -> (i32, i32) {
    %c0_i32 = arith.constant 0 : i32
    %c0_i32_0 = arith.constant 0 : i32
    %c0_i32_1 = arith.constant 0 : i32
    return %c0_i32, %c0_i32_0 : i32, i32
  }
  func.func @transform_20(%arg0: i32) -> (i32, i32) {
    %c0_i32 = arith.constant 0 : i32
    %c0_i32_0 = arith.constant 0 : i32
    %c0_i32_1 = arith.constant 0 : i32
    return %c0_i32, %c0_i32_0 : i32, i32
  }
  func.func @transform_21(%arg0: i32) -> (i32, i32) {
    %c0_i32 = arith.constant 0 : i32
    %c0_i32_0 = arith.constant 0 : i32
    %c0_i32_1 = arith.constant 0 : i32
    return %c0_i32, %c0_i32_0 : i32, i32
  }
  func.func @transform_22(%arg0: i32) -> (i32, i32) {
    %c0_i32 = arith.constant 0 : i32
    %c0_i32_0 = arith.constant 0 : i32
    %c0_i32_1 = arith.constant 0 : i32
    return %c0_i32, %c0_i32_0 : i32, i32
  }
  func.func @transform_23(%arg0: i32) -> (i32, i32) {
    %c0_i32 = arith.constant 0 : i32
    %c0_i32_0 = arith.constant 0 : i32
    %c0_i32_1 = arith.constant 0 : i32
    return %c0_i32, %c0_i32_0 : i32, i32
  }
  func.func @transform_24(%arg0: i32) -> (i32, i32) {
    %c0_i32 = arith.constant 0 : i32
    %c0_i32_0 = arith.constant 0 : i32
    %c0_i32_1 = arith.constant 0 : i32
    return %c0_i32, %c0_i32_0 : i32, i32
  }
  func.func @transform_25(%arg0: i32) -> (i32, i32) {
    %c0_i32 = arith.constant 0 : i32
    %c0_i32_0 = arith.constant 0 : i32
    return %arg0, %c0_i32 : i32, i32
  }
}

</mosaic_0001>

<bundles_post_ra>
// kernel: tpu_custom_call.1
= control target key start
LH: loop header
LB: loop body
LE: loop exit
PB: predicated region body
PF: predicated region fallthrough
CT: control target
= control target key end

     0   :  { %s15921_s0 = inlined_call_operand.hbm [shape: f32[16,2048], index: 0, kind: input, shape index: {}]   ;;  %s15922_s1 = inlined_call_operand.hbm [shape: bf16[2048,1024], index: 1, kind: input, shape index: {}]   ;;  %s15923_s2 = inlined_call_operand.hbm [shape: f32[3,1024], index: 2, kind: input, shape index: {}]   ;;  %s15924_s3 = inlined_call_operand.vmem [shape: f32[1024,4], index: 3, kind: input, shape index: {}]   ;;  %s15925_s4 = inlined_call_operand.hbm [shape: f32[4,1024], index: 4, kind: input, shape index: {}]   ;;  %s15926_s5 = inlined_call_operand.hbm [shape: bf16[1024,256], index: 5, kind: input, shape index: {}]   ;;  %s15927_s6 = inlined_call_operand.hbm [shape: f32[3,256], index: 6, kind: input, shape index: {}]   ;;  %s15928_s7 = inlined_call_operand.vmem [shape: f32[256,4], index: 7, kind: input, shape index: {}]   ;;  %s15929_s8 = inlined_call_operand.hbm [shape: f32[4,256], index: 8, kind: input, shape index: {}]   ;;  %s15930_s9 = inlined_call_operand.vmem [shape: bf16[256,64], index: 9, kind: input, shape index: {}]   ;;  %s15931_s10 = inlined_call_operand.hbm [shape: f32[3,64], index: 10, kind: input, shape index: {}]   ;;  %s15932_s11 = inlined_call_operand.vmem [shape: f32[64,4], index: 11, kind: input, shape index: {}]   ;;  %s15933_s12 = inlined_call_operand.hbm [shape: f32[4,64], index: 12, kind: input, shape index: {}]   ;;  %s15934_s13 = inlined_call_operand.vmem [shape: bf16[64,32], index: 13, kind: input, shape index: {}]   ;;  %s15935_s14 = inlined_call_operand.hbm [shape: f32[3,32], index: 14, kind: input, shape index: {}]   ;;  %s15936_s15 = inlined_call_operand.vmem [shape: f32[32,4], index: 15, kind: input, shape index: {}]   ;;  %s15937_s16 = inlined_call_operand.hbm [shape: f32[4,32], index: 16, kind: input, shape index: {}]   ;;  %s15938_s17 = inlined_call_operand.vmem [shape: bf16[32,16], index: 17, kind: input, shape index: {}]   ;;  %s15939_s18 = inlined_call_operand.hbm [shape: f32[3,16], index: 18, kind: input, shape index: {}]   ;;  %s15940_s19 = inlined_call_operand.vmem [shape: f32[16,4], index: 19, kind: input, shape index: {}]   ;;  %s15941_s20 = inlined_call_operand.hbm [shape: f32[4,16], index: 20, kind: input, shape index: {}]   ;;  %s15942_s21 = inlined_call_operand.hbm [shape: bf16[16,64], index: 21, kind: input, shape index: {}]   ;;  %s15943_s22 = inlined_call_operand.hbm [shape: f32[1,64], index: 22, kind: input, shape index: {}]   ;;  %s15944_s23 = inlined_call_operand.vmem [shape: bf16[64,32], index: 23, kind: input, shape index: {}]   ;;  %s15945_s24 = inlined_call_operand.hbm [shape: f32[1,32], index: 24, kind: input, shape index: {}]   ;;  %s15946_s25 = inlined_call_operand.hbm [shape: f32[16,32], index: 25, kind: output, shape index: {}]  }
   0x1   :  { %15963 = sst [smem:[#allocation39_spill]] %s15921_s0 }
   0x2   :  { %15964 = sst [smem:[#allocation40_spill]] %s15922_s1 }
   0x3   :  { %15965 = sst [smem:[#allocation41_spill]] %s15923_s2 }
   0x4   :  { %15966 = sst [smem:[#allocation42_spill]] %s15924_s3 }
   0x5   :  { %15967 = sst [smem:[#allocation43_spill]] %s15925_s4 }
   0x6   :  { %15968 = sst [smem:[#allocation44_spill]] %s15926_s5 }
   0x7   :  { %15969 = sst [smem:[#allocation45_spill]] %s15927_s6 }
   0x8   :  { %15970 = sst [smem:[#allocation46_spill]] %s15928_s7 }
   0x9   :  { %15971 = sst [smem:[#allocation47_spill]] %s15929_s8 }
   0xa   :  { %15972 = sst [smem:[#allocation48_spill]] %s15930_s9 }
   0xb   :  { %15973 = sst [smem:[#allocation49_spill]] %s15931_s10 }
   0xc   :  { %15974 = sst [smem:[#allocation50_spill]] %s15933_s12 }
   0xd   :  { %15975 = sst [smem:[#allocation51_spill]] %s15935_s14 }
   0xe   :  { %15976 = sst [smem:[#allocation52_spill]] %s15936_s15 }
   0xf   :  { %15977 = sst [smem:[#allocation53_spill]] %s15937_s16 }
  0x10   :  { %15978 = sst [smem:[#allocation54_spill]] %s15938_s17 }
  0x11   :  { %15979 = sst [smem:[#allocation55_spill]] %s15939_s18 }
  0x12   :  { %15980 = sst [smem:[#allocation56_spill]] %s15940_s19 }
  0x13   :  { %15981 = sst [smem:[#allocation57_spill]] %s15941_s20 }
  0x14   :  { %15982 = sst [smem:[#allocation58_spill]] %s15944_s23 }
  0x15   :  { %15983 = sst [smem:[#allocation59_spill]] %s15946_s25 }
  0x16   :  { %30 = vsyncpa [#allocation3], 0 }
  0x17   :  { %32 = vsyncpa [#allocation3 + $0x1], 0 }
  0x18   :  { %33 = vsyncpa [#allocation6], 0 }
  0x19   :  { %34 = vsyncpa [#allocation9], 0 }
  0x1a   :  { %35 = vsyncpa [#allocation12], 0 }
  0x1b   :  { %36 = vsyncpa [#allocation15], 0 }
  0x1c   :  { %37 = vsyncpa [#allocation18], 0 }
  0x1d   :  { %38 = vsyncpa [#allocation21], 0 }
  0x1e   :  { %39 = vsyncpa [#allocation24], 0 }
  0x1f   :  { %40 = vsyncpa [#allocation27], 0 }
  0x20   :  { %41 = vsyncpa [#allocation4], 0 }
  0x21   :  { %43 = vsyncpa [#allocation4 + $0x1], 0  ;;  %s14622_s29 = smov 0   ;;  %s14624_s2 = smov 0  }
  0x22   :  { %s14626_s6 = smov 0   ;;  %s14628_s30 = smov 0  }
  0x23 LB: > { %s14467_s7 = smov [#allocation5]   ;;  %s14643_s26 = sadd.s32 4294967295, %s14465_s30   ;;  %s14465_s30 = sphi %s14628_s30, %s16037_s30   ;;  %s14461_s6 = sphi %s14626_s6, %s16036_s6   ;;  %s14457_s2 = sphi %s14624_s2, %s16035_s2   ;;  %s14453_s29 = sphi %s14622_s29, %s16034_s29  }
  0x24   : > { %s622_s3 = sshll.u32 %s14467_s7, 4  ;;  %p11891_p0 = scmp.ge.s32.totalorder %s14465_s30, 1  ;;  %s623_s3 = int_to_ptr.vmem [resolvable:$true] %s622_s3 }
  0x25   : > { %p15954_p1 = scmp.eq.s32.totalorder %s14643_s26, 0  ;;  %p610_p2 = scmp.lt.s32.totalorder %s14465_s30, 3 }
  0x26   : > { %s14468_s8 = smov [#allocation8]   ;;  %s14469_s28 = smov [#allocation11]  }
  0x27   : > { %p14648_p3 = pnand %p11891_p0, %p610_p2  ;;  %s650_s27 = sshll.u32 %s14468_s8, 4  ;;  %s651_s27 = int_to_ptr.vmem [resolvable:$true] %s650_s27 }
  0x28   : > { %s674_s9 = sshll.u32 %s14469_s28, 4  ;;  %s13962_s0 = scalar_lea.vmem %s623_s3, 131072  ;;  %s14661_s9 = int_to_ptr.vmem [resolvable:$true] %s674_s9 }
  0x29   : > { %s15984_s1 = scalar_select %p14648_p3, 1, 0 }
  0x2a   : > { %p13573_p5 = pneg %p14648_p3  ;;  %p13963_p8 = scmp.ne.s32.totalorder %s623_s3, %s13962_s0 }
  0x2b   : > { %p13970_p11 = scmp.lt.s32.totalorder %s623_s3, %s623_s3  ;;  %p13971_p12 = scmp.lt.s32.totalorder %s13962_s0, %s13962_s0 }
  0x2c   : > { %p14657_p6 = pnand %p13573_p5, %p15954_p1 }
  0x2d   : > { %p13972_p13 = por %p13971_p12, %p13970_p11 }
  0x2e   : > { %p14665_p7 = pneg %p14657_p6 }
  0x30   : > { %p13965_p9 = pnand %p13963_p8, %p14665_p7 }
  0x32   : > { %p13966_p10 = pneg %p13965_p9 }
  0x34   : > { %p13973_p0 = pnand %p13972_p13, %p13966_p10 }
  0x36   : > { %13976 = shalt.err (!%p13973_p0)
}
  0x37   : > { %s14470_s7 = smov 512   ;;  %s14471_s8 = smov 32  }
  0x38   : > { %s15987_s23 = sld [smem:[#allocation40_spill]]  ;;  %s13988_s19 = scalar_lea.vmem %s651_s27, 512 }
  0x39   : > { %p13989_p2 = scmp.ne.s32.totalorder %s651_s27, %s13988_s19  ;;  %p13996_p9 = scmp.lt.s32.totalorder %s651_s27, %s651_s27 }
  0x3a   : > { %p13997_p4 = scmp.lt.s32.totalorder %s13988_s19, %s13988_s19 }
  0x3b   : > { %p13991_p5 = pnand %p13989_p2, %p14665_p7 }
  0x3c   : > { %p13998_p1 = por %p13997_p4, %p13996_p9 }
  0x3d   : > { %p13992_p8 = pneg %p13991_p5 }
  0x3e   : > { %13576 = dma.hbm_to_vmem [thread:$0]  (!%p14657_p6), %s15987_s23, 131072, %s623_s3, [#allocation6], %s14470_s7, %s14470_s7, %s14471_s8  }
  0x3f   : > { %p13999_p11 = pnand %p13998_p1, %p13992_p8 }
  0x41   : > { %14002 = shalt.err (!%p13999_p11)
}
  0x42   : > { %s15988_s15 = sld [smem:[#allocation43_spill]]  ;;  %s14014_s23 = scalar_lea.vmem %s14661_s9, 128 }
  0x43   : > { %p14015_p10 = scmp.ne.s32.totalorder %s14661_s9, %s14014_s23  ;;  %p14022_p0 = scmp.lt.s32.totalorder %s14661_s9, %s14661_s9 }
  0x44   : > { %p14023_p4 = scmp.lt.s32.totalorder %s14014_s23, %s14014_s23 }
  0x45   : > { %p14017_p12 = pnand %p14015_p10, %p14665_p7 }
  0x46   : > { %p14024_p1 = por %p14023_p4, %p14022_p0 }
  0x47   : > { %p14018_p13 = pneg %p14017_p12 }
  0x48   : > { %13582 = dma.hbm_to_vmem [thread:$0]  (!%p14657_p6), %s15988_s15, 512, %s651_s27, [#allocation9]  }
  0x49   : > { %p14025_p2 = pnand %p14024_p1, %p14018_p13 }
  0x4b   : > { %14028 = shalt.err (!%p14025_p2)
}
  0x4c   : > { %s15989_s25 = sld [smem:[#allocation45_spill]]  ;;  %s14472_s15 = smov [#allocation14]  }
  0x4d   : > { %s702_s3 = sshll.u32 %s14472_s15, 4  ;;  %s14473_s27 = smov [#allocation17]   ;;  %s703_s3 = int_to_ptr.vmem [resolvable:$true] %s702_s3 }
  0x4e   : > { %s730_s7 = sshll.u32 %s14473_s27, 4  ;;  %s14040_s8 = scalar_lea.vmem %s703_s3, 64  ;;  %s731_s7 = int_to_ptr.vmem [resolvable:$true] %s730_s7 }
  0x4f   : > { %p14041_p5 = scmp.ne.s32.totalorder %s703_s3, %s14040_s8  ;;  %p14048_p11 = scmp.lt.s32.totalorder %s703_s3, %s703_s3 }
  0x50   : > { %p14049_p10 = scmp.lt.s32.totalorder %s14040_s8, %s14040_s8 }
  0x51   : > { %p14043_p8 = pnand %p14041_p5, %p14665_p7 }
  0x52   : > { %13588 = dma.hbm_to_vmem [thread:$0]  (!%p14657_p6), %s15989_s25, 128, %s14661_s9, [#allocation12]  }
  0x53   : > { %p14044_p9 = pneg %p14043_p8  ;;  %p14050_p12 = por %p14049_p10, %p14048_p11 }
  0x55   : > { %p14051_p13 = pnand %p14050_p12, %p14044_p9 }
  0x57   : > { %14054 = shalt.err (!%p14051_p13)
}
  0x58   : > { %s15990_s10 = sld [smem:[#allocation49_spill]]  ;;  %s14066_s9 = scalar_lea.vmem %s731_s7, 64 }
  0x59   : > { %p14067_p0 = scmp.ne.s32.totalorder %s731_s7, %s14066_s9  ;;  %p14074_p2 = scmp.lt.s32.totalorder %s731_s7, %s731_s7 }
  0x5a   : > { %p14075_p5 = scmp.lt.s32.totalorder %s14066_s9, %s14066_s9 }
  0x5b   : > { %p14069_p4 = pnand %p14067_p0, %p14665_p7 }
  0x5c   : > { %p14076_p8 = por %p14075_p5, %p14074_p2 }
  0x5d   : > { %p14070_p1 = pneg %p14069_p4 }
  0x5e   : > { %13594 = dma.hbm_to_vmem [thread:$0]  (!%p14657_p6), %s15990_s10, 64, %s703_s3, [#allocation15]  }
  0x5f   : > { %p14077_p3 = pnand %p14076_p8, %p14070_p1 }
  0x61   : > { %14080 = shalt.err (!%p14077_p3)
}
  0x62   : > { %s15991_s14 = sld [smem:[#allocation51_spill]]  ;;  %s14474_s19 = smov [#allocation20]  }
  0x63   : > { %s758_s25 = sshll.u32 %s14474_s19, 4  ;;  %s14475_s15 = smov [#allocation23]   ;;  %s759_s25 = int_to_ptr.vmem [resolvable:$true] %s758_s25 }
  0x64   : > { %s782_s3 = sshll.u32 %s14475_s15, 4  ;;  %s14092_s27 = scalar_lea.vmem %s759_s25, 64  ;;  %s783_s3 = int_to_ptr.vmem [resolvable:$true] %s782_s3 }
  0x65   : > { %p14093_p9 = scmp.ne.s32.totalorder %s759_s25, %s14092_s27  ;;  %p14100_p12 = scmp.lt.s32.totalorder %s759_s25, %s759_s25 }
  0x66   : > { %p14101_p13 = scmp.lt.s32.totalorder %s14092_s27, %s14092_s27 }
  0x67   : > { %p14095_p11 = pnand %p14093_p9, %p14665_p7 }
  0x68   : > { %13600 = dma.hbm_to_vmem [thread:$0]  (!%p14657_p6), %s15991_s14, 64, %s731_s7, [#allocation18]  }
  0x69   : > { %p14096_p10 = pneg %p14095_p11  ;;  %p14102_p3 = por %p14101_p13, %p14100_p12 }
  0x6b   : > { %p14103_p0 = pnand %p14102_p3, %p14096_p10 }
  0x6d   : > { %14106 = shalt.err (!%p14103_p0)
}
  0x6e   : > { %s15992_s18 = sld [smem:[#allocation55_spill]]  ;;  %s14118_s7 = scalar_lea.vmem %s783_s3, 128 }
  0x6f   : > { %p14119_p4 = scmp.ne.s32.totalorder %s783_s3, %s14118_s7  ;;  %p14126_p5 = scmp.lt.s32.totalorder %s783_s3, %s783_s3 }
  0x70   : > { %p14127_p8 = scmp.lt.s32.totalorder %s14118_s7, %s14118_s7 }
  0x71   : > { %p14121_p1 = pnand %p14119_p4, %p14665_p7 }
  0x72   : > { %p14128_p9 = por %p14127_p8, %p14126_p5 }
  0x73   : > { %p14122_p2 = pneg %p14121_p1 }
  0x74   : > { %13606 = dma.hbm_to_vmem [thread:$0]  (!%p14657_p6), %s15992_s18, 64, %s759_s25, [#allocation21]  }
  0x75   : > { %p14129_p11 = pnand %p14128_p9, %p14122_p2 }
  0x77   : > { %14132 = shalt.err (!%p14129_p11)
}
  0x78   : > { %s14476_s0 = smov 64   ;;  %s14477_s9 = smov 4  }
  0x79   : > { %13612 = dma.hbm_to_vmem [thread:$0]  (!%p14657_p6), %s15942_s21, 128, %s783_s3, [#allocation24], %s14476_s0, %s14476_s0, %s14477_s9  }
  0x7a   : > { %s14478_s19 = smov [#allocation7]   ;;  %s14479_s15 = smov [#allocation10]  }
  0x7b   : > { %s636_s25 = sshll.u32 %s14478_s19, 4  ;;  %s660_s27 = sshll.u32 %s14479_s15, 4  ;;  %s637_s25 = int_to_ptr.vmem [resolvable:$true] %s636_s25  ;;  %s661_s27 = int_to_ptr.vmem [resolvable:$true] %s660_s27 }
  0x7c   : > { %s14144_s8 = scalar_lea.vmem %s637_s25, 512  ;;  %p14152_p3 = scmp.lt.s32.totalorder %s637_s25, %s637_s25 }
  0x7d   : > { %p14145_p10 = scmp.ne.s32.totalorder %s637_s25, %s14144_s8  ;;  %p14153_p0 = scmp.lt.s32.totalorder %s14144_s8, %s14144_s8 }
  0x7f   : > { %p14147_p12 = pnand %p14145_p10, %p14665_p7  ;;  %p14154_p4 = por %p14153_p0, %p14152_p3 }
  0x81   : > { %p14148_p13 = pneg %p14147_p12 }
  0x83   : > { %p14155_p1 = pnand %p14154_p4, %p14148_p13 }
  0x85   : > { %14158 = shalt.err (!%p14155_p1)
}
  0x86   : > { %s15993_s3 = sld [smem:[#allocation41_spill]]  ;;  %s14170_s0 = scalar_lea.vmem %s661_s27, 16384 }
  0x87   : > { %p14171_p2 = scmp.ne.s32.totalorder %s661_s27, %s14170_s0  ;;  %p14178_p9 = scmp.lt.s32.totalorder %s661_s27, %s661_s27 }
  0x88   : > { %p14179_p11 = scmp.lt.s32.totalorder %s14170_s0, %s14170_s0 }
  0x89   : > { %p14173_p5 = pnand %p14171_p2, %p14665_p7 }
  0x8a   : > { %p14180_p10 = por %p14179_p11, %p14178_p9 }
  0x8b   : > { %p14174_p8 = pneg %p14173_p5 }
  0x8c   : > { %13579 = dma.hbm_to_vmem [thread:$0]  (!%p14657_p6), %s15993_s3, 512, %s637_s25, [#allocation6]  }
  0x8d   : > { %p14181_p12 = pnand %p14180_p10, %p14174_p8 }
  0x8f   : > { %14184 = shalt.err (!%p14181_p12)
}
  0x90   : > { %s14480_s9 = smov 128   ;;  %s14481_s23 = smov 8  }
  0x91   : > { %s15994_s15 = sld [smem:[#allocation44_spill]]  ;;  %s14482_s25 = smov [#allocation13]  }
  0x92   : > { %s688_s8 = sshll.u32 %s14482_s25, 4  ;;  %s14483_s28 = smov [#allocation16]   ;;  %s689_s8 = int_to_ptr.vmem [resolvable:$true] %s688_s8 }
  0x93   : > { %s716_s7 = sshll.u32 %s14483_s28, 4  ;;  %s14196_s3 = scalar_lea.vmem %s689_s8, 128  ;;  %s717_s7 = int_to_ptr.vmem [resolvable:$true] %s716_s7 }
  0x94   : > { %p14197_p13 = scmp.ne.s32.totalorder %s689_s8, %s14196_s3  ;;  %p14204_p4 = scmp.lt.s32.totalorder %s689_s8, %s689_s8 }
  0x95   : > { %p14205_p1 = scmp.lt.s32.totalorder %s14196_s3, %s14196_s3 }
  0x96   : > { %p14199_p3 = pnand %p14197_p13, %p14665_p7 }
  0x97   : > { %13585 = dma.hbm_to_vmem [thread:$0]  (!%p14657_p6), %s15994_s15, 16384, %s661_s27, [#allocation9], %s14480_s9, %s14480_s9, %s14481_s23  }
  0x98   : > { %p14200_p0 = pneg %p14199_p3  ;;  %p14206_p2 = por %p14205_p1, %p14204_p4 }
  0x9a   : > { %p14207_p5 = pnand %p14206_p2, %p14200_p0 }
  0x9c   : > { %14210 = shalt.err (!%p14207_p5)
}
  0x9d   : > { %s15995_s27 = sld [smem:[#allocation47_spill]]  ;;  %s14222_s9 = scalar_lea.vmem %s717_s7, 64 }
  0x9e   : > { %p14223_p8 = scmp.ne.s32.totalorder %s717_s7, %s14222_s9  ;;  %p14230_p10 = scmp.lt.s32.totalorder %s717_s7, %s717_s7 }
  0x9f   : > { %p14231_p12 = scmp.lt.s32.totalorder %s14222_s9, %s14222_s9 }
  0xa0   : > { %p14225_p9 = pnand %p14223_p8, %p14665_p7 }
  0xa1   : > { %p14232_p13 = por %p14231_p12, %p14230_p10 }
  0xa2   : > { %p14226_p11 = pneg %p14225_p9 }
  0xa3   : > { %13591 = dma.hbm_to_vmem [thread:$0]  (!%p14657_p6), %s15995_s27, 128, %s689_s8, [#allocation12]  }
  0xa4   : > { %p14233_p3 = pnand %p14232_p13, %p14226_p11 }
  0xa6   : > { %14236 = shalt.err (!%p14233_p3)
}
  0xa7   : > { %s15996_s12 = sld [smem:[#allocation50_spill]]  ;;  %s14484_s15 = smov [#allocation19]  }
  0xa8   : > { %s744_s25 = sshll.u32 %s14484_s15, 4  ;;  %s14485_s8 = smov [#allocation22]   ;;  %s745_s25 = int_to_ptr.vmem [resolvable:$true] %s744_s25 }
  0xa9   : > { %s772_s28 = sshll.u32 %s14485_s8, 4  ;;  %s14248_s3 = scalar_lea.vmem %s745_s25, 64  ;;  %s773_s28 = int_to_ptr.vmem [resolvable:$true] %s772_s28 }
  0xaa   : > { %p14249_p0 = scmp.ne.s32.totalorder %s745_s25, %s14248_s3  ;;  %p14256_p2 = scmp.lt.s32.totalorder %s745_s25, %s745_s25 }
  0xab   : > { %p14257_p5 = scmp.lt.s32.totalorder %s14248_s3, %s14248_s3 }
  0xac   : > { %p14251_p4 = pnand %p14249_p0, %p14665_p7 }
  0xad   : > { %13597 = dma.hbm_to_vmem [thread:$0]  (!%p14657_p6), %s15996_s12, 64, %s717_s7, [#allocation15]  }
  0xae   : > { %p14252_p1 = pneg %p14251_p4  ;;  %p14258_p8 = por %p14257_p5, %p14256_p2 }
  0xb0   : > { %p14259_p9 = pnand %p14258_p8, %p14252_p1 }
  0xb2   : > { %14262 = shalt.err (!%p14259_p9)
}
  0xb3   : > { %s15997_s16 = sld [smem:[#allocation53_spill]]  ;;  %s14274_s7 = scalar_lea.vmem %s773_s28, 64 }
  0xb4   : > { %p14275_p11 = scmp.ne.s32.totalorder %s773_s28, %s14274_s7  ;;  %p14282_p13 = scmp.lt.s32.totalorder %s773_s28, %s773_s28 }
  0xb5   : > { %p14283_p3 = scmp.lt.s32.totalorder %s14274_s7, %s14274_s7 }
  0xb6   : > { %p14277_p10 = pnand %p14275_p11, %p14665_p7 }
  0xb7   : > { %p14284_p0 = por %p14283_p3, %p14282_p13 }
  0xb8   : > { %p14278_p12 = pneg %p14277_p10 }
  0xb9   : > { %13603 = dma.hbm_to_vmem [thread:$0]  (!%p14657_p6), %s15997_s16, 64, %s745_s25, [#allocation18]  }
  0xba   : > { %p14285_p4 = pnand %p14284_p0, %p14278_p12 }
  0xbc   : > { %14288 = shalt.err (!%p14285_p4)
}
  0xbd   : > { %s15998_s20 = sld [smem:[#allocation57_spill]]  ;;  %s14486_s23 = smov [#allocation25]  }
  0xbe   : > { %s796_s19 = sshll.u32 %s14486_s23, 4  ;;  %s14487_s15 = smov [#allocation26]   ;;  %s797_s19 = int_to_ptr.vmem [resolvable:$true] %s796_s19 }
  0xbf   : > { %s810_s25 = sshll.u32 %s14487_s15, 4  ;;  %s14300_s8 = scalar_lea.vmem %s797_s19, 16  ;;  %s811_s25 = int_to_ptr.vmem [resolvable:$true] %s810_s25 }
  0xc0   : > { %p14301_p1 = scmp.ne.s32.totalorder %s797_s19, %s14300_s8  ;;  %s14307_s3 = scalar_lea.vmem %s797_s19, 32 }
  0xc1   : > { %p14308_p8 = scmp.lt.s32.totalorder %s797_s19, %s797_s19  ;;  %p14309_p9 = scmp.lt.s32.totalorder %s14307_s3, %s14300_s8 }
  0xc2   : > { %p14303_p2 = pnand %p14301_p1, %p14665_p7 }
  0xc3   : > { %13609 = dma.hbm_to_vmem [thread:$0]  (!%p14657_p6), %s15998_s20, 64, %s773_s28, [#allocation21]  }
  0xc4   : > { %p14304_p5 = pneg %p14303_p2  ;;  %p14310_p11 = por %p14309_p9, %p14308_p8 }
  0xc6   : > { %p14311_p10 = pnand %p14310_p11, %p14304_p5 }
  0xc8   : > { %14314 = shalt.err (!%p14311_p10)
}
  0xc9   : > { %13615 = dma.hbm_to_vmem [thread:$0]  (!%p14657_p6), %s15943_s22, 16, %s797_s19, [#allocation24]  }
  0xca   : > { %s14326_s17 = scalar_lea.vmem %s811_s25, 16  ;;  %s14333_s7 = scalar_lea.vmem %s811_s25, 32 }
  0xcb   : > { %p14327_p12 = scmp.ne.s32.totalorder %s811_s25, %s14326_s17  ;;  %p14334_p0 = scmp.lt.s32.totalorder %s811_s25, %s811_s25 }
  0xcc   : > { %p14335_p4 = scmp.lt.s32.totalorder %s14333_s7, %s14326_s17 }
  0xcd   : > { %p14329_p13 = pnand %p14327_p12, %p14665_p7 }
  0xce   : > { %p14336_p1 = por %p14335_p4, %p14334_p0 }
  0xcf   : > { %p14330_p3 = pneg %p14329_p13 }
  0xd1   : > { %p14337_p2 = pnand %p14336_p1, %p14330_p3 }
  0xd3   : > { %14340 = shalt.err (!%p14337_p2)
}
  0xd4   : > { %13618 = dma.hbm_to_vmem [thread:$0]  (!%p14657_p6), %s15945_s24, 16, %s811_s25, [#allocation27]  }
  0xd5   : > { %s11890_s5 = sadd.s32 4294967294, %s14465_s30   ;;  %s14781_s4 = sadd.s32 1, %s14465_s30  }
  0xd6   : > { %s56_s23 = sadd.s32 1, %s14461_s6  ;;  %s53_s19 = ssub.s32 %s14465_s30, %s14781_s4 }
  0xd7   : > { %p63_p7 = scmp.ne.s32.totalorder %s14461_s6, %s14457_s2  ;;  %p54_p5 = scmp.eq.s32.totalorder %s53_s19, 0 }
  0xd8   : > { %p64_p8 = scmp.eq.s32.totalorder %s14465_s30, 0  ;;  %p69_p9 = scmp.ne.s32.totalorder %s14457_s2, %s14453_s29 }
  0xd9   : > { %p597_p11 = scmp.eq.s32.totalorder %s14643_s26, 1  ;;  %p15999_p12 = scmp.eq.s32.totalorder %s14643_s26, 0 }
  0xda   : > { %s14793_s15 = scalar_select %p54_p5, %s14461_s6, %s56_s23  }
  0xdb   : > { %p65_p10 = por %p64_p8, %p63_p7  ;;  %p14797_p13 = por %p15999_p12, %p69_p9 }
  0xdc   : > { %p14801_p6 = por %p597_p11, %p63_p7  ;;  %p603_p3 = scmp.eq.s32.totalorder %s11890_s5, 1 }
  0xdd   : > { %s16000_s8 = scalar_select %p14797_p13, 1, 0 }
  0xde   : > { %s16001_s25 = scalar_select %p14801_p6, 1, 0 }
  0xdf   : > { %p13642_p0 = scmp.lt.s32.totalorder %s14465_s30, 2  ;;  %s821_s3 = sand.u32 1, %s14461_s6  }
  0xe0   : > { %p14807_p4 = por %p603_p3, %p69_p9  ;;  %s11908_s28 = sshll.u32 %s821_s3, 7 }
  0xe1   : > { %s13162_s17 = sshll.u32 %s14465_s30, 11  ;;  %s16003_s9 = sld [smem:[#allocation39_spill]] }
  0xe2   : > { %s16002_s0 = scalar_select %p14807_p4, 1, 0 }
  0xe3   : > { %s825_s19 = scalar_lea.vmem [#allocation2], %s11908_s28  ;;  %p14817_p1 = pnand %p13642_p0, %p65_p10 }
  0xe4   : > { %s833_s10 = sshll.u32 %s825_s19, 4  ;;  %s822_s12 = scalar_lea.sflag [#allocation3], %s821_s3  ;;  %s834_s10 = int_to_ptr.vmem [resolvable:$true] %s833_s10 }
  0xe5   : > { %p14343_p7 = pneg %p14817_p1 }
  0xe7   : > { %s14815_s23 = scalar_lea.hbm %s16003_s9, %s13162_s17  ;;  %s14346_s27 = scalar_lea.hbm %s16003_s9, 4096 }
  0xe8   : > { %s14341_s14 = scalar_lea.hbm %s14815_s23, 2048  ;;  %p14347_p9 = scmp.lt.s32.totalorder %s14815_s23, %s16003_s9 }
  0xe9   : > { %p14342_p2 = scmp.ne.s32.totalorder %s14815_s23, %s14341_s14  ;;  %p14348_p11 = scmp.lt.s32.totalorder %s14346_s27, %s14341_s14 }
  0xeb   : > { %p14344_p5 = pnand %p14343_p7, %p14342_p2  ;;  %p14349_p10 = por %p14348_p11, %p14347_p9 }
  0xed   : > { %p14345_p8 = pneg %p14344_p5 }
  0xef   : > { %p14350_p12 = pnand %p14349_p10, %p14345_p8 }
  0xf1   : > { %14353 = shalt.err (!%p14350_p12)
}
  0xf2   : > { %s14354_s19 = scalar_lea.vmem %s834_s10, 2048  ;;  %s14488_s3 = smov [#allocation2]  }
  0xf3   : > { %p14355_p3 = scmp.ne.s32.totalorder %s834_s10, %s14354_s19  ;;  %s14359_s18 = sshll.u32 %s14488_s3, 4  ;;  %s14360_s18 = int_to_ptr.vmem [resolvable:$false] %s14359_s18 }
  0xf4   : > { %s14361_s20 = scalar_lea.vmem %s14360_s18, 4096  ;;  %p14362_p2 = scmp.lt.s32.totalorder %s834_s10, %s14360_s18 }
  0xf5   : > { %p14357_p0 = pnand %p14355_p3, %p14343_p7  ;;  %p14363_p5 = scmp.lt.s32.totalorder %s14361_s20, %s14354_s19 }
  0xf7   : > { %p14358_p4 = pneg %p14357_p0  ;;  %p14364_p6 = por %p14363_p5, %p14362_p2 }
  0xf9   : > { %p14365_p13 = pnand %p14364_p6, %p14358_p4 }
  0xfb   : > { %14368 = shalt.err (!%p14365_p13)
}
  0xfc   : > { %13622 = dma.hbm_to_vmem [thread:$0]  (!%p14817_p1), %s14815_s23, 2048, %s834_s10, %s822_s12  }
  0xfd   : > { %p16005_p8 = scmp.ne.s32.totalorder %s15984_s1, 0 }
  0xfe   : > { %s14838_s14 = sand.u32 (!%p16005_p8), 1, %s14457_s2   ;;  %p16006_p7 = scmp.ne.s32.totalorder (!%p16005_p8), %s16000_s8, 0 }
  0xff   : > { %842 = sbr.rel (%p16005_p8) target bundleno = 4927 (0x133f), region = 120  ;;  %s11912_s16 = sshll.u32 (!%p16005_p8), %s14838_s14, 7 }
 0x100   : > { %s845_s17 = scalar_lea.sflag (!%p16005_p8), [#allocation3], %s14838_s14  ;;  %s14842_s18 = scalar_lea.vmem (!%p16005_p8), [#allocation2], %s11912_s16 }
 0x104   : > { %14412 = dma.done.wait (%p16006_p7), %s845_s17, 2048  }
 0x105   : > { %14414 = vsyncadd (%p16006_p7), %s845_s17, 4294965248  ;;  %p16007_p13 = scmp.eq.s32.totalorder %s14643_s26, 0 }
 0x107   : > { %14416 = dma.done.wait (%p16007_p13), [#allocation6], 131584   ;;  %p16008_p6 = pmov %p16007_p13 }
 0x109   : > { %14418 = vsyncadd (%p16008_p6), [#allocation6], 4294835712  ;;  %p16009_p4 = pmov %p16008_p6 }
 0x10b   : > { %14420 = dma.done.wait (%p16009_p4), [#allocation9], 16896   ;;  %p16010_p1 = pmov %p16009_p4 }
 0x10d   : > { %14422 = vsyncadd (%p16010_p1), [#allocation9], 4294950400  ;;  %p16011_p9 = pmov %p16010_p1 }
 0x10e   : > { %p16012_p11 = pmov %p16010_p1 }
 0x10f   : > { %14424 = dma.done.wait (%p16011_p9), [#allocation12], 256  }
 0x110   : > { %14426 = vsyncadd (%p16012_p11), [#allocation12], 4294967040  ;;  %p16013_p10 = pmov %p16010_p1 }
 0x111   : > { %p16014_p12 = pmov %p16010_p1 }
 0x112   : > { %14428 = dma.done.wait (%p16013_p10), [#allocation15], 128  }
 0x113   : > { %14430 = vsyncadd (%p16014_p12), [#allocation15], 4294967168  ;;  %p16015_p3 = pmov %p16010_p1 }
 0x114   : > { %p16016_p0 = pmov %p16010_p1 }
 0x115   : > { %14432 = dma.done.wait (%p16015_p3), [#allocation18], 128  }
 0x116   : > { %14434 = vsyncadd (%p16016_p0), [#allocation18], 4294967168  ;;  %p16017_p2 = pmov %p16016_p0 }
 0x117   : > { %p16018_p5 = pmov %p16016_p0 }
 0x118   : > { %14436 = dma.done.wait (%p16017_p2), [#allocation21], 128  }
 0x119   : > { %14438 = vsyncadd (%p16018_p5), [#allocation21], 4294967168  ;;  %p16019_p8 = pmov %p16016_p0 }
 0x11a   : > { %p16020_p7 = pmov %p16016_p0 }
 0x11b   : > { %14440 = dma.done.wait (%p16019_p8), [#allocation24], 144  }
 0x11c   : > { %14442 = vsyncadd (%p16020_p7), [#allocation24], 4294967152  ;;  %p16021_p13 = pmov %p16016_p0 }
 0x11d   : > { %p16022_p6 = pmov %p16016_p0 }
 0x11e   : > { %14444 = dma.done.wait (%p16021_p13), [#allocation27], 16  }
 0x11f   : > { %14446 = vsyncadd (%p16022_p6), [#allocation27], 4294967280  ;;  %v1064_v0 = vld [vmem:[#allocation5 + $0x1c0] sm:$0xff]  ;;  %v977_v53 = vld [vmem:[%s14842_s18 + $0x8] sm:$0xff]  ;;  %s16023_s20 = sld [smem:[#allocation42_spill]]  ;;  %vm8972_vm0 = vcmask 1043456  }
 0x120   : > { %v1068_v1 = vld [vmem:[#allocation5 + $0x1e0] sm:$0xff]  ;;  %v979_v54 = vld [vmem:[%s14842_s18 + $0x18] sm:$0xff]  ;;  %v14882_v58 = vpack.c.bf16 %v977_v53, %v977_v53  ;;  %vm8965_vm1 = vcmask 31744   ;;  %s16024_s7 = sld [smem:[#allocation46_spill]]  ;;  %vm10799_vm2 = vcmask 523264   ;;  %vm14490_vm3 = vmmov 0  }
 0x121   : > { %v1192_v2 = vld [vmem:[#allocation5 + $0x5c0] sm:$0xff]  ;;  %v11986_v3 = vcombine.high %v1064_v0, %v1068_v1  ;;  %v11985_v5 = vcombine.low %v1064_v0, %v1068_v1  ;;  %v14884_v59 = vpack.c.bf16 %v979_v54, %v979_v54  ;;  %s16025_s5 = sld [smem:[#allocation48_spill]]  ;;  %vm11074_vm4 = vcmask 261120   ;;  %s11928_s19 = sshll.u32 %s14838_s14, 3 }
 0x122   : > { %v1196_v4 = vld [vmem:[#allocation5 + $0x5e0] sm:$0xff]  ;;  %7226 = vmatprep.mubr.bf16.mxu0 %v14882_v58  ;;  %s16026_s12 = sld [smem:[#allocation52_spill]]  ;;  %vm11331_vm5 = vcmask 130048   ;;  %s13159_s3 = sshll.u32 %s14643_s26, 7 }
 0x123   : > { %v1056_v6 = vld [vmem:[#allocation5 + $0x180] sm:$0xff]  ;;  %v12114_v8 = vcombine.high %v1192_v2, %v1196_v4  ;;  %v12113_v9 = vcombine.low %v1192_v2, %v1196_v4  ;;  %7194 = vmatprep.subr.bf16.mxu0 %v11986_v3  ;;  %7267 = vmatprep.mubr.bf16.mxu1 %v14884_v59  ;;  %s16027_s17 = sld [smem:[#allocation54_spill]]  ;;  %s11664_s26 = scalar_lea.sflag [#allocation4], %s14838_s14 }
 0x124   : > { %v1060_v7 = vld [vmem:[#allocation5 + $0x1a0] sm:$0xff]  ;;  %7195 = vmatpush1.bf16.msra.mxu0 %v11985_v5  ;;  %s16028_s23 = sld [smem:[#allocation56_spill]]  ;;  %p16031_p1 = scmp.ne.s32.totalorder %s16001_s25, 0 }
 0x125   : > { %v11978_v10 = vcombine.high %v1056_v6, %v1060_v7  ;;  %v1184_v11 = vld [vmem:[#allocation5 + $0x580] sm:$0xff]  ;;  %7235 = vmatprep.subr.bf16.mxu1 %v12114_v8  ;;  %v11977_v18 = vcombine.low %v1056_v6, %v1060_v7  ;;  %s16029_s16 = sld [smem:[#allocation58_spill]] }
 0x126   : > { %v1188_v12 = vld [vmem:[#allocation5 + $0x5a0] sm:$0xff]  ;;  %7236 = vmatpush1.bf16.msra.mxu1 %v12113_v9  ;;  %s16030_s27 = sld [smem:[#allocation59_spill]] }
 0x127   : > { %v1048_v13 = vld [vmem:[#allocation5 + $0x140] sm:$0xff]  ;;  %v12106_v14 = vcombine.high %v1184_v11, %v1188_v12  ;;  %7196 = vmatprep.subr.bf16.mxu0 %v11978_v10  ;;  %v12105_v19 = vcombine.low %v1184_v11, %v1188_v12 }
 0x128   : > { %v1052_v15 = vld [vmem:[#allocation5 + $0x160] sm:$0xff]  ;;  %7197 = vmatpush1.bf16.msra.mxu0 %v11977_v18 }
 0x129   : > { %v1176_v16 = vld [vmem:[#allocation5 + $0x540] sm:$0xff]  ;;  %v11970_v20 = vcombine.high %v1048_v13, %v1052_v15  ;;  %7237 = vmatprep.subr.bf16.mxu1 %v12106_v14  ;;  %v11969_v26 = vcombine.low %v1048_v13, %v1052_v15 }
 0x12a   : > { %v1180_v17 = vld [vmem:[#allocation5 + $0x560] sm:$0xff]  ;;  %7238 = vmatpush1.bf16.msra.mxu1 %v12105_v19 }
 0x12b   : > { %v12098_v21 = vcombine.high %v1176_v16, %v1180_v17  ;;  %v1040_v22 = vld [vmem:[#allocation5 + $0x100] sm:$0xff]  ;;  %7198 = vmatprep.subr.bf16.mxu0 %v11970_v20  ;;  %v12097_v27 = vcombine.low %v1176_v16, %v1180_v17 }
 0x12c   : > { %v1044_v23 = vld [vmem:[#allocation5 + $0x120] sm:$0xff]  ;;  %7199 = vmatpush1.bf16.msra.mxu0 %v11969_v26  ;;  %s15877_s28 = scalar_lea.hbm %s16030_s27, %s13159_s3 }
 0x12d   : > { %v1168_v24 = vld [vmem:[#allocation5 + $0x500] sm:$0xff]  ;;  %v11962_v28 = vcombine.high %v1040_v22, %v1044_v23  ;;  %7239 = vmatprep.subr.bf16.mxu1 %v12098_v21  ;;  %v11961_v34 = vcombine.low %v1040_v22, %v1044_v23 }
 0x12e   : > { %v1172_v25 = vld [vmem:[#allocation5 + $0x520] sm:$0xff]  ;;  %7240 = vmatpush1.bf16.msra.mxu1 %v12097_v27 }
 0x12f   : > { %v12090_v29 = vcombine.high %v1168_v24, %v1172_v25  ;;  %v1032_v30 = vld [vmem:[#allocation5 + $0xc0] sm:$0xff]  ;;  %7200 = vmatprep.subr.bf16.mxu0 %v11962_v28  ;;  %v12089_v35 = vcombine.low %v1168_v24, %v1172_v25 }
 0x130   : > { %v1036_v31 = vld [vmem:[#allocation5 + $0xe0] sm:$0xff]  ;;  %7201 = vmatpush1.bf16.msra.mxu0 %v11961_v34 }
 0x131   : > { %v1160_v32 = vld [vmem:[#allocation5 + $0x4c0] sm:$0xff]  ;;  %v11954_v36 = vcombine.high %v1032_v30, %v1036_v31  ;;  %7241 = vmatprep.subr.bf16.mxu1 %v12090_v29  ;;  %v11953_v42 = vcombine.low %v1032_v30, %v1036_v31 }
 0x132   : > { %v1164_v33 = vld [vmem:[#allocation5 + $0x4e0] sm:$0xff]  ;;  %7242 = vmatpush1.bf16.msra.mxu1 %v12089_v35 }
 0x133   : > { %v12082_v37 = vcombine.high %v1160_v32, %v1164_v33  ;;  %v1024_v38 = vld [vmem:[#allocation5 + $0x80] sm:$0xff]  ;;  %7202 = vmatprep.subr.bf16.mxu0 %v11954_v36  ;;  %v12081_v43 = vcombine.low %v1160_v32, %v1164_v33 }
 0x134   : > { %v1028_v39 = vld [vmem:[#allocation5 + $0xa0] sm:$0xff]  ;;  %7203 = vmatpush1.bf16.msra.mxu0 %v11953_v42 }
 0x135   : > { %v1152_v40 = vld [vmem:[#allocation5 + $0x480] sm:$0xff]  ;;  %v11946_v44 = vcombine.high %v1024_v38, %v1028_v39  ;;  %7243 = vmatprep.subr.bf16.mxu1 %v12082_v37  ;;  %v11945_v50 = vcombine.low %v1024_v38, %v1028_v39 }
 0x136   : > { %v1156_v41 = vld [vmem:[#allocation5 + $0x4a0] sm:$0xff]  ;;  %7244 = vmatpush1.bf16.msra.mxu1 %v12081_v43 }
 0x137   : > { %v12074_v45 = vcombine.high %v1152_v40, %v1156_v41  ;;  %v1016_v46 = vld [vmem:[#allocation5 + $0x40] sm:$0xff]  ;;  %7204 = vmatprep.subr.bf16.mxu0 %v11946_v44  ;;  %v12073_v51 = vcombine.low %v1152_v40, %v1156_v41 }
 0x138   : > { %v1020_v47 = vld [vmem:[#allocation5 + $0x60] sm:$0xff]  ;;  %7205 = vmatpush1.bf16.msra.mxu0 %v11945_v50 }
 0x139   : > { %v1144_v48 = vld [vmem:[#allocation5 + $0x440] sm:$0xff]  ;;  %v11938_v52 = vcombine.high %v1016_v46, %v1020_v47  ;;  %7245 = vmatprep.subr.bf16.mxu1 %v12074_v45  ;;  %v11937_v62 = vcombine.low %v1016_v46, %v1020_v47 }
 0x13a   : > { %v1148_v49 = vld [vmem:[#allocation5 + $0x460] sm:$0xff]  ;;  %7246 = vmatpush1.bf16.msra.mxu1 %v12073_v51 }
 0x13b   : > { %v12066_v55 = vcombine.high %v1144_v48, %v1148_v49  ;;  %v1008_v56 = vld [vmem:[#allocation5] sm:$0xff]  ;;  %7206 = vmatprep.subr.bf16.mxu0 %v11938_v52  ;;  %v12065_v63 = vcombine.low %v1144_v48, %v1148_v49 }
 0x13c   : > { %v1012_v57 = vld [vmem:[#allocation5 + $0x20] sm:$0xff]  ;;  %7207 = vmatpush1.bf16.msra.mxu0 %v11937_v62 }
 0x13d   : > { %v1136_v60 = vld [vmem:[#allocation5 + $0x400] sm:$0xff]  ;;  %v11930_v0 = vcombine.high %v1008_v56, %v1012_v57  ;;  %7247 = vmatprep.subr.bf16.mxu1 %v12066_v55  ;;  %v11929_v6 = vcombine.low %v1008_v56, %v1012_v57 }
 0x13e   : > { %v1140_v61 = vld [vmem:[#allocation5 + $0x420] sm:$0xff]  ;;  %7248 = vmatpush1.bf16.msra.mxu1 %v12065_v63 }
 0x13f   : > { %v12058_v1 = vcombine.high %v1136_v60, %v1140_v61  ;;  %v1128_v2 = vld [vmem:[#allocation5 + $0x3c0] sm:$0xff]  ;;  %7208 = vmatprep.subr.bf16.mxu0 %v11930_v0  ;;  %v12057_v7 = vcombine.low %v1136_v60, %v1140_v61 }
 0x140   : > { %v1132_v3 = vld [vmem:[#allocation5 + $0x3e0] sm:$0xff]  ;;  %7209 = vmatpush1.bf16.msra.mxu0 %v11929_v6 }
 0x141   : > { %v1256_v4 = vld [vmem:[#allocation5 + $0x7c0] sm:$0xff]  ;;  %v12050_v8 = vcombine.high %v1128_v2, %v1132_v3  ;;  %7249 = vmatprep.subr.bf16.mxu1 %v12058_v1  ;;  %v12049_v14 = vcombine.low %v1128_v2, %v1132_v3 }
 0x142   : > { %v1260_v5 = vld [vmem:[#allocation5 + $0x7e0] sm:$0xff]  ;;  %7250 = vmatpush1.bf16.msra.mxu1 %v12057_v7 }
 0x143   : > { %v12178_v9 = vcombine.high %v1256_v4, %v1260_v5  ;;  %v1120_v10 = vld [vmem:[#allocation5 + $0x380] sm:$0xff]  ;;  %7210 = vmatprep.subr.bf16.mxu0 %v12050_v8  ;;  %v12177_v15 = vcombine.low %v1256_v4, %v1260_v5 }
 0x144   : > { %v1124_v11 = vld [vmem:[#allocation5 + $0x3a0] sm:$0xff]  ;;  %7211 = vmatpush2.bf16.msra.mxu0 %v12049_v14 }
 0x145   : > { %v1248_v12 = vld [vmem:[#allocation5 + $0x780] sm:$0xff]  ;;  %v12042_v16 = vcombine.high %v1120_v10, %v1124_v11  ;;  %7251 = vmatprep.subr.bf16.mxu1 %v12178_v9  ;;  %v12041_v22 = vcombine.low %v1120_v10, %v1124_v11  ;;  %v978_v11 = vld [vmem:[%s14842_s18 + $0x10] sm:$0xff] }
 0x146   : > { %v1252_v13 = vld [vmem:[#allocation5 + $0x7a0] sm:$0xff]  ;;  %7252 = vmatpush2.bf16.msra.mxu1 %v12177_v15 }
 0x147   : > { %v12170_v17 = vcombine.high %v1248_v12, %v1252_v13  ;;  %v1112_v18 = vld [vmem:[#allocation5 + $0x340] sm:$0xff]  ;;  %7212 = vmatprep.subr.bf16.mxu0 %v12042_v16  ;;  %v12169_v23 = vcombine.low %v1248_v12, %v1252_v13 }
 0x148   : > { %v1116_v19 = vld [vmem:[#allocation5 + $0x360] sm:$0xff]  ;;  %7213 = vmatpush2.bf16.msra.mxu0 %v12041_v22  ;;  %v983_v22 = vld [vmem:[%s14842_s18 + $0x38] sm:$0xff] }
 0x149   : > { %v1240_v20 = vld [vmem:[#allocation5 + $0x740] sm:$0xff]  ;;  %v12034_v24 = vcombine.high %v1112_v18, %v1116_v19  ;;  %7253 = vmatprep.subr.bf16.mxu1 %v12170_v17  ;;  %v12033_v30 = vcombine.low %v1112_v18, %v1116_v19  ;;  %v981_v19 = vld [vmem:[%s14842_s18 + $0x28] sm:$0xff] }
 0x14a   : > { %v1244_v21 = vld [vmem:[#allocation5 + $0x760] sm:$0xff]  ;;  %7254 = vmatpush2.bf16.msra.mxu1 %v12169_v23 }
 0x14b   : > { %v12162_v25 = vcombine.high %v1240_v20, %v1244_v21  ;;  %v1104_v26 = vld [vmem:[#allocation5 + $0x300] sm:$0xff]  ;;  %7214 = vmatprep.subr.bf16.mxu0 %v12034_v24  ;;  %v12161_v31 = vcombine.low %v1240_v20, %v1244_v21  ;;  %v14893_v20 = vpack.c.bf16 %v978_v11, %v978_v11 }
 0x14c   : > { %v1108_v27 = vld [vmem:[#allocation5 + $0x320] sm:$0xff]  ;;  %7215 = vmatpush2.bf16.msra.mxu0 %v12033_v30 }
 0x14d   : > { %v1232_v28 = vld [vmem:[#allocation5 + $0x700] sm:$0xff]  ;;  %v12026_v32 = vcombine.high %v1104_v26, %v1108_v27  ;;  %7255 = vmatprep.subr.bf16.mxu1 %v12162_v25  ;;  %v12025_v38 = vcombine.low %v1104_v26, %v1108_v27 }
 0x14e   : > { %v1236_v29 = vld [vmem:[#allocation5 + $0x720] sm:$0xff]  ;;  %7256 = vmatpush2.bf16.msra.mxu1 %v12161_v31  ;;  %v14899_v31 = vpack.c.bf16 %v983_v22, %v983_v22 }
 0x14f   : > { %v12154_v33 = vcombine.high %v1232_v28, %v1236_v29  ;;  %v1096_v34 = vld [vmem:[#allocation5 + $0x2c0] sm:$0xff]  ;;  %7216 = vmatprep.subr.bf16.mxu0 %v12026_v32  ;;  %v12153_v39 = vcombine.low %v1232_v28, %v1236_v29  ;;  %v14896_v28 = vpack.c.bf16 %v981_v19, %v981_v19 }
 0x150   : > { %v1100_v35 = vld [vmem:[#allocation5 + $0x2e0] sm:$0xff]  ;;  %7217 = vmatpush2.bf16.msra.mxu0 %v12025_v38 }
 0x151   : > { %v1224_v36 = vld [vmem:[#allocation5 + $0x6c0] sm:$0xff]  ;;  %v12018_v40 = vcombine.high %v1096_v34, %v1100_v35  ;;  %7257 = vmatprep.subr.bf16.mxu1 %v12154_v33  ;;  %v12017_v46 = vcombine.low %v1096_v34, %v1100_v35 }
 0x152   : > { %v1228_v37 = vld [vmem:[#allocation5 + $0x6e0] sm:$0xff]  ;;  %7258 = vmatpush2.bf16.msra.mxu1 %v12153_v39 }
 0x153   : > { %v12146_v41 = vcombine.high %v1224_v36, %v1228_v37  ;;  %v1088_v42 = vld [vmem:[#allocation5 + $0x280] sm:$0xff]  ;;  %7218 = vmatprep.subr.bf16.mxu0 %v12018_v40  ;;  %v12145_v47 = vcombine.low %v1224_v36, %v1228_v37 }
 0x154   : > { %v1092_v43 = vld [vmem:[#allocation5 + $0x2a0] sm:$0xff]  ;;  %7219 = vmatpush2.bf16.msra.mxu0 %v12017_v46 }
 0x155   : > { %v1216_v44 = vld [vmem:[#allocation5 + $0x680] sm:$0xff]  ;;  %v12010_v48 = vcombine.high %v1088_v42, %v1092_v43  ;;  %7259 = vmatprep.subr.bf16.mxu1 %v12146_v41  ;;  %v12009_v54 = vcombine.low %v1088_v42, %v1092_v43 }
 0x156   : > { %v1220_v45 = vld [vmem:[#allocation5 + $0x6a0] sm:$0xff]  ;;  %7260 = vmatpush2.bf16.msra.mxu1 %v12145_v47 }
 0x157   : > { %v12138_v49 = vcombine.high %v1216_v44, %v1220_v45  ;;  %v1080_v50 = vld [vmem:[#allocation5 + $0x240] sm:$0xff]  ;;  %7220 = vmatprep.subr.bf16.mxu0 %v12010_v48  ;;  %v12137_v55 = vcombine.low %v1216_v44, %v1220_v45 }
 0x158   : > { %v1084_v51 = vld [vmem:[#allocation5 + $0x260] sm:$0xff]  ;;  %7221 = vmatpush2.bf16.msra.mxu0 %v12009_v54 }
 0x159   : > { %v1208_v52 = vld [vmem:[#allocation5 + $0x640] sm:$0xff]  ;;  %v12002_v56 = vcombine.high %v1080_v50, %v1084_v51  ;;  %7261 = vmatprep.subr.bf16.mxu1 %v12138_v49  ;;  %v12001_v0 = vcombine.low %v1080_v50, %v1084_v51 }
 0x15a   : > { %v1212_v53 = vld [vmem:[#allocation5 + $0x660] sm:$0xff]  ;;  %7262 = vmatpush2.bf16.msra.mxu1 %v12137_v55 }
 0x15b   : > { %v12130_v57 = vcombine.high %v1208_v52, %v1212_v53  ;;  %v1072_v60 = vld [vmem:[#allocation5 + $0x200] sm:$0xff]  ;;  %7222 = vmatprep.subr.bf16.mxu0 %v12002_v56  ;;  %v12129_v1 = vcombine.low %v1208_v52, %v1212_v53 }
 0x15c   : > { %v1076_v61 = vld [vmem:[#allocation5 + $0x220] sm:$0xff]  ;;  %7223 = vmatpush2.bf16.msra.mxu0 %v12001_v0 }
 0x15d   : > { %v1200_v62 = vld [vmem:[#allocation5 + $0x600] sm:$0xff]  ;;  %v11994_v2 = vcombine.high %v1072_v60, %v1076_v61  ;;  %7263 = vmatprep.subr.bf16.mxu1 %v12130_v57  ;;  %v11993_v8 = vcombine.low %v1072_v60, %v1076_v61 }
 0x15e   : > { %v1204_v63 = vld [vmem:[#allocation5 + $0x620] sm:$0xff]  ;;  %7264 = vmatpush2.bf16.msra.mxu1 %v12129_v1 }
 0x15f   : > { %v12122_v3 = vcombine.high %v1200_v62, %v1204_v63  ;;  %v1320_v4 = vld [vmem:[#allocation5 + $0x9c0] sm:$0xff]  ;;  %7224 = vmatprep.subr.bf16.mxu0 %v11994_v2  ;;  %v12121_v10 = vcombine.low %v1200_v62, %v1204_v63 }
 0x160   : > { %v1324_v5 = vld [vmem:[#allocation5 + $0x9e0] sm:$0xff]  ;;  %7225 = vmatpush2.bf16.msra.mxu0 %v11993_v8 }
 0x161   : > { %v1448_v6 = vld [vmem:[#allocation5 + $0xdc0] sm:$0xff]  ;;  %v12242_v12 = vcombine.high %v1320_v4, %v1324_v5  ;;  %7265 = vmatprep.subr.bf16.mxu1 %v12122_v3  ;;  %v12241_v21 = vcombine.low %v1320_v4, %v1324_v5 }
 0x162   : > { %v1452_v7 = vld [vmem:[#allocation5 + $0xde0] sm:$0xff]  ;;  %7266 = vmatpush2.bf16.msra.mxu1 %v12121_v10 }
 0x163   : > { %v976_v9 = vld [vmem:[%s14842_s18] sm:$0xff]  ;;  %v12370_v13 = vcombine.high %v1448_v6, %v1452_v7  ;;  %7276 = vmatprep.subr.bf16.mxu0 %v12242_v12  ;;  %v12369_v23 = vcombine.low %v1448_v6, %v1452_v7 }
 0x164   : > { %v1312_v14 = vld [vmem:[#allocation5 + $0x980] sm:$0xff]  ;;  %v14890_v16 = vpack.c.bf16 %v976_v9, %v976_v9 }
 0x165   : > { %v1316_v15 = vld [vmem:[#allocation5 + $0x9a0] sm:$0xff]  ;;  %7317 = vmatprep.subr.bf16.mxu1 %v12370_v13  ;;  %7268 = vmatmul.mubr.bf16.vlgmr.msra.gmra.mxu1 %v14893_v20 }
 0x166   : > { %v1440_v17 = vld [vmem:[#allocation5 + $0xd80] sm:$0xff]  ;;  %v12234_v24 = vcombine.high %v1312_v14, %v1316_v15  ;;  %7227 = vmatmul.mubr.bf16.vlgmr.msra.gmra.mxu0 %v14890_v16  ;;  %v12233_v32 = vcombine.low %v1312_v14, %v1316_v15  ;;  %7318 = vmatpush1.bf16.msra.mxu1 %v12369_v23 }
 0x167   : > { %v1444_v18 = vld [vmem:[#allocation5 + $0xda0] sm:$0xff]  ;;  %7277 = vmatpush1.bf16.msra.mxu0 %v12241_v21  ;;  %7308 = vmatprep.mubr.bf16.mxu0 %v14896_v28 }
 0x168   : > { %v12362_v25 = vcombine.high %v1440_v17, %v1444_v18  ;;  %v1304_v26 = vld [vmem:[#allocation5 + $0x940] sm:$0xff]  ;;  %7278 = vmatprep.subr.bf16.mxu0 %v12234_v24  ;;  %v12361_v33 = vcombine.low %v1440_v17, %v1444_v18  ;;  %7349 = vmatprep.mubr.bf16.mxu1 %v14899_v31 }
 0x169   : > { %v1308_v27 = vld [vmem:[#allocation5 + $0x960] sm:$0xff] }
 0x16a   : > { %v1432_v29 = vld [vmem:[#allocation5 + $0xd40] sm:$0xff]  ;;  %v12226_v34 = vcombine.high %v1304_v26, %v1308_v27  ;;  %7319 = vmatprep.subr.bf16.mxu1 %v12362_v25  ;;  %v12225_v40 = vcombine.low %v1304_v26, %v1308_v27 }
 0x16b   : > { %v1436_v30 = vld [vmem:[#allocation5 + $0xd60] sm:$0xff]  ;;  %7279 = vmatpush1.bf16.msra.mxu0 %v12233_v32  ;;  %7320 = vmatpush1.bf16.msra.mxu1 %v12361_v33 }
 0x16c   : > { %v1296_v35 = vld [vmem:[#allocation5 + $0x900] sm:$0xff]  ;;  %v12354_v37 = vcombine.high %v1432_v29, %v1436_v30  ;;  %7280 = vmatprep.subr.bf16.mxu0 %v12226_v34  ;;  %v12353_v41 = vcombine.low %v1432_v29, %v1436_v30 }
 0x16d   : > { %v1300_v36 = vld [vmem:[#allocation5 + $0x920] sm:$0xff] }
 0x16e   : > { %v1424_v38 = vld [vmem:[#allocation5 + $0xd00] sm:$0xff]  ;;  %v12218_v42 = vcombine.high %v1296_v35, %v1300_v36  ;;  %7321 = vmatprep.subr.bf16.mxu1 %v12354_v37  ;;  %v12217_v48 = vcombine.low %v1296_v35, %v1300_v36 }
 0x16f   : > { %v1428_v39 = vld [vmem:[#allocation5 + $0xd20] sm:$0xff]  ;;  %7281 = vmatpush1.bf16.msra.mxu0 %v12225_v40  ;;  %7322 = vmatpush1.bf16.msra.mxu1 %v12353_v41 }
 0x170   : > { %v1288_v43 = vld [vmem:[#allocation5 + $0x8c0] sm:$0xff]  ;;  %v12346_v46 = vcombine.high %v1424_v38, %v1428_v39  ;;  %7282 = vmatprep.subr.bf16.mxu0 %v12218_v42  ;;  %v12345_v49 = vcombine.low %v1424_v38, %v1428_v39 }
 0x171   : > { %v1292_v44 = vld [vmem:[#allocation5 + $0x8e0] sm:$0xff] }
 0x172   : > { %v1416_v45 = vld [vmem:[#allocation5 + $0xcc0] sm:$0xff]  ;;  %v12210_v50 = vcombine.high %v1288_v43, %v1292_v44  ;;  %7323 = vmatprep.subr.bf16.mxu1 %v12346_v46  ;;  %v12209_v56 = vcombine.low %v1288_v43, %v1292_v44 }
 0x173   : > { %v1420_v47 = vld [vmem:[#allocation5 + $0xce0] sm:$0xff]  ;;  %7283 = vmatpush1.bf16.msra.mxu0 %v12217_v48  ;;  %7324 = vmatpush1.bf16.msra.mxu1 %v12345_v49 }
 0x174   : > { %v1280_v51 = vld [vmem:[#allocation5 + $0x880] sm:$0xff]  ;;  %v12338_v54 = vcombine.high %v1416_v45, %v1420_v47  ;;  %7284 = vmatprep.subr.bf16.mxu0 %v12210_v50  ;;  %v12337_v57 = vcombine.low %v1416_v45, %v1420_v47 }
 0x175   : > { %v1284_v52 = vld [vmem:[#allocation5 + $0x8a0] sm:$0xff] }
 0x176   : > { %v1408_v53 = vld [vmem:[#allocation5 + $0xc80] sm:$0xff]  ;;  %v12202_v60 = vcombine.high %v1280_v51, %v1284_v52  ;;  %7325 = vmatprep.subr.bf16.mxu1 %v12338_v54  ;;  %v12201_v2 = vcombine.low %v1280_v51, %v1284_v52 }
 0x177   : > { %v1412_v55 = vld [vmem:[#allocation5 + $0xca0] sm:$0xff]  ;;  %7285 = vmatpush1.bf16.msra.mxu0 %v12209_v56  ;;  %7326 = vmatpush1.bf16.msra.mxu1 %v12337_v57 }
 0x178   : > { %v1272_v61 = vld [vmem:[#allocation5 + $0x840] sm:$0xff]  ;;  %v12330_v0 = vcombine.high %v1408_v53, %v1412_v55  ;;  %7286 = vmatprep.subr.bf16.mxu0 %v12202_v60  ;;  %v12329_v3 = vcombine.low %v1408_v53, %v1412_v55 }
 0x179   : > { %v1276_v62 = vld [vmem:[#allocation5 + $0x860] sm:$0xff] }
 0x17a   : > { %v1400_v63 = vld [vmem:[#allocation5 + $0xc40] sm:$0xff]  ;;  %v12194_v4 = vcombine.high %v1272_v61, %v1276_v62  ;;  %7327 = vmatprep.subr.bf16.mxu1 %v12330_v0  ;;  %v12193_v10 = vcombine.low %v1272_v61, %v1276_v62 }
 0x17b   : > { %v1404_v1 = vld [vmem:[#allocation5 + $0xc60] sm:$0xff]  ;;  %7287 = vmatpush1.bf16.msra.mxu0 %v12201_v2  ;;  %7328 = vmatpush1.bf16.msra.mxu1 %v12329_v3 }
 0x17c   : > { %v1264_v5 = vld [vmem:[#allocation5 + $0x800] sm:$0xff]  ;;  %v12322_v8 = vcombine.high %v1400_v63, %v1404_v1  ;;  %7288 = vmatprep.subr.bf16.mxu0 %v12194_v4  ;;  %v12321_v11 = vcombine.low %v1400_v63, %v1404_v1 }
 0x17d   : > { %v1268_v6 = vld [vmem:[#allocation5 + $0x820] sm:$0xff] }
 0x17e   : > { %v1392_v7 = vld [vmem:[#allocation5 + $0xc00] sm:$0xff]  ;;  %v12186_v12 = vcombine.high %v1264_v5, %v1268_v6  ;;  %7329 = vmatprep.subr.bf16.mxu1 %v12322_v8  ;;  %v12185_v19 = vcombine.low %v1264_v5, %v1268_v6 }
 0x17f   : > { %v1396_v9 = vld [vmem:[#allocation5 + $0xc20] sm:$0xff]  ;;  %7289 = vmatpush1.bf16.msra.mxu0 %v12193_v10  ;;  %7330 = vmatpush1.bf16.msra.mxu1 %v12321_v11 }
 0x180   : > { %v1384_v13 = vld [vmem:[#allocation5 + $0xbc0] sm:$0xff]  ;;  %v12314_v17 = vcombine.high %v1392_v7, %v1396_v9  ;;  %7290 = vmatprep.subr.bf16.mxu0 %v12186_v12  ;;  %v12313_v21 = vcombine.low %v1392_v7, %v1396_v9 }
 0x181   : > { %v1388_v14 = vld [vmem:[#allocation5 + $0xbe0] sm:$0xff] }
 0x182   : > { %v1512_v15 = vld [vmem:[#allocation5 + $0xfc0] sm:$0xff]  ;;  %v12306_v22 = vcombine.high %v1384_v13, %v1388_v14  ;;  %7331 = vmatprep.subr.bf16.mxu1 %v12314_v17  ;;  %v12305_v29 = vcombine.low %v1384_v13, %v1388_v14 }
 0x183   : > { %v1516_v18 = vld [vmem:[#allocation5 + $0xfe0] sm:$0xff]  ;;  %7291 = vmatpush1.bf16.msra.mxu0 %v12185_v19  ;;  %7332 = vmatpush1.bf16.msra.mxu1 %v12313_v21 }
 0x184   : > { %v1376_v23 = vld [vmem:[#allocation5 + $0xb80] sm:$0xff]  ;;  %v12434_v26 = vcombine.high %v1512_v15, %v1516_v18  ;;  %7292 = vmatprep.subr.bf16.mxu0 %v12306_v22  ;;  %v12433_v30 = vcombine.low %v1512_v15, %v1516_v18 }
 0x185   : > { %v1380_v24 = vld [vmem:[#allocation5 + $0xba0] sm:$0xff] }
 0x186   : > { %v1504_v25 = vld [vmem:[#allocation5 + $0xf80] sm:$0xff]  ;;  %v12298_v32 = vcombine.high %v1376_v23, %v1380_v24  ;;  %7333 = vmatprep.subr.bf16.mxu1 %v12434_v26  ;;  %v12297_v38 = vcombine.low %v1376_v23, %v1380_v24 }
 0x187   : > { %v1508_v27 = vld [vmem:[#allocation5 + $0xfa0] sm:$0xff]  ;;  %7293 = vmatpush2.bf16.msra.mxu0 %v12305_v29  ;;  %7334 = vmatpush2.bf16.msra.mxu1 %v12433_v30 }
 0x188   : > { %v1368_v33 = vld [vmem:[#allocation5 + $0xb40] sm:$0xff]  ;;  %v12426_v36 = vcombine.high %v1504_v25, %v1508_v27  ;;  %7294 = vmatprep.subr.bf16.mxu0 %v12298_v32  ;;  %v12425_v39 = vcombine.low %v1504_v25, %v1508_v27  ;;  %v982_v27 = vld [vmem:[%s14842_s18 + $0x30] sm:$0xff] }
 0x189   : > { %v1372_v34 = vld [vmem:[#allocation5 + $0xb60] sm:$0xff] }
 0x18a   : > { %v1496_v35 = vld [vmem:[#allocation5 + $0xf40] sm:$0xff]  ;;  %v12290_v40 = vcombine.high %v1368_v33, %v1372_v34  ;;  %7335 = vmatprep.subr.bf16.mxu1 %v12426_v36  ;;  %v12289_v46 = vcombine.low %v1368_v33, %v1372_v34 }
 0x18b   : > { %v1500_v37 = vld [vmem:[#allocation5 + $0xf60] sm:$0xff]  ;;  %7295 = vmatpush2.bf16.msra.mxu0 %v12297_v38  ;;  %7336 = vmatpush2.bf16.msra.mxu1 %v12425_v39  ;;  %v985_v38 = vld [vmem:[%s14842_s18 + $0x48] sm:$0xff] }
 0x18c   : > { %v1360_v41 = vld [vmem:[#allocation5 + $0xb00] sm:$0xff]  ;;  %v12418_v44 = vcombine.high %v1496_v35, %v1500_v37  ;;  %7296 = vmatprep.subr.bf16.mxu0 %v12290_v40  ;;  %v12417_v47 = vcombine.low %v1496_v35, %v1500_v37  ;;  %v14909_v40 = vpack.c.bf16 %v982_v27, %v982_v27 }
 0x18d   : > { %v1364_v42 = vld [vmem:[#allocation5 + $0xb20] sm:$0xff] }
 0x18e   : > { %v1488_v43 = vld [vmem:[#allocation5 + $0xf00] sm:$0xff]  ;;  %v12282_v48 = vcombine.high %v1360_v41, %v1364_v42  ;;  %7337 = vmatprep.subr.bf16.mxu1 %v12418_v44  ;;  %v12281_v54 = vcombine.low %v1360_v41, %v1364_v42  ;;  %v987_v42 = vld [vmem:[%s14842_s18 + $0x58] sm:$0xff] }
 0x18f   : > { %v1492_v45 = vld [vmem:[#allocation5 + $0xf20] sm:$0xff]  ;;  %7297 = vmatpush2.bf16.msra.mxu0 %v12289_v46  ;;  %7338 = vmatpush2.bf16.msra.mxu1 %v12417_v47 }
 0x190   : > { %v1352_v49 = vld [vmem:[#allocation5 + $0xac0] sm:$0xff]  ;;  %v12410_v52 = vcombine.high %v1488_v43, %v1492_v45  ;;  %7298 = vmatprep.subr.bf16.mxu0 %v12282_v48  ;;  %v12409_v55 = vcombine.low %v1488_v43, %v1492_v45 }
 0x191   : > { %v1356_v50 = vld [vmem:[#allocation5 + $0xae0] sm:$0xff] }
 0x192   : > { %v1480_v51 = vld [vmem:[#allocation5 + $0xec0] sm:$0xff]  ;;  %v12274_v56 = vcombine.high %v1352_v49, %v1356_v50  ;;  %7339 = vmatprep.subr.bf16.mxu1 %v12410_v52  ;;  %v12273_v0 = vcombine.low %v1352_v49, %v1356_v50  ;;  %v14912_v49 = vpack.c.bf16 %v985_v38, %v985_v38 }
 0x193   : > { %v1484_v53 = vld [vmem:[#allocation5 + $0xee0] sm:$0xff]  ;;  %7299 = vmatpush2.bf16.msra.mxu0 %v12281_v54  ;;  %7340 = vmatpush2.bf16.msra.mxu1 %v12409_v55 }
 0x194   : > { %v1344_v57 = vld [vmem:[#allocation5 + $0xa80] sm:$0xff]  ;;  %v12402_v62 = vcombine.high %v1480_v51, %v1484_v53  ;;  %7300 = vmatprep.subr.bf16.mxu0 %v12274_v56  ;;  %v12401_v1 = vcombine.low %v1480_v51, %v1484_v53  ;;  %v14915_v51 = vpack.c.bf16 %v987_v42, %v987_v42 }
 0x195   : > { %v1348_v60 = vld [vmem:[#allocation5 + $0xaa0] sm:$0xff] }
 0x196   : > { %v1472_v61 = vld [vmem:[#allocation5 + $0xe80] sm:$0xff]  ;;  %v12266_v2 = vcombine.high %v1344_v57, %v1348_v60  ;;  %7341 = vmatprep.subr.bf16.mxu1 %v12402_v62  ;;  %v12265_v8 = vcombine.low %v1344_v57, %v1348_v60 }
 0x197   : > { %v1476_v63 = vld [vmem:[#allocation5 + $0xea0] sm:$0xff]  ;;  %7301 = vmatpush2.bf16.msra.mxu0 %v12273_v0  ;;  %7342 = vmatpush2.bf16.msra.mxu1 %v12401_v1 }
 0x198   : > { %v1336_v3 = vld [vmem:[#allocation5 + $0xa40] sm:$0xff]  ;;  %v12394_v6 = vcombine.high %v1472_v61, %v1476_v63  ;;  %7302 = vmatprep.subr.bf16.mxu0 %v12266_v2  ;;  %v12393_v9 = vcombine.low %v1472_v61, %v1476_v63 }
 0x199   : > { %v1340_v4 = vld [vmem:[#allocation5 + $0xa60] sm:$0xff] }
 0x19a   : > { %v1464_v5 = vld [vmem:[#allocation5 + $0xe40] sm:$0xff]  ;;  %v12258_v10 = vcombine.high %v1336_v3, %v1340_v4  ;;  %7343 = vmatprep.subr.bf16.mxu1 %v12394_v6  ;;  %v12257_v17 = vcombine.low %v1336_v3, %v1340_v4 }
 0x19b   : > { %v1468_v7 = vld [vmem:[#allocation5 + $0xe60] sm:$0xff]  ;;  %7303 = vmatpush2.bf16.msra.mxu0 %v12265_v8  ;;  %7344 = vmatpush2.bf16.msra.mxu1 %v12393_v9 }
 0x19c   : > { %v1328_v11 = vld [vmem:[#allocation5 + $0xa00] sm:$0xff]  ;;  %v12386_v14 = vcombine.high %v1464_v5, %v1468_v7  ;;  %7304 = vmatprep.subr.bf16.mxu0 %v12258_v10  ;;  %v12385_v18 = vcombine.low %v1464_v5, %v1468_v7 }
 0x19d   : > { %v1332_v12 = vld [vmem:[#allocation5 + $0xa20] sm:$0xff] }
 0x19e   : > { %v1456_v13 = vld [vmem:[#allocation5 + $0xe00] sm:$0xff]  ;;  %v12250_v19 = vcombine.high %v1328_v11, %v1332_v12  ;;  %7345 = vmatprep.subr.bf16.mxu1 %v12386_v14  ;;  %v12249_v29 = vcombine.low %v1328_v11, %v1332_v12 }
 0x19f   : > { %v1460_v15 = vld [vmem:[#allocation5 + $0xe20] sm:$0xff]  ;;  %7305 = vmatpush2.bf16.msra.mxu0 %v12257_v17  ;;  %7346 = vmatpush2.bf16.msra.mxu1 %v12385_v18 }
 0x1a0   : > { %v1576_v21 = vld [vmem:[#allocation5 + $0x11c0] sm:$0xff]  ;;  %v12378_v24 = vcombine.high %v1456_v13, %v1460_v15  ;;  %7306 = vmatprep.subr.bf16.mxu0 %v12250_v19  ;;  %v12377_v32 = vcombine.low %v1456_v13, %v1460_v15 }
 0x1a1   : > { %v1580_v22 = vld [vmem:[#allocation5 + $0x11e0] sm:$0xff] }
 0x1a2   : > { %v1704_v23 = vld [vmem:[#allocation5 + $0x15c0] sm:$0xff]  ;;  %v12498_v33 = vcombine.high %v1576_v21, %v1580_v22  ;;  %7347 = vmatprep.subr.bf16.mxu1 %v12378_v24  ;;  %v12497_v41 = vcombine.low %v1576_v21, %v1580_v22 }
 0x1a3   : > { %v980_v25 = vld [vmem:[%s14842_s18 + $0x20] sm:$0xff]  ;;  %7307 = vmatpush2.bf16.msra.mxu0 %v12249_v29  ;;  %7348 = vmatpush2.bf16.msra.mxu1 %v12377_v32 }
 0x1a4   : > { %v1708_v26 = vld [vmem:[#allocation5 + $0x15e0] sm:$0xff]  ;;  %v14907_v39 = vpack.c.bf16 %v980_v25, %v980_v25  ;;  %7358 = vmatprep.subr.bf16.mxu0 %v12498_v33 }
 0x1a5   : > { %v1568_v30 = vld [vmem:[#allocation5 + $0x1180] sm:$0xff]  ;;  %v12626_v37 = vcombine.high %v1704_v23, %v1708_v26  ;;  %v12625_v43 = vcombine.low %v1704_v23, %v1708_v26 }
 0x1a6   : > { %v1572_v34 = vld [vmem:[#allocation5 + $0x11a0] sm:$0xff]  ;;  %7309 = vmatmul.mubr.bf16.vlgmr.msra.gmra.mxu0 %v14907_v39  ;;  %7350 = vmatmul.mubr.bf16.vlgmr.msra.gmra.mxu1 %v14909_v40 }
 0x1a7   : > { %v1696_v35 = vld [vmem:[#allocation5 + $0x1580] sm:$0xff]  ;;  %v12490_v44 = vcombine.high %v1568_v30, %v1572_v34  ;;  %7399 = vmatprep.subr.bf16.mxu1 %v12626_v37  ;;  %7359 = vmatpush1.bf16.msra.mxu0 %v12497_v41  ;;  %v12489_v52 = vcombine.low %v1568_v30, %v1572_v34 }
 0x1a8   : > { %v1700_v36 = vld [vmem:[#allocation5 + $0x15a0] sm:$0xff]  ;;  %7400 = vmatpush1.bf16.msra.mxu1 %v12625_v43  ;;  %7390 = vmatprep.mubr.bf16.mxu0 %v14912_v49 }
 0x1a9   : > { %v12618_v45 = vcombine.high %v1696_v35, %v1700_v36  ;;  %v1560_v46 = vld [vmem:[#allocation5 + $0x1140] sm:$0xff]  ;;  %7360 = vmatprep.subr.bf16.mxu0 %v12490_v44  ;;  %v12617_v53 = vcombine.low %v1696_v35, %v1700_v36  ;;  %7431 = vmatprep.mubr.bf16.mxu1 %v14915_v51 }
 0x1aa   : > { %v1564_v47 = vld [vmem:[#allocation5 + $0x1160] sm:$0xff] }
 0x1ab   : > { %v1688_v48 = vld [vmem:[#allocation5 + $0x1540] sm:$0xff]  ;;  %v12482_v54 = vcombine.high %v1560_v46, %v1564_v47  ;;  %7401 = vmatprep.subr.bf16.mxu1 %v12618_v45  ;;  %7361 = vmatpush1.bf16.msra.mxu0 %v12489_v52  ;;  %v12481_v62 = vcombine.low %v1560_v46, %v1564_v47 }
 0x1ac   : > { %v1692_v50 = vld [vmem:[#allocation5 + $0x1560] sm:$0xff]  ;;  %7402 = vmatpush1.bf16.msra.mxu1 %v12617_v53 }
 0x1ad   : > { %v1552_v55 = vld [vmem:[#allocation5 + $0x1100] sm:$0xff]  ;;  %v12610_v60 = vcombine.high %v1688_v48, %v1692_v50  ;;  %7362 = vmatprep.subr.bf16.mxu0 %v12482_v54  ;;  %v12609_v63 = vcombine.low %v1688_v48, %v1692_v50 }
 0x1ae   : > { %v1556_v56 = vld [vmem:[#allocation5 + $0x1120] sm:$0xff] }
 0x1af   : > { %v1680_v57 = vld [vmem:[#allocation5 + $0x1500] sm:$0xff]  ;;  %v12474_v0 = vcombine.high %v1552_v55, %v1556_v56  ;;  %7403 = vmatprep.subr.bf16.mxu1 %v12610_v60  ;;  %7363 = vmatpush1.bf16.msra.mxu0 %v12481_v62  ;;  %v12473_v6 = vcombine.low %v1552_v55, %v1556_v56 }
 0x1b0   : > { %v1684_v61 = vld [vmem:[#allocation5 + $0x1520] sm:$0xff]  ;;  %7404 = vmatpush1.bf16.msra.mxu1 %v12609_v63 }
 0x1b1   : > { %v1544_v1 = vld [vmem:[#allocation5 + $0x10c0] sm:$0xff]  ;;  %v12602_v4 = vcombine.high %v1680_v57, %v1684_v61  ;;  %7364 = vmatprep.subr.bf16.mxu0 %v12474_v0  ;;  %v12601_v7 = vcombine.low %v1680_v57, %v1684_v61 }
 0x1b2   : > { %v1548_v2 = vld [vmem:[#allocation5 + $0x10e0] sm:$0xff] }
 0x1b3   : > { %v1672_v3 = vld [vmem:[#allocation5 + $0x14c0] sm:$0xff]  ;;  %v12466_v8 = vcombine.high %v1544_v1, %v1548_v2  ;;  %7405 = vmatprep.subr.bf16.mxu1 %v12602_v4  ;;  %7365 = vmatpush1.bf16.msra.mxu0 %v12473_v6  ;;  %v12465_v14 = vcombine.low %v1544_v1, %v1548_v2 }
 0x1b4   : > { %v1676_v5 = vld [vmem:[#allocation5 + $0x14e0] sm:$0xff]  ;;  %7406 = vmatpush1.bf16.msra.mxu1 %v12601_v7 }
 0x1b5   : > { %v1536_v9 = vld [vmem:[#allocation5 + $0x1080] sm:$0xff]  ;;  %v12594_v12 = vcombine.high %v1672_v3, %v1676_v5  ;;  %7366 = vmatprep.subr.bf16.mxu0 %v12466_v8  ;;  %v12593_v15 = vcombine.low %v1672_v3, %v1676_v5 }
 0x1b6   : > { %v1540_v10 = vld [vmem:[#allocation5 + $0x10a0] sm:$0xff] }
 0x1b7   : > { %v1664_v11 = vld [vmem:[#allocation5 + $0x1480] sm:$0xff]  ;;  %v12458_v17 = vcombine.high %v1536_v9, %v1540_v10  ;;  %7407 = vmatprep.subr.bf16.mxu1 %v12594_v12  ;;  %7367 = vmatpush1.bf16.msra.mxu0 %v12465_v14  ;;  %v12457_v24 = vcombine.low %v1536_v9, %v1540_v10 }
 0x1b8   : > { %v1668_v13 = vld [vmem:[#allocation5 + $0x14a0] sm:$0xff]  ;;  %7408 = vmatpush1.bf16.msra.mxu1 %v12593_v15 }
 0x1b9   : > { %v1528_v18 = vld [vmem:[#allocation5 + $0x1040] sm:$0xff]  ;;  %v12586_v22 = vcombine.high %v1664_v11, %v1668_v13  ;;  %7368 = vmatprep.subr.bf16.mxu0 %v12458_v17  ;;  %v12585_v25 = vcombine.low %v1664_v11, %v1668_v13 }
 0x1ba   : > { %v1532_v19 = vld [vmem:[#allocation5 + $0x1060] sm:$0xff] }
 0x1bb   : > { %v1656_v21 = vld [vmem:[#allocation5 + $0x1440] sm:$0xff]  ;;  %v12450_v26 = vcombine.high %v1528_v18, %v1532_v19  ;;  %7409 = vmatprep.subr.bf16.mxu1 %v12586_v22  ;;  %7369 = vmatpush1.bf16.msra.mxu0 %v12457_v24  ;;  %v12449_v34 = vcombine.low %v1528_v18, %v1532_v19 }
 0x1bc   : > { %v1660_v23 = vld [vmem:[#allocation5 + $0x1460] sm:$0xff]  ;;  %7410 = vmatpush1.bf16.msra.mxu1 %v12585_v25 }
 0x1bd   : > { %v1520_v27 = vld [vmem:[#allocation5 + $0x1000] sm:$0xff]  ;;  %v12578_v32 = vcombine.high %v1656_v21, %v1660_v23  ;;  %7370 = vmatprep.subr.bf16.mxu0 %v12450_v26  ;;  %v12577_v35 = vcombine.low %v1656_v21, %v1660_v23 }
 0x1be   : > { %v1524_v29 = vld [vmem:[#allocation5 + $0x1020] sm:$0xff] }
 0x1bf   : > { %v1648_v30 = vld [vmem:[#allocation5 + $0x1400] sm:$0xff]  ;;  %v12442_v36 = vcombine.high %v1520_v27, %v1524_v29  ;;  %7411 = vmatprep.subr.bf16.mxu1 %v12578_v32  ;;  %7371 = vmatpush1.bf16.msra.mxu0 %v12449_v34  ;;  %v12441_v44 = vcombine.low %v1520_v27, %v1524_v29 }
 0x1c0   : > { %v1652_v33 = vld [vmem:[#allocation5 + $0x1420] sm:$0xff]  ;;  %7412 = vmatpush1.bf16.msra.mxu1 %v12577_v35 }
 0x1c1   : > { %v1640_v37 = vld [vmem:[#allocation5 + $0x13c0] sm:$0xff]  ;;  %v12570_v42 = vcombine.high %v1648_v30, %v1652_v33  ;;  %7372 = vmatprep.subr.bf16.mxu0 %v12442_v36  ;;  %v12569_v45 = vcombine.low %v1648_v30, %v1652_v33 }
 0x1c2   : > { %v1644_v38 = vld [vmem:[#allocation5 + $0x13e0] sm:$0xff] }
 0x1c3   : > { %v1768_v41 = vld [vmem:[#allocation5 + $0x17c0] sm:$0xff]  ;;  %v12562_v46 = vcombine.high %v1640_v37, %v1644_v38  ;;  %7413 = vmatprep.subr.bf16.mxu1 %v12570_v42  ;;  %7373 = vmatpush1.bf16.msra.mxu0 %v12441_v44  ;;  %v12561_v54 = vcombine.low %v1640_v37, %v1644_v38 }
 0x1c4   : > { %v1772_v43 = vld [vmem:[#allocation5 + $0x17e0] sm:$0xff]  ;;  %7414 = vmatpush1.bf16.msra.mxu1 %v12569_v45 }
 0x1c5   : > { %v1632_v47 = vld [vmem:[#allocation5 + $0x1380] sm:$0xff]  ;;  %v12690_v52 = vcombine.high %v1768_v41, %v1772_v43  ;;  %7374 = vmatprep.subr.bf16.mxu0 %v12562_v46  ;;  %v12689_v55 = vcombine.low %v1768_v41, %v1772_v43 }
 0x1c6   : > { %v1636_v48 = vld [vmem:[#allocation5 + $0x13a0] sm:$0xff] }
 0x1c7   : > { %v1760_v50 = vld [vmem:[#allocation5 + $0x1780] sm:$0xff]  ;;  %v12554_v56 = vcombine.high %v1632_v47, %v1636_v48  ;;  %7415 = vmatprep.subr.bf16.mxu1 %v12690_v52  ;;  %7375 = vmatpush2.bf16.msra.mxu0 %v12561_v54  ;;  %v12553_v0 = vcombine.low %v1632_v47, %v1636_v48 }
 0x1c8   : > { %v1764_v53 = vld [vmem:[#allocation5 + $0x17a0] sm:$0xff]  ;;  %7416 = vmatpush2.bf16.msra.mxu1 %v12689_v55 }
 0x1c9   : > { %v1624_v57 = vld [vmem:[#allocation5 + $0x1340] sm:$0xff]  ;;  %v12682_v61 = vcombine.high %v1760_v50, %v1764_v53  ;;  %7376 = vmatprep.subr.bf16.mxu0 %v12554_v56  ;;  %v12681_v1 = vcombine.low %v1760_v50, %v1764_v53 }
 0x1ca   : > { %v1628_v60 = vld [vmem:[#allocation5 + $0x1360] sm:$0xff] }
 0x1cb   : > { %v1752_v62 = vld [vmem:[#allocation5 + $0x1740] sm:$0xff]  ;;  %v12546_v2 = vcombine.high %v1624_v57, %v1628_v60  ;;  %7417 = vmatprep.subr.bf16.mxu1 %v12682_v61  ;;  %7377 = vmatpush2.bf16.msra.mxu0 %v12553_v0  ;;  %v12545_v8 = vcombine.low %v1624_v57, %v1628_v60  ;;  %v986_v61 = vld [vmem:[%s14842_s18 + $0x50] sm:$0xff] }
 0x1cc   : > { %v1756_v63 = vld [vmem:[#allocation5 + $0x1760] sm:$0xff]  ;;  %7418 = vmatpush2.bf16.msra.mxu1 %v12681_v1 }
 0x1cd   : > { %v12674_v3 = vcombine.high %v1752_v62, %v1756_v63  ;;  %v1616_v4 = vld [vmem:[#allocation5 + $0x1300] sm:$0xff]  ;;  %7378 = vmatprep.subr.bf16.mxu0 %v12546_v2  ;;  %v12673_v9 = vcombine.low %v1752_v62, %v1756_v63 }
 0x1ce   : > { %v1620_v5 = vld [vmem:[#allocation5 + $0x1320] sm:$0xff] }
 0x1cf   : > { %v1744_v6 = vld [vmem:[#allocation5 + $0x1700] sm:$0xff]  ;;  %v12538_v10 = vcombine.high %v1616_v4, %v1620_v5  ;;  %7419 = vmatprep.subr.bf16.mxu1 %v12674_v3  ;;  %7379 = vmatpush2.bf16.msra.mxu0 %v12545_v8  ;;  %v12537_v17 = vcombine.low %v1616_v4, %v1620_v5  ;;  %v989_v5 = vld [vmem:[%s14842_s18 + $0x68] sm:$0xff]  ;;  %v991_v8 = vld [vmem:[%s14842_s18 + $0x78] sm:$0xff] }
 0x1d0   : > { %v1748_v7 = vld [vmem:[#allocation5 + $0x1720] sm:$0xff]  ;;  %7420 = vmatpush2.bf16.msra.mxu1 %v12673_v9 }
 0x1d1   : > { %v12666_v11 = vcombine.high %v1744_v6, %v1748_v7  ;;  %v1608_v12 = vld [vmem:[#allocation5 + $0x12c0] sm:$0xff]  ;;  %7380 = vmatprep.subr.bf16.mxu0 %v12538_v10  ;;  %v12665_v18 = vcombine.low %v1744_v6, %v1748_v7  ;;  %v14925_v6 = vpack.c.bf16 %v986_v61, %v986_v61 }
 0x1d2   : > { %v1612_v13 = vld [vmem:[#allocation5 + $0x12e0] sm:$0xff] }
 0x1d3   : > { %v1736_v14 = vld [vmem:[#allocation5 + $0x16c0] sm:$0xff]  ;;  %v12530_v19 = vcombine.high %v1608_v12, %v1612_v13  ;;  %7421 = vmatprep.subr.bf16.mxu1 %v12666_v11  ;;  %7381 = vmatpush2.bf16.msra.mxu0 %v12537_v17  ;;  %v12529_v26 = vcombine.low %v1608_v12, %v1612_v13 }
 0x1d4   : > { %v1740_v15 = vld [vmem:[#allocation5 + $0x16e0] sm:$0xff]  ;;  %7422 = vmatpush2.bf16.msra.mxu1 %v12665_v18  ;;  %v14931_v18 = vpack.c.bf16 %v991_v8, %v991_v8 }
 0x1d5   : > { %v12658_v21 = vcombine.high %v1736_v14, %v1740_v15  ;;  %v1600_v22 = vld [vmem:[#allocation5 + $0x1280] sm:$0xff]  ;;  %7382 = vmatprep.subr.bf16.mxu0 %v12530_v19  ;;  %v12657_v27 = vcombine.low %v1736_v14, %v1740_v15  ;;  %v14928_v14 = vpack.c.bf16 %v989_v5, %v989_v5 }
 0x1d6   : > { %v1604_v23 = vld [vmem:[#allocation5 + $0x12a0] sm:$0xff] }
 0x1d7   : > { %v1728_v24 = vld [vmem:[#allocation5 + $0x1680] sm:$0xff]  ;;  %v12522_v29 = vcombine.high %v1600_v22, %v1604_v23  ;;  %7423 = vmatprep.subr.bf16.mxu1 %v12658_v21  ;;  %7383 = vmatpush2.bf16.msra.mxu0 %v12529_v26  ;;  %v12521_v36 = vcombine.low %v1600_v22, %v1604_v23 }
 0x1d8   : > { %v1732_v25 = vld [vmem:[#allocation5 + $0x16a0] sm:$0xff]  ;;  %7424 = vmatpush2.bf16.msra.mxu1 %v12657_v27 }
 0x1d9   : > { %v12650_v30 = vcombine.high %v1728_v24, %v1732_v25  ;;  %v1592_v32 = vld [vmem:[#allocation5 + $0x1240] sm:$0xff]  ;;  %7384 = vmatprep.subr.bf16.mxu0 %v12522_v29  ;;  %v12649_v37 = vcombine.low %v1728_v24, %v1732_v25 }
 0x1da   : > { %v1596_v33 = vld [vmem:[#allocation5 + $0x1260] sm:$0xff] }
 0x1db   : > { %v1720_v34 = vld [vmem:[#allocation5 + $0x1640] sm:$0xff]  ;;  %v12514_v38 = vcombine.high %v1592_v32, %v1596_v33  ;;  %7425 = vmatprep.subr.bf16.mxu1 %v12650_v30  ;;  %7385 = vmatpush2.bf16.msra.mxu0 %v12521_v36  ;;  %v12513_v46 = vcombine.low %v1592_v32, %v1596_v33 }
 0x1dc   : > { %v1724_v35 = vld [vmem:[#allocation5 + $0x1660] sm:$0xff]  ;;  %7426 = vmatpush2.bf16.msra.mxu1 %v12649_v37 }
 0x1dd   : > { %v12642_v41 = vcombine.high %v1720_v34, %v1724_v35  ;;  %v1584_v42 = vld [vmem:[#allocation5 + $0x1200] sm:$0xff]  ;;  %7386 = vmatprep.subr.bf16.mxu0 %v12514_v38  ;;  %v12641_v47 = vcombine.low %v1720_v34, %v1724_v35 }
 0x1de   : > { %v1588_v43 = vld [vmem:[#allocation5 + $0x1220] sm:$0xff] }
 0x1df   : > { %v1712_v44 = vld [vmem:[#allocation5 + $0x1600] sm:$0xff]  ;;  %v12506_v48 = vcombine.high %v1584_v42, %v1588_v43  ;;  %7427 = vmatprep.subr.bf16.mxu1 %v12642_v41  ;;  %7387 = vmatpush2.bf16.msra.mxu0 %v12513_v46  ;;  %v12505_v56 = vcombine.low %v1584_v42, %v1588_v43 }
 0x1e0   : > { %v1716_v45 = vld [vmem:[#allocation5 + $0x1620] sm:$0xff]  ;;  %7428 = vmatpush2.bf16.msra.mxu1 %v12641_v47 }
 0x1e1   : > { %v12634_v50 = vcombine.high %v1712_v44, %v1716_v45  ;;  %v1832_v52 = vld [vmem:[#allocation5 + $0x19c0] sm:$0xff]  ;;  %7388 = vmatprep.subr.bf16.mxu0 %v12506_v48  ;;  %v12633_v60 = vcombine.low %v1712_v44, %v1716_v45 }
 0x1e2   : > { %v1836_v53 = vld [vmem:[#allocation5 + $0x19e0] sm:$0xff] }
 0x1e3   : > { %v1960_v54 = vld [vmem:[#allocation5 + $0x1dc0] sm:$0xff]  ;;  %v12754_v62 = vcombine.high %v1832_v52, %v1836_v53  ;;  %7429 = vmatprep.subr.bf16.mxu1 %v12634_v50  ;;  %7389 = vmatpush2.bf16.msra.mxu0 %v12505_v56  ;;  %v12753_v7 = vcombine.low %v1832_v52, %v1836_v53 }
 0x1e4   : > { %v1964_v55 = vld [vmem:[#allocation5 + $0x1de0] sm:$0xff]  ;;  %7430 = vmatpush2.bf16.msra.mxu1 %v12633_v60 }
 0x1e5   : > { %v984_v57 = vld [vmem:[%s14842_s18 + $0x40] sm:$0xff]  ;;  %v12882_v63 = vcombine.high %v1960_v54, %v1964_v55  ;;  %7440 = vmatprep.subr.bf16.mxu0 %v12754_v62  ;;  %v12881_v9 = vcombine.low %v1960_v54, %v1964_v55 }
 0x1e6   : > { %v1824_v0 = vld [vmem:[#allocation5 + $0x1980] sm:$0xff]  ;;  %v14922_v2 = vpack.c.bf16 %v984_v57, %v984_v57 }
 0x1e7   : > { %v1828_v1 = vld [vmem:[#allocation5 + $0x19a0] sm:$0xff]  ;;  %7481 = vmatprep.subr.bf16.mxu1 %v12882_v63  ;;  %7432 = vmatmul.mubr.bf16.vlgmr.msra.gmra.mxu1 %v14925_v6 }
 0x1e8   : > { %v1952_v3 = vld [vmem:[#allocation5 + $0x1d80] sm:$0xff]  ;;  %v12746_v10 = vcombine.high %v1824_v0, %v1828_v1  ;;  %7391 = vmatmul.mubr.bf16.vlgmr.msra.gmra.mxu0 %v14922_v2  ;;  %v12745_v19 = vcombine.low %v1824_v0, %v1828_v1  ;;  %7482 = vmatpush1.bf16.msra.mxu1 %v12881_v9 }
 0x1e9   : > { %v1956_v4 = vld [vmem:[#allocation5 + $0x1da0] sm:$0xff]  ;;  %7441 = vmatpush1.bf16.msra.mxu0 %v12753_v7  ;;  %7472 = vmatprep.mubr.bf16.mxu0 %v14928_v14 }
 0x1ea   : > { %v12874_v11 = vcombine.high %v1952_v3, %v1956_v4  ;;  %v1816_v12 = vld [vmem:[#allocation5 + $0x1940] sm:$0xff]  ;;  %7442 = vmatprep.subr.bf16.mxu0 %v12746_v10  ;;  %v12873_v21 = vcombine.low %v1952_v3, %v1956_v4  ;;  %7513 = vmatprep.mubr.bf16.mxu1 %v14931_v18 }
 0x1eb   : > { %v1820_v13 = vld [vmem:[#allocation5 + $0x1960] sm:$0xff] }
 0x1ec   : > { %v1944_v15 = vld [vmem:[#allocation5 + $0x1d40] sm:$0xff]  ;;  %v12738_v22 = vcombine.high %v1816_v12, %v1820_v13  ;;  %7483 = vmatprep.subr.bf16.mxu1 %v12874_v11  ;;  %v12737_v29 = vcombine.low %v1816_v12, %v1820_v13 }
 0x1ed   : > { %v1948_v17 = vld [vmem:[#allocation5 + $0x1d60] sm:$0xff]  ;;  %7443 = vmatpush1.bf16.msra.mxu0 %v12745_v19  ;;  %7484 = vmatpush1.bf16.msra.mxu1 %v12873_v21 }
 0x1ee   : > { %v12866_v23 = vcombine.high %v1944_v15, %v1948_v17  ;;  %v1808_v24 = vld [vmem:[#allocation5 + $0x1900] sm:$0xff]  ;;  %7444 = vmatprep.subr.bf16.mxu0 %v12738_v22  ;;  %v12865_v30 = vcombine.low %v1944_v15, %v1948_v17 }
 0x1ef   : > { %v1812_v25 = vld [vmem:[#allocation5 + $0x1920] sm:$0xff] }
 0x1f0   : > { %v1936_v26 = vld [vmem:[#allocation5 + $0x1d00] sm:$0xff]  ;;  %v12730_v32 = vcombine.high %v1808_v24, %v1812_v25  ;;  %7485 = vmatprep.subr.bf16.mxu1 %v12866_v23  ;;  %v12729_v38 = vcombine.low %v1808_v24, %v1812_v25 }
 0x1f1   : > { %v1940_v27 = vld [vmem:[#allocation5 + $0x1d20] sm:$0xff]  ;;  %7445 = vmatpush1.bf16.msra.mxu0 %v12737_v29  ;;  %7486 = vmatpush1.bf16.msra.mxu1 %v12865_v30 }
 0x1f2   : > { %v12858_v33 = vcombine.high %v1936_v26, %v1940_v27  ;;  %v1800_v34 = vld [vmem:[#allocation5 + $0x18c0] sm:$0xff]  ;;  %7446 = vmatprep.subr.bf16.mxu0 %v12730_v32  ;;  %v12857_v41 = vcombine.low %v1936_v26, %v1940_v27 }
 0x1f3   : > { %v1804_v35 = vld [vmem:[#allocation5 + $0x18e0] sm:$0xff] }
 0x1f4   : > { %v1928_v36 = vld [vmem:[#allocation5 + $0x1cc0] sm:$0xff]  ;;  %v12722_v42 = vcombine.high %v1800_v34, %v1804_v35  ;;  %7487 = vmatprep.subr.bf16.mxu1 %v12858_v33  ;;  %v12721_v48 = vcombine.low %v1800_v34, %v1804_v35 }
 0x1f5   : > { %v1932_v37 = vld [vmem:[#allocation5 + $0x1ce0] sm:$0xff]  ;;  %7447 = vmatpush1.bf16.msra.mxu0 %v12729_v38  ;;  %7488 = vmatpush1.bf16.msra.mxu1 %v12857_v41 }
 0x1f6   : > { %v12850_v43 = vcombine.high %v1928_v36, %v1932_v37  ;;  %v1792_v44 = vld [vmem:[#allocation5 + $0x1880] sm:$0xff]  ;;  %7448 = vmatprep.subr.bf16.mxu0 %v12722_v42  ;;  %v12849_v50 = vcombine.low %v1928_v36, %v1932_v37 }
 0x1f7   : > { %v1796_v45 = vld [vmem:[#allocation5 + $0x18a0] sm:$0xff] }
 0x1f8   : > { %v1920_v46 = vld [vmem:[#allocation5 + $0x1c80] sm:$0xff]  ;;  %v12714_v52 = vcombine.high %v1792_v44, %v1796_v45  ;;  %7489 = vmatprep.subr.bf16.mxu1 %v12850_v43  ;;  %v12713_v60 = vcombine.low %v1792_v44, %v1796_v45 }
 0x1f9   : > { %v1924_v47 = vld [vmem:[#allocation5 + $0x1ca0] sm:$0xff]  ;;  %7449 = vmatpush1.bf16.msra.mxu0 %v12721_v48  ;;  %7490 = vmatpush1.bf16.msra.mxu1 %v12849_v50 }
 0x1fa   : > { %v12842_v53 = vcombine.high %v1920_v46, %v1924_v47  ;;  %v1784_v54 = vld [vmem:[#allocation5 + $0x1840] sm:$0xff]  ;;  %7450 = vmatprep.subr.bf16.mxu0 %v12714_v52  ;;  %v12841_v61 = vcombine.low %v1920_v46, %v1924_v47 }
 0x1fb   : > { %v1788_v55 = vld [vmem:[#allocation5 + $0x1860] sm:$0xff] }
 0x1fc   : > { %v1912_v56 = vld [vmem:[#allocation5 + $0x1c40] sm:$0xff]  ;;  %v12706_v62 = vcombine.high %v1784_v54, %v1788_v55  ;;  %7491 = vmatprep.subr.bf16.mxu1 %v12842_v53  ;;  %v12705_v5 = vcombine.low %v1784_v54, %v1788_v55 }
 0x1fd   : > { %v1916_v57 = vld [vmem:[#allocation5 + $0x1c60] sm:$0xff]  ;;  %7451 = vmatpush1.bf16.msra.mxu0 %v12713_v60  ;;  %7492 = vmatpush1.bf16.msra.mxu1 %v12841_v61 }
 0x1fe   : > { %v12834_v63 = vcombine.high %v1912_v56, %v1916_v57  ;;  %v1776_v0 = vld [vmem:[#allocation5 + $0x1800] sm:$0xff]  ;;  %7452 = vmatprep.subr.bf16.mxu0 %v12706_v62  ;;  %v12833_v7 = vcombine.low %v1912_v56, %v1916_v57 }
 0x1ff   : > { %v1780_v1 = vld [vmem:[#allocation5 + $0x1820] sm:$0xff] }
 0x200   : > { %v1904_v3 = vld [vmem:[#allocation5 + $0x1c00] sm:$0xff]  ;;  %v12698_v8 = vcombine.high %v1776_v0, %v1780_v1  ;;  %7493 = vmatprep.subr.bf16.mxu1 %v12834_v63  ;;  %v12697_v15 = vcombine.low %v1776_v0, %v1780_v1 }
 0x201   : > { %v1908_v4 = vld [vmem:[#allocation5 + $0x1c20] sm:$0xff]  ;;  %7453 = vmatpush1.bf16.msra.mxu0 %v12705_v5  ;;  %7494 = vmatpush1.bf16.msra.mxu1 %v12833_v7 }
 0x202   : > { %v12826_v9 = vcombine.high %v1904_v3, %v1908_v4  ;;  %v1896_v10 = vld [vmem:[#allocation5 + $0x1bc0] sm:$0xff]  ;;  %7454 = vmatprep.subr.bf16.mxu0 %v12698_v8  ;;  %v12825_v17 = vcombine.low %v1904_v3, %v1908_v4 }
 0x203   : > { %v1900_v11 = vld [vmem:[#allocation5 + $0x1be0] sm:$0xff] }
 0x204   : > { %v2024_v12 = vld [vmem:[#allocation5 + $0x1fc0] sm:$0xff]  ;;  %v12818_v19 = vcombine.high %v1896_v10, %v1900_v11  ;;  %7495 = vmatprep.subr.bf16.mxu1 %v12826_v9  ;;  %v12817_v26 = vcombine.low %v1896_v10, %v1900_v11 }
 0x205   : > { %v2028_v13 = vld [vmem:[#allocation5 + $0x1fe0] sm:$0xff]  ;;  %7455 = vmatpush1.bf16.msra.mxu0 %v12697_v15  ;;  %7496 = vmatpush1.bf16.msra.mxu1 %v12825_v17 }
 0x206   : > { %v12946_v21 = vcombine.high %v2024_v12, %v2028_v13  ;;  %v1888_v22 = vld [vmem:[#allocation5 + $0x1b80] sm:$0xff]  ;;  %7456 = vmatprep.subr.bf16.mxu0 %v12818_v19  ;;  %v12945_v27 = vcombine.low %v2024_v12, %v2028_v13  ;;  %v2034_v13 = vlaneseq }
 0x207   : > { %v1892_v23 = vld [vmem:[#allocation5 + $0x1ba0] sm:$0xff] }
 0x208   : > { %v2016_v24 = vld [vmem:[#allocation5 + $0x1f80] sm:$0xff]  ;;  %v12810_v29 = vcombine.high %v1888_v22, %v1892_v23  ;;  %7497 = vmatprep.subr.bf16.mxu1 %v12946_v21  ;;  %v12809_v36 = vcombine.low %v1888_v22, %v1892_v23 }
 0x209   : > { %v2020_v25 = vld [vmem:[#allocation5 + $0x1fa0] sm:$0xff]  ;;  %7457 = vmatpush2.bf16.msra.mxu0 %v12817_v26  ;;  %7498 = vmatpush2.bf16.msra.mxu1 %v12945_v27  ;;  %v14936_v26 = vshrl.u32 %v2034_v13, 7  ;;  %v1041_v13 = vld [vmem:[#allocation5 + $0x108] sm:$0xff] }
 0x20a   : > { %v12938_v30 = vcombine.high %v2016_v24, %v2020_v25  ;;  %v1880_v32 = vld [vmem:[#allocation5 + $0x1b40] sm:$0xff]  ;;  %7458 = vmatprep.subr.bf16.mxu0 %v12810_v29  ;;  %v12937_v37 = vcombine.low %v2016_v24, %v2020_v25 }
 0x20b   : > { %v1884_v33 = vld [vmem:[#allocation5 + $0x1b60] sm:$0xff] }
 0x20c   : > { %v2008_v34 = vld [vmem:[#allocation5 + $0x1f40] sm:$0xff]  ;;  %v12802_v38 = vcombine.high %v1880_v32, %v1884_v33  ;;  %7499 = vmatprep.subr.bf16.mxu1 %v12938_v30  ;;  %v12801_v46 = vcombine.low %v1880_v32, %v1884_v33  ;;  %v1065_v32 = vld [vmem:[#allocation5 + $0x1c8] sm:$0xff] }
 0x20d   : > { %v2012_v35 = vld [vmem:[#allocation5 + $0x1f60] sm:$0xff]  ;;  %7459 = vmatpush2.bf16.msra.mxu0 %v12809_v36  ;;  %7500 = vmatpush2.bf16.msra.mxu1 %v12937_v37  ;;  %v1069_v33 = vld [vmem:[#allocation5 + $0x1e8] sm:$0xff]  ;;  %v14939_v37 = vsub.s32 0, %v14936_v26 }
 0x20e   : > { %v12930_v41 = vcombine.high %v2008_v34, %v2012_v35  ;;  %v1872_v42 = vld [vmem:[#allocation5 + $0x1b00] sm:$0xff]  ;;  %7460 = vmatprep.subr.bf16.mxu0 %v12802_v38  ;;  %v12929_v47 = vcombine.low %v2008_v34, %v2012_v35  ;;  %v1193_v34 = vld [vmem:[#allocation5 + $0x5c8] sm:$0xff] }
 0x20f   : > { %v1876_v43 = vld [vmem:[#allocation5 + $0x1b20] sm:$0xff]  ;;  %v1197_v35 = vld [vmem:[#allocation5 + $0x5e8] sm:$0xff] }
 0x210   : > { %v2000_v44 = vld [vmem:[#allocation5 + $0x1f00] sm:$0xff]  ;;  %v12794_v48 = vcombine.high %v1872_v42, %v1876_v43  ;;  %7501 = vmatprep.subr.bf16.mxu1 %v12930_v41  ;;  %v12793_v56 = vcombine.low %v1872_v42, %v1876_v43  ;;  %v990_v43 = vld [vmem:[%s14842_s18 + $0x70] sm:$0xff] }
 0x211   : > { %v2004_v45 = vld [vmem:[#allocation5 + $0x1f20] sm:$0xff]  ;;  %7461 = vmatpush2.bf16.msra.mxu0 %v12801_v46  ;;  %7502 = vmatpush2.bf16.msra.mxu1 %v12929_v47  ;;  %v1057_v46 = vld [vmem:[#allocation5 + $0x188] sm:$0xff] }
 0x212   : > { %v12922_v50 = vcombine.high %v2000_v44, %v2004_v45  ;;  %v1864_v52 = vld [vmem:[#allocation5 + $0x1ac0] sm:$0xff]  ;;  %7462 = vmatprep.subr.bf16.mxu0 %v12794_v48  ;;  %v12921_v57 = vcombine.low %v2000_v44, %v2004_v45  ;;  %v11988_v44 = vcombine.high %v1065_v32, %v1069_v33  ;;  %v12116_v45 = vcombine.high %v1193_v34, %v1197_v35  ;;  %v1061_v47 = vld [vmem:[#allocation5 + $0x1a8] sm:$0xff] }
 0x213   : > { %v1868_v53 = vld [vmem:[#allocation5 + $0x1ae0] sm:$0xff] }
 0x214   : > { %v1992_v54 = vld [vmem:[#allocation5 + $0x1ec0] sm:$0xff]  ;;  %v12786_v60 = vcombine.high %v1864_v52, %v1868_v53  ;;  %7503 = vmatprep.subr.bf16.mxu1 %v12922_v50  ;;  %v12785_v3 = vcombine.low %v1864_v52, %v1868_v53  ;;  %v1185_v50 = vld [vmem:[#allocation5 + $0x588] sm:$0xff] }
 0x215   : > { %v1996_v55 = vld [vmem:[#allocation5 + $0x1ee0] sm:$0xff]  ;;  %7463 = vmatpush2.bf16.msra.mxu0 %v12793_v56  ;;  %7504 = vmatpush2.bf16.msra.mxu1 %v12921_v57  ;;  %v1189_v52 = vld [vmem:[#allocation5 + $0x5a8] sm:$0xff]  ;;  %v12115_v56 = vcombine.low %v1193_v34, %v1197_v35  ;;  %v11980_v57 = vcombine.high %v1057_v46, %v1061_v47 }
 0x216   : > { %v12914_v61 = vcombine.high %v1992_v54, %v1996_v55  ;;  %v1856_v62 = vld [vmem:[#allocation5 + $0x1a80] sm:$0xff]  ;;  %7464 = vmatprep.subr.bf16.mxu0 %v12786_v60  ;;  %v12913_v4 = vcombine.low %v1992_v54, %v1996_v55  ;;  %v14949_v54 = vpack.c.bf16 %v990_v43, %v990_v43  ;;  %v11987_v55 = vcombine.low %v1065_v32, %v1069_v33  ;;  %v1033_v32 = vld [vmem:[#allocation5 + $0xc8] sm:$0xff] }
 0x217   : > { %v1860_v63 = vld [vmem:[#allocation5 + $0x1aa0] sm:$0xff]  ;;  %v12108_v60 = vcombine.high %v1185_v50, %v1189_v52  ;;  %v1037_v33 = vld [vmem:[#allocation5 + $0xe8] sm:$0xff] }
 0x218   : > { %v1984_v0 = vld [vmem:[#allocation5 + $0x1e80] sm:$0xff]  ;;  %v12778_v5 = vcombine.high %v1856_v62, %v1860_v63  ;;  %7505 = vmatprep.subr.bf16.mxu1 %v12914_v61  ;;  %v12777_v12 = vcombine.low %v1856_v62, %v1860_v63  ;;  %v1049_v61 = vld [vmem:[#allocation5 + $0x148] sm:$0xff] }
 0x219   : > { %v1988_v1 = vld [vmem:[#allocation5 + $0x1ea0] sm:$0xff]  ;;  %7465 = vmatpush2.bf16.msra.mxu0 %v12785_v3  ;;  %7506 = vmatpush2.bf16.msra.mxu1 %v12913_v4  ;;  %v1053_v62 = vld [vmem:[#allocation5 + $0x168] sm:$0xff] }
 0x21a   : > { %v12906_v7 = vcombine.high %v1984_v0, %v1988_v1  ;;  %v1848_v8 = vld [vmem:[#allocation5 + $0x1a40] sm:$0xff]  ;;  %7466 = vmatprep.subr.bf16.mxu0 %v12778_v5  ;;  %v12905_v15 = vcombine.low %v1984_v0, %v1988_v1  ;;  %v1177_v0 = vld [vmem:[#allocation5 + $0x548] sm:$0xff]  ;;  %v11979_v5 = vcombine.low %v1057_v46, %v1061_v47 }
 0x21b   : > { %v1852_v9 = vld [vmem:[#allocation5 + $0x1a60] sm:$0xff]  ;;  %v1181_v1 = vld [vmem:[#allocation5 + $0x568] sm:$0xff] }
 0x21c   : > { %v1976_v10 = vld [vmem:[#allocation5 + $0x1e40] sm:$0xff]  ;;  %v12770_v17 = vcombine.high %v1848_v8, %v1852_v9  ;;  %7507 = vmatprep.subr.bf16.mxu1 %v12906_v7  ;;  %v12769_v25 = vcombine.low %v1848_v8, %v1852_v9  ;;  %v12107_v8 = vcombine.low %v1185_v50, %v1189_v52  ;;  %v11972_v9 = vcombine.high %v1049_v61, %v1053_v62  ;;  %v1161_v34 = vld [vmem:[#allocation5 + $0x4c8] sm:$0xff] }
 0x21d   : > { %v1980_v11 = vld [vmem:[#allocation5 + $0x1e60] sm:$0xff]  ;;  %7467 = vmatpush2.bf16.msra.mxu0 %v12777_v12  ;;  %7508 = vmatpush2.bf16.msra.mxu1 %v12905_v15  ;;  %v12100_v12 = vcombine.high %v1177_v0, %v1181_v1  ;;  %v1045_v15 = vld [vmem:[#allocation5 + $0x128] sm:$0xff]  ;;  %v11955_v50 = vcombine.low %v1033_v32, %v1037_v33 }
 0x21e   : > { %v12898_v19 = vcombine.high %v1976_v10, %v1980_v11  ;;  %v1840_v21 = vld [vmem:[#allocation5 + $0x1a00] sm:$0xff]  ;;  %7468 = vmatprep.subr.bf16.mxu0 %v12770_v17  ;;  %v12897_v27 = vcombine.low %v1976_v10, %v1980_v11  ;;  %v1165_v35 = vld [vmem:[#allocation5 + $0x4e8] sm:$0xff] }
 0x21f   : > { %v1844_v22 = vld [vmem:[#allocation5 + $0x1a20] sm:$0xff]  ;;  %v12084_v43 = vcombine.high %v1161_v34, %v1165_v35  ;;  %v1153_v46 = vld [vmem:[#allocation5 + $0x488] sm:$0xff]  ;;  %v12083_v52 = vcombine.low %v1161_v34, %v1165_v35 }
 0x220   : > { %v1968_v23 = vld [vmem:[#allocation5 + $0x1e00] sm:$0xff]  ;;  %v12762_v29 = vcombine.high %v1840_v21, %v1844_v22  ;;  %7509 = vmatprep.subr.bf16.mxu1 %v12898_v19  ;;  %v12761_v36 = vcombine.low %v1840_v21, %v1844_v22  ;;  %v1169_v19 = vld [vmem:[#allocation5 + $0x508] sm:$0xff] }
 0x221   : > { %v1972_v24 = vld [vmem:[#allocation5 + $0x1e20] sm:$0xff]  ;;  %7469 = vmatpush2.bf16.msra.mxu0 %v12769_v25  ;;  %7510 = vmatpush2.bf16.msra.mxu1 %v12897_v27  ;;  %v1173_v21 = vld [vmem:[#allocation5 + $0x528] sm:$0xff]  ;;  %v12099_v25 = vcombine.low %v1177_v0, %v1181_v1  ;;  %v11964_v27 = vcombine.high %v1041_v13, %v1045_v15 }
 0x222   : > { %v12890_v30 = vcombine.high %v1968_v23, %v1972_v24  ;;  %v988_v38 = vld [vmem:[%s14842_s18 + $0x60] sm:$0xff]  ;;  %7470 = vmatprep.subr.bf16.mxu0 %v12762_v29  ;;  %v12889_v41 = vcombine.low %v1968_v23, %v1972_v24  ;;  %v11971_v23 = vcombine.low %v1049_v61, %v1053_v62  ;;  %v1157_v47 = vld [vmem:[#allocation5 + $0x4a8] sm:$0xff]  ;;  %s974_s18 = scalar_lea.vmem [#allocation28], %s11928_s19 }
 0x223   : > { %v14942_v42 = vld [vmem:[#allocation7] ss:$4 sm:$0xff]  ;;  %v14945_v48 = vpack.c.bf16 %v988_v38, %v988_v38  ;;  %v12091_v38 = vcombine.low %v1169_v19, %v1173_v21  ;;  %s11677_s10 = sshll.u32 %s974_s18, 4  ;;  %s15879_s10 = int_to_ptr.vmem [resolvable:$true] %s11677_s10 }
 0x224   : > { %7511 = vmatprep.subr.bf16.mxu1 %v12890_v30  ;;  %v2037_v53 = vrot.slane %v14942_v42, %v14939_v37  ;;  %v12092_v30 = vcombine.high %v1169_v19, %v1173_v21  ;;  %v1149_v61 = vld [vmem:[#allocation5 + $0x468] sm:$0xff]  ;;  %s14369_s19 = scalar_lea.vmem %s15879_s10, 128 }
 0x225   : > { %7471 = vmatpush2.bf16.msra.mxu0 %v12761_v36  ;;  %7512 = vmatpush2.bf16.msra.mxu1 %v12889_v41  ;;  %v7269_v4 = vpop.f32.mrf.mxu1  ;;  %v11963_v36 = vcombine.low %v1041_v13, %v1045_v15  ;;  %v11956_v41 = vcombine.high %v1033_v32, %v1037_v33  ;;  %v1133_v19 = vld [vmem:[#allocation5 + $0x3e8] sm:$0xff]  ;;  %p14370_p4 = scmp.ne.s32.totalorder %s15879_s10, %s14369_s19 }
 0x226   : > { %7522 = vmatprep.subr.bf16.mxu0 %v11988_v44  ;;  %7563 = vmatprep.subr.bf16.mxu1 %v12116_v45  ;;  %v7228_v63 = vpop.f32.mrf.mxu0  ;;  %v1025_v44 = vld [vmem:[#allocation5 + $0x88] sm:$0xff] }
 0x227   : > { %v7229_v3 = vadd.f32 %v7228_v63, %v2037_v53  ;;  %v14957_v11 = vpop.f32.mrf.mxu1  ;;  %v1029_v45 = vld [vmem:[#allocation5 + $0xa8] sm:$0xff]  ;;  %v12075_v63 = vcombine.low %v1153_v46, %v1157_v47  ;;  %p14371_p9 = pnand %p14370_p4, %p16031_p1 }
 0x228   : > { %7473 = vmatmul.mubr.bf16.vlgmr.msra.gmra.mxu0 %v14945_v48  ;;  %7514 = vmatmul.mubr.bf16.vlgmr.msra.gmra.mxu1 %v14949_v54  ;;  %v14953_v7 = vpop.f32.mrf.mxu0  ;;  %v11948_v53 = vcombine.high %v1025_v44, %v1029_v45  ;;  %v11947_v62 = vcombine.low %v1025_v44, %v1029_v45  ;;  %v1257_v21 = vld [vmem:[#allocation5 + $0x7c8] sm:$0xff] }
 0x229   : > { %7523 = vmatpush1.bf16.msra.mxu0 %v11987_v55  ;;  %7564 = vmatpush1.bf16.msra.mxu1 %v12115_v56  ;;  %v14955_v10 = vadd.f32 %v7269_v4, %v7229_v3  ;;  %v7273_v22 = vpop.f32.mrf.mxu1  ;;  %v12076_v55 = vcombine.high %v1153_v46, %v1157_v47  ;;  %v1017_v56 = vld [vmem:[#allocation5 + $0x48] sm:$0xff]  ;;  %p14372_p11 = pneg %p14371_p9 }
 0x22a   : > { %7524 = vmatprep.subr.bf16.mxu0 %v11980_v57  ;;  %7565 = vmatprep.subr.bf16.mxu1 %v12108_v60  ;;  %v7232_v17 = vpop.f32.mrf.mxu0  ;;  %v1021_v57 = vld [vmem:[#allocation5 + $0x68] sm:$0xff] }
 0x22b   : > { %7554 = vmatprep.mubr.bf16.mxu0 %v14882_v58  ;;  %7595 = vmatprep.mubr.bf16.mxu1 %v14884_v59  ;;  %v7274_v29 = vpop.f32.mrf.mxu1  ;;  %v1145_v60 = vld [vmem:[#allocation5 + $0x448] sm:$0xff]  ;;  %v11940_v0 = vcombine.high %v1017_v56, %v1021_v57 }
 0x22c   : > { %v7233_v24 = vpop.f32.mrf.mxu0  ;;  %v12068_v1 = vcombine.high %v1145_v60, %v1149_v61  ;;  %v1009_v3 = vld [vmem:[#allocation5 + $0x8] sm:$0xff] }
 0x22d   : > { %7525 = vmatpush1.bf16.msra.mxu0 %v11979_v5  ;;  %7566 = vmatpush1.bf16.msra.mxu1 %v12107_v8  ;;  %v1013_v4 = vld [vmem:[#allocation5 + $0x28] sm:$0xff] }
 0x22e   : > { %7526 = vmatprep.subr.bf16.mxu0 %v11972_v9  ;;  %7567 = vmatprep.subr.bf16.mxu1 %v12100_v12  ;;  %v1137_v5 = vld [vmem:[#allocation5 + $0x408] sm:$0xff]  ;;  %v11939_v9 = vcombine.low %v1017_v56, %v1021_v57  ;;  %v12067_v12 = vcombine.low %v1145_v60, %v1149_v61  ;;  %v11932_v13 = vcombine.high %v1009_v3, %v1013_v4 }
 0x22f   : > { %v1141_v8 = vld [vmem:[#allocation5 + $0x428] sm:$0xff] }
 0x230   : > { %v12060_v15 = vcombine.high %v1137_v5, %v1141_v8  ;;  %v1129_v17 = vld [vmem:[#allocation5 + $0x3c8] sm:$0xff]  ;;  %v12059_v24 = vcombine.low %v1137_v5, %v1141_v8 }
 0x231   : > { %7527 = vmatpush1.bf16.msra.mxu0 %v11971_v23  ;;  %7568 = vmatpush1.bf16.msra.mxu1 %v12099_v25  ;;  %v1261_v22 = vld [vmem:[#allocation5 + $0x7e8] sm:$0xff]  ;;  %v11931_v23 = vcombine.low %v1009_v3, %v1013_v4  ;;  %v12052_v25 = vcombine.high %v1129_v17, %v1133_v19  ;;  %v12051_v34 = vcombine.low %v1129_v17, %v1133_v19 }
 0x232   : > { %7528 = vmatprep.subr.bf16.mxu0 %v11964_v27  ;;  %7569 = vmatprep.subr.bf16.mxu1 %v12092_v30  ;;  %v12180_v27 = vcombine.high %v1257_v21, %v1261_v22  ;;  %v1121_v29 = vld [vmem:[#allocation5 + $0x388] sm:$0xff]  ;;  %v12179_v35 = vcombine.low %v1257_v21, %v1261_v22 }
 0x233   : > { %v1125_v30 = vld [vmem:[#allocation5 + $0x3a8] sm:$0xff] }
 0x234   : > { %v1249_v32 = vld [vmem:[#allocation5 + $0x788] sm:$0xff]  ;;  %v12043_v46 = vcombine.low %v1121_v29, %v1125_v30 }
 0x235   : > { %7529 = vmatpush1.bf16.msra.mxu0 %v11963_v36  ;;  %7570 = vmatpush1.bf16.msra.mxu1 %v12091_v38  ;;  %v1253_v33 = vld [vmem:[#allocation5 + $0x7a8] sm:$0xff]  ;;  %v12044_v36 = vcombine.high %v1121_v29, %v1125_v30 }
 0x236   : > { %7530 = vmatprep.subr.bf16.mxu0 %v11956_v41  ;;  %7571 = vmatprep.subr.bf16.mxu1 %v12084_v43  ;;  %v12172_v38 = vcombine.high %v1249_v32, %v1253_v33  ;;  %v1113_v41 = vld [vmem:[#allocation5 + $0x348] sm:$0xff]  ;;  %v12171_v47 = vcombine.low %v1249_v32, %v1253_v33 }
 0x237   : > { %v1117_v43 = vld [vmem:[#allocation5 + $0x368] sm:$0xff] }
 0x238   : > { %v1241_v44 = vld [vmem:[#allocation5 + $0x748] sm:$0xff]  ;;  %v12035_v60 = vcombine.low %v1113_v41, %v1117_v43 }
 0x239   : > { %7531 = vmatpush1.bf16.msra.mxu0 %v11955_v50  ;;  %7572 = vmatpush1.bf16.msra.mxu1 %v12083_v52  ;;  %v1245_v45 = vld [vmem:[#allocation5 + $0x768] sm:$0xff]  ;;  %v12036_v50 = vcombine.high %v1113_v41, %v1117_v43 }
 0x23a   : > { %7532 = vmatprep.subr.bf16.mxu0 %v11948_v53  ;;  %7573 = vmatprep.subr.bf16.mxu1 %v12076_v55  ;;  %v12164_v52 = vcombine.high %v1241_v44, %v1245_v45  ;;  %v1105_v53 = vld [vmem:[#allocation5 + $0x308] sm:$0xff]  ;;  %v12163_v61 = vcombine.low %v1241_v44, %v1245_v45  ;;  %v14962_v44 = vsub.s32 1, %v14936_v26 }
 0x23b   : > { %v1109_v55 = vld [vmem:[#allocation5 + $0x328] sm:$0xff] }
 0x23c   : > { %v1233_v56 = vld [vmem:[#allocation5 + $0x708] sm:$0xff]  ;;  %v12027_v5 = vcombine.low %v1105_v53, %v1109_v55 }
 0x23d   : > { %7533 = vmatpush1.bf16.msra.mxu0 %v11947_v62  ;;  %7574 = vmatpush1.bf16.msra.mxu1 %v12075_v63  ;;  %v1237_v57 = vld [vmem:[#allocation5 + $0x728] sm:$0xff]  ;;  %v12028_v62 = vcombine.high %v1105_v53, %v1109_v55 }
 0x23e   : > { %7534 = vmatprep.subr.bf16.mxu0 %v11940_v0  ;;  %7575 = vmatprep.subr.bf16.mxu1 %v12068_v1  ;;  %v12156_v63 = vcombine.high %v1233_v56, %v1237_v57  ;;  %v1097_v0 = vld [vmem:[#allocation5 + $0x2c8] sm:$0xff]  ;;  %v12155_v8 = vcombine.low %v1233_v56, %v1237_v57  ;;  %v2041_v57 = vrot.slane %v14942_v42, %v14962_v44 }
 0x23f   : > { %v1101_v1 = vld [vmem:[#allocation5 + $0x2e8] sm:$0xff] }
 0x240   : > { %v1225_v3 = vld [vmem:[#allocation5 + $0x6c8] sm:$0xff]  ;;  %v12019_v21 = vcombine.low %v1097_v0, %v1101_v1 }
 0x241   : > { %7535 = vmatpush1.bf16.msra.mxu0 %v11939_v9  ;;  %7576 = vmatpush1.bf16.msra.mxu1 %v12067_v12  ;;  %v1229_v4 = vld [vmem:[#allocation5 + $0x6e8] sm:$0xff]  ;;  %v12020_v9 = vcombine.high %v1097_v0, %v1101_v1 }
 0x242   : > { %7536 = vmatprep.subr.bf16.mxu0 %v11932_v13  ;;  %7577 = vmatprep.subr.bf16.mxu1 %v12060_v15  ;;  %v12148_v12 = vcombine.high %v1225_v3, %v1229_v4  ;;  %v1089_v13 = vld [vmem:[#allocation5 + $0x288] sm:$0xff]  ;;  %v12147_v22 = vcombine.low %v1225_v3, %v1229_v4 }
 0x243   : > { %v1093_v15 = vld [vmem:[#allocation5 + $0x2a8] sm:$0xff] }
 0x244   : > { %v1217_v17 = vld [vmem:[#allocation5 + $0x688] sm:$0xff]  ;;  %v12011_v32 = vcombine.low %v1089_v13, %v1093_v15 }
 0x245   : > { %7537 = vmatpush1.bf16.msra.mxu0 %v11931_v23  ;;  %7578 = vmatpush1.bf16.msra.mxu1 %v12059_v24  ;;  %v1221_v19 = vld [vmem:[#allocation5 + $0x6a8] sm:$0xff]  ;;  %v12012_v23 = vcombine.high %v1089_v13, %v1093_v15 }
 0x246   : > { %7538 = vmatprep.subr.bf16.mxu0 %v12052_v25  ;;  %7579 = vmatprep.subr.bf16.mxu1 %v12180_v27  ;;  %v12140_v24 = vcombine.high %v1217_v17, %v1221_v19  ;;  %v1081_v25 = vld [vmem:[#allocation5 + $0x248] sm:$0xff]  ;;  %v12139_v33 = vcombine.low %v1217_v17, %v1221_v19 }
 0x247   : > { %v1085_v27 = vld [vmem:[#allocation5 + $0x268] sm:$0xff] }
 0x248   : > { %v1209_v29 = vld [vmem:[#allocation5 + $0x648] sm:$0xff]  ;;  %v12003_v45 = vcombine.low %v1081_v25, %v1085_v27 }
 0x249   : > { %7539 = vmatpush2.bf16.msra.mxu0 %v12051_v34  ;;  %7580 = vmatpush2.bf16.msra.mxu1 %v12179_v35  ;;  %v1213_v30 = vld [vmem:[#allocation5 + $0x668] sm:$0xff]  ;;  %v12004_v34 = vcombine.high %v1081_v25, %v1085_v27 }
 0x24a   : > { %7540 = vmatprep.subr.bf16.mxu0 %v12044_v36  ;;  %7581 = vmatprep.subr.bf16.mxu1 %v12172_v38  ;;  %v12132_v35 = vcombine.high %v1209_v29, %v1213_v30  ;;  %v1073_v36 = vld [vmem:[#allocation5 + $0x208] sm:$0xff] }
 0x24b   : > { %v1077_v38 = vld [vmem:[#allocation5 + $0x228] sm:$0xff] }
 0x24c   : > { %v1201_v41 = vld [vmem:[#allocation5 + $0x608] sm:$0xff] }
 0x24d   : > { %7541 = vmatpush2.bf16.msra.mxu0 %v12043_v46  ;;  %7582 = vmatpush2.bf16.msra.mxu1 %v12171_v47  ;;  %v1205_v43 = vld [vmem:[#allocation5 + $0x628] sm:$0xff]  ;;  %v12131_v46 = vcombine.low %v1209_v29, %v1213_v30  ;;  %v11996_v47 = vcombine.high %v1073_v36, %v1077_v38 }
 0x24e   : > { %7542 = vmatprep.subr.bf16.mxu0 %v12036_v50  ;;  %7583 = vmatprep.subr.bf16.mxu1 %v12164_v52  ;;  %v12124_v50 = vcombine.high %v1201_v41, %v1205_v43  ;;  %v1321_v52 = vld [vmem:[#allocation5 + $0x9c8] sm:$0xff] }
 0x24f   : > { %v1325_v53 = vld [vmem:[#allocation5 + $0x9e8] sm:$0xff] }
 0x250   : > { %v1449_v55 = vld [vmem:[#allocation5 + $0xdc8] sm:$0xff] }
 0x251   : > { %7543 = vmatpush2.bf16.msra.mxu0 %v12035_v60  ;;  %7584 = vmatpush2.bf16.msra.mxu1 %v12163_v61  ;;  %v1453_v56 = vld [vmem:[#allocation5 + $0xde8] sm:$0xff]  ;;  %v11995_v60 = vcombine.low %v1073_v36, %v1077_v38  ;;  %v12123_v61 = vcombine.low %v1201_v41, %v1205_v43 }
 0x252   : > { %7544 = vmatprep.subr.bf16.mxu0 %v12028_v62  ;;  %7585 = vmatprep.subr.bf16.mxu1 %v12156_v63  ;;  %v12244_v62 = vcombine.high %v1321_v52, %v1325_v53  ;;  %v12372_v63 = vcombine.high %v1449_v55, %v1453_v56  ;;  %v1313_v0 = vld [vmem:[#allocation5 + $0x988] sm:$0xff] }
 0x253   : > { %v1317_v1 = vld [vmem:[#allocation5 + $0x9a8] sm:$0xff] }
 0x254   : > { %v1441_v3 = vld [vmem:[#allocation5 + $0xd88] sm:$0xff]  ;;  %v12236_v42 = vcombine.high %v1313_v0, %v1317_v1 }
 0x255   : > { %7545 = vmatpush2.bf16.msra.mxu0 %v12027_v5  ;;  %7586 = vmatpush2.bf16.msra.mxu1 %v12155_v8  ;;  %v1445_v4 = vld [vmem:[#allocation5 + $0xda8] sm:$0xff]  ;;  %v7231_v5 = vadd.f32 %v14953_v7, %v2041_v57  ;;  %v12243_v8 = vcombine.low %v1321_v52, %v1325_v53 }
 0x256   : > { %7546 = vmatprep.subr.bf16.mxu0 %v12020_v9  ;;  %7587 = vmatprep.subr.bf16.mxu1 %v12148_v12  ;;  %v12371_v9 = vcombine.low %v1449_v55, %v1453_v56  ;;  %v12364_v12 = vcombine.high %v1441_v3, %v1445_v4  ;;  %v1305_v13 = vld [vmem:[#allocation5 + $0x948] sm:$0xff]  ;;  %v12363_v27 = vcombine.low %v1441_v3, %v1445_v4 }
 0x257   : > { %v1309_v15 = vld [vmem:[#allocation5 + $0x968] sm:$0xff] }
 0x258   : > { %v1433_v19 = vld [vmem:[#allocation5 + $0xd48] sm:$0xff]  ;;  %v12228_v29 = vcombine.high %v1305_v13, %v1309_v15 }
 0x259   : > { %7547 = vmatpush2.bf16.msra.mxu0 %v12019_v21  ;;  %7588 = vmatpush2.bf16.msra.mxu1 %v12147_v22  ;;  %v1437_v21 = vld [vmem:[#allocation5 + $0xd68] sm:$0xff]  ;;  %v7272_v22 = vadd.f32 %v14957_v11, %v7231_v5 }
 0x25a   : > { %7548 = vmatprep.subr.bf16.mxu0 %v12012_v23  ;;  %7589 = vmatprep.subr.bf16.mxu1 %v12140_v24  ;;  %v12235_v24 = vcombine.low %v1313_v0, %v1317_v1  ;;  %v1301_v11 = vld [vmem:[#allocation5 + $0x928] sm:$0xff] }
 0x25b   : > { %v1425_v36 = vld [vmem:[#allocation5 + $0xd08] sm:$0xff] }
 0x25c   : > { %v1429_v38 = vld [vmem:[#allocation5 + $0xd28] sm:$0xff] }
 0x25d   : > { %7549 = vmatpush2.bf16.msra.mxu0 %v12011_v32  ;;  %7590 = vmatpush2.bf16.msra.mxu1 %v12139_v33  ;;  %v12348_v53 = vcombine.high %v1425_v36, %v1429_v38  ;;  %v1289_v55 = vld [vmem:[#allocation5 + $0x8c8] sm:$0xff] }
 0x25e   : > { %7550 = vmatprep.subr.bf16.mxu0 %v12004_v34  ;;  %7591 = vmatprep.subr.bf16.mxu1 %v12132_v35  ;;  %v12356_v34 = vcombine.high %v1433_v19, %v1437_v21  ;;  %v1297_v35 = vld [vmem:[#allocation5 + $0x908] sm:$0xff] }
 0x25f   : > { %v1293_v56 = vld [vmem:[#allocation5 + $0x8e8] sm:$0xff] }
 0x260   : > { %v1417_v57 = vld [vmem:[#allocation5 + $0xcc8] sm:$0xff] }
 0x261   : > { %7551 = vmatpush2.bf16.msra.mxu0 %v12003_v45  ;;  %7592 = vmatpush2.bf16.msra.mxu1 %v12131_v46  ;;  %v12227_v45 = vcombine.low %v1305_v13, %v1309_v15  ;;  %v1281_v1 = vld [vmem:[#allocation5 + $0x888] sm:$0xff] }
 0x262   : > { %7552 = vmatprep.subr.bf16.mxu0 %v11996_v47  ;;  %7593 = vmatprep.subr.bf16.mxu1 %v12124_v50  ;;  %v12355_v47 = vcombine.low %v1433_v19, %v1437_v21  ;;  %v12220_v50 = vcombine.high %v1297_v35, %v1301_v11  ;;  %v1285_v3 = vld [vmem:[#allocation5 + $0x8a8] sm:$0xff] }
 0x263   : > { %v1409_v4 = vld [vmem:[#allocation5 + $0xc88] sm:$0xff]  ;;  %v12203_v21 = vcombine.low %v1281_v1, %v1285_v3 }
 0x264   : > { %v1413_v5 = vld [vmem:[#allocation5 + $0xca8] sm:$0xff] }
 0x265   : > { %7553 = vmatpush2.bf16.msra.mxu0 %v11995_v60  ;;  %7594 = vmatpush2.bf16.msra.mxu1 %v12123_v61  ;;  %v1421_v60 = vld [vmem:[#allocation5 + $0xce8] sm:$0xff]  ;;  %v12219_v61 = vcombine.low %v1297_v35, %v1301_v11 }
 0x266   : > { %7604 = vmatprep.subr.bf16.mxu0 %v12244_v62  ;;  %7645 = vmatprep.subr.bf16.mxu1 %v12372_v63  ;;  %v7310_v17 = vpop.f32.mrf.mxu0  ;;  %v7351_v7 = vpop.f32.mrf.mxu1  ;;  %v12347_v62 = vcombine.low %v1425_v36, %v1429_v38  ;;  %v12212_v63 = vcombine.high %v1289_v55, %v1293_v56  ;;  %v12340_v0 = vcombine.high %v1417_v57, %v1421_v60  ;;  %v1273_v13 = vld [vmem:[#allocation5 + $0x848] sm:$0xff] }
 0x267   : > { %v7311_v23 = vadd.f32 %v7310_v17, %v14955_v10  ;;  %v1277_v15 = vld [vmem:[#allocation5 + $0x868] sm:$0xff] }
 0x268   : > { %7555 = vmatmul.mubr.bf16.vlgmr.msra.gmra.mxu0 %v14890_v16  ;;  %7596 = vmatmul.mubr.bf16.vlgmr.msra.gmra.mxu1 %v14893_v20  ;;  %v7312_v25 = vpop.f32.mrf.mxu0  ;;  %v7353_v33 = vpop.f32.mrf.mxu1  ;;  %v1401_v17 = vld [vmem:[#allocation5 + $0xc48] sm:$0xff] }
 0x269   : > { %7605 = vmatpush1.bf16.msra.mxu0 %v12243_v8  ;;  %7646 = vmatpush1.bf16.msra.mxu1 %v12371_v9  ;;  %v14971_v30 = vadd.f32 %v7351_v7, %v7311_v23  ;;  %v7313_v32 = vadd.f32 %v7312_v25, %v7272_v22  ;;  %v12211_v8 = vcombine.low %v1289_v55, %v1293_v56  ;;  %v1405_v19 = vld [vmem:[#allocation5 + $0xc68] sm:$0xff] }
 0x26a   : > { %7606 = vmatprep.subr.bf16.mxu0 %v12236_v42  ;;  %7647 = vmatprep.subr.bf16.mxu1 %v12364_v12  ;;  %v7314_v10 = vpop.f32.mrf.mxu0  ;;  %v7355_v43 = vpop.f32.mrf.mxu1  ;;  %v12339_v9 = vcombine.low %v1417_v57, %v1421_v60  ;;  %v12204_v42 = vcombine.high %v1281_v1, %v1285_v3  ;;  %v12332_v12 = vcombine.high %v1409_v4, %v1413_v5  ;;  %v1269_v25 = vld [vmem:[#allocation5 + $0x828] sm:$0xff] }
 0x26b   : > { %7636 = vmatprep.mubr.bf16.mxu0 %v14896_v28  ;;  %7677 = vmatprep.mubr.bf16.mxu1 %v14899_v31  ;;  %v14975_v41 = vadd.f32 %v7353_v33, %v7313_v32  ;;  %v12331_v22 = vcombine.low %v1409_v4, %v1413_v5  ;;  %v12196_v23 = vcombine.high %v1273_v13, %v1277_v15  ;;  %v1385_v11 = vld [vmem:[#allocation5 + $0xbc8] sm:$0xff] }
 0x26c   : > { %v7315_v46 = vpop.f32.mrf.mxu0  ;;  %v7356_v52 = vpop.f32.mrf.mxu1  ;;  %v12324_v7 = vcombine.high %v1401_v17, %v1405_v19  ;;  %v12195_v32 = vcombine.low %v1273_v13, %v1277_v15  ;;  %v12323_v33 = vcombine.low %v1401_v17, %v1405_v19  ;;  %v1389_v10 = vld [vmem:[#allocation5 + $0xbe8] sm:$0xff] }
 0x26d   : > { %7607 = vmatpush1.bf16.msra.mxu0 %v12235_v24  ;;  %7648 = vmatpush1.bf16.msra.mxu1 %v12363_v27  ;;  %v1265_v24 = vld [vmem:[#allocation5 + $0x808] sm:$0xff]  ;;  %v12308_v46 = vcombine.high %v1385_v11, %v1389_v10  ;;  %v12307_v56 = vcombine.low %v1385_v11, %v1389_v10 }
 0x26e   : > { %7608 = vmatprep.subr.bf16.mxu0 %v12228_v29  ;;  %7649 = vmatprep.subr.bf16.mxu1 %v12356_v34  ;;  %v1393_v27 = vld [vmem:[#allocation5 + $0xc08] sm:$0xff]  ;;  %v12188_v34 = vcombine.high %v1265_v24, %v1269_v25  ;;  %v12187_v43 = vcombine.low %v1265_v24, %v1269_v25 }
 0x26f   : > { %v1397_v29 = vld [vmem:[#allocation5 + $0xc28] sm:$0xff] }
 0x270   : > { %v12316_v35 = vcombine.high %v1393_v27, %v1397_v29  ;;  %v1513_v36 = vld [vmem:[#allocation5 + $0xfc8] sm:$0xff] }
 0x271   : > { %7609 = vmatpush1.bf16.msra.mxu0 %v12227_v45  ;;  %7650 = vmatpush1.bf16.msra.mxu1 %v12355_v47  ;;  %v1517_v38 = vld [vmem:[#allocation5 + $0xfe8] sm:$0xff]  ;;  %v12315_v45 = vcombine.low %v1393_v27, %v1397_v29 }
 0x272   : > { %7610 = vmatprep.subr.bf16.mxu0 %v12220_v50  ;;  %7651 = vmatprep.subr.bf16.mxu1 %v12348_v53  ;;  %v12436_v47 = vcombine.high %v1513_v36, %v1517_v38  ;;  %v1377_v50 = vld [vmem:[#allocation5 + $0xb88] sm:$0xff]  ;;  %v12435_v57 = vcombine.low %v1513_v36, %v1517_v38 }
 0x273   : > { %v1381_v52 = vld [vmem:[#allocation5 + $0xba8] sm:$0xff] }
 0x274   : > { %v1505_v53 = vld [vmem:[#allocation5 + $0xf88] sm:$0xff]  ;;  %v12300_v60 = vcombine.high %v1377_v50, %v1381_v52  ;;  %v12299_v3 = vcombine.low %v1377_v50, %v1381_v52 }
 0x275   : > { %7611 = vmatpush1.bf16.msra.mxu0 %v12219_v61  ;;  %7652 = vmatpush1.bf16.msra.mxu1 %v12347_v62  ;;  %v1509_v55 = vld [vmem:[#allocation5 + $0xfa8] sm:$0xff] }
 0x276   : > { %7612 = vmatprep.subr.bf16.mxu0 %v12212_v63  ;;  %7653 = vmatprep.subr.bf16.mxu1 %v12340_v0  ;;  %v12428_v61 = vcombine.high %v1505_v53, %v1509_v55  ;;  %v1369_v62 = vld [vmem:[#allocation5 + $0xb48] sm:$0xff]  ;;  %v12427_v4 = vcombine.low %v1505_v53, %v1509_v55 }
 0x277   : > { %v1373_v63 = vld [vmem:[#allocation5 + $0xb68] sm:$0xff] }
 0x278   : > { %v1497_v0 = vld [vmem:[#allocation5 + $0xf48] sm:$0xff]  ;;  %v12292_v5 = vcombine.high %v1369_v62, %v1373_v63  ;;  %v12291_v15 = vcombine.low %v1369_v62, %v1373_v63 }
 0x279   : > { %7613 = vmatpush1.bf16.msra.mxu0 %v12211_v8  ;;  %7654 = vmatpush1.bf16.msra.mxu1 %v12339_v9  ;;  %v1501_v1 = vld [vmem:[#allocation5 + $0xf68] sm:$0xff] }
 0x27a   : > { %7614 = vmatprep.subr.bf16.mxu0 %v12204_v42  ;;  %7655 = vmatprep.subr.bf16.mxu1 %v12332_v12  ;;  %v12420_v8 = vcombine.high %v1497_v0, %v1501_v1  ;;  %v1361_v9 = vld [vmem:[#allocation5 + $0xb08] sm:$0xff]  ;;  %v12419_v17 = vcombine.low %v1497_v0, %v1501_v1 }
 0x27b   : > { %v1365_v42 = vld [vmem:[#allocation5 + $0xb28] sm:$0xff] }
 0x27c   : > { %v1489_v12 = vld [vmem:[#allocation5 + $0xf08] sm:$0xff]  ;;  %v12284_v19 = vcombine.high %v1361_v9, %v1365_v42  ;;  %v12283_v25 = vcombine.low %v1361_v9, %v1365_v42 }
 0x27d   : > { %7615 = vmatpush1.bf16.msra.mxu0 %v12203_v21  ;;  %7656 = vmatpush1.bf16.msra.mxu1 %v12331_v22  ;;  %v1493_v13 = vld [vmem:[#allocation5 + $0xf28] sm:$0xff] }
 0x27e   : > { %7616 = vmatprep.subr.bf16.mxu0 %v12196_v23  ;;  %7657 = vmatprep.subr.bf16.mxu1 %v12324_v7  ;;  %v12412_v21 = vcombine.high %v1489_v12, %v1493_v13  ;;  %v1353_v22 = vld [vmem:[#allocation5 + $0xac8] sm:$0xff]  ;;  %v12411_v27 = vcombine.low %v1489_v12, %v1493_v13 }
 0x27f   : > { %v1357_v23 = vld [vmem:[#allocation5 + $0xae8] sm:$0xff] }
 0x280   : > { %v1481_v7 = vld [vmem:[#allocation5 + $0xec8] sm:$0xff]  ;;  %v12276_v29 = vcombine.high %v1353_v22, %v1357_v23  ;;  %v12275_v10 = vcombine.low %v1353_v22, %v1357_v23 }
 0x281   : > { %7617 = vmatpush1.bf16.msra.mxu0 %v12195_v32  ;;  %7658 = vmatpush1.bf16.msra.mxu1 %v12323_v33  ;;  %v1485_v24 = vld [vmem:[#allocation5 + $0xee8] sm:$0xff] }
 0x282   : > { %7618 = vmatprep.subr.bf16.mxu0 %v12188_v34  ;;  %7659 = vmatprep.subr.bf16.mxu1 %v12316_v35  ;;  %v12404_v32 = vcombine.high %v1481_v7, %v1485_v24  ;;  %v1345_v33 = vld [vmem:[#allocation5 + $0xa88] sm:$0xff]  ;;  %v12403_v36 = vcombine.low %v1481_v7, %v1485_v24 }
 0x283   : > { %v1349_v34 = vld [vmem:[#allocation5 + $0xaa8] sm:$0xff] }
 0x284   : > { %v1473_v35 = vld [vmem:[#allocation5 + $0xe88] sm:$0xff]  ;;  %v12268_v38 = vcombine.high %v1345_v33, %v1349_v34  ;;  %v12267_v52 = vcombine.low %v1345_v33, %v1349_v34 }
 0x285   : > { %7619 = vmatpush1.bf16.msra.mxu0 %v12187_v43  ;;  %7660 = vmatpush1.bf16.msra.mxu1 %v12315_v45  ;;  %v1477_v11 = vld [vmem:[#allocation5 + $0xea8] sm:$0xff] }
 0x286   : > { %7620 = vmatprep.subr.bf16.mxu0 %v12308_v46  ;;  %7661 = vmatprep.subr.bf16.mxu1 %v12436_v47  ;;  %v12396_v43 = vcombine.high %v1473_v35, %v1477_v11  ;;  %v1337_v45 = vld [vmem:[#allocation5 + $0xa48] sm:$0xff]  ;;  %v12395_v53 = vcombine.low %v1473_v35, %v1477_v11 }
 0x287   : > { %v1341_v46 = vld [vmem:[#allocation5 + $0xa68] sm:$0xff] }
 0x288   : > { %v1465_v47 = vld [vmem:[#allocation5 + $0xe48] sm:$0xff]  ;;  %v12260_v55 = vcombine.high %v1337_v45, %v1341_v46  ;;  %v12259_v63 = vcombine.low %v1337_v45, %v1341_v46 }
 0x289   : > { %7621 = vmatpush2.bf16.msra.mxu0 %v12307_v56  ;;  %7662 = vmatpush2.bf16.msra.mxu1 %v12435_v57  ;;  %v1469_v50 = vld [vmem:[#allocation5 + $0xe68] sm:$0xff] }
 0x28a   : > { %7622 = vmatprep.subr.bf16.mxu0 %v12300_v60  ;;  %7663 = vmatprep.subr.bf16.mxu1 %v12428_v61  ;;  %v12388_v56 = vcombine.high %v1465_v47, %v1469_v50  ;;  %v1329_v57 = vld [vmem:[#allocation5 + $0xa08] sm:$0xff]  ;;  %v12387_v0 = vcombine.low %v1465_v47, %v1469_v50 }
 0x28b   : > { %v1333_v60 = vld [vmem:[#allocation5 + $0xa28] sm:$0xff] }
 0x28c   : > { %v1457_v61 = vld [vmem:[#allocation5 + $0xe08] sm:$0xff]  ;;  %v12252_v1 = vcombine.high %v1329_v57, %v1333_v60  ;;  %v12251_v42 = vcombine.low %v1329_v57, %v1333_v60 }
 0x28d   : > { %7623 = vmatpush2.bf16.msra.mxu0 %v12299_v3  ;;  %7664 = vmatpush2.bf16.msra.mxu1 %v12427_v4  ;;  %v1461_v62 = vld [vmem:[#allocation5 + $0xe28] sm:$0xff] }
 0x28e   : > { %7624 = vmatprep.subr.bf16.mxu0 %v12292_v5  ;;  %7665 = vmatprep.subr.bf16.mxu1 %v12420_v8  ;;  %v12380_v3 = vcombine.high %v1457_v61, %v1461_v62  ;;  %v1577_v4 = vld [vmem:[#allocation5 + $0x11c8] sm:$0xff]  ;;  %v12379_v12 = vcombine.low %v1457_v61, %v1461_v62 }
 0x28f   : > { %v1581_v5 = vld [vmem:[#allocation5 + $0x11e8] sm:$0xff] }
 0x290   : > { %v1705_v8 = vld [vmem:[#allocation5 + $0x15c8] sm:$0xff]  ;;  %v12500_v13 = vcombine.high %v1577_v4, %v1581_v5  ;;  %v12499_v23 = vcombine.low %v1577_v4, %v1581_v5 }
 0x291   : > { %7625 = vmatpush2.bf16.msra.mxu0 %v12291_v15  ;;  %7666 = vmatpush2.bf16.msra.mxu1 %v12419_v17  ;;  %v1709_v9 = vld [vmem:[#allocation5 + $0x15e8] sm:$0xff] }
 0x292   : > { %7626 = vmatprep.subr.bf16.mxu0 %v12284_v19  ;;  %7667 = vmatprep.subr.bf16.mxu1 %v12412_v21  ;;  %v12628_v15 = vcombine.high %v1705_v8, %v1709_v9  ;;  %v1569_v17 = vld [vmem:[#allocation5 + $0x1188] sm:$0xff]  ;;  %v12627_v7 = vcombine.low %v1705_v8, %v1709_v9 }
 0x293   : > { %v1573_v19 = vld [vmem:[#allocation5 + $0x11a8] sm:$0xff] }
 0x294   : > { %v1697_v21 = vld [vmem:[#allocation5 + $0x1588] sm:$0xff]  ;;  %v12492_v24 = vcombine.high %v1569_v17, %v1573_v19 }
 0x295   : > { %7627 = vmatpush2.bf16.msra.mxu0 %v12283_v25  ;;  %7668 = vmatpush2.bf16.msra.mxu1 %v12411_v27  ;;  %v1701_v22 = vld [vmem:[#allocation5 + $0x15a8] sm:$0xff] }
 0x296   : > { %7628 = vmatprep.subr.bf16.mxu0 %v12276_v29  ;;  %7669 = vmatprep.subr.bf16.mxu1 %v12404_v32  ;;  %v12620_v25 = vcombine.high %v1697_v21, %v1701_v22  ;;  %v1561_v27 = vld [vmem:[#allocation5 + $0x1148] sm:$0xff] }
 0x297   : > { %v1565_v29 = vld [vmem:[#allocation5 + $0x1168] sm:$0xff] }
 0x298   : > { %v1689_v33 = vld [vmem:[#allocation5 + $0x1548] sm:$0xff]  ;;  %v12483_v61 = vcombine.low %v1561_v27, %v1565_v29 }
 0x299   : > { %7629 = vmatpush2.bf16.msra.mxu0 %v12275_v10  ;;  %7670 = vmatpush2.bf16.msra.mxu1 %v12403_v36  ;;  %v1693_v34 = vld [vmem:[#allocation5 + $0x1568] sm:$0xff]  ;;  %v12491_v10 = vcombine.low %v1569_v17, %v1573_v19 }
 0x29a   : > { %7630 = vmatprep.subr.bf16.mxu0 %v12268_v38  ;;  %7671 = vmatprep.subr.bf16.mxu1 %v12396_v43  ;;  %v12619_v38 = vcombine.low %v1697_v21, %v1701_v22  ;;  %v12484_v43 = vcombine.high %v1561_v27, %v1565_v29  ;;  %v12612_v50 = vcombine.high %v1689_v33, %v1693_v34  ;;  %v1549_v4 = vld [vmem:[#allocation5 + $0x10e8] sm:$0xff] }
 0x29b   : > { %v1673_v5 = vld [vmem:[#allocation5 + $0x14c8] sm:$0xff] }
 0x29c   : > { %v1677_v8 = vld [vmem:[#allocation5 + $0x14e8] sm:$0xff] }
 0x29d   : > { %7631 = vmatpush2.bf16.msra.mxu0 %v12267_v52  ;;  %7672 = vmatpush2.bf16.msra.mxu1 %v12395_v53  ;;  %v1553_v52 = vld [vmem:[#allocation5 + $0x1108] sm:$0xff] }
 0x29e   : > { %7632 = vmatprep.subr.bf16.mxu0 %v12260_v55  ;;  %7673 = vmatprep.subr.bf16.mxu1 %v12388_v56  ;;  %v1557_v53 = vld [vmem:[#allocation5 + $0x1128] sm:$0xff] }
 0x29f   : > { %v1681_v55 = vld [vmem:[#allocation5 + $0x1508] sm:$0xff]  ;;  %v12475_v9 = vcombine.low %v1553_v52, %v1557_v53 }
 0x2a0   : > { %v1685_v56 = vld [vmem:[#allocation5 + $0x1528] sm:$0xff] }
 0x2a1   : > { %7633 = vmatpush2.bf16.msra.mxu0 %v12259_v63  ;;  %7674 = vmatpush2.bf16.msra.mxu1 %v12387_v0  ;;  %v12476_v63 = vcombine.high %v1553_v52, %v1557_v53  ;;  %v1541_v17 = vld [vmem:[#allocation5 + $0x10a8] sm:$0xff] }
 0x2a2   : > { %7634 = vmatprep.subr.bf16.mxu0 %v12252_v1  ;;  %7675 = vmatprep.subr.bf16.mxu1 %v12380_v3  ;;  %v12604_v1 = vcombine.high %v1681_v55, %v1685_v56  ;;  %v1545_v3 = vld [vmem:[#allocation5 + $0x10c8] sm:$0xff] }
 0x2a3   : > { %v1665_v19 = vld [vmem:[#allocation5 + $0x1488] sm:$0xff]  ;;  %v12467_v22 = vcombine.low %v1545_v3, %v1549_v4 }
 0x2a4   : > { %v1669_v21 = vld [vmem:[#allocation5 + $0x14a8] sm:$0xff] }
 0x2a5   : > { %7635 = vmatpush2.bf16.msra.mxu0 %v12251_v42  ;;  %7676 = vmatpush2.bf16.msra.mxu1 %v12379_v12  ;;  %v12603_v42 = vcombine.low %v1681_v55, %v1685_v56  ;;  %v12468_v12 = vcombine.high %v1545_v3, %v1549_v4  ;;  %v1533_v27 = vld [vmem:[#allocation5 + $0x1068] sm:$0xff] }
 0x2a6   : > { %7686 = vmatprep.subr.bf16.mxu0 %v12500_v13  ;;  %7727 = vmatprep.subr.bf16.mxu1 %v12628_v15  ;;  %v12596_v13 = vcombine.high %v1673_v5, %v1677_v8  ;;  %v1537_v15 = vld [vmem:[#allocation5 + $0x1088] sm:$0xff] }
 0x2a7   : > { %v7433_v11 = vpop.f32.mrf.mxu1  ;;  %v1657_v29 = vld [vmem:[#allocation5 + $0x1448] sm:$0xff] }
 0x2a8   : > { %v7392_v32 = vpop.f32.mrf.mxu0  ;;  %7637 = vmatmul.mubr.bf16.vlgmr.msra.gmra.mxu0 %v14907_v39  ;;  %7678 = vmatmul.mubr.bf16.vlgmr.msra.gmra.mxu1 %v14909_v40  ;;  %v1641_v53 = vld [vmem:[#allocation5 + $0x13c8] sm:$0xff] }
 0x2a9   : > { %v7393_v35 = vadd.f32 %v7392_v32, %v14971_v30  ;;  %7687 = vmatpush1.bf16.msra.mxu0 %v12499_v23  ;;  %7728 = vmatpush1.bf16.msra.mxu1 %v12627_v7  ;;  %v7435_v47 = vpop.f32.mrf.mxu1  ;;  %v12595_v23 = vcombine.low %v1673_v5, %v1677_v8  ;;  %v12460_v7 = vcombine.high %v1537_v15, %v1541_v17  ;;  %v1661_v32 = vld [vmem:[#allocation5 + $0x1468] sm:$0xff] }
 0x2aa   : > { %v7394_v36 = vpop.f32.mrf.mxu0  ;;  %7688 = vmatprep.subr.bf16.mxu0 %v12492_v24  ;;  %7729 = vmatprep.subr.bf16.mxu1 %v12620_v25  ;;  %v12588_v24 = vcombine.high %v1665_v19, %v1669_v21  ;;  %v1529_v25 = vld [vmem:[#allocation5 + $0x1048] sm:$0xff] }
 0x2ab   : > { %v14980_v45 = vadd.f32 %v7433_v11, %v7393_v35  ;;  %v7395_v46 = vadd.f32 %v7394_v36, %v14975_v41  ;;  %7718 = vmatprep.mubr.bf16.mxu0 %v14912_v49  ;;  %7759 = vmatprep.mubr.bf16.mxu1 %v14915_v51  ;;  %v7437_v60 = vpop.f32.mrf.mxu1  ;;  %v12611_v41 = vcombine.low %v1689_v33, %v1693_v34  ;;  %v1525_v36 = vld [vmem:[#allocation5 + $0x1028] sm:$0xff] }
 0x2ac   : > { %v7396_v30 = vpop.f32.mrf.mxu0  ;;  %v12459_v33 = vcombine.low %v1537_v15, %v1541_v17  ;;  %v12587_v34 = vcombine.low %v1665_v19, %v1669_v21  ;;  %v12452_v35 = vcombine.high %v1529_v25, %v1533_v27  ;;  %v12580_v11 = vcombine.high %v1657_v29, %v1661_v32  ;;  %v1769_v55 = vld [vmem:[#allocation5 + $0x17c8] sm:$0xff] }
 0x2ad   : > { %v14985_v57 = vadd.f32 %v7435_v47, %v7395_v46  ;;  %7689 = vmatpush1.bf16.msra.mxu0 %v12491_v10  ;;  %7730 = vmatpush1.bf16.msra.mxu1 %v12619_v38  ;;  %v7438_v0 = vpop.f32.mrf.mxu1  ;;  %v1521_v10 = vld [vmem:[#allocation5 + $0x1008] sm:$0xff]  ;;  %v12451_v46 = vcombine.low %v1529_v25, %v1533_v27  ;;  %v12579_v47 = vcombine.low %v1657_v29, %v1661_v32 }
 0x2ae   : > { %v7397_v62 = vpop.f32.mrf.mxu0  ;;  %7690 = vmatprep.subr.bf16.mxu0 %v12484_v43  ;;  %7731 = vmatprep.subr.bf16.mxu1 %v12612_v50  ;;  %v1649_v38 = vld [vmem:[#allocation5 + $0x1408] sm:$0xff]  ;;  %v12444_v50 = vcombine.high %v1521_v10, %v1525_v36  ;;  %v12443_v60 = vcombine.low %v1521_v10, %v1525_v36 }
 0x2af   : > { %v1653_v43 = vld [vmem:[#allocation5 + $0x1428] sm:$0xff] }
 0x2b0   : > { %v12572_v52 = vcombine.high %v1649_v38, %v1653_v43  ;;  %v1645_v30 = vld [vmem:[#allocation5 + $0x13e8] sm:$0xff] }
 0x2b1   : > { %7691 = vmatpush1.bf16.msra.mxu0 %v12483_v61  ;;  %7732 = vmatpush1.bf16.msra.mxu1 %v12611_v41  ;;  %v1773_v56 = vld [vmem:[#allocation5 + $0x17e8] sm:$0xff]  ;;  %v12571_v61 = vcombine.low %v1649_v38, %v1653_v43  ;;  %v12564_v62 = vcombine.high %v1641_v53, %v1645_v30  ;;  %v12563_v4 = vcombine.low %v1641_v53, %v1645_v30 }
 0x2b2   : > { %7692 = vmatprep.subr.bf16.mxu0 %v12476_v63  ;;  %7733 = vmatprep.subr.bf16.mxu1 %v12604_v1  ;;  %v12692_v41 = vcombine.high %v1769_v55, %v1773_v56  ;;  %v1633_v63 = vld [vmem:[#allocation5 + $0x1388] sm:$0xff]  ;;  %v12691_v5 = vcombine.low %v1769_v55, %v1773_v56 }
 0x2b3   : > { %v1637_v0 = vld [vmem:[#allocation5 + $0x13a8] sm:$0xff] }
 0x2b4   : > { %v1761_v1 = vld [vmem:[#allocation5 + $0x1788] sm:$0xff]  ;;  %v12556_v8 = vcombine.high %v1633_v63, %v1637_v0  ;;  %v12555_v17 = vcombine.low %v1633_v63, %v1637_v0 }
 0x2b5   : > { %7693 = vmatpush1.bf16.msra.mxu0 %v12475_v9  ;;  %7734 = vmatpush1.bf16.msra.mxu1 %v12603_v42  ;;  %v1765_v3 = vld [vmem:[#allocation5 + $0x17a8] sm:$0xff] }
 0x2b6   : > { %7694 = vmatprep.subr.bf16.mxu0 %v12468_v12  ;;  %7735 = vmatprep.subr.bf16.mxu1 %v12596_v13  ;;  %v12684_v9 = vcombine.high %v1761_v1, %v1765_v3  ;;  %v1625_v42 = vld [vmem:[#allocation5 + $0x1348] sm:$0xff]  ;;  %v12683_v19 = vcombine.low %v1761_v1, %v1765_v3 }
 0x2b7   : > { %v1629_v12 = vld [vmem:[#allocation5 + $0x1368] sm:$0xff] }
 0x2b8   : > { %v1753_v13 = vld [vmem:[#allocation5 + $0x1748] sm:$0xff]  ;;  %v12548_v21 = vcombine.high %v1625_v42, %v1629_v12  ;;  %v12547_v27 = vcombine.low %v1625_v42, %v1629_v12 }
 0x2b9   : > { %7695 = vmatpush1.bf16.msra.mxu0 %v12467_v22  ;;  %7736 = vmatpush1.bf16.msra.mxu1 %v12595_v23  ;;  %v1757_v15 = vld [vmem:[#allocation5 + $0x1768] sm:$0xff] }
 0x2ba   : > { %7696 = vmatprep.subr.bf16.mxu0 %v12460_v7  ;;  %7737 = vmatprep.subr.bf16.mxu1 %v12588_v24  ;;  %v12676_v22 = vcombine.high %v1753_v13, %v1757_v15  ;;  %v1617_v23 = vld [vmem:[#allocation5 + $0x1308] sm:$0xff]  ;;  %v12675_v29 = vcombine.low %v1753_v13, %v1757_v15 }
 0x2bb   : > { %v1621_v7 = vld [vmem:[#allocation5 + $0x1328] sm:$0xff] }
 0x2bc   : > { %v1745_v24 = vld [vmem:[#allocation5 + $0x1708] sm:$0xff]  ;;  %v12540_v32 = vcombine.high %v1617_v23, %v1621_v7  ;;  %v12539_v36 = vcombine.low %v1617_v23, %v1621_v7 }
 0x2bd   : > { %7697 = vmatpush1.bf16.msra.mxu0 %v12459_v33  ;;  %7738 = vmatpush1.bf16.msra.mxu1 %v12587_v34  ;;  %v1749_v25 = vld [vmem:[#allocation5 + $0x1728] sm:$0xff] }
 0x2be   : > { %7698 = vmatprep.subr.bf16.mxu0 %v12452_v35  ;;  %7739 = vmatprep.subr.bf16.mxu1 %v12580_v11  ;;  %v12668_v33 = vcombine.high %v1745_v24, %v1749_v25  ;;  %v1609_v34 = vld [vmem:[#allocation5 + $0x12c8] sm:$0xff]  ;;  %v12667_v38 = vcombine.low %v1745_v24, %v1749_v25 }
 0x2bf   : > { %v1613_v35 = vld [vmem:[#allocation5 + $0x12e8] sm:$0xff] }
 0x2c0   : > { %v1737_v11 = vld [vmem:[#allocation5 + $0x16c8] sm:$0xff]  ;;  %v12532_v43 = vcombine.high %v1609_v34, %v1613_v35  ;;  %v12531_v30 = vcombine.low %v1609_v34, %v1613_v35 }
 0x2c1   : > { %7699 = vmatpush1.bf16.msra.mxu0 %v12451_v46  ;;  %7740 = vmatpush1.bf16.msra.mxu1 %v12579_v47  ;;  %v1741_v10 = vld [vmem:[#allocation5 + $0x16e8] sm:$0xff] }
 0x2c2   : > { %7700 = vmatprep.subr.bf16.mxu0 %v12444_v50  ;;  %7741 = vmatprep.subr.bf16.mxu1 %v12572_v52  ;;  %v12660_v46 = vcombine.high %v1737_v11, %v1741_v10  ;;  %v1601_v47 = vld [vmem:[#allocation5 + $0x1288] sm:$0xff]  ;;  %v12659_v55 = vcombine.low %v1737_v11, %v1741_v10 }
 0x2c3   : > { %v1605_v50 = vld [vmem:[#allocation5 + $0x12a8] sm:$0xff] }
 0x2c4   : > { %v1729_v52 = vld [vmem:[#allocation5 + $0x1688] sm:$0xff]  ;;  %v12524_v56 = vcombine.high %v1601_v47, %v1605_v50  ;;  %v12523_v0 = vcombine.low %v1601_v47, %v1605_v50 }
 0x2c5   : > { %7701 = vmatpush1.bf16.msra.mxu0 %v12443_v60  ;;  %7742 = vmatpush1.bf16.msra.mxu1 %v12571_v61  ;;  %v1733_v53 = vld [vmem:[#allocation5 + $0x16a8] sm:$0xff] }
 0x2c6   : > { %7702 = vmatprep.subr.bf16.mxu0 %v12564_v62  ;;  %7743 = vmatprep.subr.bf16.mxu1 %v12692_v41  ;;  %v12652_v60 = vcombine.high %v1729_v52, %v1733_v53  ;;  %v1593_v61 = vld [vmem:[#allocation5 + $0x1248] sm:$0xff]  ;;  %v12651_v1 = vcombine.low %v1729_v52, %v1733_v53 }
 0x2c7   : > { %v1597_v62 = vld [vmem:[#allocation5 + $0x1268] sm:$0xff] }
 0x2c8   : > { %v1721_v41 = vld [vmem:[#allocation5 + $0x1648] sm:$0xff]  ;;  %v12516_v3 = vcombine.high %v1593_v61, %v1597_v62  ;;  %v12515_v12 = vcombine.low %v1593_v61, %v1597_v62 }
 0x2c9   : > { %7703 = vmatpush2.bf16.msra.mxu0 %v12563_v4  ;;  %7744 = vmatpush2.bf16.msra.mxu1 %v12691_v5  ;;  %v1725_v63 = vld [vmem:[#allocation5 + $0x1668] sm:$0xff] }
 0x2ca   : > { %7704 = vmatprep.subr.bf16.mxu0 %v12556_v8  ;;  %7745 = vmatprep.subr.bf16.mxu1 %v12684_v9  ;;  %v12644_v4 = vcombine.high %v1721_v41, %v1725_v63  ;;  %v1585_v5 = vld [vmem:[#allocation5 + $0x1208] sm:$0xff]  ;;  %v12643_v13 = vcombine.low %v1721_v41, %v1725_v63 }
 0x2cb   : > { %v1589_v8 = vld [vmem:[#allocation5 + $0x1228] sm:$0xff] }
 0x2cc   : > { %v1713_v9 = vld [vmem:[#allocation5 + $0x1608] sm:$0xff]  ;;  %v12508_v15 = vcombine.high %v1585_v5, %v1589_v8  ;;  %v12507_v7 = vcombine.low %v1585_v5, %v1589_v8 }
 0x2cd   : > { %7705 = vmatpush2.bf16.msra.mxu0 %v12555_v17  ;;  %7746 = vmatpush2.bf16.msra.mxu1 %v12683_v19  ;;  %v1717_v42 = vld [vmem:[#allocation5 + $0x1628] sm:$0xff] }
 0x2ce   : > { %7706 = vmatprep.subr.bf16.mxu0 %v12548_v21  ;;  %7747 = vmatprep.subr.bf16.mxu1 %v12676_v22  ;;  %v12636_v17 = vcombine.high %v1713_v9, %v1717_v42  ;;  %v1833_v19 = vld [vmem:[#allocation5 + $0x19c8] sm:$0xff]  ;;  %v12635_v24 = vcombine.low %v1713_v9, %v1717_v42 }
 0x2cf   : > { %v1837_v21 = vld [vmem:[#allocation5 + $0x19e8] sm:$0xff] }
 0x2d0   : > { %v1961_v22 = vld [vmem:[#allocation5 + $0x1dc8] sm:$0xff]  ;;  %v12756_v25 = vcombine.high %v1833_v19, %v1837_v21  ;;  %v12755_v35 = vcombine.low %v1833_v19, %v1837_v21 }
 0x2d1   : > { %7707 = vmatpush2.bf16.msra.mxu0 %v12547_v27  ;;  %7748 = vmatpush2.bf16.msra.mxu1 %v12675_v29  ;;  %v1965_v23 = vld [vmem:[#allocation5 + $0x1de8] sm:$0xff] }
 0x2d2   : > { %7708 = vmatprep.subr.bf16.mxu0 %v12540_v32  ;;  %7749 = vmatprep.subr.bf16.mxu1 %v12668_v33  ;;  %v12884_v27 = vcombine.high %v1961_v22, %v1965_v23  ;;  %v1825_v29 = vld [vmem:[#allocation5 + $0x1988] sm:$0xff]  ;;  %v12883_v11 = vcombine.low %v1961_v22, %v1965_v23 }
 0x2d3   : > { %v1829_v32 = vld [vmem:[#allocation5 + $0x19a8] sm:$0xff] }
 0x2d4   : > { %v1953_v33 = vld [vmem:[#allocation5 + $0x1d88] sm:$0xff]  ;;  %v12748_v10 = vcombine.high %v1825_v29, %v1829_v32 }
 0x2d5   : > { %7709 = vmatpush2.bf16.msra.mxu0 %v12539_v36  ;;  %7750 = vmatpush2.bf16.msra.mxu1 %v12667_v38  ;;  %v1957_v34 = vld [vmem:[#allocation5 + $0x1da8] sm:$0xff] }
 0x2d6   : > { %7710 = vmatprep.subr.bf16.mxu0 %v12532_v43  ;;  %7751 = vmatprep.subr.bf16.mxu1 %v12660_v46  ;;  %v12876_v36 = vcombine.high %v1953_v33, %v1957_v34  ;;  %v1817_v38 = vld [vmem:[#allocation5 + $0x1948] sm:$0xff] }
 0x2d7   : > { %v1821_v43 = vld [vmem:[#allocation5 + $0x1968] sm:$0xff] }
 0x2d8   : > { %v1945_v47 = vld [vmem:[#allocation5 + $0x1d48] sm:$0xff]  ;;  %v12739_v9 = vcombine.low %v1817_v38, %v1821_v43 }
 0x2d9   : > { %7711 = vmatpush2.bf16.msra.mxu0 %v12531_v30  ;;  %7752 = vmatpush2.bf16.msra.mxu1 %v12659_v55  ;;  %v1949_v50 = vld [vmem:[#allocation5 + $0x1d68] sm:$0xff]  ;;  %v12747_v30 = vcombine.low %v1825_v29, %v1829_v32 }
 0x2da   : > { %7712 = vmatprep.subr.bf16.mxu0 %v12524_v56  ;;  %7753 = vmatprep.subr.bf16.mxu1 %v12652_v60  ;;  %v12875_v56 = vcombine.low %v1953_v33, %v1957_v34  ;;  %v12740_v60 = vcombine.high %v1817_v38, %v1821_v43  ;;  %v12868_v63 = vcombine.high %v1945_v47, %v1949_v50  ;;  %v1805_v19 = vld [vmem:[#allocation5 + $0x18e8] sm:$0xff] }
 0x2db   : > { %v1929_v21 = vld [vmem:[#allocation5 + $0x1cc8] sm:$0xff] }
 0x2dc   : > { %v1933_v22 = vld [vmem:[#allocation5 + $0x1ce8] sm:$0xff] }
 0x2dd   : > { %7713 = vmatpush2.bf16.msra.mxu0 %v12523_v0  ;;  %7754 = vmatpush2.bf16.msra.mxu1 %v12651_v1  ;;  %v1809_v0 = vld [vmem:[#allocation5 + $0x1908] sm:$0xff] }
 0x2de   : > { %7714 = vmatprep.subr.bf16.mxu0 %v12516_v3  ;;  %7755 = vmatprep.subr.bf16.mxu1 %v12644_v4  ;;  %v1813_v1 = vld [vmem:[#allocation5 + $0x1928] sm:$0xff] }
 0x2df   : > { %v1937_v3 = vld [vmem:[#allocation5 + $0x1d08] sm:$0xff]  ;;  %v12731_v23 = vcombine.low %v1809_v0, %v1813_v1 }
 0x2e0   : > { %v1941_v4 = vld [vmem:[#allocation5 + $0x1d28] sm:$0xff] }
 0x2e1   : > { %7715 = vmatpush2.bf16.msra.mxu0 %v12515_v12  ;;  %7756 = vmatpush2.bf16.msra.mxu1 %v12643_v13  ;;  %v12732_v12 = vcombine.high %v1809_v0, %v1813_v1  ;;  %v1797_v29 = vld [vmem:[#allocation5 + $0x18a8] sm:$0xff] }
 0x2e2   : > { %7716 = vmatprep.subr.bf16.mxu0 %v12508_v15  ;;  %7757 = vmatprep.subr.bf16.mxu1 %v12636_v17  ;;  %v12860_v15 = vcombine.high %v1937_v3, %v1941_v4  ;;  %v1801_v17 = vld [vmem:[#allocation5 + $0x18c8] sm:$0xff] }
 0x2e3   : > { %v1921_v32 = vld [vmem:[#allocation5 + $0x1c88] sm:$0xff]  ;;  %v12723_v34 = vcombine.low %v1801_v17, %v1805_v19 }
 0x2e4   : > { %v1925_v33 = vld [vmem:[#allocation5 + $0x1ca8] sm:$0xff] }
 0x2e5   : > { %7717 = vmatpush2.bf16.msra.mxu0 %v12507_v7  ;;  %7758 = vmatpush2.bf16.msra.mxu1 %v12635_v24  ;;  %v12859_v7 = vcombine.low %v1937_v3, %v1941_v4  ;;  %v12724_v24 = vcombine.high %v1801_v17, %v1805_v19  ;;  %v1789_v38 = vld [vmem:[#allocation5 + $0x1868] sm:$0xff] }
 0x2e6   : > { %7768 = vmatprep.subr.bf16.mxu0 %v12756_v25  ;;  %7809 = vmatprep.subr.bf16.mxu1 %v12884_v27  ;;  %v12852_v25 = vcombine.high %v1929_v21, %v1933_v22  ;;  %v1793_v27 = vld [vmem:[#allocation5 + $0x1888] sm:$0xff] }
 0x2e7   : > { %v1913_v43 = vld [vmem:[#allocation5 + $0x1c48] sm:$0xff] }
 0x2e8   : > { %v7474_v46 = vpop.f32.mrf.mxu0  ;;  %7719 = vmatmul.mubr.bf16.vlgmr.msra.gmra.mxu0 %v14922_v2  ;;  %v7515_v53 = vpop.f32.mrf.mxu1  ;;  %7760 = vmatmul.mubr.bf16.vlgmr.msra.gmra.mxu1 %v14925_v6  ;;  %v1897_v1 = vld [vmem:[#allocation5 + $0x1bc8] sm:$0xff] }
 0x2e9   : > { %v7475_v52 = vadd.f32 %v7474_v46, %v14980_v45  ;;  %7769 = vmatpush1.bf16.msra.mxu0 %v12755_v35  ;;  %7810 = vmatpush1.bf16.msra.mxu1 %v12883_v11  ;;  %v12851_v35 = vcombine.low %v1929_v21, %v1933_v22  ;;  %v12716_v11 = vcombine.high %v1793_v27, %v1797_v29  ;;  %v1917_v46 = vld [vmem:[#allocation5 + $0x1c68] sm:$0xff] }
 0x2ea   : > { %v7476_v55 = vpop.f32.mrf.mxu0  ;;  %7770 = vmatprep.subr.bf16.mxu0 %v12748_v10  ;;  %v7517_v41 = vpop.f32.mrf.mxu1  ;;  %7811 = vmatprep.subr.bf16.mxu1 %v12876_v36  ;;  %v12844_v10 = vcombine.high %v1921_v32, %v1925_v33  ;;  %v1785_v36 = vld [vmem:[#allocation5 + $0x1848] sm:$0xff] }
 0x2eb   : > { %v14990_v61 = vadd.f32 %v7515_v53, %v7475_v52  ;;  %v7477_v62 = vadd.f32 %v7476_v55, %v14985_v57  ;;  %7800 = vmatprep.mubr.bf16.mxu0 %v14928_v14  ;;  %7841 = vmatprep.mubr.bf16.mxu1 %v14931_v18  ;;  %v12867_v57 = vcombine.low %v1945_v47, %v1949_v50  ;;  %v1781_v55 = vld [vmem:[#allocation5 + $0x1828] sm:$0xff] }
 0x2ec   : > { %v7478_v45 = vpop.f32.mrf.mxu0  ;;  %v7519_v8 = vpop.f32.mrf.mxu1  ;;  %v12715_v47 = vcombine.low %v1793_v27, %v1797_v29  ;;  %v12843_v50 = vcombine.low %v1921_v32, %v1925_v33  ;;  %v12708_v52 = vcombine.high %v1785_v36, %v1789_v38  ;;  %v12836_v53 = vcombine.high %v1913_v43, %v1917_v46  ;;  %v2025_v3 = vld [vmem:[#allocation5 + $0x1fc8] sm:$0xff] }
 0x2ed   : > { %v14995_v5 = vadd.f32 %v7517_v41, %v7477_v62  ;;  %7771 = vmatpush1.bf16.msra.mxu0 %v12747_v30  ;;  %7812 = vmatpush1.bf16.msra.mxu1 %v12875_v56  ;;  %v1777_v30 = vld [vmem:[#allocation5 + $0x1808] sm:$0xff]  ;;  %v12707_v62 = vcombine.low %v1785_v36, %v1789_v38  ;;  %v12835_v41 = vcombine.low %v1913_v43, %v1917_v46 }
 0x2ee   : > { %v7479_v42 = vpop.f32.mrf.mxu0  ;;  %7772 = vmatprep.subr.bf16.mxu0 %v12740_v60  ;;  %v7520_v13 = vpop.f32.mrf.mxu1  ;;  %7813 = vmatprep.subr.bf16.mxu1 %v12868_v63  ;;  %v1905_v56 = vld [vmem:[#allocation5 + $0x1c08] sm:$0xff]  ;;  %v12700_v63 = vcombine.high %v1777_v30, %v1781_v55  ;;  %v12699_v8 = vcombine.low %v1777_v30, %v1781_v55 }
 0x2ef   : > { %v1909_v60 = vld [vmem:[#allocation5 + $0x1c28] sm:$0xff] }
 0x2f0   : > { %v12828_v0 = vcombine.high %v1905_v56, %v1909_v60  ;;  %v1901_v45 = vld [vmem:[#allocation5 + $0x1be8] sm:$0xff] }
 0x2f1   : > { %7773 = vmatpush1.bf16.msra.mxu0 %v12739_v9  ;;  %7814 = vmatpush1.bf16.msra.mxu1 %v12867_v57  ;;  %v2029_v4 = vld [vmem:[#allocation5 + $0x1fe8] sm:$0xff]  ;;  %v12827_v9 = vcombine.low %v1905_v56, %v1909_v60  ;;  %v12820_v42 = vcombine.high %v1897_v1, %v1901_v45  ;;  %v12819_v19 = vcombine.low %v1897_v1, %v1901_v45 }
 0x2f2   : > { %7774 = vmatprep.subr.bf16.mxu0 %v12732_v12  ;;  %7815 = vmatprep.subr.bf16.mxu1 %v12860_v15  ;;  %v12948_v57 = vcombine.high %v2025_v3, %v2029_v4  ;;  %v1889_v12 = vld [vmem:[#allocation5 + $0x1b88] sm:$0xff]  ;;  %v12947_v21 = vcombine.low %v2025_v3, %v2029_v4 }
 0x2f3   : > { %v1893_v13 = vld [vmem:[#allocation5 + $0x1ba8] sm:$0xff] }
 0x2f4   : > { %v2017_v15 = vld [vmem:[#allocation5 + $0x1f88] sm:$0xff]  ;;  %v12812_v22 = vcombine.high %v1889_v12, %v1893_v13  ;;  %v12811_v29 = vcombine.low %v1889_v12, %v1893_v13 }
 0x2f5   : > { %7775 = vmatpush1.bf16.msra.mxu0 %v12731_v23  ;;  %7816 = vmatpush1.bf16.msra.mxu1 %v12859_v7  ;;  %v2021_v17 = vld [vmem:[#allocation5 + $0x1fa8] sm:$0xff] }
 0x2f6   : > { %7776 = vmatprep.subr.bf16.mxu0 %v12724_v24  ;;  %7817 = vmatprep.subr.bf16.mxu1 %v12852_v25  ;;  %v12940_v23 = vcombine.high %v2017_v15, %v2021_v17  ;;  %v1881_v7 = vld [vmem:[#allocation5 + $0x1b48] sm:$0xff]  ;;  %v12939_v32 = vcombine.low %v2017_v15, %v2021_v17 }
 0x2f7   : > { %v1885_v24 = vld [vmem:[#allocation5 + $0x1b68] sm:$0xff] }
 0x2f8   : > { %v2009_v25 = vld [vmem:[#allocation5 + $0x1f48] sm:$0xff]  ;;  %v12804_v33 = vcombine.high %v1881_v7, %v1885_v24  ;;  %v12803_v38 = vcombine.low %v1881_v7, %v1885_v24 }
 0x2f9   : > { %7777 = vmatpush1.bf16.msra.mxu0 %v12723_v34  ;;  %7818 = vmatpush1.bf16.msra.mxu1 %v12851_v35  ;;  %v2013_v27 = vld [vmem:[#allocation5 + $0x1f68] sm:$0xff] }
 0x2fa   : > { %7778 = vmatprep.subr.bf16.mxu0 %v12716_v11  ;;  %7819 = vmatprep.subr.bf16.mxu1 %v12844_v10  ;;  %v12932_v34 = vcombine.high %v2009_v25, %v2013_v27  ;;  %v1873_v35 = vld [vmem:[#allocation5 + $0x1b08] sm:$0xff]  ;;  %v12931_v43 = vcombine.low %v2009_v25, %v2013_v27 }
 0x2fb   : > { %v1877_v11 = vld [vmem:[#allocation5 + $0x1b28] sm:$0xff] }
 0x2fc   : > { %v2001_v10 = vld [vmem:[#allocation5 + $0x1f08] sm:$0xff]  ;;  %v12796_v46 = vcombine.high %v1873_v35, %v1877_v11  ;;  %v12795_v55 = vcombine.low %v1873_v35, %v1877_v11  ;;  %v1198_v35 = vld [vmem:[#allocation5 + $0x5f0] sm:$0xff] }
 0x2fd   : > { %7779 = vmatpush1.bf16.msra.mxu0 %v12715_v47  ;;  %7820 = vmatpush1.bf16.msra.mxu1 %v12843_v50  ;;  %v2005_v36 = vld [vmem:[#allocation5 + $0x1f28] sm:$0xff] }
 0x2fe   : > { %7780 = vmatprep.subr.bf16.mxu0 %v12708_v52  ;;  %7821 = vmatprep.subr.bf16.mxu1 %v12836_v53  ;;  %v12924_v47 = vcombine.high %v2001_v10, %v2005_v36  ;;  %v1865_v50 = vld [vmem:[#allocation5 + $0x1ac8] sm:$0xff]  ;;  %v12923_v56 = vcombine.low %v2001_v10, %v2005_v36  ;;  %v14998_v10 = vsub.s32 2, %v14936_v26 }
 0x2ff   : > { %v1869_v52 = vld [vmem:[#allocation5 + $0x1ae8] sm:$0xff] }
 0x300   : > { %v1993_v53 = vld [vmem:[#allocation5 + $0x1ec8] sm:$0xff]  ;;  %v12788_v60 = vcombine.high %v1865_v50, %v1869_v52  ;;  %v12787_v45 = vcombine.low %v1865_v50, %v1869_v52  ;;  %v1062_v50 = vld [vmem:[#allocation5 + $0x1b0] sm:$0xff] }
 0x301   : > { %7781 = vmatpush1.bf16.msra.mxu0 %v12707_v62  ;;  %7822 = vmatpush1.bf16.msra.mxu1 %v12835_v41  ;;  %v1997_v30 = vld [vmem:[#allocation5 + $0x1ee8] sm:$0xff]  ;;  %v1186_v52 = vld [vmem:[#allocation5 + $0x590] sm:$0xff] }
 0x302   : > { %7782 = vmatprep.subr.bf16.mxu0 %v12700_v63  ;;  %7823 = vmatprep.subr.bf16.mxu1 %v12828_v0  ;;  %v12916_v62 = vcombine.high %v1993_v53, %v1997_v30  ;;  %v1857_v41 = vld [vmem:[#allocation5 + $0x1a88] sm:$0xff]  ;;  %v12915_v3 = vcombine.low %v1993_v53, %v1997_v30  ;;  %v1190_v53 = vld [vmem:[#allocation5 + $0x5b0] sm:$0xff] }
 0x303   : > { %v1861_v63 = vld [vmem:[#allocation5 + $0x1aa8] sm:$0xff] }
 0x304   : > { %v1985_v0 = vld [vmem:[#allocation5 + $0x1e88] sm:$0xff]  ;;  %v12780_v4 = vcombine.high %v1857_v41, %v1861_v63  ;;  %v12779_v13 = vcombine.low %v1857_v41, %v1861_v63  ;;  %v12110_v63 = vcombine.high %v1186_v52, %v1190_v53 }
 0x305   : > { %7783 = vmatpush1.bf16.msra.mxu0 %v12699_v8  ;;  %7824 = vmatpush1.bf16.msra.mxu1 %v12827_v9  ;;  %v1989_v1 = vld [vmem:[#allocation5 + $0x1ea8] sm:$0xff] }
 0x306   : > { %7784 = vmatprep.subr.bf16.mxu0 %v12820_v42  ;;  %7825 = vmatprep.subr.bf16.mxu1 %v12948_v57  ;;  %v12908_v8 = vcombine.high %v1985_v0, %v1989_v1  ;;  %v1849_v9 = vld [vmem:[#allocation5 + $0x1a48] sm:$0xff]  ;;  %v12907_v15 = vcombine.low %v1985_v0, %v1989_v1  ;;  %v1050_v0 = vld [vmem:[#allocation5 + $0x150] sm:$0xff] }
 0x307   : > { %v1853_v42 = vld [vmem:[#allocation5 + $0x1a68] sm:$0xff]  ;;  %v1054_v1 = vld [vmem:[#allocation5 + $0x170] sm:$0xff] }
 0x308   : > { %v1977_v57 = vld [vmem:[#allocation5 + $0x1e48] sm:$0xff]  ;;  %v12772_v17 = vcombine.high %v1849_v9, %v1853_v42  ;;  %v12771_v24 = vcombine.low %v1849_v9, %v1853_v42 }
 0x309   : > { %7785 = vmatpush2.bf16.msra.mxu0 %v12819_v19  ;;  %7826 = vmatpush2.bf16.msra.mxu1 %v12947_v21  ;;  %v1981_v12 = vld [vmem:[#allocation5 + $0x1e68] sm:$0xff] }
 0x30a   : > { %7786 = vmatprep.subr.bf16.mxu0 %v12812_v22  ;;  %7827 = vmatprep.subr.bf16.mxu1 %v12940_v23  ;;  %v12900_v19 = vcombine.high %v1977_v57, %v1981_v12  ;;  %v1841_v21 = vld [vmem:[#allocation5 + $0x1a08] sm:$0xff]  ;;  %v12899_v25 = vcombine.low %v1977_v57, %v1981_v12  ;;  %v12109_v12 = vcombine.low %v1186_v52, %v1190_v53 }
 0x30b   : > { %v1845_v22 = vld [vmem:[#allocation5 + $0x1a28] sm:$0xff] }
 0x30c   : > { %v1969_v23 = vld [vmem:[#allocation5 + $0x1e08] sm:$0xff]  ;;  %v12764_v27 = vcombine.high %v1841_v21, %v1845_v22  ;;  %v12763_v11 = vcombine.low %v1841_v21, %v1845_v22  ;;  %v1042_v22 = vld [vmem:[#allocation5 + $0x110] sm:$0xff] }
 0x30d   : > { %7787 = vmatpush2.bf16.msra.mxu0 %v12811_v29  ;;  %7828 = vmatpush2.bf16.msra.mxu1 %v12939_v32  ;;  %v1973_v7 = vld [vmem:[#allocation5 + $0x1e28] sm:$0xff]  ;;  %v1066_v32 = vld [vmem:[#allocation5 + $0x1d0] sm:$0xff] }
 0x30e   : > { %7788 = vmatprep.subr.bf16.mxu0 %v12804_v33  ;;  %7829 = vmatprep.subr.bf16.mxu1 %v12932_v34  ;;  %v12892_v29 = vcombine.high %v1969_v23, %v1973_v7  ;;  %v1070_v33 = vld [vmem:[#allocation5 + $0x1f0] sm:$0xff]  ;;  %v12891_v36 = vcombine.low %v1969_v23, %v1973_v7 }
 0x30f   : > { %v1194_v34 = vld [vmem:[#allocation5 + $0x5d0] sm:$0xff] }
 0x310   : > { %v13948_v30 = vld [vmem:[#allocation7] ss:$4 sm:$0xff] }
 0x311   : > { %7789 = vmatpush2.bf16.msra.mxu0 %v12803_v38  ;;  %7830 = vmatpush2.bf16.msra.mxu1 %v12931_v43  ;;  %v11990_v38 = vcombine.high %v1066_v32, %v1070_v33  ;;  %v12118_v43 = vcombine.high %v1194_v34, %v1198_v35  ;;  %v1046_v23 = vld [vmem:[#allocation5 + $0x130] sm:$0xff] }
 0x312   : > { %7790 = vmatprep.subr.bf16.mxu0 %v12796_v46  ;;  %7831 = vmatprep.subr.bf16.mxu1 %v12924_v47  ;;  %v15001_v46 = vsub.s32 3, %v14936_v26  ;;  %v1058_v47 = vld [vmem:[#allocation5 + $0x190] sm:$0xff]  ;;  %v11965_v52 = vcombine.low %v1042_v22, %v1046_v23 }
 0x313   : > { %v11981_v42 = vcombine.low %v1058_v47, %v1062_v50 }
 0x314   : > { %v2049_v41 = vrot.slane %v13948_v30, %v15001_v46 }
 0x315   : > { %7791 = vmatpush2.bf16.msra.mxu0 %v12795_v55  ;;  %7832 = vmatpush2.bf16.msra.mxu1 %v12923_v56  ;;  %v2045_v55 = vrot.slane %v13948_v30, %v14998_v10  ;;  %v11989_v56 = vcombine.low %v1066_v32, %v1070_v33  ;;  %v11973_v32 = vcombine.low %v1050_v0, %v1054_v1 }
 0x316   : > { %7792 = vmatprep.subr.bf16.mxu0 %v12788_v60  ;;  %7833 = vmatprep.subr.bf16.mxu1 %v12916_v62  ;;  %v12117_v60 = vcombine.low %v1194_v34, %v1198_v35  ;;  %v11982_v62 = vcombine.high %v1058_v47, %v1062_v50  ;;  %v11966_v35 = vcombine.high %v1042_v22, %v1046_v23  ;;  %v1162_v47 = vld [vmem:[#allocation5 + $0x4d0] sm:$0xff] }
 0x317   : > { %v1166_v50 = vld [vmem:[#allocation5 + $0x4f0] sm:$0xff] }
 0x318   : > { %v1142_v22 = vld [vmem:[#allocation5 + $0x430] sm:$0xff] }
 0x319   : > { %7793 = vmatpush2.bf16.msra.mxu0 %v12787_v45  ;;  %7834 = vmatpush2.bf16.msra.mxu1 %v12915_v3  ;;  %v1178_v3 = vld [vmem:[#allocation5 + $0x550] sm:$0xff] }
 0x31a   : > { %7794 = vmatprep.subr.bf16.mxu0 %v12780_v4  ;;  %7835 = vmatprep.subr.bf16.mxu1 %v12908_v8  ;;  %v1182_v4 = vld [vmem:[#allocation5 + $0x570] sm:$0xff] }
 0x31b   : > { %v12102_v21 = vcombine.high %v1178_v3, %v1182_v4  ;;  %v12101_v34 = vcombine.low %v1178_v3, %v1182_v4  ;;  %v1018_v3 = vld [vmem:[#allocation5 + $0x50] sm:$0xff] }
 0x31c   : > { %v1022_v4 = vld [vmem:[#allocation5 + $0x70] sm:$0xff] }
 0x31d   : > { %7795 = vmatpush2.bf16.msra.mxu0 %v12779_v13  ;;  %7836 = vmatpush2.bf16.msra.mxu1 %v12907_v15  ;;  %v11974_v13 = vcombine.high %v1050_v0, %v1054_v1  ;;  %v12085_v0 = vcombine.low %v1162_v47, %v1166_v50  ;;  %v11941_v23 = vcombine.low %v1018_v3, %v1022_v4 }
 0x31e   : > { %7796 = vmatprep.subr.bf16.mxu0 %v12772_v17  ;;  %7837 = vmatprep.subr.bf16.mxu1 %v12900_v19 }
 0x321   : > { %7797 = vmatpush2.bf16.msra.mxu0 %v12771_v24  ;;  %7838 = vmatpush2.bf16.msra.mxu1 %v12899_v25  ;;  %v1170_v24 = vld [vmem:[#allocation5 + $0x510] sm:$0xff] }
 0x322   : > { %7798 = vmatprep.subr.bf16.mxu0 %v12764_v27  ;;  %7839 = vmatprep.subr.bf16.mxu1 %v12892_v29  ;;  %v1174_v25 = vld [vmem:[#allocation5 + $0x530] sm:$0xff] }
 0x323   : > { %v12093_v53 = vcombine.low %v1170_v24, %v1174_v25 }
 0x325   : > { %7799 = vmatpush2.bf16.msra.mxu0 %v12763_v11  ;;  %7840 = vmatpush2.bf16.msra.mxu1 %v12891_v36  ;;  %v12094_v36 = vcombine.high %v1170_v24, %v1174_v25 }
 0x326   : > { %7850 = vmatprep.subr.bf16.mxu0 %v11990_v38  ;;  %7891 = vmatprep.subr.bf16.mxu1 %v12118_v43  ;;  %v1034_v38 = vld [vmem:[#allocation5 + $0xd0] sm:$0xff] }
 0x327   : > { %v1038_v43 = vld [vmem:[#allocation5 + $0xf0] sm:$0xff] }
 0x328   : > { %v7556_v45 = vpop.f32.mrf.mxu0  ;;  %7801 = vmatmul.mubr.bf16.vlgmr.msra.gmra.mxu0 %v14945_v48  ;;  %v7597_v9 = vpop.f32.mrf.mxu1  ;;  %7842 = vmatmul.mubr.bf16.vlgmr.msra.gmra.mxu1 %v14949_v54  ;;  %v11958_v30 = vcombine.high %v1034_v38, %v1038_v43 }
 0x329   : > { %v7557_v8 = vadd.f32 %v7556_v45, %v2045_v55  ;;  %7851 = vmatpush1.bf16.msra.mxu0 %v11989_v56  ;;  %7892 = vmatpush1.bf16.msra.mxu1 %v12117_v60  ;;  %v12086_v55 = vcombine.high %v1162_v47, %v1166_v50  ;;  %v1026_v56 = vld [vmem:[#allocation5 + $0x90] sm:$0xff] }
 0x32a   : > { %v7558_v57 = vpop.f32.mrf.mxu0  ;;  %7852 = vmatprep.subr.bf16.mxu0 %v11982_v62  ;;  %v7599_v19 = vpop.f32.mrf.mxu1  ;;  %7893 = vmatprep.subr.bf16.mxu1 %v12110_v63  ;;  %v1030_v60 = vld [vmem:[#allocation5 + $0xb0] sm:$0xff]  ;;  %v11957_v63 = vcombine.low %v1034_v38, %v1038_v43 }
 0x32b   : > { %v15007_v15 = vadd.f32 %v7597_v9, %v7557_v8  ;;  %v7559_v17 = vadd.f32 %v7558_v57, %v2049_v41  ;;  %7882 = vmatprep.mubr.bf16.mxu0 %v14882_v58  ;;  %7923 = vmatprep.mubr.bf16.mxu1 %v14884_v59  ;;  %v1154_v62 = vld [vmem:[#allocation5 + $0x490] sm:$0xff]  ;;  %v11950_v1 = vcombine.high %v1026_v56, %v1030_v60 }
 0x32c   : > { %v7560_v7 = vpop.f32.mrf.mxu0  ;;  %v7601_v29 = vpop.f32.mrf.mxu1  ;;  %v1158_v41 = vld [vmem:[#allocation5 + $0x4b0] sm:$0xff] }
 0x32d   : > { %v15011_v27 = vadd.f32 %v7599_v19, %v7559_v17  ;;  %7853 = vmatpush1.bf16.msra.mxu0 %v11981_v42  ;;  %7894 = vmatpush1.bf16.msra.mxu1 %v12109_v12  ;;  %v12078_v45 = vcombine.high %v1154_v62, %v1158_v41  ;;  %v1146_v8 = vld [vmem:[#allocation5 + $0x450] sm:$0xff]  ;;  %v11949_v42 = vcombine.low %v1026_v56, %v1030_v60 }
 0x32e   : > { %v7561_v33 = vpop.f32.mrf.mxu0  ;;  %7854 = vmatprep.subr.bf16.mxu0 %v11974_v13  ;;  %v7602_v11 = vpop.f32.mrf.mxu1  ;;  %7895 = vmatprep.subr.bf16.mxu1 %v12102_v21  ;;  %v1150_v9 = vld [vmem:[#allocation5 + $0x470] sm:$0xff]  ;;  %v12077_v57 = vcombine.low %v1154_v62, %v1158_v41  ;;  %v11942_v12 = vcombine.high %v1018_v3, %v1022_v4 }
 0x32f   : > { %v12070_v13 = vcombine.high %v1146_v8, %v1150_v9  ;;  %v1010_v17 = vld [vmem:[#allocation5 + $0x10] sm:$0xff]  ;;  %v12069_v7 = vcombine.low %v1146_v8, %v1150_v9 }
 0x330   : > { %v1014_v19 = vld [vmem:[#allocation5 + $0x30] sm:$0xff] }
 0x331   : > { %7855 = vmatpush1.bf16.msra.mxu0 %v11973_v32  ;;  %7896 = vmatpush1.bf16.msra.mxu1 %v12101_v34  ;;  %v1138_v21 = vld [vmem:[#allocation5 + $0x410] sm:$0xff]  ;;  %v11934_v24 = vcombine.high %v1010_v17, %v1014_v19 }
 0x332   : > { %7856 = vmatprep.subr.bf16.mxu0 %v11966_v35  ;;  %7897 = vmatprep.subr.bf16.mxu1 %v12094_v36  ;;  %v12062_v25 = vcombine.high %v1138_v21, %v1142_v22  ;;  %v1130_v29 = vld [vmem:[#allocation5 + $0x3d0] sm:$0xff]  ;;  %v11933_v35 = vcombine.low %v1010_v17, %v1014_v19  ;;  %v12061_v11 = vcombine.low %v1138_v21, %v1142_v22 }
 0x333   : > { %v1134_v32 = vld [vmem:[#allocation5 + $0x3f0] sm:$0xff] }
 0x334   : > { %v1258_v33 = vld [vmem:[#allocation5 + $0x7d0] sm:$0xff]  ;;  %v12054_v36 = vcombine.high %v1130_v29, %v1134_v32 }
 0x335   : > { %7857 = vmatpush1.bf16.msra.mxu0 %v11965_v52  ;;  %7898 = vmatpush1.bf16.msra.mxu1 %v12093_v53  ;;  %v1262_v34 = vld [vmem:[#allocation5 + $0x7f0] sm:$0xff]  ;;  %v12053_v53 = vcombine.low %v1130_v29, %v1134_v32 }
 0x336   : > { %7858 = vmatprep.subr.bf16.mxu0 %v11958_v30  ;;  %7899 = vmatprep.subr.bf16.mxu1 %v12086_v55  ;;  %v12182_v38 = vcombine.high %v1258_v33, %v1262_v34  ;;  %v1122_v43 = vld [vmem:[#allocation5 + $0x390] sm:$0xff]  ;;  %v12181_v30 = vcombine.low %v1258_v33, %v1262_v34 }
 0x337   : > { %v1126_v47 = vld [vmem:[#allocation5 + $0x3b0] sm:$0xff] }
 0x338   : > { %v1250_v50 = vld [vmem:[#allocation5 + $0x790] sm:$0xff]  ;;  %v12046_v55 = vcombine.high %v1122_v43, %v1126_v47 }
 0x339   : > { %7859 = vmatpush1.bf16.msra.mxu0 %v11957_v63  ;;  %7900 = vmatpush1.bf16.msra.mxu1 %v12085_v0  ;;  %v1254_v52 = vld [vmem:[#allocation5 + $0x7b0] sm:$0xff]  ;;  %v12045_v0 = vcombine.low %v1122_v43, %v1126_v47 }
 0x33a   : > { %7860 = vmatprep.subr.bf16.mxu0 %v11950_v1  ;;  %7901 = vmatprep.subr.bf16.mxu1 %v12078_v45  ;;  %v12174_v56 = vcombine.high %v1250_v50, %v1254_v52  ;;  %v1114_v60 = vld [vmem:[#allocation5 + $0x350] sm:$0xff]  ;;  %v12173_v1 = vcombine.low %v1250_v50, %v1254_v52 }
 0x33b   : > { %v1118_v62 = vld [vmem:[#allocation5 + $0x370] sm:$0xff] }
 0x33c   : > { %v1242_v41 = vld [vmem:[#allocation5 + $0x750] sm:$0xff]  ;;  %v12038_v45 = vcombine.high %v1114_v60, %v1118_v62 }
 0x33d   : > { %7861 = vmatpush1.bf16.msra.mxu0 %v11949_v42  ;;  %7902 = vmatpush1.bf16.msra.mxu1 %v12077_v57  ;;  %v1246_v63 = vld [vmem:[#allocation5 + $0x770] sm:$0xff]  ;;  %v12037_v57 = vcombine.low %v1114_v60, %v1118_v62 }
 0x33e   : > { %7862 = vmatprep.subr.bf16.mxu0 %v11942_v12  ;;  %7903 = vmatprep.subr.bf16.mxu1 %v12070_v13  ;;  %v12166_v3 = vcombine.high %v1242_v41, %v1246_v63  ;;  %v1106_v4 = vld [vmem:[#allocation5 + $0x310] sm:$0xff]  ;;  %v12165_v12 = vcombine.low %v1242_v41, %v1246_v63 }
 0x33f   : > { %v1110_v8 = vld [vmem:[#allocation5 + $0x330] sm:$0xff] }
 0x340   : > { %v1234_v9 = vld [vmem:[#allocation5 + $0x710] sm:$0xff]  ;;  %v12030_v13 = vcombine.high %v1106_v4, %v1110_v8 }
 0x341   : > { %7863 = vmatpush1.bf16.msra.mxu0 %v11941_v23  ;;  %7904 = vmatpush1.bf16.msra.mxu1 %v12069_v7  ;;  %v1238_v42 = vld [vmem:[#allocation5 + $0x730] sm:$0xff]  ;;  %v12029_v7 = vcombine.low %v1106_v4, %v1110_v8 }
 0x342   : > { %7864 = vmatprep.subr.bf16.mxu0 %v11934_v24  ;;  %7905 = vmatprep.subr.bf16.mxu1 %v12062_v25  ;;  %v12158_v17 = vcombine.high %v1234_v9, %v1238_v42  ;;  %v1098_v19 = vld [vmem:[#allocation5 + $0x2d0] sm:$0xff]  ;;  %v12157_v24 = vcombine.low %v1234_v9, %v1238_v42 }
 0x343   : > { %v1102_v21 = vld [vmem:[#allocation5 + $0x2f0] sm:$0xff] }
 0x344   : > { %v1226_v22 = vld [vmem:[#allocation5 + $0x6d0] sm:$0xff]  ;;  %v12022_v25 = vcombine.high %v1098_v19, %v1102_v21 }
 0x345   : > { %7865 = vmatpush1.bf16.msra.mxu0 %v11933_v35  ;;  %7906 = vmatpush1.bf16.msra.mxu1 %v12061_v11  ;;  %v1230_v23 = vld [vmem:[#allocation5 + $0x6f0] sm:$0xff]  ;;  %v12021_v11 = vcombine.low %v1098_v19, %v1102_v21 }
 0x346   : > { %7866 = vmatprep.subr.bf16.mxu0 %v12054_v36  ;;  %7907 = vmatprep.subr.bf16.mxu1 %v12182_v38  ;;  %v12150_v29 = vcombine.high %v1226_v22, %v1230_v23  ;;  %v1090_v32 = vld [vmem:[#allocation5 + $0x290] sm:$0xff]  ;;  %v12149_v36 = vcombine.low %v1226_v22, %v1230_v23 }
 0x347   : > { %v1094_v33 = vld [vmem:[#allocation5 + $0x2b0] sm:$0xff] }
 0x348   : > { %v1218_v34 = vld [vmem:[#allocation5 + $0x690] sm:$0xff]  ;;  %v12014_v38 = vcombine.high %v1090_v32, %v1094_v33 }
 0x349   : > { %7867 = vmatpush2.bf16.msra.mxu0 %v12053_v53  ;;  %7908 = vmatpush2.bf16.msra.mxu1 %v12181_v30  ;;  %v1222_v35 = vld [vmem:[#allocation5 + $0x6b0] sm:$0xff]  ;;  %v12013_v30 = vcombine.low %v1090_v32, %v1094_v33 }
 0x34a   : > { %7868 = vmatprep.subr.bf16.mxu0 %v12046_v55  ;;  %7909 = vmatprep.subr.bf16.mxu1 %v12174_v56  ;;  %v12142_v43 = vcombine.high %v1218_v34, %v1222_v35  ;;  %v1082_v47 = vld [vmem:[#allocation5 + $0x250] sm:$0xff]  ;;  %v12141_v55 = vcombine.low %v1218_v34, %v1222_v35 }
 0x34b   : > { %v1086_v50 = vld [vmem:[#allocation5 + $0x270] sm:$0xff] }
 0x34c   : > { %v1210_v52 = vld [vmem:[#allocation5 + $0x650] sm:$0xff]  ;;  %v12006_v56 = vcombine.high %v1082_v47, %v1086_v50 }
 0x34d   : > { %7869 = vmatpush2.bf16.msra.mxu0 %v12045_v0  ;;  %7910 = vmatpush2.bf16.msra.mxu1 %v12173_v1  ;;  %v1214_v53 = vld [vmem:[#allocation5 + $0x670] sm:$0xff]  ;;  %v12005_v1 = vcombine.low %v1082_v47, %v1086_v50 }
 0x34e   : > { %7870 = vmatprep.subr.bf16.mxu0 %v12038_v45  ;;  %7911 = vmatprep.subr.bf16.mxu1 %v12166_v3  ;;  %v12134_v60 = vcombine.high %v1210_v52, %v1214_v53  ;;  %v1074_v62 = vld [vmem:[#allocation5 + $0x210] sm:$0xff]  ;;  %v12133_v45 = vcombine.low %v1210_v52, %v1214_v53 }
 0x34f   : > { %v1078_v41 = vld [vmem:[#allocation5 + $0x230] sm:$0xff] }
 0x350   : > { %v1202_v63 = vld [vmem:[#allocation5 + $0x610] sm:$0xff]  ;;  %v11998_v3 = vcombine.high %v1074_v62, %v1078_v41 }
 0x351   : > { %7871 = vmatpush2.bf16.msra.mxu0 %v12037_v57  ;;  %7912 = vmatpush2.bf16.msra.mxu1 %v12165_v12  ;;  %v1206_v0 = vld [vmem:[#allocation5 + $0x630] sm:$0xff]  ;;  %v11997_v12 = vcombine.low %v1074_v62, %v1078_v41 }
 0x352   : > { %7872 = vmatprep.subr.bf16.mxu0 %v12030_v13  ;;  %7913 = vmatprep.subr.bf16.mxu1 %v12158_v17  ;;  %v12126_v4 = vcombine.high %v1202_v63, %v1206_v0  ;;  %v1322_v8 = vld [vmem:[#allocation5 + $0x9d0] sm:$0xff]  ;;  %v12125_v13 = vcombine.low %v1202_v63, %v1206_v0 }
 0x353   : > { %v1326_v9 = vld [vmem:[#allocation5 + $0x9f0] sm:$0xff] }
 0x354   : > { %v1450_v42 = vld [vmem:[#allocation5 + $0xdd0] sm:$0xff]  ;;  %v12246_v17 = vcombine.high %v1322_v8, %v1326_v9 }
 0x355   : > { %7873 = vmatpush2.bf16.msra.mxu0 %v12029_v7  ;;  %7914 = vmatpush2.bf16.msra.mxu1 %v12157_v24  ;;  %v1454_v57 = vld [vmem:[#allocation5 + $0xdf0] sm:$0xff]  ;;  %v12245_v24 = vcombine.low %v1322_v8, %v1326_v9 }
 0x356   : > { %7874 = vmatprep.subr.bf16.mxu0 %v12022_v25  ;;  %7915 = vmatprep.subr.bf16.mxu1 %v12150_v29  ;;  %v12374_v19 = vcombine.high %v1450_v42, %v1454_v57  ;;  %v1314_v21 = vld [vmem:[#allocation5 + $0x990] sm:$0xff]  ;;  %v12373_v25 = vcombine.low %v1450_v42, %v1454_v57 }
 0x357   : > { %v1318_v22 = vld [vmem:[#allocation5 + $0x9b0] sm:$0xff] }
 0x358   : > { %v1442_v23 = vld [vmem:[#allocation5 + $0xd90] sm:$0xff]  ;;  %v12238_v29 = vcombine.high %v1314_v21, %v1318_v22  ;;  %v12237_v47 = vcombine.low %v1314_v21, %v1318_v22 }
 0x359   : > { %7875 = vmatpush2.bf16.msra.mxu0 %v12021_v11  ;;  %7916 = vmatpush2.bf16.msra.mxu1 %v12149_v36  ;;  %v1446_v7 = vld [vmem:[#allocation5 + $0xdb0] sm:$0xff] }
 0x35a   : > { %7876 = vmatprep.subr.bf16.mxu0 %v12014_v38  ;;  %7917 = vmatprep.subr.bf16.mxu1 %v12142_v43  ;;  %v12366_v32 = vcombine.high %v1442_v23, %v1446_v7  ;;  %v1306_v33 = vld [vmem:[#allocation5 + $0x950] sm:$0xff]  ;;  %v12365_v52 = vcombine.low %v1442_v23, %v1446_v7 }
 0x35b   : > { %v1310_v34 = vld [vmem:[#allocation5 + $0x970] sm:$0xff] }
 0x35c   : > { %v1434_v11 = vld [vmem:[#allocation5 + $0xd50] sm:$0xff]  ;;  %v12230_v53 = vcombine.high %v1306_v33, %v1310_v34 }
 0x35d   : > { %7877 = vmatpush2.bf16.msra.mxu0 %v12013_v30  ;;  %7918 = vmatpush2.bf16.msra.mxu1 %v12141_v55  ;;  %v1438_v36 = vld [vmem:[#allocation5 + $0xd70] sm:$0xff] }
 0x35e   : > { %7878 = vmatprep.subr.bf16.mxu0 %v12006_v56  ;;  %7919 = vmatprep.subr.bf16.mxu1 %v12134_v60  ;;  %v12358_v60 = vcombine.high %v1434_v11, %v1438_v36  ;;  %v1298_v62 = vld [vmem:[#allocation5 + $0x910] sm:$0xff] }
 0x35f   : > { %v1302_v41 = vld [vmem:[#allocation5 + $0x930] sm:$0xff] }
 0x360   : > { %v1426_v63 = vld [vmem:[#allocation5 + $0xd10] sm:$0xff]  ;;  %v12222_v8 = vcombine.high %v1298_v62, %v1302_v41 }
 0x361   : > { %7879 = vmatpush2.bf16.msra.mxu0 %v12005_v1  ;;  %7920 = vmatpush2.bf16.msra.mxu1 %v12133_v45  ;;  %v1430_v0 = vld [vmem:[#allocation5 + $0xd30] sm:$0xff] }
 0x362   : > { %7880 = vmatprep.subr.bf16.mxu0 %v11998_v3  ;;  %7921 = vmatprep.subr.bf16.mxu1 %v12126_v4  ;;  %v12229_v3 = vcombine.low %v1306_v33, %v1310_v34  ;;  %v12350_v42 = vcombine.high %v1426_v63, %v1430_v0  ;;  %v1290_v57 = vld [vmem:[#allocation5 + $0x8d0] sm:$0xff]  ;;  %v12349_v21 = vcombine.low %v1426_v63, %v1430_v0 }
 0x363   : > { %v1282_v7 = vld [vmem:[#allocation5 + $0x890] sm:$0xff] }
 0x365   : > { %7881 = vmatpush2.bf16.msra.mxu0 %v11997_v12  ;;  %7922 = vmatpush2.bf16.msra.mxu1 %v12125_v13  ;;  %v1294_v12 = vld [vmem:[#allocation5 + $0x8f0] sm:$0xff] }
 0x366   : > { %7932 = vmatprep.subr.bf16.mxu0 %v12246_v17  ;;  %7973 = vmatprep.subr.bf16.mxu1 %v12374_v19  ;;  %v1418_v13 = vld [vmem:[#allocation5 + $0xcd0] sm:$0xff]  ;;  %v12221_v19 = vcombine.low %v1298_v62, %v1302_v41  ;;  %v12214_v22 = vcombine.high %v1290_v57, %v1294_v12 }
 0x367   : > { %v1422_v17 = vld [vmem:[#allocation5 + $0xcf0] sm:$0xff] }
 0x368   : > { %v7638_v35 = vpop.f32.mrf.mxu0  ;;  %7883 = vmatmul.mubr.bf16.vlgmr.msra.gmra.mxu0 %v14890_v16  ;;  %v7679_v43 = vpop.f32.mrf.mxu1  ;;  %7924 = vmatmul.mubr.bf16.vlgmr.msra.gmra.mxu1 %v14893_v20  ;;  %v12342_v23 = vcombine.high %v1418_v13, %v1422_v17  ;;  %v12341_v33 = vcombine.low %v1418_v13, %v1422_v17  ;;  %v1398_v62 = vld [vmem:[#allocation5 + $0xc30] sm:$0xff] }
 0x369   : > { %v7639_v38 = vadd.f32 %v7638_v35, %v15007_v15  ;;  %7933 = vmatpush1.bf16.msra.mxu0 %v12245_v24  ;;  %7974 = vmatpush1.bf16.msra.mxu1 %v12373_v25  ;;  %v1286_v24 = vld [vmem:[#allocation5 + $0x8b0] sm:$0xff] }
 0x36a   : > { %v7640_v50 = vpop.f32.mrf.mxu0  ;;  %7934 = vmatprep.subr.bf16.mxu0 %v12238_v29  ;;  %v7681_v56 = vpop.f32.mrf.mxu1  ;;  %7975 = vmatprep.subr.bf16.mxu1 %v12366_v32  ;;  %v1410_v25 = vld [vmem:[#allocation5 + $0xc90] sm:$0xff]  ;;  %v12213_v32 = vcombine.low %v1290_v57, %v1294_v12  ;;  %v12206_v34 = vcombine.high %v1282_v7, %v1286_v24 }
 0x36b   : > { %v15016_v30 = vadd.f32 %v7679_v43, %v7639_v38  ;;  %v7641_v55 = vadd.f32 %v7640_v50, %v15011_v27  ;;  %7964 = vmatprep.mubr.bf16.mxu0 %v14896_v28  ;;  %8005 = vmatprep.mubr.bf16.mxu1 %v14899_v31  ;;  %v12357_v27 = vcombine.low %v1434_v11, %v1438_v36  ;;  %v1414_v29 = vld [vmem:[#allocation5 + $0xcb0] sm:$0xff] }
 0x36c   : > { %v7642_v15 = vpop.f32.mrf.mxu0  ;;  %v7683_v45 = vpop.f32.mrf.mxu1  ;;  %v12334_v35 = vcombine.high %v1410_v25, %v1414_v29  ;;  %v1274_v11 = vld [vmem:[#allocation5 + $0x850] sm:$0xff]  ;;  %v12333_v50 = vcombine.low %v1410_v25, %v1414_v29 }
 0x36d   : > { %v15021_v1 = vadd.f32 %v7681_v56, %v7641_v55  ;;  %7935 = vmatpush1.bf16.msra.mxu0 %v12237_v47  ;;  %7976 = vmatpush1.bf16.msra.mxu1 %v12365_v52  ;;  %v1278_v36 = vld [vmem:[#allocation5 + $0x870] sm:$0xff]  ;;  %v12205_v47 = vcombine.low %v1282_v7, %v1286_v24 }
 0x36e   : > { %v7643_v4 = vpop.f32.mrf.mxu0  ;;  %7936 = vmatprep.subr.bf16.mxu0 %v12230_v53  ;;  %v7684_v9 = vpop.f32.mrf.mxu1  ;;  %7977 = vmatprep.subr.bf16.mxu1 %v12358_v60  ;;  %v1402_v38 = vld [vmem:[#allocation5 + $0xc50] sm:$0xff]  ;;  %v12198_v52 = vcombine.high %v1274_v11, %v1278_v36  ;;  %v12197_v41 = vcombine.low %v1274_v11, %v1278_v36 }
 0x36f   : > { %v1406_v43 = vld [vmem:[#allocation5 + $0xc70] sm:$0xff] }
 0x370   : > { %v12326_v53 = vcombine.high %v1402_v38, %v1406_v43  ;;  %v1266_v55 = vld [vmem:[#allocation5 + $0x810] sm:$0xff]  ;;  %v12325_v15 = vcombine.low %v1402_v38, %v1406_v43 }
 0x371   : > { %7937 = vmatpush1.bf16.msra.mxu0 %v12229_v3  ;;  %7978 = vmatpush1.bf16.msra.mxu1 %v12357_v27  ;;  %v1270_v56 = vld [vmem:[#allocation5 + $0x830] sm:$0xff] }
 0x372   : > { %7938 = vmatprep.subr.bf16.mxu0 %v12222_v8  ;;  %7979 = vmatprep.subr.bf16.mxu1 %v12350_v42  ;;  %v1394_v60 = vld [vmem:[#allocation5 + $0xc10] sm:$0xff]  ;;  %v12190_v63 = vcombine.high %v1266_v55, %v1270_v56  ;;  %v12189_v8 = vcombine.low %v1266_v55, %v1270_v56 }
 0x373   : > { %v12318_v0 = vcombine.high %v1394_v60, %v1398_v62  ;;  %v1386_v45 = vld [vmem:[#allocation5 + $0xbd0] sm:$0xff]  ;;  %v12317_v9 = vcombine.low %v1394_v60, %v1398_v62 }
 0x374   : > { %v1390_v3 = vld [vmem:[#allocation5 + $0xbf0] sm:$0xff] }
 0x375   : > { %7939 = vmatpush1.bf16.msra.mxu0 %v12221_v19  ;;  %7980 = vmatpush1.bf16.msra.mxu1 %v12349_v21  ;;  %v1514_v4 = vld [vmem:[#allocation5 + $0xfd0] sm:$0xff]  ;;  %v12310_v42 = vcombine.high %v1386_v45, %v1390_v3  ;;  %v12309_v21 = vcombine.low %v1386_v45, %v1390_v3 }
 0x376   : > { %7940 = vmatprep.subr.bf16.mxu0 %v12214_v22  ;;  %7981 = vmatprep.subr.bf16.mxu1 %v12342_v23  ;;  %v1518_v27 = vld [vmem:[#allocation5 + $0xff0] sm:$0xff] }
 0x377   : > { %v12438_v57 = vcombine.high %v1514_v4, %v1518_v27  ;;  %v1378_v12 = vld [vmem:[#allocation5 + $0xb90] sm:$0xff]  ;;  %v12437_v22 = vcombine.low %v1514_v4, %v1518_v27 }
 0x378   : > { %v1382_v13 = vld [vmem:[#allocation5 + $0xbb0] sm:$0xff] }
 0x379   : > { %7941 = vmatpush1.bf16.msra.mxu0 %v12213_v32  ;;  %7982 = vmatpush1.bf16.msra.mxu1 %v12341_v33  ;;  %v1506_v17 = vld [vmem:[#allocation5 + $0xf90] sm:$0xff]  ;;  %v12302_v23 = vcombine.high %v1378_v12, %v1382_v13  ;;  %v12301_v33 = vcombine.low %v1378_v12, %v1382_v13 }
 0x37a   : > { %7942 = vmatprep.subr.bf16.mxu0 %v12206_v34  ;;  %7983 = vmatprep.subr.bf16.mxu1 %v12334_v35  ;;  %v1510_v19 = vld [vmem:[#allocation5 + $0xfb0] sm:$0xff] }
 0x37b   : > { %v12430_v7 = vcombine.high %v1506_v17, %v1510_v19  ;;  %v1370_v24 = vld [vmem:[#allocation5 + $0xb50] sm:$0xff]  ;;  %v12429_v34 = vcombine.low %v1506_v17, %v1510_v19 }
 0x37c   : > { %v1374_v25 = vld [vmem:[#allocation5 + $0xb70] sm:$0xff] }
 0x37d   : > { %7943 = vmatpush1.bf16.msra.mxu0 %v12205_v47  ;;  %7984 = vmatpush1.bf16.msra.mxu1 %v12333_v50  ;;  %v1498_v29 = vld [vmem:[#allocation5 + $0xf50] sm:$0xff]  ;;  %v12294_v35 = vcombine.high %v1370_v24, %v1374_v25  ;;  %v12293_v50 = vcombine.low %v1370_v24, %v1374_v25 }
 0x37e   : > { %7944 = vmatprep.subr.bf16.mxu0 %v12198_v52  ;;  %7985 = vmatprep.subr.bf16.mxu1 %v12326_v53  ;;  %v1502_v32 = vld [vmem:[#allocation5 + $0xf70] sm:$0xff] }
 0x37f   : > { %v12422_v11 = vcombine.high %v1498_v29, %v1502_v32  ;;  %v1362_v36 = vld [vmem:[#allocation5 + $0xb10] sm:$0xff]  ;;  %v12421_v52 = vcombine.low %v1498_v29, %v1502_v32 }
 0x380   : > { %v1366_v38 = vld [vmem:[#allocation5 + $0xb30] sm:$0xff] }
 0x381   : > { %7945 = vmatpush1.bf16.msra.mxu0 %v12197_v41  ;;  %7986 = vmatpush1.bf16.msra.mxu1 %v12325_v15  ;;  %v1490_v43 = vld [vmem:[#allocation5 + $0xf10] sm:$0xff]  ;;  %v12286_v53 = vcombine.high %v1362_v36, %v1366_v38  ;;  %v12285_v15 = vcombine.low %v1362_v36, %v1366_v38 }
 0x382   : > { %7946 = vmatprep.subr.bf16.mxu0 %v12190_v63  ;;  %7987 = vmatprep.subr.bf16.mxu1 %v12318_v0  ;;  %v1494_v47 = vld [vmem:[#allocation5 + $0xf30] sm:$0xff] }
 0x383   : > { %v12414_v55 = vcombine.high %v1490_v43, %v1494_v47  ;;  %v1354_v56 = vld [vmem:[#allocation5 + $0xad0] sm:$0xff]  ;;  %v12413_v63 = vcombine.low %v1490_v43, %v1494_v47 }
 0x384   : > { %v1358_v60 = vld [vmem:[#allocation5 + $0xaf0] sm:$0xff] }
 0x385   : > { %7947 = vmatpush1.bf16.msra.mxu0 %v12189_v8  ;;  %7988 = vmatpush1.bf16.msra.mxu1 %v12317_v9  ;;  %v1482_v62 = vld [vmem:[#allocation5 + $0xed0] sm:$0xff]  ;;  %v12278_v0 = vcombine.high %v1354_v56, %v1358_v60  ;;  %v12277_v9 = vcombine.low %v1354_v56, %v1358_v60 }
 0x386   : > { %7948 = vmatprep.subr.bf16.mxu0 %v12310_v42  ;;  %7989 = vmatprep.subr.bf16.mxu1 %v12438_v57  ;;  %v1486_v41 = vld [vmem:[#allocation5 + $0xef0] sm:$0xff] }
 0x387   : > { %v12406_v45 = vcombine.high %v1482_v62, %v1486_v41  ;;  %v1346_v3 = vld [vmem:[#allocation5 + $0xa90] sm:$0xff]  ;;  %v12405_v42 = vcombine.low %v1482_v62, %v1486_v41 }
 0x388   : > { %v1350_v4 = vld [vmem:[#allocation5 + $0xab0] sm:$0xff] }
 0x389   : > { %7949 = vmatpush2.bf16.msra.mxu0 %v12309_v21  ;;  %7990 = vmatpush2.bf16.msra.mxu1 %v12437_v22  ;;  %v1474_v27 = vld [vmem:[#allocation5 + $0xe90] sm:$0xff]  ;;  %v12270_v57 = vcombine.high %v1346_v3, %v1350_v4  ;;  %v12269_v22 = vcombine.low %v1346_v3, %v1350_v4 }
 0x38a   : > { %7950 = vmatprep.subr.bf16.mxu0 %v12302_v23  ;;  %7991 = vmatprep.subr.bf16.mxu1 %v12430_v7  ;;  %v1478_v8 = vld [vmem:[#allocation5 + $0xeb0] sm:$0xff] }
 0x38b   : > { %v12398_v12 = vcombine.high %v1474_v27, %v1478_v8  ;;  %v1338_v13 = vld [vmem:[#allocation5 + $0xa50] sm:$0xff]  ;;  %v12397_v23 = vcombine.low %v1474_v27, %v1478_v8 }
 0x38c   : > { %v1342_v17 = vld [vmem:[#allocation5 + $0xa70] sm:$0xff] }
 0x38d   : > { %7951 = vmatpush2.bf16.msra.mxu0 %v12301_v33  ;;  %7992 = vmatpush2.bf16.msra.mxu1 %v12429_v34  ;;  %v1466_v19 = vld [vmem:[#allocation5 + $0xe50] sm:$0xff]  ;;  %v12262_v7 = vcombine.high %v1338_v13, %v1342_v17  ;;  %v12261_v34 = vcombine.low %v1338_v13, %v1342_v17 }
 0x38e   : > { %7952 = vmatprep.subr.bf16.mxu0 %v12294_v35  ;;  %7993 = vmatprep.subr.bf16.mxu1 %v12422_v11  ;;  %v1470_v21 = vld [vmem:[#allocation5 + $0xe70] sm:$0xff] }
 0x38f   : > { %v12390_v24 = vcombine.high %v1466_v19, %v1470_v21  ;;  %v1330_v25 = vld [vmem:[#allocation5 + $0xa10] sm:$0xff]  ;;  %v12389_v35 = vcombine.low %v1466_v19, %v1470_v21 }
 0x390   : > { %v1334_v29 = vld [vmem:[#allocation5 + $0xa30] sm:$0xff] }
 0x391   : > { %7953 = vmatpush2.bf16.msra.mxu0 %v12293_v50  ;;  %7994 = vmatpush2.bf16.msra.mxu1 %v12421_v52  ;;  %v1458_v32 = vld [vmem:[#allocation5 + $0xe10] sm:$0xff]  ;;  %v12254_v11 = vcombine.high %v1330_v25, %v1334_v29  ;;  %v12253_v52 = vcombine.low %v1330_v25, %v1334_v29 }
 0x392   : > { %7954 = vmatprep.subr.bf16.mxu0 %v12286_v53  ;;  %7995 = vmatprep.subr.bf16.mxu1 %v12414_v55  ;;  %v1462_v33 = vld [vmem:[#allocation5 + $0xe30] sm:$0xff] }
 0x393   : > { %v12382_v36 = vcombine.high %v1458_v32, %v1462_v33  ;;  %v1578_v38 = vld [vmem:[#allocation5 + $0x11d0] sm:$0xff]  ;;  %v12381_v53 = vcombine.low %v1458_v32, %v1462_v33 }
 0x394   : > { %v1582_v43 = vld [vmem:[#allocation5 + $0x11f0] sm:$0xff] }
 0x395   : > { %7955 = vmatpush2.bf16.msra.mxu0 %v12285_v15  ;;  %7996 = vmatpush2.bf16.msra.mxu1 %v12413_v63  ;;  %v1706_v47 = vld [vmem:[#allocation5 + $0x15d0] sm:$0xff]  ;;  %v12502_v55 = vcombine.high %v1578_v38, %v1582_v43  ;;  %v12501_v63 = vcombine.low %v1578_v38, %v1582_v43 }
 0x396   : > { %7956 = vmatprep.subr.bf16.mxu0 %v12278_v0  ;;  %7997 = vmatprep.subr.bf16.mxu1 %v12406_v45  ;;  %v1710_v50 = vld [vmem:[#allocation5 + $0x15f0] sm:$0xff] }
 0x397   : > { %v12630_v56 = vcombine.high %v1706_v47, %v1710_v50  ;;  %v1570_v60 = vld [vmem:[#allocation5 + $0x1190] sm:$0xff]  ;;  %v12629_v0 = vcombine.low %v1706_v47, %v1710_v50 }
 0x398   : > { %v1574_v62 = vld [vmem:[#allocation5 + $0x11b0] sm:$0xff] }
 0x399   : > { %7957 = vmatpush2.bf16.msra.mxu0 %v12277_v9  ;;  %7998 = vmatpush2.bf16.msra.mxu1 %v12405_v42  ;;  %v1698_v41 = vld [vmem:[#allocation5 + $0x1590] sm:$0xff]  ;;  %v12494_v45 = vcombine.high %v1570_v60, %v1574_v62  ;;  %v12493_v13 = vcombine.low %v1570_v60, %v1574_v62 }
 0x39a   : > { %7958 = vmatprep.subr.bf16.mxu0 %v12270_v57  ;;  %7999 = vmatprep.subr.bf16.mxu1 %v12398_v12  ;;  %v1702_v15 = vld [vmem:[#allocation5 + $0x15b0] sm:$0xff] }
 0x39b   : > { %v12622_v3 = vcombine.high %v1698_v41, %v1702_v15  ;;  %v1562_v4 = vld [vmem:[#allocation5 + $0x1150] sm:$0xff]  ;;  %v12621_v19 = vcombine.low %v1698_v41, %v1702_v15 }
 0x39c   : > { %v1566_v27 = vld [vmem:[#allocation5 + $0x1170] sm:$0xff] }
 0x39d   : > { %7959 = vmatpush2.bf16.msra.mxu0 %v12269_v22  ;;  %8000 = vmatpush2.bf16.msra.mxu1 %v12397_v23  ;;  %v1690_v9 = vld [vmem:[#allocation5 + $0x1550] sm:$0xff]  ;;  %v12486_v21 = vcombine.high %v1562_v4, %v1566_v27 }
 0x39e   : > { %7960 = vmatprep.subr.bf16.mxu0 %v12262_v7  ;;  %8001 = vmatprep.subr.bf16.mxu1 %v12390_v24  ;;  %v1694_v42 = vld [vmem:[#allocation5 + $0x1570] sm:$0xff] }
 0x39f   : > { %v12614_v24 = vcombine.high %v1690_v9, %v1694_v42  ;;  %v1554_v25 = vld [vmem:[#allocation5 + $0x1110] sm:$0xff] }
 0x3a0   : > { %v1558_v29 = vld [vmem:[#allocation5 + $0x1130] sm:$0xff] }
 0x3a1   : > { %7961 = vmatpush2.bf16.msra.mxu0 %v12261_v34  ;;  %8002 = vmatpush2.bf16.msra.mxu1 %v12389_v35  ;;  %v1682_v32 = vld [vmem:[#allocation5 + $0x1510] sm:$0xff]  ;;  %v12478_v38 = vcombine.high %v1554_v25, %v1558_v29 }
 0x3a2   : > { %7962 = vmatprep.subr.bf16.mxu0 %v12254_v11  ;;  %8003 = vmatprep.subr.bf16.mxu1 %v12382_v36  ;;  %v1686_v33 = vld [vmem:[#allocation5 + $0x1530] sm:$0xff]  ;;  %v12485_v11 = vcombine.low %v1562_v4, %v1566_v27 }
 0x3a3   : > { %v12606_v47 = vcombine.high %v1682_v32, %v1686_v33  ;;  %v1546_v50 = vld [vmem:[#allocation5 + $0x10d0] sm:$0xff]  ;;  %v12605_v60 = vcombine.low %v1682_v32, %v1686_v33 }
 0x3a4   : > { %v1538_v15 = vld [vmem:[#allocation5 + $0x1090] sm:$0xff] }
 0x3a5   : > { %7963 = vmatpush2.bf16.msra.mxu0 %v12253_v52  ;;  %8004 = vmatpush2.bf16.msra.mxu1 %v12381_v53  ;;  %v1550_v52 = vld [vmem:[#allocation5 + $0x10f0] sm:$0xff] }
 0x3a6   : > { %8014 = vmatprep.subr.bf16.mxu0 %v12502_v55  ;;  %8055 = vmatprep.subr.bf16.mxu1 %v12630_v56  ;;  %v1674_v53 = vld [vmem:[#allocation5 + $0x14d0] sm:$0xff]  ;;  %v12477_v56 = vcombine.low %v1554_v25, %v1558_v29  ;;  %v12470_v62 = vcombine.high %v1546_v50, %v1550_v52 }
 0x3a7   : > { %v1678_v55 = vld [vmem:[#allocation5 + $0x14f0] sm:$0xff] }
 0x3a8   : > { %v7720_v8 = vpop.f32.mrf.mxu0  ;;  %7965 = vmatmul.mubr.bf16.vlgmr.msra.gmra.mxu0 %v14907_v39  ;;  %v7761_v12 = vpop.f32.mrf.mxu1  ;;  %8006 = vmatmul.mubr.bf16.vlgmr.msra.gmra.mxu1 %v14909_v40  ;;  %v12598_v41 = vcombine.high %v1674_v53, %v1678_v55  ;;  %v12597_v4 = vcombine.low %v1674_v53, %v1678_v55  ;;  %v1654_v25 = vld [vmem:[#allocation5 + $0x1430] sm:$0xff] }
 0x3a9   : > { %v7721_v57 = vadd.f32 %v7720_v8, %v15016_v30  ;;  %8015 = vmatpush1.bf16.msra.mxu0 %v12501_v63  ;;  %8056 = vmatpush1.bf16.msra.mxu1 %v12629_v0  ;;  %v1542_v63 = vld [vmem:[#allocation5 + $0x10b0] sm:$0xff] }
 0x3aa   : > { %v7722_v17 = vpop.f32.mrf.mxu0  ;;  %8016 = vmatprep.subr.bf16.mxu0 %v12494_v45  ;;  %v7763_v7 = vpop.f32.mrf.mxu1  ;;  %8057 = vmatprep.subr.bf16.mxu1 %v12622_v3  ;;  %v1666_v0 = vld [vmem:[#allocation5 + $0x1490] sm:$0xff]  ;;  %v12469_v3 = vcombine.low %v1546_v50, %v1550_v52  ;;  %v12462_v27 = vcombine.high %v1538_v15, %v1542_v63 }
 0x3ab   : > { %v15026_v22 = vadd.f32 %v7761_v12, %v7721_v57  ;;  %v7723_v23 = vadd.f32 %v7722_v17, %v15021_v1  ;;  %8046 = vmatprep.mubr.bf16.mxu0 %v14912_v49  ;;  %8087 = vmatprep.mubr.bf16.mxu1 %v14915_v51  ;;  %v12613_v1 = vcombine.low %v1690_v9, %v1694_v42  ;;  %v1670_v45 = vld [vmem:[#allocation5 + $0x14b0] sm:$0xff] }
 0x3ac   : > { %v7724_v30 = vpop.f32.mrf.mxu0  ;;  %v7765_v35 = vpop.f32.mrf.mxu1  ;;  %v12590_v8 = vcombine.high %v1666_v0, %v1670_v45  ;;  %v1530_v9 = vld [vmem:[#allocation5 + $0x1050] sm:$0xff]  ;;  %v12589_v17 = vcombine.low %v1666_v0, %v1670_v45 }
 0x3ad   : > { %v15031_v34 = vadd.f32 %v7763_v7, %v7723_v23  ;;  %8017 = vmatpush1.bf16.msra.mxu0 %v12493_v13  ;;  %8058 = vmatpush1.bf16.msra.mxu1 %v12621_v19  ;;  %v1534_v42 = vld [vmem:[#allocation5 + $0x1070] sm:$0xff]  ;;  %v12461_v13 = vcombine.low %v1538_v15, %v1542_v63 }
 0x3ae   : > { %v7725_v36 = vpop.f32.mrf.mxu0  ;;  %8018 = vmatprep.subr.bf16.mxu0 %v12486_v21  ;;  %v7766_v43 = vpop.f32.mrf.mxu1  ;;  %8059 = vmatprep.subr.bf16.mxu1 %v12614_v24  ;;  %v1658_v57 = vld [vmem:[#allocation5 + $0x1450] sm:$0xff]  ;;  %v12454_v19 = vcombine.high %v1530_v9, %v1534_v42  ;;  %v12453_v29 = vcombine.low %v1530_v9, %v1534_v42 }
 0x3af   : > { %v1662_v12 = vld [vmem:[#allocation5 + $0x1470] sm:$0xff] }
 0x3b0   : > { %v12582_v21 = vcombine.high %v1658_v57, %v1662_v12  ;;  %v1522_v23 = vld [vmem:[#allocation5 + $0x1010] sm:$0xff]  ;;  %v12581_v30 = vcombine.low %v1658_v57, %v1662_v12 }
 0x3b1   : > { %8019 = vmatpush1.bf16.msra.mxu0 %v12485_v11  ;;  %8060 = vmatpush1.bf16.msra.mxu1 %v12613_v1  ;;  %v1526_v7 = vld [vmem:[#allocation5 + $0x1030] sm:$0xff] }
 0x3b2   : > { %8020 = vmatprep.subr.bf16.mxu0 %v12478_v38  ;;  %8061 = vmatprep.subr.bf16.mxu1 %v12606_v47  ;;  %v1650_v24 = vld [vmem:[#allocation5 + $0x1410] sm:$0xff]  ;;  %v12446_v32 = vcombine.high %v1522_v23, %v1526_v7  ;;  %v12445_v38 = vcombine.low %v1522_v23, %v1526_v7 }
 0x3b3   : > { %v12574_v33 = vcombine.high %v1650_v24, %v1654_v25  ;;  %v1642_v35 = vld [vmem:[#allocation5 + $0x13d0] sm:$0xff]  ;;  %v12573_v43 = vcombine.low %v1650_v24, %v1654_v25 }
 0x3b4   : > { %v1646_v11 = vld [vmem:[#allocation5 + $0x13f0] sm:$0xff] }
 0x3b5   : > { %8021 = vmatpush1.bf16.msra.mxu0 %v12477_v56  ;;  %8062 = vmatpush1.bf16.msra.mxu1 %v12605_v60  ;;  %v1770_v36 = vld [vmem:[#allocation5 + $0x17d0] sm:$0xff]  ;;  %v12566_v47 = vcombine.high %v1642_v35, %v1646_v11  ;;  %v12565_v60 = vcombine.low %v1642_v35, %v1646_v11 }
 0x3b6   : > { %8022 = vmatprep.subr.bf16.mxu0 %v12470_v62  ;;  %8063 = vmatprep.subr.bf16.mxu1 %v12598_v41  ;;  %v1774_v1 = vld [vmem:[#allocation5 + $0x17f0] sm:$0xff] }
 0x3b7   : > { %v12694_v50 = vcombine.high %v1770_v36, %v1774_v1  ;;  %v1634_v52 = vld [vmem:[#allocation5 + $0x1390] sm:$0xff]  ;;  %v12693_v62 = vcombine.low %v1770_v36, %v1774_v1 }
 0x3b8   : > { %v1638_v53 = vld [vmem:[#allocation5 + $0x13b0] sm:$0xff] }
 0x3b9   : > { %8023 = vmatpush1.bf16.msra.mxu0 %v12469_v3  ;;  %8064 = vmatpush1.bf16.msra.mxu1 %v12597_v4  ;;  %v1762_v55 = vld [vmem:[#allocation5 + $0x1790] sm:$0xff]  ;;  %v12558_v41 = vcombine.high %v1634_v52, %v1638_v53  ;;  %v12557_v4 = vcombine.low %v1634_v52, %v1638_v53 }
 0x3ba   : > { %8024 = vmatprep.subr.bf16.mxu0 %v12462_v27  ;;  %8065 = vmatprep.subr.bf16.mxu1 %v12590_v8  ;;  %v1766_v56 = vld [vmem:[#allocation5 + $0x17b0] sm:$0xff] }
 0x3bb   : > { %v12686_v15 = vcombine.high %v1762_v55, %v1766_v56  ;;  %v1626_v63 = vld [vmem:[#allocation5 + $0x1350] sm:$0xff]  ;;  %v12685_v27 = vcombine.low %v1762_v55, %v1766_v56 }
 0x3bc   : > { %v1630_v0 = vld [vmem:[#allocation5 + $0x1370] sm:$0xff] }
 0x3bd   : > { %8025 = vmatpush1.bf16.msra.mxu0 %v12461_v13  ;;  %8066 = vmatpush1.bf16.msra.mxu1 %v12589_v17  ;;  %v1754_v45 = vld [vmem:[#allocation5 + $0x1750] sm:$0xff]  ;;  %v12550_v8 = vcombine.high %v1626_v63, %v1630_v0  ;;  %v12549_v17 = vcombine.low %v1626_v63, %v1630_v0 }
 0x3be   : > { %8026 = vmatprep.subr.bf16.mxu0 %v12454_v19  ;;  %8067 = vmatprep.subr.bf16.mxu1 %v12582_v21  ;;  %v1758_v3 = vld [vmem:[#allocation5 + $0x1770] sm:$0xff] }
 0x3bf   : > { %v12678_v9 = vcombine.high %v1754_v45, %v1758_v3  ;;  %v1618_v42 = vld [vmem:[#allocation5 + $0x1310] sm:$0xff]  ;;  %v12677_v19 = vcombine.low %v1754_v45, %v1758_v3 }
 0x3c0   : > { %v1622_v57 = vld [vmem:[#allocation5 + $0x1330] sm:$0xff] }
 0x3c1   : > { %8027 = vmatpush1.bf16.msra.mxu0 %v12453_v29  ;;  %8068 = vmatpush1.bf16.msra.mxu1 %v12581_v30  ;;  %v1746_v12 = vld [vmem:[#allocation5 + $0x1710] sm:$0xff]  ;;  %v12542_v21 = vcombine.high %v1618_v42, %v1622_v57  ;;  %v12541_v30 = vcombine.low %v1618_v42, %v1622_v57 }
 0x3c2   : > { %8028 = vmatprep.subr.bf16.mxu0 %v12446_v32  ;;  %8069 = vmatprep.subr.bf16.mxu1 %v12574_v33  ;;  %v1750_v13 = vld [vmem:[#allocation5 + $0x1730] sm:$0xff] }
 0x3c3   : > { %v12670_v23 = vcombine.high %v1746_v12, %v1750_v13  ;;  %v1610_v7 = vld [vmem:[#allocation5 + $0x12d0] sm:$0xff]  ;;  %v12669_v32 = vcombine.low %v1746_v12, %v1750_v13 }
 0x3c4   : > { %v1614_v24 = vld [vmem:[#allocation5 + $0x12f0] sm:$0xff] }
 0x3c5   : > { %8029 = vmatpush1.bf16.msra.mxu0 %v12445_v38  ;;  %8070 = vmatpush1.bf16.msra.mxu1 %v12573_v43  ;;  %v1738_v25 = vld [vmem:[#allocation5 + $0x16d0] sm:$0xff]  ;;  %v12534_v33 = vcombine.high %v1610_v7, %v1614_v24  ;;  %v12533_v43 = vcombine.low %v1610_v7, %v1614_v24 }
 0x3c6   : > { %8030 = vmatprep.subr.bf16.mxu0 %v12566_v47  ;;  %8071 = vmatprep.subr.bf16.mxu1 %v12694_v50  ;;  %v1742_v29 = vld [vmem:[#allocation5 + $0x16f0] sm:$0xff] }
 0x3c7   : > { %v12662_v35 = vcombine.high %v1738_v25, %v1742_v29  ;;  %v1602_v11 = vld [vmem:[#allocation5 + $0x1290] sm:$0xff]  ;;  %v12661_v47 = vcombine.low %v1738_v25, %v1742_v29 }
 0x3c8   : > { %v1606_v36 = vld [vmem:[#allocation5 + $0x12b0] sm:$0xff] }
 0x3c9   : > { %8031 = vmatpush2.bf16.msra.mxu0 %v12565_v60  ;;  %8072 = vmatpush2.bf16.msra.mxu1 %v12693_v62  ;;  %v1730_v1 = vld [vmem:[#allocation5 + $0x1690] sm:$0xff]  ;;  %v12526_v50 = vcombine.high %v1602_v11, %v1606_v36  ;;  %v12525_v62 = vcombine.low %v1602_v11, %v1606_v36 }
 0x3ca   : > { %8032 = vmatprep.subr.bf16.mxu0 %v12558_v41  ;;  %8073 = vmatprep.subr.bf16.mxu1 %v12686_v15  ;;  %v1734_v38 = vld [vmem:[#allocation5 + $0x16b0] sm:$0xff] }
 0x3cb   : > { %v12654_v52 = vcombine.high %v1730_v1, %v1734_v38  ;;  %v1594_v53 = vld [vmem:[#allocation5 + $0x1250] sm:$0xff]  ;;  %v12653_v41 = vcombine.low %v1730_v1, %v1734_v38 }
 0x3cc   : > { %v1598_v55 = vld [vmem:[#allocation5 + $0x1270] sm:$0xff] }
 0x3cd   : > { %8033 = vmatpush2.bf16.msra.mxu0 %v12557_v4  ;;  %8074 = vmatpush2.bf16.msra.mxu1 %v12685_v27  ;;  %v1722_v56 = vld [vmem:[#allocation5 + $0x1650] sm:$0xff]  ;;  %v12518_v15 = vcombine.high %v1594_v53, %v1598_v55  ;;  %v12517_v27 = vcombine.low %v1594_v53, %v1598_v55 }
 0x3ce   : > { %8034 = vmatprep.subr.bf16.mxu0 %v12550_v8  ;;  %8075 = vmatprep.subr.bf16.mxu1 %v12678_v9  ;;  %v1726_v60 = vld [vmem:[#allocation5 + $0x1670] sm:$0xff] }
 0x3cf   : > { %v12646_v63 = vcombine.high %v1722_v56, %v1726_v60  ;;  %v1586_v0 = vld [vmem:[#allocation5 + $0x1210] sm:$0xff]  ;;  %v12645_v8 = vcombine.low %v1722_v56, %v1726_v60 }
 0x3d0   : > { %v1590_v45 = vld [vmem:[#allocation5 + $0x1230] sm:$0xff] }
 0x3d1   : > { %8035 = vmatpush2.bf16.msra.mxu0 %v12549_v17  ;;  %8076 = vmatpush2.bf16.msra.mxu1 %v12677_v19  ;;  %v1714_v3 = vld [vmem:[#allocation5 + $0x1610] sm:$0xff]  ;;  %v12510_v9 = vcombine.high %v1586_v0, %v1590_v45  ;;  %v12509_v19 = vcombine.low %v1586_v0, %v1590_v45 }
 0x3d2   : > { %8036 = vmatprep.subr.bf16.mxu0 %v12542_v21  ;;  %8077 = vmatprep.subr.bf16.mxu1 %v12670_v23  ;;  %v1718_v4 = vld [vmem:[#allocation5 + $0x1630] sm:$0xff] }
 0x3d3   : > { %v12638_v42 = vcombine.high %v1714_v3, %v1718_v4  ;;  %v1834_v57 = vld [vmem:[#allocation5 + $0x19d0] sm:$0xff]  ;;  %v12637_v21 = vcombine.low %v1714_v3, %v1718_v4 }
 0x3d4   : > { %v1838_v12 = vld [vmem:[#allocation5 + $0x19f0] sm:$0xff] }
 0x3d5   : > { %8037 = vmatpush2.bf16.msra.mxu0 %v12541_v30  ;;  %8078 = vmatpush2.bf16.msra.mxu1 %v12669_v32  ;;  %v1962_v13 = vld [vmem:[#allocation5 + $0x1dd0] sm:$0xff]  ;;  %v12758_v23 = vcombine.high %v1834_v57, %v1838_v12  ;;  %v12757_v32 = vcombine.low %v1834_v57, %v1838_v12 }
 0x3d6   : > { %8038 = vmatprep.subr.bf16.mxu0 %v12534_v33  ;;  %8079 = vmatprep.subr.bf16.mxu1 %v12662_v35  ;;  %v1966_v17 = vld [vmem:[#allocation5 + $0x1df0] sm:$0xff] }
 0x3d7   : > { %v12886_v7 = vcombine.high %v1962_v13, %v1966_v17  ;;  %v1826_v24 = vld [vmem:[#allocation5 + $0x1990] sm:$0xff]  ;;  %v12885_v33 = vcombine.low %v1962_v13, %v1966_v17 }
 0x3d8   : > { %v1830_v25 = vld [vmem:[#allocation5 + $0x19b0] sm:$0xff] }
 0x3d9   : > { %8039 = vmatpush2.bf16.msra.mxu0 %v12533_v43  ;;  %8080 = vmatpush2.bf16.msra.mxu1 %v12661_v47  ;;  %v1954_v29 = vld [vmem:[#allocation5 + $0x1d90] sm:$0xff]  ;;  %v12750_v35 = vcombine.high %v1826_v24, %v1830_v25  ;;  %v12749_v53 = vcombine.low %v1826_v24, %v1830_v25 }
 0x3da   : > { %8040 = vmatprep.subr.bf16.mxu0 %v12526_v50  ;;  %8081 = vmatprep.subr.bf16.mxu1 %v12654_v52  ;;  %v1958_v30 = vld [vmem:[#allocation5 + $0x1db0] sm:$0xff] }
 0x3db   : > { %v12878_v11 = vcombine.high %v1954_v29, %v1958_v30  ;;  %v1818_v36 = vld [vmem:[#allocation5 + $0x1950] sm:$0xff]  ;;  %v12877_v56 = vcombine.low %v1954_v29, %v1958_v30 }
 0x3dc   : > { %v1822_v1 = vld [vmem:[#allocation5 + $0x1970] sm:$0xff] }
 0x3dd   : > { %8041 = vmatpush2.bf16.msra.mxu0 %v12525_v62  ;;  %8082 = vmatpush2.bf16.msra.mxu1 %v12653_v41  ;;  %v1946_v43 = vld [vmem:[#allocation5 + $0x1d50] sm:$0xff]  ;;  %v12742_v60 = vcombine.high %v1818_v36, %v1822_v1 }
 0x3de   : > { %8042 = vmatprep.subr.bf16.mxu0 %v12518_v15  ;;  %8083 = vmatprep.subr.bf16.mxu1 %v12646_v63  ;;  %v1950_v47 = vld [vmem:[#allocation5 + $0x1d70] sm:$0xff] }
 0x3df   : > { %v12870_v63 = vcombine.high %v1946_v43, %v1950_v47  ;;  %v1810_v0 = vld [vmem:[#allocation5 + $0x1910] sm:$0xff] }
 0x3e0   : > { %v1814_v45 = vld [vmem:[#allocation5 + $0x1930] sm:$0xff] }
 0x3e1   : > { %8043 = vmatpush2.bf16.msra.mxu0 %v12517_v27  ;;  %8084 = vmatpush2.bf16.msra.mxu1 %v12645_v8  ;;  %v1938_v3 = vld [vmem:[#allocation5 + $0x1d10] sm:$0xff]  ;;  %v12734_v57 = vcombine.high %v1810_v0, %v1814_v45 }
 0x3e2   : > { %8044 = vmatprep.subr.bf16.mxu0 %v12510_v9  ;;  %8085 = vmatprep.subr.bf16.mxu1 %v12638_v42  ;;  %v1942_v4 = vld [vmem:[#allocation5 + $0x1d30] sm:$0xff]  ;;  %v12741_v9 = vcombine.low %v1818_v36, %v1822_v1 }
 0x3e3   : > { %v12862_v13 = vcombine.high %v1938_v3, %v1942_v4  ;;  %v1802_v17 = vld [vmem:[#allocation5 + $0x18d0] sm:$0xff]  ;;  %v12861_v24 = vcombine.low %v1938_v3, %v1942_v4 }
 0x3e4   : > { %v1794_v30 = vld [vmem:[#allocation5 + $0x1890] sm:$0xff] }
 0x3e5   : > { %8045 = vmatpush2.bf16.msra.mxu0 %v12509_v19  ;;  %8086 = vmatpush2.bf16.msra.mxu1 %v12637_v21  ;;  %v1806_v19 = vld [vmem:[#allocation5 + $0x18f0] sm:$0xff] }
 0x3e6   : > { %8096 = vmatprep.subr.bf16.mxu0 %v12758_v23  ;;  %8137 = vmatprep.subr.bf16.mxu1 %v12886_v7  ;;  %v1930_v21 = vld [vmem:[#allocation5 + $0x1cd0] sm:$0xff]  ;;  %v12733_v7 = vcombine.low %v1810_v0, %v1814_v45  ;;  %v12726_v25 = vcombine.high %v1802_v17, %v1806_v19 }
 0x3e7   : > { %v1934_v23 = vld [vmem:[#allocation5 + $0x1cf0] sm:$0xff] }
 0x3e8   : > { %v7802_v38 = vpop.f32.mrf.mxu0  ;;  %8047 = vmatmul.mubr.bf16.vlgmr.msra.gmra.mxu0 %v14922_v2  ;;  %v7843_v52 = vpop.f32.mrf.mxu1  ;;  %8088 = vmatmul.mubr.bf16.vlgmr.msra.gmra.mxu1 %v14925_v6  ;;  %v12854_v29 = vcombine.high %v1930_v21, %v1934_v23  ;;  %v12853_v36 = vcombine.low %v1930_v21, %v1934_v23  ;;  %v1910_v0 = vld [vmem:[#allocation5 + $0x1c30] sm:$0xff] }
 0x3e9   : > { %v7803_v50 = vadd.f32 %v7802_v38, %v15026_v22  ;;  %8097 = vmatpush1.bf16.msra.mxu0 %v12757_v32  ;;  %8138 = vmatpush1.bf16.msra.mxu1 %v12885_v33  ;;  %v1798_v32 = vld [vmem:[#allocation5 + $0x18b0] sm:$0xff] }
 0x3ea   : > { %v7804_v55 = vpop.f32.mrf.mxu0  ;;  %8098 = vmatprep.subr.bf16.mxu0 %v12750_v35  ;;  %v7845_v15 = vpop.f32.mrf.mxu1  ;;  %8139 = vmatprep.subr.bf16.mxu1 %v12878_v11  ;;  %v1922_v33 = vld [vmem:[#allocation5 + $0x1c90] sm:$0xff]  ;;  %v12725_v11 = vcombine.low %v1802_v17, %v1806_v19  ;;  %v12718_v1 = vcombine.high %v1794_v30, %v1798_v32 }
 0x3eb   : > { %v15036_v62 = vadd.f32 %v7843_v52, %v7803_v50  ;;  %v7805_v41 = vadd.f32 %v7804_v55, %v15031_v34  ;;  %8128 = vmatprep.mubr.bf16.mxu0 %v14928_v14  ;;  %8169 = vmatprep.mubr.bf16.mxu1 %v14931_v18  ;;  %v12869_v34 = vcombine.low %v1946_v43, %v1950_v47  ;;  %v1926_v35 = vld [vmem:[#allocation5 + $0x1cb0] sm:$0xff] }
 0x3ec   : > { %v7806_v22 = vpop.f32.mrf.mxu0  ;;  %v7847_v8 = vpop.f32.mrf.mxu1  ;;  %v12846_v38 = vcombine.high %v1922_v33, %v1926_v35  ;;  %v1786_v43 = vld [vmem:[#allocation5 + $0x1850] sm:$0xff]  ;;  %v12845_v55 = vcombine.low %v1922_v33, %v1926_v35 }
 0x3ed   : > { %v15041_v27 = vadd.f32 %v7845_v15, %v7805_v41  ;;  %8099 = vmatpush1.bf16.msra.mxu0 %v12749_v53  ;;  %8140 = vmatpush1.bf16.msra.mxu1 %v12877_v56  ;;  %v1790_v47 = vld [vmem:[#allocation5 + $0x1870] sm:$0xff]  ;;  %v12717_v53 = vcombine.low %v1794_v30, %v1798_v32 }
 0x3ee   : > { %v7807_v42 = vpop.f32.mrf.mxu0  ;;  %8100 = vmatprep.subr.bf16.mxu0 %v12742_v60  ;;  %v7848_v12 = vpop.f32.mrf.mxu1  ;;  %8141 = vmatprep.subr.bf16.mxu1 %v12870_v63  ;;  %v1914_v50 = vld [vmem:[#allocation5 + $0x1c50] sm:$0xff]  ;;  %v12710_v56 = vcombine.high %v1786_v43, %v1790_v47  ;;  %v12709_v45 = vcombine.low %v1786_v43, %v1790_v47 }
 0x3ef   : > { %v1918_v52 = vld [vmem:[#allocation5 + $0x1c70] sm:$0xff] }
 0x3f0   : > { %v12838_v60 = vcombine.high %v1914_v50, %v1918_v52  ;;  %v1778_v41 = vld [vmem:[#allocation5 + $0x1810] sm:$0xff]  ;;  %v12837_v22 = vcombine.low %v1914_v50, %v1918_v52 }
 0x3f1   : > { %8101 = vmatpush1.bf16.msra.mxu0 %v12741_v9  ;;  %8142 = vmatpush1.bf16.msra.mxu1 %v12869_v34  ;;  %v1782_v15 = vld [vmem:[#allocation5 + $0x1830] sm:$0xff] }
 0x3f2   : > { %8102 = vmatprep.subr.bf16.mxu0 %v12734_v57  ;;  %8143 = vmatprep.subr.bf16.mxu1 %v12862_v13  ;;  %v1906_v63 = vld [vmem:[#allocation5 + $0x1c10] sm:$0xff]  ;;  %v12702_v3 = vcombine.high %v1778_v41, %v1782_v15  ;;  %v12701_v57 = vcombine.low %v1778_v41, %v1782_v15 }
 0x3f3   : > { %v12830_v4 = vcombine.high %v1906_v63, %v1910_v0  ;;  %v1898_v8 = vld [vmem:[#allocation5 + $0x1bd0] sm:$0xff]  ;;  %v12829_v12 = vcombine.low %v1906_v63, %v1910_v0 }
 0x3f4   : > { %v1902_v9 = vld [vmem:[#allocation5 + $0x1bf0] sm:$0xff] }
 0x3f5   : > { %8103 = vmatpush1.bf16.msra.mxu0 %v12733_v7  ;;  %8144 = vmatpush1.bf16.msra.mxu1 %v12861_v24  ;;  %v2026_v42 = vld [vmem:[#allocation5 + $0x1fd0] sm:$0xff]  ;;  %v12822_v13 = vcombine.high %v1898_v8, %v1902_v9  ;;  %v12821_v24 = vcombine.low %v1898_v8, %v1902_v9 }
 0x3f6   : > { %8104 = vmatprep.subr.bf16.mxu0 %v12726_v25  ;;  %8145 = vmatprep.subr.bf16.mxu1 %v12854_v29  ;;  %v2030_v34 = vld [vmem:[#allocation5 + $0x1ff0] sm:$0xff] }
 0x3f7   : > { %v12950_v17 = vcombine.high %v2026_v42, %v2030_v34  ;;  %v1890_v19 = vld [vmem:[#allocation5 + $0x1b90] sm:$0xff]  ;;  %v12949_v25 = vcombine.low %v2026_v42, %v2030_v34 }
 0x3f8   : > { %v1894_v21 = vld [vmem:[#allocation5 + $0x1bb0] sm:$0xff] }
 0x3f9   : > { %8105 = vmatpush1.bf16.msra.mxu0 %v12725_v11  ;;  %8146 = vmatpush1.bf16.msra.mxu1 %v12853_v36  ;;  %v2018_v23 = vld [vmem:[#allocation5 + $0x1f90] sm:$0xff]  ;;  %v12814_v29 = vcombine.high %v1890_v19, %v1894_v21  ;;  %v12813_v36 = vcombine.low %v1890_v19, %v1894_v21 }
 0x3fa   : > { %8106 = vmatprep.subr.bf16.mxu0 %v12718_v1  ;;  %8147 = vmatprep.subr.bf16.mxu1 %v12846_v38  ;;  %v2022_v7 = vld [vmem:[#allocation5 + $0x1fb0] sm:$0xff] }
 0x3fb   : > { %v12942_v30 = vcombine.high %v2018_v23, %v2022_v7  ;;  %v1882_v32 = vld [vmem:[#allocation5 + $0x1b50] sm:$0xff]  ;;  %v12941_v1 = vcombine.low %v2018_v23, %v2022_v7 }
 0x3fc   : > { %v1886_v33 = vld [vmem:[#allocation5 + $0x1b70] sm:$0xff] }
 0x3fd   : > { %8107 = vmatpush1.bf16.msra.mxu0 %v12717_v53  ;;  %8148 = vmatpush1.bf16.msra.mxu1 %v12845_v55  ;;  %v2010_v35 = vld [vmem:[#allocation5 + $0x1f50] sm:$0xff]  ;;  %v12806_v38 = vcombine.high %v1882_v32, %v1886_v33  ;;  %v12805_v55 = vcombine.low %v1882_v32, %v1886_v33 }
 0x3fe   : > { %8108 = vmatprep.subr.bf16.mxu0 %v12710_v56  ;;  %8149 = vmatprep.subr.bf16.mxu1 %v12838_v60  ;;  %v2014_v11 = vld [vmem:[#allocation5 + $0x1f70] sm:$0xff] }
 0x3ff   : > { %v12934_v43 = vcombine.high %v2010_v35, %v2014_v11  ;;  %v1874_v47 = vld [vmem:[#allocation5 + $0x1b10] sm:$0xff]  ;;  %v12933_v56 = vcombine.low %v2010_v35, %v2014_v11 }
 0x400   : > { %v1878_v50 = vld [vmem:[#allocation5 + $0x1b30] sm:$0xff] }
 0x401   : > { %8109 = vmatpush1.bf16.msra.mxu0 %v12709_v45  ;;  %8150 = vmatpush1.bf16.msra.mxu1 %v12837_v22  ;;  %v2002_v52 = vld [vmem:[#allocation5 + $0x1f10] sm:$0xff]  ;;  %v12798_v60 = vcombine.high %v1874_v47, %v1878_v50  ;;  %v12797_v22 = vcombine.low %v1874_v47, %v1878_v50  ;;  %v1067_v50 = vld [vmem:[#allocation5 + $0x1d8] sm:$0xff] }
 0x402   : > { %8110 = vmatprep.subr.bf16.mxu0 %v12702_v3  ;;  %8151 = vmatprep.subr.bf16.mxu1 %v12830_v4  ;;  %v2006_v53 = vld [vmem:[#allocation5 + $0x1f30] sm:$0xff] }
 0x403   : > { %v12926_v41 = vcombine.high %v2002_v52, %v2006_v53  ;;  %v1866_v15 = vld [vmem:[#allocation5 + $0x1ad0] sm:$0xff]  ;;  %v12925_v3 = vcombine.low %v2002_v52, %v2006_v53  ;;  %v1071_v52 = vld [vmem:[#allocation5 + $0x1f8] sm:$0xff] }
 0x404   : > { %v1870_v63 = vld [vmem:[#allocation5 + $0x1af0] sm:$0xff]  ;;  %v1195_v53 = vld [vmem:[#allocation5 + $0x5d8] sm:$0xff] }
 0x405   : > { %8111 = vmatpush1.bf16.msra.mxu0 %v12701_v57  ;;  %8152 = vmatpush1.bf16.msra.mxu1 %v12829_v12  ;;  %v1994_v0 = vld [vmem:[#allocation5 + $0x1ed0] sm:$0xff]  ;;  %v12790_v4 = vcombine.high %v1866_v15, %v1870_v63  ;;  %v12789_v12 = vcombine.low %v1866_v15, %v1870_v63  ;;  %v11992_v15 = vcombine.high %v1067_v50, %v1071_v52 }
 0x406   : > { %8112 = vmatprep.subr.bf16.mxu0 %v12822_v13  ;;  %8153 = vmatprep.subr.bf16.mxu1 %v12950_v17  ;;  %v1998_v45 = vld [vmem:[#allocation5 + $0x1ef0] sm:$0xff] }
 0x407   : > { %v12918_v8 = vcombine.high %v1994_v0, %v1998_v45  ;;  %v1858_v9 = vld [vmem:[#allocation5 + $0x1a90] sm:$0xff]  ;;  %v12917_v13 = vcombine.low %v1994_v0, %v1998_v45  ;;  %v15047_v0 = vsub.s32 5, %v14936_v26  ;;  %v1059_v45 = vld [vmem:[#allocation5 + $0x198] sm:$0xff] }
 0x408   : > { %v1862_v42 = vld [vmem:[#allocation5 + $0x1ab0] sm:$0xff] }
 0x409   : > { %8113 = vmatpush2.bf16.msra.mxu0 %v12821_v24  ;;  %8154 = vmatpush2.bf16.msra.mxu1 %v12949_v25  ;;  %v1986_v34 = vld [vmem:[#allocation5 + $0x1e90] sm:$0xff]  ;;  %v12782_v17 = vcombine.high %v1858_v9, %v1862_v42  ;;  %v12781_v25 = vcombine.low %v1858_v9, %v1862_v42  ;;  %v11991_v42 = vcombine.low %v1067_v50, %v1071_v52  ;;  %v1171_v50 = vld [vmem:[#allocation5 + $0x518] sm:$0xff] }
 0x40a   : > { %8114 = vmatprep.subr.bf16.mxu0 %v12814_v29  ;;  %8155 = vmatprep.subr.bf16.mxu1 %v12942_v30  ;;  %v1990_v57 = vld [vmem:[#allocation5 + $0x1eb0] sm:$0xff]  ;;  %v1175_v52 = vld [vmem:[#allocation5 + $0x538] sm:$0xff] }
 0x40b   : > { %v12910_v19 = vcombine.high %v1986_v34, %v1990_v57  ;;  %v1850_v21 = vld [vmem:[#allocation5 + $0x1a50] sm:$0xff]  ;;  %v12909_v29 = vcombine.low %v1986_v34, %v1990_v57 }
 0x40c   : > { %v1854_v23 = vld [vmem:[#allocation5 + $0x1a70] sm:$0xff] }
 0x40d   : > { %8115 = vmatpush2.bf16.msra.mxu0 %v12813_v36  ;;  %8156 = vmatpush2.bf16.msra.mxu1 %v12941_v1  ;;  %v1978_v7 = vld [vmem:[#allocation5 + $0x1e50] sm:$0xff]  ;;  %v12774_v30 = vcombine.high %v1850_v21, %v1854_v23  ;;  %v12773_v1 = vcombine.low %v1850_v21, %v1854_v23  ;;  %v1179_v23 = vld [vmem:[#allocation5 + $0x558] sm:$0xff] }
 0x40e   : > { %8116 = vmatprep.subr.bf16.mxu0 %v12806_v38  ;;  %8157 = vmatprep.subr.bf16.mxu1 %v12934_v43  ;;  %v1982_v24 = vld [vmem:[#allocation5 + $0x1e70] sm:$0xff] }
 0x40f   : > { %v12902_v32 = vcombine.high %v1978_v7, %v1982_v24  ;;  %v1842_v33 = vld [vmem:[#allocation5 + $0x1a10] sm:$0xff]  ;;  %v12901_v38 = vcombine.low %v1978_v7, %v1982_v24  ;;  %v1183_v7 = vld [vmem:[#allocation5 + $0x578] sm:$0xff] }
 0x410   : > { %v1846_v35 = vld [vmem:[#allocation5 + $0x1a30] sm:$0xff] }
 0x411   : > { %8117 = vmatpush2.bf16.msra.mxu0 %v12805_v55  ;;  %8158 = vmatpush2.bf16.msra.mxu1 %v12933_v56  ;;  %v1970_v11 = vld [vmem:[#allocation5 + $0x1e10] sm:$0xff]  ;;  %v12766_v43 = vcombine.high %v1842_v33, %v1846_v35  ;;  %v1199_v55 = vld [vmem:[#allocation5 + $0x5f8] sm:$0xff]  ;;  %v12765_v56 = vcombine.low %v1842_v33, %v1846_v35 }
 0x412   : > { %8118 = vmatprep.subr.bf16.mxu0 %v12798_v60  ;;  %8159 = vmatprep.subr.bf16.mxu1 %v12926_v41  ;;  %v1974_v36 = vld [vmem:[#allocation5 + $0x1e30] sm:$0xff]  ;;  %v15044_v60 = vsub.s32 4, %v14936_v26  ;;  %v12120_v63 = vcombine.high %v1195_v53, %v1199_v55  ;;  %v12119_v34 = vcombine.low %v1195_v53, %v1199_v55 }
 0x413   : > { %v12894_v47 = vcombine.high %v1970_v11, %v1974_v36  ;;  %v12893_v41 = vcombine.low %v1970_v11, %v1974_v36 }
 0x415   : > { %8119 = vmatpush2.bf16.msra.mxu0 %v12797_v22  ;;  %8160 = vmatpush2.bf16.msra.mxu1 %v12925_v3  ;;  %v1063_v22 = vld [vmem:[#allocation5 + $0x1b8] sm:$0xff] }
 0x416   : > { %8120 = vmatprep.subr.bf16.mxu0 %v12790_v4  ;;  %8161 = vmatprep.subr.bf16.mxu1 %v12918_v8  ;;  %v1187_v3 = vld [vmem:[#allocation5 + $0x598] sm:$0xff]  ;;  %v11984_v57 = vcombine.high %v1059_v45, %v1063_v22 }
 0x417   : > { %v1191_v4 = vld [vmem:[#allocation5 + $0x5b8] sm:$0xff] }
 0x418   : > { %v13949_v8 = vld [vmem:[#allocation7] ss:$4 sm:$0xff] }
 0x419   : > { %8121 = vmatpush2.bf16.msra.mxu0 %v12789_v12  ;;  %8162 = vmatpush2.bf16.msra.mxu1 %v12917_v13  ;;  %v2053_v9 = vrot.slane %v13949_v8, %v15044_v60  ;;  %v2057_v12 = vrot.slane %v13949_v8, %v15047_v0  ;;  %v12112_v13 = vcombine.high %v1187_v3, %v1191_v4  ;;  %v1167_v8 = vld [vmem:[#allocation5 + $0x4f8] sm:$0xff] }
 0x41a   : > { %8122 = vmatprep.subr.bf16.mxu0 %v12782_v17  ;;  %8163 = vmatprep.subr.bf16.mxu1 %v12910_v19  ;;  %v1051_v17 = vld [vmem:[#allocation5 + $0x158] sm:$0xff] }
 0x41b   : > { %v1055_v19 = vld [vmem:[#allocation5 + $0x178] sm:$0xff] }
 0x41c   : > { %v11976_v33 = vcombine.high %v1051_v17, %v1055_v19 }
 0x41d   : > { %8123 = vmatpush2.bf16.msra.mxu0 %v12781_v25  ;;  %8164 = vmatpush2.bf16.msra.mxu1 %v12909_v29  ;;  %v11983_v29 = vcombine.low %v1059_v45, %v1063_v22  ;;  %v12096_v22 = vcombine.high %v1171_v50, %v1175_v52 }
 0x41e   : > { %8124 = vmatprep.subr.bf16.mxu0 %v12774_v30  ;;  %8165 = vmatprep.subr.bf16.mxu1 %v12902_v32  ;;  %v12111_v32 = vcombine.low %v1187_v3, %v1191_v4  ;;  %v1035_v3 = vld [vmem:[#allocation5 + $0xd8] sm:$0xff] }
 0x41f   : > { %v1163_v4 = vld [vmem:[#allocation5 + $0x4d8] sm:$0xff] }
 0x421   : > { %8125 = vmatpush2.bf16.msra.mxu0 %v12773_v1  ;;  %8166 = vmatpush2.bf16.msra.mxu1 %v12901_v38  ;;  %v12104_v1 = vcombine.high %v1179_v23, %v1183_v7  ;;  %v1043_v38 = vld [vmem:[#allocation5 + $0x118] sm:$0xff] }
 0x422   : > { %8126 = vmatprep.subr.bf16.mxu0 %v12766_v43  ;;  %8167 = vmatprep.subr.bf16.mxu1 %v12894_v47  ;;  %v1047_v43 = vld [vmem:[#allocation5 + $0x138] sm:$0xff] }
 0x425   : > { %8127 = vmatpush2.bf16.msra.mxu0 %v12765_v56  ;;  %8168 = vmatpush2.bf16.msra.mxu1 %v12893_v41  ;;  %v11975_v56 = vcombine.low %v1051_v17, %v1055_v19  ;;  %v1159_v17 = vld [vmem:[#allocation5 + $0x4b8] sm:$0xff] }
 0x426   : > { %8178 = vmatprep.subr.bf16.mxu0 %v11992_v15  ;;  %8219 = vmatprep.subr.bf16.mxu1 %v12120_v63  ;;  %v12103_v15 = vcombine.low %v1179_v23, %v1183_v7  ;;  %v11968_v63 = vcombine.high %v1043_v38, %v1047_v43 }
 0x428   : > { %v7884_v21 = vpop.f32.mrf.mxu0  ;;  %8129 = vmatmul.mubr.bf16.vlgmr.msra.gmra.mxu0 %v14945_v48  ;;  %v7925_v25 = vpop.f32.mrf.mxu1  ;;  %8170 = vmatmul.mubr.bf16.vlgmr.msra.gmra.mxu1 %v14949_v54 }
 0x429   : > { %v7885_v24 = vadd.f32 %v7884_v21, %v2053_v9  ;;  %8179 = vmatpush1.bf16.msra.mxu0 %v11991_v42  ;;  %8220 = vmatpush1.bf16.msra.mxu1 %v12119_v34  ;;  %v11967_v9 = vcombine.low %v1043_v38, %v1047_v43  ;;  %v12088_v34 = vcombine.high %v1163_v4, %v1167_v8  ;;  %v1015_v38 = vld [vmem:[#allocation5 + $0x38] sm:$0xff] }
 0x42a   : > { %v7886_v30 = vpop.f32.mrf.mxu0  ;;  %8180 = vmatprep.subr.bf16.mxu0 %v11984_v57  ;;  %v7927_v36 = vpop.f32.mrf.mxu1  ;;  %8221 = vmatprep.subr.bf16.mxu1 %v12112_v13  ;;  %v1027_v57 = vld [vmem:[#allocation5 + $0x98] sm:$0xff]  ;;  %v12087_v21 = vcombine.low %v1163_v4, %v1167_v8 }
 0x42b   : > { %v15053_v35 = vadd.f32 %v7925_v25, %v7885_v24  ;;  %v7887_v11 = vadd.f32 %v7886_v30, %v2057_v12  ;;  %8210 = vmatprep.mubr.bf16.mxu0 %v14882_v58  ;;  %8251 = vmatprep.mubr.bf16.mxu1 %v14884_v59  ;;  %v1039_v58 = vld [vmem:[#allocation5 + $0xf8] sm:$0xff]  ;;  %v12095_v59 = vcombine.low %v1171_v50, %v1175_v52 }
 0x42c   : > { %v7888_v47 = vpop.f32.mrf.mxu0  ;;  %v7929_v55 = vpop.f32.mrf.mxu1  ;;  %v11960_v42 = vcombine.high %v1035_v3, %v1039_v58  ;;  %v1031_v12 = vld [vmem:[#allocation5 + $0xb8] sm:$0xff]  ;;  %v11959_v19 = vcombine.low %v1035_v3, %v1039_v58 }
 0x42d   : > { %v15057_v53 = vadd.f32 %v7927_v36, %v7887_v11  ;;  %8181 = vmatpush1.bf16.msra.mxu0 %v11983_v29  ;;  %8222 = vmatpush1.bf16.msra.mxu1 %v12111_v32  ;;  %v1155_v13 = vld [vmem:[#allocation5 + $0x498] sm:$0xff]  ;;  %v11952_v23 = vcombine.high %v1027_v57, %v1031_v12  ;;  %v11951_v32 = vcombine.low %v1027_v57, %v1031_v12 }
 0x42e   : > { %v7889_v41 = vpop.f32.mrf.mxu0  ;;  %8182 = vmatprep.subr.bf16.mxu0 %v11976_v33  ;;  %v7930_v45 = vpop.f32.mrf.mxu1  ;;  %8223 = vmatprep.subr.bf16.mxu1 %v12104_v1  ;;  %v12080_v7 = vcombine.high %v1155_v13, %v1159_v17  ;;  %v1019_v24 = vld [vmem:[#allocation5 + $0x58] sm:$0xff]  ;;  %v12079_v33 = vcombine.low %v1155_v13, %v1159_v17 }
 0x42f   : > { %v1023_v25 = vld [vmem:[#allocation5 + $0x78] sm:$0xff] }
 0x430   : > { %v1147_v29 = vld [vmem:[#allocation5 + $0x458] sm:$0xff]  ;;  %v11944_v11 = vcombine.high %v1019_v24, %v1023_v25  ;;  %v11943_v50 = vcombine.low %v1019_v24, %v1023_v25 }
 0x431   : > { %8183 = vmatpush1.bf16.msra.mxu0 %v11975_v56  ;;  %8224 = vmatpush1.bf16.msra.mxu1 %v12103_v15  ;;  %v1151_v30 = vld [vmem:[#allocation5 + $0x478] sm:$0xff] }
 0x432   : > { %8184 = vmatprep.subr.bf16.mxu0 %v11968_v63  ;;  %8225 = vmatprep.subr.bf16.mxu1 %v12096_v22  ;;  %v12072_v36 = vcombine.high %v1147_v29, %v1151_v30  ;;  %v1011_v1 = vld [vmem:[#allocation5 + $0x18] sm:$0xff]  ;;  %v12071_v52 = vcombine.low %v1147_v29, %v1151_v30 }
 0x433   : > { %v1139_v43 = vld [vmem:[#allocation5 + $0x418] sm:$0xff]  ;;  %v11936_v55 = vcombine.high %v1011_v1, %v1015_v38  ;;  %v11935_v22 = vcombine.low %v1011_v1, %v1015_v38 }
 0x434   : > { %v1143_v47 = vld [vmem:[#allocation5 + $0x438] sm:$0xff] }
 0x435   : > { %8185 = vmatpush1.bf16.msra.mxu0 %v11967_v9  ;;  %8226 = vmatpush1.bf16.msra.mxu1 %v12095_v59  ;;  %v12064_v56 = vcombine.high %v1139_v43, %v1143_v47  ;;  %v1131_v41 = vld [vmem:[#allocation5 + $0x3d8] sm:$0xff]  ;;  %v12063_v3 = vcombine.low %v1139_v43, %v1143_v47 }
 0x436   : > { %8186 = vmatprep.subr.bf16.mxu0 %v11960_v42  ;;  %8227 = vmatprep.subr.bf16.mxu1 %v12088_v34  ;;  %v1135_v15 = vld [vmem:[#allocation5 + $0x3f8] sm:$0xff] }
 0x437   : > { %v1259_v63 = vld [vmem:[#allocation5 + $0x7d8] sm:$0xff]  ;;  %v12056_v58 = vcombine.high %v1131_v41, %v1135_v15  ;;  %v12055_v34 = vcombine.low %v1131_v41, %v1135_v15 }
 0x438   : > { %v1263_v45 = vld [vmem:[#allocation5 + $0x7f8] sm:$0xff] }
 0x439   : > { %8187 = vmatpush1.bf16.msra.mxu0 %v11959_v19  ;;  %8228 = vmatpush1.bf16.msra.mxu1 %v12087_v21  ;;  %v12184_v4 = vcombine.high %v1259_v63, %v1263_v45  ;;  %v1123_v8 = vld [vmem:[#allocation5 + $0x398] sm:$0xff]  ;;  %v12183_v57 = vcombine.low %v1259_v63, %v1263_v45 }
 0x43a   : > { %8188 = vmatprep.subr.bf16.mxu0 %v11952_v23  ;;  %8229 = vmatprep.subr.bf16.mxu1 %v12080_v7  ;;  %v1127_v9 = vld [vmem:[#allocation5 + $0x3b8] sm:$0xff] }
 0x43b   : > { %v1251_v59 = vld [vmem:[#allocation5 + $0x798] sm:$0xff]  ;;  %v12048_v12 = vcombine.high %v1123_v8, %v1127_v9  ;;  %v12047_v7 = vcombine.low %v1123_v8, %v1127_v9 }
 0x43c   : > { %v1255_v42 = vld [vmem:[#allocation5 + $0x7b8] sm:$0xff] }
 0x43d   : > { %8189 = vmatpush1.bf16.msra.mxu0 %v11951_v32  ;;  %8230 = vmatpush1.bf16.msra.mxu1 %v12079_v33  ;;  %v12176_v13 = vcombine.high %v1251_v59, %v1255_v42  ;;  %v1115_v17 = vld [vmem:[#allocation5 + $0x358] sm:$0xff]  ;;  %v12175_v24 = vcombine.low %v1251_v59, %v1255_v42 }
 0x43e   : > { %8190 = vmatprep.subr.bf16.mxu0 %v11944_v11  ;;  %8231 = vmatprep.subr.bf16.mxu1 %v12072_v36  ;;  %v1119_v19 = vld [vmem:[#allocation5 + $0x378] sm:$0xff] }
 0x43f   : > { %v1243_v21 = vld [vmem:[#allocation5 + $0x758] sm:$0xff]  ;;  %v12040_v25 = vcombine.high %v1115_v17, %v1119_v19  ;;  %v12039_v36 = vcombine.low %v1115_v17, %v1119_v19 }
 0x440   : > { %v1247_v23 = vld [vmem:[#allocation5 + $0x778] sm:$0xff] }
 0x441   : > { %8191 = vmatpush1.bf16.msra.mxu0 %v11943_v50  ;;  %8232 = vmatpush1.bf16.msra.mxu1 %v12071_v52  ;;  %v12168_v29 = vcombine.high %v1243_v21, %v1247_v23  ;;  %v1107_v30 = vld [vmem:[#allocation5 + $0x318] sm:$0xff]  ;;  %v12167_v1 = vcombine.low %v1243_v21, %v1247_v23 }
 0x442   : > { %8192 = vmatprep.subr.bf16.mxu0 %v11936_v55  ;;  %8233 = vmatprep.subr.bf16.mxu1 %v12064_v56  ;;  %v1111_v32 = vld [vmem:[#allocation5 + $0x338] sm:$0xff] }
 0x443   : > { %v1235_v33 = vld [vmem:[#allocation5 + $0x718] sm:$0xff]  ;;  %v12032_v38 = vcombine.high %v1107_v30, %v1111_v32  ;;  %v12031_v56 = vcombine.low %v1107_v30, %v1111_v32 }
 0x444   : > { %v1239_v11 = vld [vmem:[#allocation5 + $0x738] sm:$0xff] }
 0x445   : > { %8193 = vmatpush1.bf16.msra.mxu0 %v11935_v22  ;;  %8234 = vmatpush1.bf16.msra.mxu1 %v12063_v3  ;;  %v12160_v43 = vcombine.high %v1235_v33, %v1239_v11  ;;  %v1099_v47 = vld [vmem:[#allocation5 + $0x2d8] sm:$0xff]  ;;  %v12159_v41 = vcombine.low %v1235_v33, %v1239_v11 }
 0x446   : > { %8194 = vmatprep.subr.bf16.mxu0 %v12056_v58  ;;  %8235 = vmatprep.subr.bf16.mxu1 %v12184_v4  ;;  %v1103_v50 = vld [vmem:[#allocation5 + $0x2f8] sm:$0xff] }
 0x447   : > { %v1227_v52 = vld [vmem:[#allocation5 + $0x6d8] sm:$0xff]  ;;  %v12024_v15 = vcombine.high %v1099_v47, %v1103_v50  ;;  %v12023_v4 = vcombine.low %v1099_v47, %v1103_v50 }
 0x448   : > { %v1231_v55 = vld [vmem:[#allocation5 + $0x6f8] sm:$0xff] }
 0x449   : > { %8195 = vmatpush2.bf16.msra.mxu0 %v12055_v34  ;;  %8236 = vmatpush2.bf16.msra.mxu1 %v12183_v57  ;;  %v12152_v63 = vcombine.high %v1227_v52, %v1231_v55  ;;  %v1091_v45 = vld [vmem:[#allocation5 + $0x298] sm:$0xff]  ;;  %v12151_v8 = vcombine.low %v1227_v52, %v1231_v55 }
 0x44a   : > { %8196 = vmatprep.subr.bf16.mxu0 %v12048_v12  ;;  %8237 = vmatprep.subr.bf16.mxu1 %v12176_v13  ;;  %v1095_v22 = vld [vmem:[#allocation5 + $0x2b8] sm:$0xff] }
 0x44b   : > { %v1219_v3 = vld [vmem:[#allocation5 + $0x698] sm:$0xff]  ;;  %v12016_v9 = vcombine.high %v1091_v45, %v1095_v22  ;;  %v12015_v13 = vcombine.low %v1091_v45, %v1095_v22 }
 0x44c   : > { %v1223_v58 = vld [vmem:[#allocation5 + $0x6b8] sm:$0xff] }
 0x44d   : > { %8197 = vmatpush2.bf16.msra.mxu0 %v12047_v7  ;;  %8238 = vmatpush2.bf16.msra.mxu1 %v12175_v24  ;;  %v12144_v59 = vcombine.high %v1219_v3, %v1223_v58  ;;  %v1083_v42 = vld [vmem:[#allocation5 + $0x258] sm:$0xff]  ;;  %v12143_v17 = vcombine.low %v1219_v3, %v1223_v58 }
 0x44e   : > { %8198 = vmatprep.subr.bf16.mxu0 %v12040_v25  ;;  %8239 = vmatprep.subr.bf16.mxu1 %v12168_v29  ;;  %v1087_v34 = vld [vmem:[#allocation5 + $0x278] sm:$0xff] }
 0x44f   : > { %v1211_v57 = vld [vmem:[#allocation5 + $0x658] sm:$0xff]  ;;  %v12008_v19 = vcombine.high %v1083_v42, %v1087_v34  ;;  %v12007_v29 = vcombine.low %v1083_v42, %v1087_v34 }
 0x450   : > { %v1215_v12 = vld [vmem:[#allocation5 + $0x678] sm:$0xff] }
 0x451   : > { %8199 = vmatpush2.bf16.msra.mxu0 %v12039_v36  ;;  %8240 = vmatpush2.bf16.msra.mxu1 %v12167_v1  ;;  %v12136_v21 = vcombine.high %v1211_v57, %v1215_v12  ;;  %v1075_v23 = vld [vmem:[#allocation5 + $0x218] sm:$0xff]  ;;  %v12135_v30 = vcombine.low %v1211_v57, %v1215_v12 }
 0x452   : > { %8200 = vmatprep.subr.bf16.mxu0 %v12032_v38  ;;  %8241 = vmatprep.subr.bf16.mxu1 %v12160_v43  ;;  %v1079_v7 = vld [vmem:[#allocation5 + $0x238] sm:$0xff] }
 0x453   : > { %v1203_v24 = vld [vmem:[#allocation5 + $0x618] sm:$0xff]  ;;  %v12000_v32 = vcombine.high %v1075_v23, %v1079_v7  ;;  %v11999_v43 = vcombine.low %v1075_v23, %v1079_v7 }
 0x454   : > { %v1207_v25 = vld [vmem:[#allocation5 + $0x638] sm:$0xff] }
 0x455   : > { %8201 = vmatpush2.bf16.msra.mxu0 %v12031_v56  ;;  %8242 = vmatpush2.bf16.msra.mxu1 %v12159_v41  ;;  %v12128_v33 = vcombine.high %v1203_v24, %v1207_v25  ;;  %v1323_v11 = vld [vmem:[#allocation5 + $0x9d8] sm:$0xff]  ;;  %v12127_v47 = vcombine.low %v1203_v24, %v1207_v25 }
 0x456   : > { %8202 = vmatprep.subr.bf16.mxu0 %v12024_v15  ;;  %8243 = vmatprep.subr.bf16.mxu1 %v12152_v63  ;;  %v1327_v36 = vld [vmem:[#allocation5 + $0x9f8] sm:$0xff] }
 0x457   : > { %v1451_v1 = vld [vmem:[#allocation5 + $0xdd8] sm:$0xff]  ;;  %v12248_v50 = vcombine.high %v1323_v11, %v1327_v36  ;;  %v12247_v63 = vcombine.low %v1323_v11, %v1327_v36 }
 0x458   : > { %v1455_v38 = vld [vmem:[#allocation5 + $0xdf8] sm:$0xff] }
 0x459   : > { %8203 = vmatpush2.bf16.msra.mxu0 %v12023_v4  ;;  %8244 = vmatpush2.bf16.msra.mxu1 %v12151_v8  ;;  %v12376_v52 = vcombine.high %v1451_v1, %v1455_v38  ;;  %v1315_v55 = vld [vmem:[#allocation5 + $0x998] sm:$0xff]  ;;  %v12375_v45 = vcombine.low %v1451_v1, %v1455_v38 }
 0x45a   : > { %8204 = vmatprep.subr.bf16.mxu0 %v12016_v9  ;;  %8245 = vmatprep.subr.bf16.mxu1 %v12144_v59  ;;  %v1319_v56 = vld [vmem:[#allocation5 + $0x9b8] sm:$0xff] }
 0x45b   : > { %v1443_v41 = vld [vmem:[#allocation5 + $0xd98] sm:$0xff]  ;;  %v12240_v22 = vcombine.high %v1315_v55, %v1319_v56  ;;  %v12239_v57 = vcombine.low %v1315_v55, %v1319_v56 }
 0x45c   : > { %v1447_v15 = vld [vmem:[#allocation5 + $0xdb8] sm:$0xff] }
 0x45d   : > { %8205 = vmatpush2.bf16.msra.mxu0 %v12015_v13  ;;  %8246 = vmatpush2.bf16.msra.mxu1 %v12143_v17  ;;  %v12368_v3 = vcombine.high %v1443_v41, %v1447_v15  ;;  %v1307_v58 = vld [vmem:[#allocation5 + $0x958] sm:$0xff]  ;;  %v12367_v13 = vcombine.low %v1443_v41, %v1447_v15 }
 0x45e   : > { %8206 = vmatprep.subr.bf16.mxu0 %v12008_v19  ;;  %8247 = vmatprep.subr.bf16.mxu1 %v12136_v21  ;;  %v1311_v4 = vld [vmem:[#allocation5 + $0x978] sm:$0xff] }
 0x45f   : > { %v1435_v9 = vld [vmem:[#allocation5 + $0xd58] sm:$0xff]  ;;  %v12232_v17 = vcombine.high %v1307_v58, %v1311_v4 }
 0x460   : > { %v1439_v59 = vld [vmem:[#allocation5 + $0xd78] sm:$0xff] }
 0x461   : > { %8207 = vmatpush2.bf16.msra.mxu0 %v12007_v29  ;;  %8248 = vmatpush2.bf16.msra.mxu1 %v12135_v30  ;;  %v1299_v7 = vld [vmem:[#allocation5 + $0x918] sm:$0xff] }
 0x462   : > { %8208 = vmatprep.subr.bf16.mxu0 %v12000_v32  ;;  %8249 = vmatprep.subr.bf16.mxu1 %v12128_v33  ;;  %v1303_v24 = vld [vmem:[#allocation5 + $0x938] sm:$0xff]  ;;  %v12231_v32 = vcombine.low %v1307_v58, %v1311_v4 }
 0x463   : > { %v1431_v25 = vld [vmem:[#allocation5 + $0xd38] sm:$0xff]  ;;  %v12224_v11 = vcombine.high %v1299_v7, %v1303_v24 }
 0x464   : > { %v1291_v38 = vld [vmem:[#allocation5 + $0x8d8] sm:$0xff] }
 0x465   : > { %8209 = vmatpush2.bf16.msra.mxu0 %v11999_v43  ;;  %8250 = vmatpush2.bf16.msra.mxu1 %v12127_v47  ;;  %v1419_v43 = vld [vmem:[#allocation5 + $0xcd8] sm:$0xff] }
 0x466   : > { %8260 = vmatprep.subr.bf16.mxu0 %v12248_v50  ;;  %8301 = vmatprep.subr.bf16.mxu1 %v12376_v52  ;;  %v1423_v47 = vld [vmem:[#allocation5 + $0xcf8] sm:$0xff]  ;;  %v12223_v50 = vcombine.low %v1299_v7, %v1303_v24 }
 0x467   : > { %v12344_v55 = vcombine.high %v1419_v43, %v1423_v47  ;;  %v1283_v56 = vld [vmem:[#allocation5 + $0x898] sm:$0xff] }
 0x468   : > { %v7966_v8 = vpop.f32.mrf.mxu0  ;;  %8211 = vmatmul.mubr.bf16.vlgmr.msra.gmra.mxu0 %v14890_v16  ;;  %v8007_v34 = vpop.f32.mrf.mxu1  ;;  %8252 = vmatmul.mubr.bf16.vlgmr.msra.gmra.mxu1 %v14893_v20  ;;  %v12360_v16 = vcombine.high %v1435_v9, %v1439_v59  ;;  %v1427_v20 = vld [vmem:[#allocation5 + $0xd18] sm:$0xff] }
 0x469   : > { %v7967_v42 = vadd.f32 %v7966_v8, %v15053_v35  ;;  %8261 = vmatpush1.bf16.msra.mxu0 %v12247_v63  ;;  %8302 = vmatpush1.bf16.msra.mxu1 %v12375_v45  ;;  %v12352_v1 = vcombine.high %v1427_v20, %v1431_v25  ;;  %v1287_v41 = vld [vmem:[#allocation5 + $0x8b8] sm:$0xff] }
 0x46a   : > { %v7968_v12 = vpop.f32.mrf.mxu0  ;;  %8262 = vmatprep.subr.bf16.mxu0 %v12240_v22  ;;  %v8009_v23 = vpop.f32.mrf.mxu1  ;;  %8303 = vmatprep.subr.bf16.mxu1 %v12368_v3  ;;  %v1411_v15 = vld [vmem:[#allocation5 + $0xc98] sm:$0xff]  ;;  %v12343_v22 = vcombine.low %v1419_v43, %v1423_v47  ;;  %v12208_v3 = vcombine.high %v1283_v56, %v1287_v41 }
 0x46b   : > { %v15062_v19 = vadd.f32 %v8007_v34, %v7967_v42  ;;  %v7969_v21 = vadd.f32 %v7968_v12, %v15057_v53  ;;  %8292 = vmatprep.mubr.bf16.mxu0 %v14896_v28  ;;  %8333 = vmatprep.mubr.bf16.mxu1 %v14899_v31  ;;  %v12359_v53 = vcombine.low %v1435_v9, %v1439_v59  ;;  %v1295_v28 = vld [vmem:[#allocation5 + $0x8f8] sm:$0xff] }
 0x46c   : > { %v7970_v35 = vpop.f32.mrf.mxu0  ;;  %v8011_v30 = vpop.f32.mrf.mxu1  ;;  %v12351_v31 = vcombine.low %v1427_v20, %v1431_v25  ;;  %v12216_v52 = vcombine.high %v1291_v38, %v1295_v28  ;;  %v1415_v63 = vld [vmem:[#allocation5 + $0xcb8] sm:$0xff]  ;;  %v12215_v45 = vcombine.low %v1291_v38, %v1295_v28  ;;  %v12207_v42 = vcombine.low %v1283_v56, %v1287_v41 }
 0x46d   : > { %v15067_v29 = vadd.f32 %v8009_v23, %v7969_v21  ;;  %8263 = vmatpush1.bf16.msra.mxu0 %v12239_v57  ;;  %8304 = vmatpush1.bf16.msra.mxu1 %v12367_v13  ;;  %v12336_v58 = vcombine.high %v1411_v15, %v1415_v63  ;;  %v1275_v4 = vld [vmem:[#allocation5 + $0x858] sm:$0xff]  ;;  %v12335_v34 = vcombine.low %v1411_v15, %v1415_v63 }
 0x46e   : > { %v7971_v33 = vpop.f32.mrf.mxu0  ;;  %8264 = vmatprep.subr.bf16.mxu0 %v12232_v17  ;;  %v8012_v36 = vpop.f32.mrf.mxu1  ;;  %8305 = vmatprep.subr.bf16.mxu1 %v12360_v16  ;;  %v1279_v8 = vld [vmem:[#allocation5 + $0x878] sm:$0xff] }
 0x46f   : > { %v1403_v9 = vld [vmem:[#allocation5 + $0xc58] sm:$0xff]  ;;  %v12200_v57 = vcombine.high %v1275_v4, %v1279_v8  ;;  %v12199_v16 = vcombine.low %v1275_v4, %v1279_v8 }
 0x470   : > { %v1407_v59 = vld [vmem:[#allocation5 + $0xc78] sm:$0xff] }
 0x471   : > { %8265 = vmatpush1.bf16.msra.mxu0 %v12231_v32  ;;  %8306 = vmatpush1.bf16.msra.mxu1 %v12359_v53  ;;  %v12328_v12 = vcombine.high %v1403_v9, %v1407_v59  ;;  %v1267_v13 = vld [vmem:[#allocation5 + $0x818] sm:$0xff]  ;;  %v12327_v7 = vcombine.low %v1403_v9, %v1407_v59 }
 0x472   : > { %8266 = vmatprep.subr.bf16.mxu0 %v12224_v11  ;;  %8307 = vmatprep.subr.bf16.mxu1 %v12352_v1  ;;  %v1271_v17 = vld [vmem:[#allocation5 + $0x838] sm:$0xff] }
 0x473   : > { %v1395_v21 = vld [vmem:[#allocation5 + $0xc18] sm:$0xff]  ;;  %v12192_v24 = vcombine.high %v1267_v13, %v1271_v17  ;;  %v12191_v33 = vcombine.low %v1267_v13, %v1271_v17 }
 0x474   : > { %v1399_v23 = vld [vmem:[#allocation5 + $0xc38] sm:$0xff] }
 0x475   : > { %8267 = vmatpush1.bf16.msra.mxu0 %v12223_v50  ;;  %8308 = vmatpush1.bf16.msra.mxu1 %v12351_v31  ;;  %v12320_v35 = vcombine.high %v1395_v21, %v1399_v23  ;;  %v1387_v20 = vld [vmem:[#allocation5 + $0xbd8] sm:$0xff]  ;;  %v12319_v53 = vcombine.low %v1395_v21, %v1399_v23 }
 0x476   : > { %8268 = vmatprep.subr.bf16.mxu0 %v12216_v52  ;;  %8309 = vmatprep.subr.bf16.mxu1 %v12344_v55  ;;  %v1391_v25 = vld [vmem:[#allocation5 + $0xbf8] sm:$0xff] }
 0x477   : > { %v1515_v30 = vld [vmem:[#allocation5 + $0xfd8] sm:$0xff]  ;;  %v12312_v11 = vcombine.high %v1387_v20, %v1391_v25  ;;  %v12311_v47 = vcombine.low %v1387_v20, %v1391_v25 }
 0x478   : > { %v1519_v32 = vld [vmem:[#allocation5 + $0xff8] sm:$0xff] }
 0x479   : > { %8269 = vmatpush1.bf16.msra.mxu0 %v12215_v45  ;;  %8310 = vmatpush1.bf16.msra.mxu1 %v12343_v22  ;;  %v12440_v36 = vcombine.high %v1515_v30, %v1519_v32  ;;  %v1379_v1 = vld [vmem:[#allocation5 + $0xb98] sm:$0xff]  ;;  %v12439_v50 = vcombine.low %v1515_v30, %v1519_v32 }
 0x47a   : > { %8270 = vmatprep.subr.bf16.mxu0 %v12208_v3  ;;  %8311 = vmatprep.subr.bf16.mxu1 %v12336_v58  ;;  %v1383_v38 = vld [vmem:[#allocation5 + $0xbb8] sm:$0xff] }
 0x47b   : > { %v1507_v28 = vld [vmem:[#allocation5 + $0xf98] sm:$0xff]  ;;  %v12304_v31 = vcombine.high %v1379_v1, %v1383_v38  ;;  %v12303_v63 = vcombine.low %v1379_v1, %v1383_v38 }
 0x47c   : > { %v1511_v43 = vld [vmem:[#allocation5 + $0xfb8] sm:$0xff] }
 0x47d   : > { %8271 = vmatpush1.bf16.msra.mxu0 %v12207_v42  ;;  %8312 = vmatpush1.bf16.msra.mxu1 %v12335_v34  ;;  %v12432_v52 = vcombine.high %v1507_v28, %v1511_v43  ;;  %v1371_v55 = vld [vmem:[#allocation5 + $0xb58] sm:$0xff]  ;;  %v12431_v45 = vcombine.low %v1507_v28, %v1511_v43 }
 0x47e   : > { %8272 = vmatprep.subr.bf16.mxu0 %v12200_v57  ;;  %8313 = vmatprep.subr.bf16.mxu1 %v12328_v12  ;;  %v1375_v56 = vld [vmem:[#allocation5 + $0xb78] sm:$0xff] }
 0x47f   : > { %v1499_v41 = vld [vmem:[#allocation5 + $0xf58] sm:$0xff]  ;;  %v12296_v22 = vcombine.high %v1371_v55, %v1375_v56  ;;  %v12295_v59 = vcombine.low %v1371_v55, %v1375_v56 }
 0x480   : > { %v1503_v15 = vld [vmem:[#allocation5 + $0xf78] sm:$0xff] }
 0x481   : > { %8273 = vmatpush1.bf16.msra.mxu0 %v12199_v16  ;;  %8314 = vmatpush1.bf16.msra.mxu1 %v12327_v7  ;;  %v12424_v3 = vcombine.high %v1499_v41, %v1503_v15  ;;  %v1363_v58 = vld [vmem:[#allocation5 + $0xb18] sm:$0xff]  ;;  %v12423_v42 = vcombine.low %v1499_v41, %v1503_v15 }
 0x482   : > { %8274 = vmatprep.subr.bf16.mxu0 %v12192_v24  ;;  %8315 = vmatprep.subr.bf16.mxu1 %v12320_v35  ;;  %v1367_v4 = vld [vmem:[#allocation5 + $0xb38] sm:$0xff] }
 0x483   : > { %v1491_v8 = vld [vmem:[#allocation5 + $0xf18] sm:$0xff]  ;;  %v12288_v34 = vcombine.high %v1363_v58, %v1367_v4  ;;  %v12287_v23 = vcombine.low %v1363_v58, %v1367_v4 }
 0x484   : > { %v1495_v9 = vld [vmem:[#allocation5 + $0xf38] sm:$0xff] }
 0x485   : > { %8275 = vmatpush1.bf16.msra.mxu0 %v12191_v33  ;;  %8316 = vmatpush1.bf16.msra.mxu1 %v12319_v53  ;;  %v12416_v57 = vcombine.high %v1491_v8, %v1495_v9  ;;  %v1355_v12 = vld [vmem:[#allocation5 + $0xad8] sm:$0xff]  ;;  %v12415_v16 = vcombine.low %v1491_v8, %v1495_v9 }
 0x486   : > { %8276 = vmatprep.subr.bf16.mxu0 %v12312_v11  ;;  %8317 = vmatprep.subr.bf16.mxu1 %v12440_v36  ;;  %v1359_v13 = vld [vmem:[#allocation5 + $0xaf8] sm:$0xff] }
 0x487   : > { %v1483_v17 = vld [vmem:[#allocation5 + $0xed8] sm:$0xff]  ;;  %v12280_v7 = vcombine.high %v1355_v12, %v1359_v13  ;;  %v12279_v32 = vcombine.low %v1355_v12, %v1359_v13 }
 0x488   : > { %v1487_v21 = vld [vmem:[#allocation5 + $0xef8] sm:$0xff] }
 0x489   : > { %8277 = vmatpush2.bf16.msra.mxu0 %v12311_v47  ;;  %8318 = vmatpush2.bf16.msra.mxu1 %v12439_v50  ;;  %v12408_v24 = vcombine.high %v1483_v17, %v1487_v21  ;;  %v1347_v35 = vld [vmem:[#allocation5 + $0xa98] sm:$0xff]  ;;  %v12407_v33 = vcombine.low %v1483_v17, %v1487_v21 }
 0x48a   : > { %8278 = vmatprep.subr.bf16.mxu0 %v12304_v31  ;;  %8319 = vmatprep.subr.bf16.mxu1 %v12432_v52  ;;  %v1351_v20 = vld [vmem:[#allocation5 + $0xab8] sm:$0xff] }
 0x48b   : > { %v1475_v25 = vld [vmem:[#allocation5 + $0xe98] sm:$0xff]  ;;  %v12272_v53 = vcombine.high %v1347_v35, %v1351_v20  ;;  %v12271_v43 = vcombine.low %v1347_v35, %v1351_v20 }
 0x48c   : > { %v1479_v30 = vld [vmem:[#allocation5 + $0xeb8] sm:$0xff] }
 0x48d   : > { %8279 = vmatpush2.bf16.msra.mxu0 %v12303_v63  ;;  %8320 = vmatpush2.bf16.msra.mxu1 %v12431_v45  ;;  %v12400_v11 = vcombine.high %v1475_v25, %v1479_v30  ;;  %v1339_v36 = vld [vmem:[#allocation5 + $0xa58] sm:$0xff]  ;;  %v12399_v47 = vcombine.low %v1475_v25, %v1479_v30 }
 0x48e   : > { %8280 = vmatprep.subr.bf16.mxu0 %v12296_v22  ;;  %8321 = vmatprep.subr.bf16.mxu1 %v12424_v3  ;;  %v1343_v1 = vld [vmem:[#allocation5 + $0xa78] sm:$0xff] }
 0x48f   : > { %v1467_v38 = vld [vmem:[#allocation5 + $0xe58] sm:$0xff]  ;;  %v12264_v50 = vcombine.high %v1339_v36, %v1343_v1  ;;  %v12263_v15 = vcombine.low %v1339_v36, %v1343_v1 }
 0x490   : > { %v1471_v28 = vld [vmem:[#allocation5 + $0xe78] sm:$0xff] }
 0x491   : > { %8281 = vmatpush2.bf16.msra.mxu0 %v12295_v59  ;;  %8322 = vmatpush2.bf16.msra.mxu1 %v12423_v42  ;;  %v12392_v31 = vcombine.high %v1467_v38, %v1471_v28  ;;  %v1331_v52 = vld [vmem:[#allocation5 + $0xa18] sm:$0xff]  ;;  %v12391_v63 = vcombine.low %v1467_v38, %v1471_v28 }
 0x492   : > { %8282 = vmatprep.subr.bf16.mxu0 %v12288_v34  ;;  %8323 = vmatprep.subr.bf16.mxu1 %v12416_v57  ;;  %v1335_v55 = vld [vmem:[#allocation5 + $0xa38] sm:$0xff] }
 0x493   : > { %v1459_v56 = vld [vmem:[#allocation5 + $0xe18] sm:$0xff]  ;;  %v12256_v45 = vcombine.high %v1331_v52, %v1335_v55  ;;  %v12255_v9 = vcombine.low %v1331_v52, %v1335_v55 }
 0x494   : > { %v1463_v41 = vld [vmem:[#allocation5 + $0xe38] sm:$0xff] }
 0x495   : > { %8283 = vmatpush2.bf16.msra.mxu0 %v12287_v23  ;;  %8324 = vmatpush2.bf16.msra.mxu1 %v12415_v16  ;;  %v12384_v22 = vcombine.high %v1459_v56, %v1463_v41  ;;  %v1579_v3 = vld [vmem:[#allocation5 + $0x11d8] sm:$0xff]  ;;  %v12383_v59 = vcombine.low %v1459_v56, %v1463_v41 }
 0x496   : > { %8284 = vmatprep.subr.bf16.mxu0 %v12280_v7  ;;  %8325 = vmatprep.subr.bf16.mxu1 %v12408_v24  ;;  %v1583_v58 = vld [vmem:[#allocation5 + $0x11f8] sm:$0xff] }
 0x497   : > { %v1707_v4 = vld [vmem:[#allocation5 + $0x15d8] sm:$0xff]  ;;  %v12504_v42 = vcombine.high %v1579_v3, %v1583_v58  ;;  %v12503_v21 = vcombine.low %v1579_v3, %v1583_v58 }
 0x498   : > { %v1711_v8 = vld [vmem:[#allocation5 + $0x15f8] sm:$0xff] }
 0x499   : > { %8285 = vmatpush2.bf16.msra.mxu0 %v12279_v32  ;;  %8326 = vmatpush2.bf16.msra.mxu1 %v12407_v33  ;;  %v12632_v34 = vcombine.high %v1707_v4, %v1711_v8  ;;  %v1571_v57 = vld [vmem:[#allocation5 + $0x1198] sm:$0xff]  ;;  %v12631_v23 = vcombine.low %v1707_v4, %v1711_v8 }
 0x49a   : > { %8286 = vmatprep.subr.bf16.mxu0 %v12272_v53  ;;  %8327 = vmatprep.subr.bf16.mxu1 %v12400_v11  ;;  %v1575_v12 = vld [vmem:[#allocation5 + $0x11b8] sm:$0xff] }
 0x49b   : > { %v1699_v13 = vld [vmem:[#allocation5 + $0x1598] sm:$0xff]  ;;  %v12496_v16 = vcombine.high %v1571_v57, %v1575_v12  ;;  %v12495_v53 = vcombine.low %v1571_v57, %v1575_v12 }
 0x49c   : > { %v1703_v17 = vld [vmem:[#allocation5 + $0x15b8] sm:$0xff] }
 0x49d   : > { %8287 = vmatpush2.bf16.msra.mxu0 %v12271_v43  ;;  %8328 = vmatpush2.bf16.msra.mxu1 %v12399_v47  ;;  %v12624_v7 = vcombine.high %v1699_v13, %v1703_v17  ;;  %v1563_v24 = vld [vmem:[#allocation5 + $0x1158] sm:$0xff]  ;;  %v12623_v36 = vcombine.low %v1699_v13, %v1703_v17 }
 0x49e   : > { %8288 = vmatprep.subr.bf16.mxu0 %v12264_v50  ;;  %8329 = vmatprep.subr.bf16.mxu1 %v12392_v31  ;;  %v1567_v35 = vld [vmem:[#allocation5 + $0x1178] sm:$0xff] }
 0x49f   : > { %v1691_v25 = vld [vmem:[#allocation5 + $0x1558] sm:$0xff]  ;;  %v12488_v1 = vcombine.high %v1563_v24, %v1567_v35  ;;  %v12487_v56 = vcombine.low %v1563_v24, %v1567_v35 }
 0x4a0   : > { %v1695_v30 = vld [vmem:[#allocation5 + $0x1578] sm:$0xff] }
 0x4a1   : > { %8289 = vmatpush2.bf16.msra.mxu0 %v12263_v15  ;;  %8330 = vmatpush2.bf16.msra.mxu1 %v12391_v63  ;;  %v1555_v47 = vld [vmem:[#allocation5 + $0x1118] sm:$0xff] }
 0x4a2   : > { %8290 = vmatprep.subr.bf16.mxu0 %v12256_v45  ;;  %8331 = vmatprep.subr.bf16.mxu1 %v12384_v22  ;;  %v1559_v50 = vld [vmem:[#allocation5 + $0x1138] sm:$0xff] }
 0x4a3   : > { %v1687_v31 = vld [vmem:[#allocation5 + $0x1538] sm:$0xff]  ;;  %v12480_v15 = vcombine.high %v1555_v47, %v1559_v50  ;;  %v12479_v4 = vcombine.low %v1555_v47, %v1559_v50 }
 0x4a4   : > { %v1547_v22 = vld [vmem:[#allocation5 + $0x10d8] sm:$0xff] }
 0x4a5   : > { %8291 = vmatpush2.bf16.msra.mxu0 %v12255_v9  ;;  %8332 = vmatpush2.bf16.msra.mxu1 %v12383_v59  ;;  %v1675_v3 = vld [vmem:[#allocation5 + $0x14d8] sm:$0xff] }
 0x4a6   : > { %8342 = vmatprep.subr.bf16.mxu0 %v12504_v42  ;;  %8383 = vmatprep.subr.bf16.mxu1 %v12632_v34  ;;  %v1679_v58 = vld [vmem:[#allocation5 + $0x14f8] sm:$0xff] }
 0x4a7   : > { %v12600_v9 = vcombine.high %v1675_v3, %v1679_v58  ;;  %v1539_v59 = vld [vmem:[#allocation5 + $0x1098] sm:$0xff]  ;;  %v12599_v13 = vcombine.low %v1675_v3, %v1679_v58 }
 0x4a8   : > { %v8048_v20 = vpop.f32.mrf.mxu0  ;;  %8293 = vmatmul.mubr.bf16.vlgmr.msra.gmra.mxu0 %v14907_v39  ;;  %v8089_v33 = vpop.f32.mrf.mxu1  ;;  %8334 = vmatmul.mubr.bf16.vlgmr.msra.gmra.mxu1 %v14909_v40  ;;  %v12616_v39 = vcombine.high %v1691_v25, %v1695_v30  ;;  %v1683_v40 = vld [vmem:[#allocation5 + $0x1518] sm:$0xff] }
 0x4a9   : > { %v8049_v32 = vadd.f32 %v8048_v20, %v15062_v19  ;;  %8343 = vmatpush1.bf16.msra.mxu0 %v12503_v21  ;;  %8384 = vmatpush1.bf16.msra.mxu1 %v12631_v23  ;;  %v12608_v45 = vcombine.high %v1683_v40, %v1687_v31  ;;  %v1543_v42 = vld [vmem:[#allocation5 + $0x10b8] sm:$0xff] }
 0x4aa   : > { %v8050_v11 = vpop.f32.mrf.mxu0  ;;  %8344 = vmatprep.subr.bf16.mxu0 %v12496_v16  ;;  %v8091_v43 = vpop.f32.mrf.mxu1  ;;  %8385 = vmatprep.subr.bf16.mxu1 %v12624_v7  ;;  %v1667_v34 = vld [vmem:[#allocation5 + $0x1498] sm:$0xff]  ;;  %v12464_v17 = vcombine.high %v1539_v59, %v1543_v42  ;;  %v12463_v35 = vcombine.low %v1539_v59, %v1543_v42 }
 0x4ab   : > { %v15072_v38 = vadd.f32 %v8089_v33, %v8049_v32  ;;  %v8051_v28 = vadd.f32 %v8050_v11, %v15067_v29  ;;  %8374 = vmatprep.mubr.bf16.mxu0 %v14912_v49  ;;  %8415 = vmatprep.mubr.bf16.mxu1 %v14915_v51  ;;  %v12615_v29 = vcombine.low %v1691_v25, %v1695_v30  ;;  %v1551_v49 = vld [vmem:[#allocation5 + $0x10f8] sm:$0xff] }
 0x4ac   : > { %v8052_v19 = vpop.f32.mrf.mxu0  ;;  %v8093_v55 = vpop.f32.mrf.mxu1  ;;  %v12607_v51 = vcombine.low %v1683_v40, %v1687_v31  ;;  %v12472_v8 = vcombine.high %v1547_v22, %v1551_v49  ;;  %v1671_v57 = vld [vmem:[#allocation5 + $0x14b8] sm:$0xff]  ;;  %v12471_v12 = vcombine.low %v1547_v22, %v1551_v49 }
 0x4ad   : > { %v15077_v52 = vadd.f32 %v8091_v43, %v8051_v28  ;;  %8345 = vmatpush1.bf16.msra.mxu0 %v12495_v53  ;;  %8386 = vmatpush1.bf16.msra.mxu1 %v12623_v36  ;;  %v12592_v21 = vcombine.high %v1667_v34, %v1671_v57  ;;  %v1531_v23 = vld [vmem:[#allocation5 + $0x1058] sm:$0xff]  ;;  %v12591_v20 = vcombine.low %v1667_v34, %v1671_v57 }
 0x4ae   : > { %v8053_v41 = vpop.f32.mrf.mxu0  ;;  %8346 = vmatprep.subr.bf16.mxu0 %v12488_v1  ;;  %v8094_v63 = vpop.f32.mrf.mxu1  ;;  %8387 = vmatprep.subr.bf16.mxu1 %v12616_v39  ;;  %v1535_v16 = vld [vmem:[#allocation5 + $0x1078] sm:$0xff] }
 0x4af   : > { %v1659_v7 = vld [vmem:[#allocation5 + $0x1458] sm:$0xff]  ;;  %v12456_v25 = vcombine.high %v1531_v23, %v1535_v16  ;;  %v12455_v36 = vcombine.low %v1531_v23, %v1535_v16 }
 0x4b0   : > { %v1663_v24 = vld [vmem:[#allocation5 + $0x1478] sm:$0xff] }
 0x4b1   : > { %8347 = vmatpush1.bf16.msra.mxu0 %v12487_v56  ;;  %8388 = vmatpush1.bf16.msra.mxu1 %v12615_v29  ;;  %v12584_v30 = vcombine.high %v1659_v7, %v1663_v24  ;;  %v1523_v32 = vld [vmem:[#allocation5 + $0x1018] sm:$0xff]  ;;  %v12583_v1 = vcombine.low %v1659_v7, %v1663_v24 }
 0x4b2   : > { %8348 = vmatprep.subr.bf16.mxu0 %v12480_v15  ;;  %8389 = vmatprep.subr.bf16.mxu1 %v12608_v45  ;;  %v1527_v33 = vld [vmem:[#allocation5 + $0x1038] sm:$0xff] }
 0x4b3   : > { %v1651_v53 = vld [vmem:[#allocation5 + $0x1418] sm:$0xff]  ;;  %v12448_v28 = vcombine.high %v1523_v32, %v1527_v33  ;;  %v12447_v40 = vcombine.low %v1523_v32, %v1527_v33 }
 0x4b4   : > { %v1655_v11 = vld [vmem:[#allocation5 + $0x1438] sm:$0xff] }
 0x4b5   : > { %8349 = vmatpush1.bf16.msra.mxu0 %v12479_v4  ;;  %8390 = vmatpush1.bf16.msra.mxu1 %v12607_v51  ;;  %v12576_v43 = vcombine.high %v1651_v53, %v1655_v11  ;;  %v1643_v39 = vld [vmem:[#allocation5 + $0x13d8] sm:$0xff]  ;;  %v12575_v31 = vcombine.low %v1651_v53, %v1655_v11 }
 0x4b6   : > { %8350 = vmatprep.subr.bf16.mxu0 %v12472_v8  ;;  %8391 = vmatprep.subr.bf16.mxu1 %v12600_v9  ;;  %v1647_v47 = vld [vmem:[#allocation5 + $0x13f8] sm:$0xff] }
 0x4b7   : > { %v1771_v50 = vld [vmem:[#allocation5 + $0x17d8] sm:$0xff]  ;;  %v12568_v55 = vcombine.high %v1643_v39, %v1647_v47  ;;  %v12567_v45 = vcombine.low %v1643_v39, %v1647_v47 }
 0x4b8   : > { %v1775_v19 = vld [vmem:[#allocation5 + $0x17f8] sm:$0xff] }
 0x4b9   : > { %8351 = vmatpush1.bf16.msra.mxu0 %v12471_v12  ;;  %8392 = vmatpush1.bf16.msra.mxu1 %v12599_v13  ;;  %v12696_v56 = vcombine.high %v1771_v50, %v1775_v19  ;;  %v1635_v41 = vld [vmem:[#allocation5 + $0x1398] sm:$0xff]  ;;  %v12695_v22 = vcombine.low %v1771_v50, %v1775_v19 }
 0x4ba   : > { %8352 = vmatprep.subr.bf16.mxu0 %v12464_v17  ;;  %8393 = vmatprep.subr.bf16.mxu1 %v12592_v21  ;;  %v1639_v29 = vld [vmem:[#allocation5 + $0x13b8] sm:$0xff] }
 0x4bb   : > { %v1763_v15 = vld [vmem:[#allocation5 + $0x1798] sm:$0xff]  ;;  %v12560_v49 = vcombine.high %v1635_v41, %v1639_v29  ;;  %v12559_v9 = vcombine.low %v1635_v41, %v1639_v29 }
 0x4bc   : > { %v1767_v63 = vld [vmem:[#allocation5 + $0x17b8] sm:$0xff] }
 0x4bd   : > { %8353 = vmatpush1.bf16.msra.mxu0 %v12463_v35  ;;  %8394 = vmatpush1.bf16.msra.mxu1 %v12591_v20  ;;  %v12688_v3 = vcombine.high %v1763_v15, %v1767_v63  ;;  %v1627_v58 = vld [vmem:[#allocation5 + $0x1358] sm:$0xff]  ;;  %v12687_v59 = vcombine.low %v1763_v15, %v1767_v63 }
 0x4be   : > { %8354 = vmatprep.subr.bf16.mxu0 %v12456_v25  ;;  %8395 = vmatprep.subr.bf16.mxu1 %v12584_v30  ;;  %v1631_v4 = vld [vmem:[#allocation5 + $0x1378] sm:$0xff] }
 0x4bf   : > { %v1755_v51 = vld [vmem:[#allocation5 + $0x1758] sm:$0xff]  ;;  %v12552_v42 = vcombine.high %v1627_v58, %v1631_v4  ;;  %v12551_v21 = vcombine.low %v1627_v58, %v1631_v4 }
 0x4c0   : > { %v1759_v8 = vld [vmem:[#allocation5 + $0x1778] sm:$0xff] }
 0x4c1   : > { %8355 = vmatpush1.bf16.msra.mxu0 %v12455_v36  ;;  %8396 = vmatpush1.bf16.msra.mxu1 %v12583_v1  ;;  %v12680_v34 = vcombine.high %v1755_v51, %v1759_v8  ;;  %v1619_v57 = vld [vmem:[#allocation5 + $0x1318] sm:$0xff]  ;;  %v12679_v23 = vcombine.low %v1755_v51, %v1759_v8 }
 0x4c2   : > { %8356 = vmatprep.subr.bf16.mxu0 %v12448_v28  ;;  %8397 = vmatprep.subr.bf16.mxu1 %v12576_v43  ;;  %v1623_v12 = vld [vmem:[#allocation5 + $0x1338] sm:$0xff] }
 0x4c3   : > { %v1747_v13 = vld [vmem:[#allocation5 + $0x1718] sm:$0xff]  ;;  %v12544_v16 = vcombine.high %v1619_v57, %v1623_v12  ;;  %v12543_v30 = vcombine.low %v1619_v57, %v1623_v12 }
 0x4c4   : > { %v1751_v17 = vld [vmem:[#allocation5 + $0x1738] sm:$0xff] }
 0x4c5   : > { %8357 = vmatpush1.bf16.msra.mxu0 %v12447_v40  ;;  %8398 = vmatpush1.bf16.msra.mxu1 %v12575_v31  ;;  %v12672_v7 = vcombine.high %v1747_v13, %v1751_v17  ;;  %v1611_v24 = vld [vmem:[#allocation5 + $0x12d8] sm:$0xff]  ;;  %v12671_v32 = vcombine.low %v1747_v13, %v1751_v17 }
 0x4c6   : > { %8358 = vmatprep.subr.bf16.mxu0 %v12568_v55  ;;  %8399 = vmatprep.subr.bf16.mxu1 %v12696_v56  ;;  %v1615_v35 = vld [vmem:[#allocation5 + $0x12f8] sm:$0xff] }
 0x4c7   : > { %v1739_v20 = vld [vmem:[#allocation5 + $0x16d8] sm:$0xff]  ;;  %v12536_v33 = vcombine.high %v1611_v24, %v1615_v35  ;;  %v12535_v43 = vcombine.low %v1611_v24, %v1615_v35 }
 0x4c8   : > { %v1743_v25 = vld [vmem:[#allocation5 + $0x16f8] sm:$0xff] }
 0x4c9   : > { %8359 = vmatpush2.bf16.msra.mxu0 %v12567_v45  ;;  %8400 = vmatpush2.bf16.msra.mxu1 %v12695_v22  ;;  %v12664_v53 = vcombine.high %v1739_v20, %v1743_v25  ;;  %v1603_v11 = vld [vmem:[#allocation5 + $0x1298] sm:$0xff]  ;;  %v12663_v39 = vcombine.low %v1739_v20, %v1743_v25 }
 0x4ca   : > { %8360 = vmatprep.subr.bf16.mxu0 %v12560_v49  ;;  %8401 = vmatprep.subr.bf16.mxu1 %v12688_v3  ;;  %v1607_v36 = vld [vmem:[#allocation5 + $0x12b8] sm:$0xff] }
 0x4cb   : > { %v1731_v1 = vld [vmem:[#allocation5 + $0x1698] sm:$0xff]  ;;  %v12528_v47 = vcombine.high %v1603_v11, %v1607_v36  ;;  %v12527_v56 = vcombine.low %v1603_v11, %v1607_v36 }
 0x4cc   : > { %v1735_v28 = vld [vmem:[#allocation5 + $0x16b8] sm:$0xff] }
 0x4cd   : > { %8361 = vmatpush2.bf16.msra.mxu0 %v12559_v9  ;;  %8402 = vmatpush2.bf16.msra.mxu1 %v12687_v59  ;;  %v12656_v50 = vcombine.high %v1731_v1, %v1735_v28  ;;  %v1595_v19 = vld [vmem:[#allocation5 + $0x1258] sm:$0xff]  ;;  %v12655_v41 = vcombine.low %v1731_v1, %v1735_v28 }
 0x4ce   : > { %8362 = vmatprep.subr.bf16.mxu0 %v12552_v42  ;;  %8403 = vmatprep.subr.bf16.mxu1 %v12680_v34  ;;  %v1599_v40 = vld [vmem:[#allocation5 + $0x1278] sm:$0xff] }
 0x4cf   : > { %v1723_v31 = vld [vmem:[#allocation5 + $0x1658] sm:$0xff]  ;;  %v12520_v29 = vcombine.high %v1595_v19, %v1599_v40  ;;  %v12519_v3 = vcombine.low %v1595_v19, %v1599_v40 }
 0x4d0   : > { %v1727_v55 = vld [vmem:[#allocation5 + $0x1678] sm:$0xff] }
 0x4d1   : > { %8363 = vmatpush2.bf16.msra.mxu0 %v12551_v21  ;;  %8404 = vmatpush2.bf16.msra.mxu1 %v12679_v23  ;;  %v12648_v15 = vcombine.high %v1723_v31, %v1727_v55  ;;  %v1587_v63 = vld [vmem:[#allocation5 + $0x1218] sm:$0xff]  ;;  %v12647_v58 = vcombine.low %v1723_v31, %v1727_v55 }
 0x4d2   : > { %8364 = vmatprep.subr.bf16.mxu0 %v12544_v16  ;;  %8405 = vmatprep.subr.bf16.mxu1 %v12672_v7  ;;  %v1591_v45 = vld [vmem:[#allocation5 + $0x1238] sm:$0xff] }
 0x4d3   : > { %v1715_v22 = vld [vmem:[#allocation5 + $0x1618] sm:$0xff]  ;;  %v12512_v4 = vcombine.high %v1587_v63, %v1591_v45  ;;  %v12511_v34 = vcombine.low %v1587_v63, %v1591_v45 }
 0x4d4   : > { %v1719_v49 = vld [vmem:[#allocation5 + $0x1638] sm:$0xff] }
 0x4d5   : > { %8365 = vmatpush2.bf16.msra.mxu0 %v12543_v30  ;;  %8406 = vmatpush2.bf16.msra.mxu1 %v12671_v32  ;;  %v12640_v51 = vcombine.high %v1715_v22, %v1719_v49  ;;  %v1835_v8 = vld [vmem:[#allocation5 + $0x19d8] sm:$0xff]  ;;  %v12639_v57 = vcombine.low %v1715_v22, %v1719_v49 }
 0x4d6   : > { %8366 = vmatprep.subr.bf16.mxu0 %v12536_v33  ;;  %8407 = vmatprep.subr.bf16.mxu1 %v12664_v53  ;;  %v1839_v9 = vld [vmem:[#allocation5 + $0x19f8] sm:$0xff] }
 0x4d7   : > { %v1963_v59 = vld [vmem:[#allocation5 + $0x1dd8] sm:$0xff]  ;;  %v12760_v12 = vcombine.high %v1835_v8, %v1839_v9  ;;  %v12759_v7 = vcombine.low %v1835_v8, %v1839_v9 }
 0x4d8   : > { %v1967_v42 = vld [vmem:[#allocation5 + $0x1df8] sm:$0xff] }
 0x4d9   : > { %8367 = vmatpush2.bf16.msra.mxu0 %v12535_v43  ;;  %8408 = vmatpush2.bf16.msra.mxu1 %v12663_v39  ;;  %v12888_v13 = vcombine.high %v1963_v59, %v1967_v42  ;;  %v1827_v17 = vld [vmem:[#allocation5 + $0x1998] sm:$0xff]  ;;  %v12887_v24 = vcombine.low %v1963_v59, %v1967_v42 }
 0x4da   : > { %8368 = vmatprep.subr.bf16.mxu0 %v12528_v47  ;;  %8409 = vmatprep.subr.bf16.mxu1 %v12656_v50  ;;  %v1831_v21 = vld [vmem:[#allocation5 + $0x19b8] sm:$0xff] }
 0x4db   : > { %v1955_v23 = vld [vmem:[#allocation5 + $0x1d98] sm:$0xff]  ;;  %v12752_v35 = vcombine.high %v1827_v17, %v1831_v21  ;;  %v12751_v1 = vcombine.low %v1827_v17, %v1831_v21 }
 0x4dc   : > { %v1959_v16 = vld [vmem:[#allocation5 + $0x1db8] sm:$0xff] }
 0x4dd   : > { %8369 = vmatpush2.bf16.msra.mxu0 %v12527_v56  ;;  %8410 = vmatpush2.bf16.msra.mxu1 %v12655_v41  ;;  %v12880_v20 = vcombine.high %v1955_v23, %v1959_v16  ;;  %v1819_v25 = vld [vmem:[#allocation5 + $0x1958] sm:$0xff]  ;;  %v12879_v43 = vcombine.low %v1955_v23, %v1959_v16 }
 0x4de   : > { %8370 = vmatprep.subr.bf16.mxu0 %v12520_v29  ;;  %8411 = vmatprep.subr.bf16.mxu1 %v12648_v15  ;;  %v1823_v30 = vld [vmem:[#allocation5 + $0x1978] sm:$0xff] }
 0x4df   : > { %v1947_v33 = vld [vmem:[#allocation5 + $0x1d58] sm:$0xff]  ;;  %v12744_v39 = vcombine.high %v1819_v25, %v1823_v30  ;;  %v12743_v29 = vcombine.low %v1819_v25, %v1823_v30 }
 0x4e0   : > { %v1951_v53 = vld [vmem:[#allocation5 + $0x1d78] sm:$0xff] }
 0x4e1   : > { %8371 = vmatpush2.bf16.msra.mxu0 %v12519_v3  ;;  %8412 = vmatpush2.bf16.msra.mxu1 %v12647_v58  ;;  %v1811_v40 = vld [vmem:[#allocation5 + $0x1918] sm:$0xff] }
 0x4e2   : > { %8372 = vmatprep.subr.bf16.mxu0 %v12512_v4  ;;  %8413 = vmatprep.subr.bf16.mxu1 %v12640_v51  ;;  %v1815_v31 = vld [vmem:[#allocation5 + $0x1938] sm:$0xff] }
 0x4e3   : > { %v1943_v55 = vld [vmem:[#allocation5 + $0x1d38] sm:$0xff]  ;;  %v12736_v63 = vcombine.high %v1811_v40, %v1815_v31  ;;  %v12735_v4 = vcombine.low %v1811_v40, %v1815_v31 }
 0x4e4   : > { %v1803_v49 = vld [vmem:[#allocation5 + $0x18d8] sm:$0xff] }
 0x4e5   : > { %8373 = vmatpush2.bf16.msra.mxu0 %v12511_v34  ;;  %8414 = vmatpush2.bf16.msra.mxu1 %v12639_v57  ;;  %v1931_v3 = vld [vmem:[#allocation5 + $0x1cd8] sm:$0xff] }
 0x4e6   : > { %8424 = vmatprep.subr.bf16.mxu0 %v12760_v12  ;;  %8465 = vmatprep.subr.bf16.mxu1 %v12888_v13  ;;  %v1935_v58 = vld [vmem:[#allocation5 + $0x1cf8] sm:$0xff] }
 0x4e7   : > { %v12856_v8 = vcombine.high %v1931_v3, %v1935_v58  ;;  %v1795_v9 = vld [vmem:[#allocation5 + $0x1898] sm:$0xff]  ;;  %v12855_v12 = vcombine.low %v1931_v3, %v1935_v58 }
 0x4e8   : > { %v8130_v32 = vpop.f32.mrf.mxu0  ;;  %8375 = vmatmul.mubr.bf16.vlgmr.msra.gmra.mxu0 %v14922_v2  ;;  %v8171_v36 = vpop.f32.mrf.mxu1  ;;  %8416 = vmatmul.mubr.bf16.vlgmr.msra.gmra.mxu1 %v14925_v6  ;;  %v12872_v2 = vcombine.high %v1947_v33, %v1951_v53  ;;  %v1939_v6 = vld [vmem:[#allocation5 + $0x1d18] sm:$0xff] }
 0x4e9   : > { %v8131_v11 = vadd.f32 %v8130_v32, %v15072_v38  ;;  %8425 = vmatpush1.bf16.msra.mxu0 %v12759_v7  ;;  %8466 = vmatpush1.bf16.msra.mxu1 %v12887_v24  ;;  %v12864_v22 = vcombine.high %v1939_v6, %v1943_v55  ;;  %v1799_v59 = vld [vmem:[#allocation5 + $0x18b8] sm:$0xff] }
 0x4ea   : > { %v8132_v28 = vpop.f32.mrf.mxu0  ;;  %8426 = vmatprep.subr.bf16.mxu0 %v12752_v35  ;;  %v8173_v19 = vpop.f32.mrf.mxu1  ;;  %8467 = vmatprep.subr.bf16.mxu1 %v12880_v20  ;;  %v1923_v42 = vld [vmem:[#allocation5 + $0x1c98] sm:$0xff]  ;;  %v12720_v13 = vcombine.high %v1795_v9, %v1799_v59  ;;  %v12719_v24 = vcombine.low %v1795_v9, %v1799_v59 }
 0x4eb   : > { %v15082_v47 = vadd.f32 %v8171_v36, %v8131_v11  ;;  %v8133_v50 = vadd.f32 %v8132_v28, %v15077_v52  ;;  %8456 = vmatprep.mubr.bf16.mxu0 %v14928_v14  ;;  %8497 = vmatprep.mubr.bf16.mxu1 %v14931_v18  ;;  %v12871_v52 = vcombine.low %v1947_v33, %v1951_v53  ;;  %v1807_v14 = vld [vmem:[#allocation5 + $0x18f8] sm:$0xff] }
 0x4ec   : > { %v8134_v38 = vpop.f32.mrf.mxu0  ;;  %v8175_v41 = vpop.f32.mrf.mxu1  ;;  %v12863_v18 = vcombine.low %v1939_v6, %v1943_v55  ;;  %v12728_v51 = vcombine.high %v1803_v49, %v1807_v14  ;;  %v1927_v34 = vld [vmem:[#allocation5 + $0x1cb8] sm:$0xff]  ;;  %v12727_v57 = vcombine.low %v1803_v49, %v1807_v14 }
 0x4ed   : > { %v15087_v56 = vadd.f32 %v8173_v19, %v8133_v50  ;;  %8427 = vmatpush1.bf16.msra.mxu0 %v12751_v1  ;;  %8468 = vmatpush1.bf16.msra.mxu1 %v12879_v43  ;;  %v12848_v17 = vcombine.high %v1923_v42, %v1927_v34  ;;  %v1787_v21 = vld [vmem:[#allocation5 + $0x1858] sm:$0xff]  ;;  %v12847_v35 = vcombine.low %v1923_v42, %v1927_v34 }
 0x4ee   : > { %v8135_v15 = vpop.f32.mrf.mxu0  ;;  %8428 = vmatprep.subr.bf16.mxu0 %v12744_v39  ;;  %v8176_v45 = vpop.f32.mrf.mxu1  ;;  %8469 = vmatprep.subr.bf16.mxu1 %v12872_v2  ;;  %v1791_v23 = vld [vmem:[#allocation5 + $0x1878] sm:$0xff] }
 0x4ef   : > { %v1915_v16 = vld [vmem:[#allocation5 + $0x1c58] sm:$0xff]  ;;  %v12712_v20 = vcombine.high %v1787_v21, %v1791_v23  ;;  %v12711_v11 = vcombine.low %v1787_v21, %v1791_v23 }
 0x4f0   : > { %v1919_v7 = vld [vmem:[#allocation5 + $0x1c78] sm:$0xff] }
 0x4f1   : > { %8429 = vmatpush1.bf16.msra.mxu0 %v12743_v29  ;;  %8470 = vmatpush1.bf16.msra.mxu1 %v12871_v52  ;;  %v12840_v25 = vcombine.high %v1915_v16, %v1919_v7  ;;  %v1779_v30 = vld [vmem:[#allocation5 + $0x1818] sm:$0xff]  ;;  %v12839_v36 = vcombine.low %v1915_v16, %v1919_v7 }
 0x4f2   : > { %8430 = vmatprep.subr.bf16.mxu0 %v12736_v63  ;;  %8471 = vmatprep.subr.bf16.mxu1 %v12864_v22  ;;  %v1783_v32 = vld [vmem:[#allocation5 + $0x1838] sm:$0xff] }
 0x4f3   : > { %v1907_v33 = vld [vmem:[#allocation5 + $0x1c18] sm:$0xff]  ;;  %v12704_v1 = vcombine.high %v1779_v30, %v1783_v32  ;;  %v12703_v2 = vcombine.low %v1779_v30, %v1783_v32 }
 0x4f4   : > { %v1911_v53 = vld [vmem:[#allocation5 + $0x1c38] sm:$0xff] }
 0x4f5   : > { %8431 = vmatpush1.bf16.msra.mxu0 %v12735_v4  ;;  %8472 = vmatpush1.bf16.msra.mxu1 %v12863_v18  ;;  %v12832_v28 = vcombine.high %v1907_v33, %v1911_v53  ;;  %v1899_v43 = vld [vmem:[#allocation5 + $0x1bd8] sm:$0xff]  ;;  %v12831_v40 = vcombine.low %v1907_v33, %v1911_v53 }
 0x4f6   : > { %8432 = vmatprep.subr.bf16.mxu0 %v12728_v51  ;;  %8473 = vmatprep.subr.bf16.mxu1 %v12856_v8  ;;  %v1903_v39 = vld [vmem:[#allocation5 + $0x1bf8] sm:$0xff] }
 0x4f7   : > { %v2027_v50 = vld [vmem:[#allocation5 + $0x1fd8] sm:$0xff]  ;;  %v12824_v31 = vcombine.high %v1899_v43, %v1903_v39  ;;  %v12823_v15 = vcombine.low %v1899_v43, %v1903_v39 }
 0x4f8   : > { %v2031_v19 = vld [vmem:[#allocation5 + $0x1ff8] sm:$0xff] }
 0x4f9   : > { %8433 = vmatpush1.bf16.msra.mxu0 %v12727_v57  ;;  %8474 = vmatpush1.bf16.msra.mxu1 %v12855_v12  ;;  %v12952_v38 = vcombine.high %v2027_v50, %v2031_v19  ;;  %v1891_v6 = vld [vmem:[#allocation5 + $0x1b98] sm:$0xff]  ;;  %v12951_v52 = vcombine.low %v2027_v50, %v2031_v19 }
 0x4fa   : > { %8434 = vmatprep.subr.bf16.mxu0 %v12720_v13  ;;  %8475 = vmatprep.subr.bf16.mxu1 %v12848_v17  ;;  %v1895_v55 = vld [vmem:[#allocation5 + $0x1bb8] sm:$0xff] }
 0x4fb   : > { %v2019_v41 = vld [vmem:[#allocation5 + $0x1f98] sm:$0xff]  ;;  %v12816_v63 = vcombine.high %v1891_v6, %v1895_v55  ;;  %v12815_v58 = vcombine.low %v1891_v6, %v1895_v55 }
 0x4fc   : > { %v2023_v29 = vld [vmem:[#allocation5 + $0x1fb8] sm:$0xff] }
 0x4fd   : > { %8435 = vmatpush1.bf16.msra.mxu0 %v12719_v24  ;;  %8476 = vmatpush1.bf16.msra.mxu1 %v12847_v35  ;;  %v12944_v45 = vcombine.high %v2019_v41, %v2023_v29  ;;  %v1883_v22 = vld [vmem:[#allocation5 + $0x1b58] sm:$0xff]  ;;  %v12943_v4 = vcombine.low %v2019_v41, %v2023_v29 }
 0x4fe   : > { %8436 = vmatprep.subr.bf16.mxu0 %v12712_v20  ;;  %8477 = vmatprep.subr.bf16.mxu1 %v12840_v25  ;;  %v1887_v49 = vld [vmem:[#allocation5 + $0x1b78] sm:$0xff] }
 0x4ff   : > { %v2011_v14 = vld [vmem:[#allocation5 + $0x1f58] sm:$0xff]  ;;  %v12808_v18 = vcombine.high %v1883_v22, %v1887_v49  ;;  %v12807_v34 = vcombine.low %v1883_v22, %v1887_v49  ;;  %v15090_v22 = vsub.s32 6, %v14936_v26 }
 0x500   : > { %v2015_v3 = vld [vmem:[#allocation5 + $0x1f78] sm:$0xff] }
 0x501   : > { %8437 = vmatpush1.bf16.msra.mxu0 %v12711_v11  ;;  %8478 = vmatpush1.bf16.msra.mxu1 %v12839_v36  ;;  %v12936_v51 = vcombine.high %v2011_v14, %v2015_v3  ;;  %v1875_v8 = vld [vmem:[#allocation5 + $0x1b18] sm:$0xff]  ;;  %v12935_v57 = vcombine.low %v2011_v14, %v2015_v3  ;;  %v15096_v3 = vsub.s32 7, %v14936_v26 }
 0x502   : > { %8438 = vmatprep.subr.bf16.mxu0 %v12704_v1  ;;  %8479 = vmatprep.subr.bf16.mxu1 %v12832_v28  ;;  %v1879_v9 = vld [vmem:[#allocation5 + $0x1b38] sm:$0xff] }
 0x503   : > { %v2003_v59 = vld [vmem:[#allocation5 + $0x1f18] sm:$0xff]  ;;  %v12800_v12 = vcombine.high %v1875_v8, %v1879_v9  ;;  %v12799_v7 = vcombine.low %v1875_v8, %v1879_v9 }
 0x504   : > { %v2007_v42 = vld [vmem:[#allocation5 + $0x1f38] sm:$0xff] }
 0x505   : > { %8439 = vmatpush1.bf16.msra.mxu0 %v12703_v2  ;;  %8480 = vmatpush1.bf16.msra.mxu1 %v12831_v40  ;;  %v12928_v13 = vcombine.high %v2003_v59, %v2007_v42  ;;  %v1867_v17 = vld [vmem:[#allocation5 + $0x1ad8] sm:$0xff]  ;;  %v12927_v24 = vcombine.low %v2003_v59, %v2007_v42  ;;  %v8548_v59 = vld [vmem:[%s16023_s20 + $0xf0] sm:$0xff] }
 0x506   : > { %8440 = vmatprep.subr.bf16.mxu0 %v12824_v31  ;;  %8481 = vmatprep.subr.bf16.mxu1 %v12952_v38  ;;  %v1871_v21 = vld [vmem:[#allocation5 + $0x1af8] sm:$0xff] }
 0x507   : > { %v1995_v23 = vld [vmem:[#allocation5 + $0x1ed8] sm:$0xff]  ;;  %v12792_v35 = vcombine.high %v1867_v17, %v1871_v21  ;;  %v12791_v53 = vcombine.low %v1867_v17, %v1871_v21 }
 0x508   : > { %v1999_v16 = vld [vmem:[#allocation5 + $0x1ef8] sm:$0xff] }
 0x509   : > { %8441 = vmatpush2.bf16.msra.mxu0 %v12823_v15  ;;  %8482 = vmatpush2.bf16.msra.mxu1 %v12951_v52  ;;  %v12920_v20 = vcombine.high %v1995_v23, %v1999_v16  ;;  %v1859_v25 = vld [vmem:[#allocation5 + $0x1a98] sm:$0xff]  ;;  %v12919_v11 = vcombine.low %v1995_v23, %v1999_v16  ;;  %v8579_v16 = vld [vmem:[%s16023_s20 + $0x1e8] sm:$0xff] }
 0x50a   : > { %8442 = vmatprep.subr.bf16.mxu0 %v12816_v63  ;;  %8483 = vmatprep.subr.bf16.mxu1 %v12944_v45  ;;  %v1863_v30 = vld [vmem:[#allocation5 + $0x1ab8] sm:$0xff] }
 0x50b   : > { %v1987_v32 = vld [vmem:[#allocation5 + $0x1e98] sm:$0xff]  ;;  %v12784_v36 = vcombine.high %v1859_v25, %v1863_v30  ;;  %v12783_v19 = vcombine.low %v1859_v25, %v1863_v30 }
 0x50c   : > { %v1991_v33 = vld [vmem:[#allocation5 + $0x1eb8] sm:$0xff] }
 0x50d   : > { %8443 = vmatpush2.bf16.msra.mxu0 %v12815_v58  ;;  %8484 = vmatpush2.bf16.msra.mxu1 %v12943_v4  ;;  %v12912_v1 = vcombine.high %v1987_v32, %v1991_v33  ;;  %v1851_v28 = vld [vmem:[#allocation5 + $0x1a58] sm:$0xff]  ;;  %v12911_v2 = vcombine.low %v1987_v32, %v1991_v33  ;;  %v8578_v32 = vld [vmem:[%s16023_s20 + $0x1e0] sm:$0xff] }
 0x50e   : > { %8444 = vmatprep.subr.bf16.mxu0 %v12808_v18  ;;  %8485 = vmatprep.subr.bf16.mxu1 %v12936_v51  ;;  %v1855_v43 = vld [vmem:[#allocation5 + $0x1a78] sm:$0xff]  ;;  %v8530_v33 = vld [vmem:[%s16023_s20 + $0x60] sm:$0xff] }
 0x50f   : > { %v1979_v39 = vld [vmem:[#allocation5 + $0x1e58] sm:$0xff]  ;;  %v12776_v40 = vcombine.high %v1851_v28, %v1855_v43  ;;  %v12775_v29 = vcombine.low %v1851_v28, %v1855_v43 }
 0x510   : > { %v1983_v50 = vld [vmem:[#allocation5 + $0x1e78] sm:$0xff] }
 0x511   : > { %8445 = vmatpush2.bf16.msra.mxu0 %v12807_v34  ;;  %8486 = vmatpush2.bf16.msra.mxu1 %v12935_v57  ;;  %v12904_v31 = vcombine.high %v1979_v39, %v1983_v50  ;;  %v1843_v38 = vld [vmem:[#allocation5 + $0x1a18] sm:$0xff]  ;;  %v12903_v15 = vcombine.low %v1979_v39, %v1983_v50  ;;  %v8580_v57 = vld [vmem:[%s16023_s20 + $0x1f0] sm:$0xff] }
 0x512   : > { %8446 = vmatprep.subr.bf16.mxu0 %v12800_v12  ;;  %8487 = vmatprep.subr.bf16.mxu1 %v12928_v13  ;;  %v1847_v6 = vld [vmem:[#allocation5 + $0x1a38] sm:$0xff]  ;;  %v8532_v12 = vld [vmem:[%s16023_s20 + $0x70] sm:$0xff] }
 0x513   : > { %v1971_v55 = vld [vmem:[#allocation5 + $0x1e18] sm:$0xff]  ;;  %v12768_v52 = vcombine.high %v1843_v38, %v1847_v6  ;;  %v12767_v45 = vcombine.low %v1843_v38, %v1847_v6  ;;  %v8564_v13 = vld [vmem:[%s16023_s20 + $0x170] sm:$0xff]  ;;  %v8575_v38 = vld [vmem:[%s16023_s20 + $0x1c8] sm:$0xff] }
 0x514   : > { %v1975_v41 = vld [vmem:[#allocation5 + $0x1e38] sm:$0xff]  ;;  %v8544_v50 = vld [vmem:[%s16023_s20 + $0xd0] sm:$0xff]  ;;  %v8527_v6 = vld [vmem:[%s16023_s20 + $0x48] sm:$0xff] }
 0x515   : > { %8447 = vmatpush2.bf16.msra.mxu0 %v12799_v7  ;;  %8488 = vmatpush2.bf16.msra.mxu1 %v12927_v24  ;;  %v12896_v63 = vcombine.high %v1971_v55, %v1975_v41  ;;  %v12895_v49 = vcombine.low %v1971_v55, %v1975_v41  ;;  %v8549_v14 = vld [vmem:[%s16023_s20 + $0xf8] sm:$0xff]  ;;  %v8531_v7 = vld [vmem:[%s16023_s20 + $0x68] sm:$0xff]  ;;  %v8542_v41 = vld [vmem:[%s16023_s20 + $0xc0] sm:$0xff] }
 0x516   : > { %8448 = vmatprep.subr.bf16.mxu0 %v12792_v35  ;;  %8489 = vmatprep.subr.bf16.mxu1 %v12920_v20  ;;  %v8581_v58 = vld [vmem:[%s16023_s20 + $0x1f8] sm:$0xff]  ;;  %v8563_v35 = vld [vmem:[%s16023_s20 + $0x168] sm:$0xff]  ;;  %v8546_v20 = vld [vmem:[%s16023_s20 + $0xe0] sm:$0xff] }
 0x517   : > { %v13950_v4 = vld [vmem:[#allocation7] ss:$4 sm:$0xff] }
 0x518   : > { %v2061_v18 = vrot.slane %v13950_v4, %v15090_v22  ;;  %v8533_v51 = vld [vmem:[%s16023_s20 + $0x78] sm:$0xff]  ;;  %v2065_v8 = vrot.slane %v13950_v4, %v15096_v3  ;;  %v8559_v55 = vld [vmem:[%s16023_s20 + $0x148] sm:$0xff]  ;;  %v8572_v4 = vld [vmem:[%s16023_s20 + $0x1b0] sm:$0xff] }
 0x519   : > { %8449 = vmatpush2.bf16.msra.mxu0 %v12791_v53  ;;  %8490 = vmatpush2.bf16.msra.mxu1 %v12919_v11  ;;  %v8565_v26 = vld [vmem:[%s16023_s20 + $0x178] sm:$0xff]  ;;  %v8562_v11 = vld [vmem:[%s16023_s20 + $0x160] sm:$0xff] }
 0x51a   : > { %8450 = vmatprep.subr.bf16.mxu0 %v12784_v36  ;;  %8491 = vmatprep.subr.bf16.mxu1 %v12912_v1  ;;  %v8545_v36 = vld [vmem:[%s16023_s20 + $0xd8] sm:$0xff] }
 0x51b   : > { %v8577_v28 = vld [vmem:[%s16023_s20 + $0x1d8] sm:$0xff] }
 0x51c   : > { %v8529_v43 = vld [vmem:[%s16023_s20 + $0x58] sm:$0xff] }
 0x51d   : > { %8451 = vmatpush2.bf16.msra.mxu0 %v12783_v19  ;;  %8492 = vmatpush2.bf16.msra.mxu1 %v12911_v2  ;;  %v8561_v39 = vld [vmem:[%s16023_s20 + $0x158] sm:$0xff]  ;;  %v8576_v19 = vld [vmem:[%s16023_s20 + $0x1d0] sm:$0xff] }
 0x51e   : > { %8452 = vmatprep.subr.bf16.mxu0 %v12776_v40  ;;  %8493 = vmatprep.subr.bf16.mxu1 %v12904_v31  ;;  %v8528_v2 = vld [vmem:[%s16023_s20 + $0x50] sm:$0xff]  ;;  %v8543_v31 = vld [vmem:[%s16023_s20 + $0xc8] sm:$0xff] }
 0x51f   : > { %v8560_v40 = vld [vmem:[%s16023_s20 + $0x150] sm:$0xff] }
 0x521   : > { %8453 = vmatpush2.bf16.msra.mxu0 %v12775_v29  ;;  %8494 = vmatpush2.bf16.msra.mxu1 %v12903_v15  ;;  %v8574_v29 = vld [vmem:[%s16023_s20 + $0x1c0] sm:$0xff] }
 0x522   : > { %8454 = vmatprep.subr.bf16.mxu0 %v12768_v52  ;;  %8495 = vmatprep.subr.bf16.mxu1 %v12896_v63  ;;  %v8526_v15 = vld [vmem:[%s16023_s20 + $0x40] sm:$0xff]  ;;  %v8541_v63 = vld [vmem:[%s16023_s20 + $0xb8] sm:$0xff] }
 0x523   : > { %v8558_v52 = vld [vmem:[%s16023_s20 + $0x140] sm:$0xff] }
 0x525   : > { %8455 = vmatpush2.bf16.msra.mxu0 %v12767_v45  ;;  %8496 = vmatpush2.bf16.msra.mxu1 %v12895_v49  ;;  %v8573_v45 = vld [vmem:[%s16023_s20 + $0x1b8] sm:$0xff] }
 0x526   : > { %13163 = vmatprep.subr.mxu0 %v8549_v14  ;;  %13201 = vmatprep.subr.mxu1 %v8581_v58  ;;  %v8525_v49 = vld [vmem:[%s16023_s20 + $0x38] sm:$0xff]  ;;  %v8540_v58 = vld [vmem:[%s16023_s20 + $0xb0] sm:$0xff] }
 0x527   : > { %v8557_v14 = vld [vmem:[%s16023_s20 + $0x138] sm:$0xff] }
 0x528   : > { %v8212_v9 = vpop.f32.mrf.mxu0  ;;  %8457 = vmatmul.mubr.bf16.vlgmr.msra.gmra.mxu0 %v14945_v48  ;;  %v8253_v34 = vpop.f32.mrf.mxu1  ;;  %8498 = vmatmul.mubr.bf16.vlgmr.msra.gmra.mxu1 %v14949_v54  ;;  %v8547_v54 = vld [vmem:[%s16023_s20 + $0xe8] sm:$0xff] }
 0x529   : > { %v8213_v42 = vadd.f32 %v8212_v9, %v2061_v18  ;;  %13164 = vmatpush3.msra.mxu0 %v8533_v51  ;;  %8710 = vmatprep.mubr.f32.mxu0 %v14995_v5  ;;  %v8524_v18 = vld [vmem:[%s16023_s20 + $0x30] sm:$0xff]  ;;  %v8523_v9 = vld [vmem:[%s16023_s20 + $0x28] sm:$0xff] }
 0x52a   : > { %13202 = vmatpush3.msra.mxu1 %v8565_v26  ;;  %v8214_v48 = vpop.f32.mrf.mxu0  ;;  %8785 = vmatprep.mubr.f32.mxu1 %v15041_v27  ;;  %v8255_v23 = vpop.f32.mrf.mxu1  ;;  %v8556_v51 = vld [vmem:[%s16023_s20 + $0x130] sm:$0xff]  ;;  %v8539_v26 = vld [vmem:[%s16023_s20 + $0xa8] sm:$0xff] }
 0x52b   : > { %v15127_v17 = vadd.f32 %v8253_v34, %v8213_v42  ;;  %v8215_v21 = vadd.f32 %v8214_v48, %v2065_v8  ;;  %13165 = vmatprep.subr.mxu0 %v8548_v59  ;;  %13203 = vmatprep.subr.mxu1 %v8580_v57  ;;  %v8571_v8 = vld [vmem:[%s16023_s20 + $0x1a8] sm:$0xff]  ;;  %v8538_v42 = vld [vmem:[%s16023_s20 + $0xa0] sm:$0xff]  ;;  %v8537_v48 = vld [vmem:[%s16023_s20 + $0x98] sm:$0xff] }
 0x52c   : > { %13166 = vmatpush3.msra.mxu0 %v8532_v12  ;;  %v8216_v24 = vpop.f32.mrf.mxu0  ;;  %13204 = vmatpush3.msra.mxu1 %v8564_v13  ;;  %v8257_v30 = vpop.f32.mrf.mxu1  ;;  %v8555_v59 = vld [vmem:[%s16023_s20 + $0x128] sm:$0xff]  ;;  %v8570_v34 = vld [vmem:[%s16023_s20 + $0x1a0] sm:$0xff]  ;;  %v8569_v13 = vld [vmem:[%s16023_s20 + $0x198] sm:$0xff] }
 0x52d   : > { %v15142_v25 = vadd.f32 %v8255_v23, %v8215_v21  ;;  %13167 = vmatprep.subr.mxu0 %v8547_v54  ;;  %13205 = vmatprep.subr.mxu1 %v8579_v16  ;;  %v8522_v57 = vld [vmem:[%s16023_s20 + $0x20] sm:$0xff]  ;;  %v8521_v54 = vld [vmem:[%s16023_s20 + $0x18] sm:$0xff]  ;;  %v8536_v23 = vld [vmem:[%s16023_s20 + $0x90] sm:$0xff] }
 0x52e   : > { %13168 = vmatpush3.msra.mxu0 %v8531_v7  ;;  %v8217_v53 = vpop.f32.mrf.mxu0  ;;  %13206 = vmatpush3.msra.mxu1 %v8563_v35  ;;  %v8258_v1 = vpop.f32.mrf.mxu1  ;;  %v8554_v12 = vld [vmem:[%s16023_s20 + $0x120] sm:$0xff]  ;;  %v8553_v21 = vld [vmem:[%s16023_s20 + $0x118] sm:$0xff]  ;;  %v8568_v16 = vld [vmem:[%s16023_s20 + $0x190] sm:$0xff] }
 0x52f   : > { %13169 = vmatprep.subr.mxu0 %v8546_v20  ;;  %13207 = vmatprep.subr.mxu1 %v8578_v32  ;;  %v8520_v7 = vld [vmem:[%s16023_s20 + $0x10] sm:$0xff]  ;;  %v8535_v35 = vld [vmem:[%s16023_s20 + $0x88] sm:$0xff]  ;;  %v8566_v53 = vld [vmem:[%s16023_s20 + $0x180] sm:$0xff] }
 0x530   : > { %13170 = vmatpush3.msra.mxu0 %v8530_v33  ;;  %13208 = vmatpush3.msra.mxu1 %v8562_v11  ;;  %v8552_v24 = vld [vmem:[%s16023_s20 + $0x110] sm:$0xff]  ;;  %v8567_v20 = vld [vmem:[%s16023_s20 + $0x188] sm:$0xff]  ;;  %v8534_v33 = vld [vmem:[%s16023_s20 + $0x80] sm:$0xff] }
 0x531   : > { %13171 = vmatprep.subr.mxu0 %v8545_v36  ;;  %13209 = vmatprep.subr.mxu1 %v8577_v28  ;;  %v8519_v30 = vld [vmem:[%s16023_s20 + $0x8] sm:$0xff]  ;;  %v8518_v11 = vld [vmem:[%s16023_s20] sm:$0xff]  ;;  %v8613_v1 = vld [vmem:[%s16023_s20 + $0x2f8] sm:$0xff]  ;;  %v8511_v28 = vmul.f32 %v14995_v5, %v14995_v5 }
 0x532   : > { %13172 = vmatpush3.msra.mxu0 %v8529_v43  ;;  %13210 = vmatpush3.msra.mxu1 %v8561_v39  ;;  %v8551_v32 = vld [vmem:[%s16023_s20 + $0x108] sm:$0xff]  ;;  %v8550_v36 = vld [vmem:[%s16023_s20 + $0x100] sm:$0xff]  ;;  %v8513_v43 = vmul.f32 %v15041_v27, %v15041_v27  ;;  %v8597_v39 = vld [vmem:[%s16023_s20 + $0x278] sm:$0xff] }
 0x533   : > { %13173 = vmatprep.subr.mxu0 %v8544_v50  ;;  %13211 = vmatprep.subr.mxu1 %v8576_v19  ;;  %v8645_v50 = vld [vmem:[%s16023_s20 + $0x3f8] sm:$0xff]  ;;  %v8612_v19 = vld [vmem:[%s16023_s20 + $0x2f0] sm:$0xff] }
 0x534   : > { %13174 = vmatpush3.msra.mxu0 %v8528_v2  ;;  %13212 = vmatpush3.msra.mxu1 %v8560_v40  ;;  %v8596_v2 = vld [vmem:[%s16023_s20 + $0x270] sm:$0xff]  ;;  %v8510_v40 = vmul.f32 %v14990_v61, %v14990_v61 }
 0x535   : > { %13175 = vmatprep.subr.mxu0 %v8543_v31  ;;  %13213 = vmatprep.subr.mxu1 %v8575_v38  ;;  %v8512_v31 = vmul.f32 %v15036_v62, %v15036_v62  ;;  %v8611_v38 = vld [vmem:[%s16023_s20 + $0x2e8] sm:$0xff] }
 0x536   : > { %13176 = vmatpush3.msra.mxu0 %v8527_v6  ;;  %13214 = vmatpush3.msra.mxu1 %v8559_v55  ;;  %v8595_v6 = vld [vmem:[%s16023_s20 + $0x268] sm:$0xff]  ;;  %v8629_v55 = vld [vmem:[%s16023_s20 + $0x378] sm:$0xff] }
 0x537   : > { %13177 = vmatprep.subr.mxu0 %v8542_v41  ;;  %13215 = vmatprep.subr.mxu1 %v8574_v29  ;;  %v8610_v41 = vld [vmem:[%s16023_s20 + $0x2e0] sm:$0xff]  ;;  %v8644_v29 = vld [vmem:[%s16023_s20 + $0x3f0] sm:$0xff] }
 0x538   : > { %13178 = vmatpush3.msra.mxu0 %v8526_v15  ;;  %13216 = vmatpush3.msra.mxu1 %v8558_v52  ;;  %v8594_v15 = vld [vmem:[%s16023_s20 + $0x260] sm:$0xff]  ;;  %v8628_v52 = vld [vmem:[%s16023_s20 + $0x370] sm:$0xff] }
 0x539   : > { %13179 = vmatprep.subr.mxu0 %v8541_v63  ;;  %13217 = vmatprep.subr.mxu1 %v8573_v45  ;;  %v8609_v63 = vld [vmem:[%s16023_s20 + $0x2d8] sm:$0xff]  ;;  %v8643_v45 = vld [vmem:[%s16023_s20 + $0x3e8] sm:$0xff] }
 0x53a   : > { %13180 = vmatpush3.msra.mxu0 %v8525_v49  ;;  %13218 = vmatpush3.msra.mxu1 %v8557_v14  ;;  %v8593_v49 = vld [vmem:[%s16023_s20 + $0x258] sm:$0xff]  ;;  %v8627_v14 = vld [vmem:[%s16023_s20 + $0x368] sm:$0xff] }
 0x53b   : > { %13181 = vmatprep.subr.mxu0 %v8540_v58  ;;  %13219 = vmatprep.subr.mxu1 %v8572_v4  ;;  %v8608_v58 = vld [vmem:[%s16023_s20 + $0x2d0] sm:$0xff]  ;;  %v8642_v4 = vld [vmem:[%s16023_s20 + $0x3e0] sm:$0xff] }
 0x53c   : > { %13182 = vmatpush3.msra.mxu0 %v8524_v18  ;;  %13220 = vmatpush3.msra.mxu1 %v8556_v51  ;;  %v8592_v18 = vld [vmem:[%s16023_s20 + $0x250] sm:$0xff]  ;;  %v8626_v51 = vld [vmem:[%s16023_s20 + $0x360] sm:$0xff] }
 0x53d   : > { %13183 = vmatprep.subr.mxu0 %v8539_v26  ;;  %13221 = vmatprep.subr.mxu1 %v8571_v8  ;;  %v8607_v26 = vld [vmem:[%s16023_s20 + $0x2c8] sm:$0xff]  ;;  %v8641_v8 = vld [vmem:[%s16023_s20 + $0x3d8] sm:$0xff] }
 0x53e   : > { %13184 = vmatpush3.msra.mxu0 %v8523_v9  ;;  %13222 = vmatpush3.msra.mxu1 %v8555_v59  ;;  %v8591_v9 = vld [vmem:[%s16023_s20 + $0x248] sm:$0xff]  ;;  %v8625_v59 = vld [vmem:[%s16023_s20 + $0x358] sm:$0xff] }
 0x53f   : > { %13185 = vmatprep.subr.mxu0 %v8538_v42  ;;  %13223 = vmatprep.subr.mxu1 %v8570_v34  ;;  %v8606_v42 = vld [vmem:[%s16023_s20 + $0x2c0] sm:$0xff]  ;;  %v8640_v34 = vld [vmem:[%s16023_s20 + $0x3d0] sm:$0xff] }
 0x540   : > { %13186 = vmatpush3.msra.mxu0 %v8522_v57  ;;  %13224 = vmatpush3.msra.mxu1 %v8554_v12  ;;  %v8590_v57 = vld [vmem:[%s16023_s20 + $0x240] sm:$0xff]  ;;  %v8624_v12 = vld [vmem:[%s16023_s20 + $0x350] sm:$0xff] }
 0x541   : > { %13187 = vmatprep.subr.mxu0 %v8537_v48  ;;  %13225 = vmatprep.subr.mxu1 %v8569_v13  ;;  %v8605_v48 = vld [vmem:[%s16023_s20 + $0x2b8] sm:$0xff]  ;;  %v8639_v13 = vld [vmem:[%s16023_s20 + $0x3c8] sm:$0xff] }
 0x542   : > { %13188 = vmatpush3.msra.mxu0 %v8521_v54  ;;  %13226 = vmatpush3.msra.mxu1 %v8553_v21  ;;  %v8589_v54 = vld [vmem:[%s16023_s20 + $0x238] sm:$0xff]  ;;  %v8623_v21 = vld [vmem:[%s16023_s20 + $0x348] sm:$0xff] }
 0x543   : > { %13189 = vmatprep.subr.mxu0 %v8536_v23  ;;  %13227 = vmatprep.subr.mxu1 %v8568_v16  ;;  %v8604_v23 = vld [vmem:[%s16023_s20 + $0x2b0] sm:$0xff]  ;;  %v8638_v16 = vld [vmem:[%s16023_s20 + $0x3c0] sm:$0xff] }
 0x544   : > { %13190 = vmatpush3.msra.mxu0 %v8520_v7  ;;  %13228 = vmatpush3.msra.mxu1 %v8552_v24  ;;  %v8588_v7 = vld [vmem:[%s16023_s20 + $0x230] sm:$0xff]  ;;  %v8622_v24 = vld [vmem:[%s16023_s20 + $0x340] sm:$0xff] }
 0x545   : > { %13191 = vmatprep.subr.mxu0 %v8535_v35  ;;  %13229 = vmatprep.subr.mxu1 %v8567_v20  ;;  %v8603_v35 = vld [vmem:[%s16023_s20 + $0x2a8] sm:$0xff]  ;;  %v8637_v20 = vld [vmem:[%s16023_s20 + $0x3b8] sm:$0xff] }
 0x546   : > { %13192 = vmatpush3.msra.mxu0 %v8519_v30  ;;  %13230 = vmatpush3.msra.mxu1 %v8551_v32  ;;  %v8587_v30 = vld [vmem:[%s16023_s20 + $0x228] sm:$0xff]  ;;  %v8621_v32 = vld [vmem:[%s16023_s20 + $0x338] sm:$0xff] }
 0x547   : > { %13193 = vmatprep.subr.mxu0 %v8534_v33  ;;  %13231 = vmatprep.subr.mxu1 %v8566_v53  ;;  %v8602_v33 = vld [vmem:[%s16023_s20 + $0x2a0] sm:$0xff]  ;;  %v8636_v53 = vld [vmem:[%s16023_s20 + $0x3b0] sm:$0xff] }
 0x548   : > { %13194 = vmatpush3.msra.mxu0 %v8518_v11  ;;  %13232 = vmatpush3.msra.mxu1 %v8550_v36  ;;  %v8586_v11 = vld [vmem:[%s16023_s20 + $0x220] sm:$0xff]  ;;  %v8620_v36 = vld [vmem:[%s16023_s20 + $0x330] sm:$0xff] }
 0x549   : > { %8711 = vmatmul.mubr.f32.vlgmr.msra.gmra.mxu0 %v14990_v61  ;;  %8786 = vmatmul.mubr.f32.vlgmr.msra.gmra.mxu1 %v15036_v62 }
 0x54a   : > { %13239 = vmatprep.subr.mxu0 %v8613_v1  ;;  %8715 = vmatprep.mubr.f32.mxu0 %v8511_v28  ;;  %v8601_v1 = vld [vmem:[%s16023_s20 + $0x298] sm:$0xff]  ;;  %v8635_v28 = vld [vmem:[%s16023_s20 + $0x3a8] sm:$0xff] }
 0x54b   : > { %8790 = vmatprep.mubr.f32.mxu1 %v8513_v43  ;;  %13240 = vmatpush3.msra.mxu0 %v8597_v39  ;;  %v8585_v43 = vld [vmem:[%s16023_s20 + $0x218] sm:$0xff]  ;;  %v8619_v39 = vld [vmem:[%s16023_s20 + $0x328] sm:$0xff] }
 0x54c   : > { %13277 = vmatprep.subr.mxu1 %v8645_v50  ;;  %13241 = vmatprep.subr.mxu0 %v8612_v19  ;;  %v8600_v50 = vld [vmem:[%s16023_s20 + $0x290] sm:$0xff]  ;;  %v8634_v19 = vld [vmem:[%s16023_s20 + $0x3a0] sm:$0xff] }
 0x54d   : > { %8716 = vmatmul.mubr.f32.gmra.mxu0 %v8510_v40  ;;  %8791 = vmatmul.mubr.f32.gmra.mxu1 %v8512_v31  ;;  %v8618_v40 = vld [vmem:[%s16023_s20 + $0x320] sm:$0xff]  ;;  %v8599_v31 = vld [vmem:[%s16023_s20 + $0x288] sm:$0xff] }
 0x54e   : > { %13242 = vmatpush3.msra.mxu0 %v8596_v2  ;;  %8860 = vmatprep.mubr.f32.mxu0 %v15087_v56  ;;  %v8584_v2 = vld [vmem:[%s16023_s20 + $0x210] sm:$0xff] }
 0x54f   : > { %13243 = vmatprep.subr.mxu0 %v8611_v38  ;;  %13278 = vmatpush3.msra.mxu1 %v8629_v55  ;;  %v8583_v38 = vld [vmem:[%s16023_s20 + $0x208] sm:$0xff]  ;;  %v8582_v55 = vld [vmem:[%s16023_s20 + $0x200] sm:$0xff] }
 0x550   : > { %13244 = vmatpush3.msra.mxu0 %v8595_v6  ;;  %13279 = vmatprep.subr.mxu1 %v8644_v29  ;;  %v8598_v6 = vld [vmem:[%s16023_s20 + $0x280] sm:$0xff] }
 0x551   : > { %13245 = vmatprep.subr.mxu0 %v8610_v41  ;;  %13280 = vmatpush3.msra.mxu1 %v8628_v52  ;;  %v8515_v52 = vmul.f32 %v15087_v56, %v15087_v56 }
 0x552   : > { %13246 = vmatpush3.msra.mxu0 %v8594_v15  ;;  %13281 = vmatprep.subr.mxu1 %v8643_v45  ;;  %v8633_v45 = vld [vmem:[%s16023_s20 + $0x398] sm:$0xff] }
 0x553   : > { %13247 = vmatprep.subr.mxu0 %v8609_v63  ;;  %13282 = vmatpush3.msra.mxu1 %v8627_v14 }
 0x554   : > { %13248 = vmatpush3.msra.mxu0 %v8593_v49  ;;  %13283 = vmatprep.subr.mxu1 %v8642_v4 }
 0x555   : > { %13249 = vmatprep.subr.mxu0 %v8608_v58  ;;  %13284 = vmatpush3.msra.mxu1 %v8626_v51 }
 0x556   : > { %13250 = vmatpush3.msra.mxu0 %v8592_v18  ;;  %13285 = vmatprep.subr.mxu1 %v8641_v8  ;;  %v8632_v18 = vld [vmem:[%s16023_s20 + $0x390] sm:$0xff]  ;;  %v8514_v8 = vmul.f32 %v15082_v47, %v15082_v47 }
 0x557   : > { %13251 = vmatprep.subr.mxu0 %v8607_v26  ;;  %13286 = vmatpush3.msra.mxu1 %v8625_v59  ;;  %v8615_v59 = vld [vmem:[%s16023_s20 + $0x308] sm:$0xff] }
 0x558   : > { %13252 = vmatpush3.msra.mxu0 %v8591_v9  ;;  %13287 = vmatprep.subr.mxu1 %v8640_v34  ;;  %v8631_v9 = vld [vmem:[%s16023_s20 + $0x388] sm:$0xff] }
 0x559   : > { %13253 = vmatprep.subr.mxu0 %v8606_v42  ;;  %13288 = vmatpush3.msra.mxu1 %v8624_v12  ;;  %v8614_v12 = vld [vmem:[%s16023_s20 + $0x300] sm:$0xff] }
 0x55a   : > { %13254 = vmatpush3.msra.mxu0 %v8590_v57  ;;  %13289 = vmatprep.subr.mxu1 %v8639_v13  ;;  %v8630_v57 = vld [vmem:[%s16023_s20 + $0x380] sm:$0xff] }
 0x55b   : > { %13255 = vmatprep.subr.mxu0 %v8605_v48  ;;  %13290 = vmatpush3.msra.mxu1 %v8623_v21 }
 0x55c   : > { %13256 = vmatpush3.msra.mxu0 %v8589_v54  ;;  %13291 = vmatprep.subr.mxu1 %v8638_v16 }
 0x55d   : > { %13257 = vmatprep.subr.mxu0 %v8604_v23  ;;  %13292 = vmatpush3.msra.mxu1 %v8622_v24 }
 0x55e   : > { %13258 = vmatpush3.msra.mxu0 %v8588_v7  ;;  %13293 = vmatprep.subr.mxu1 %v8637_v20 }
 0x55f   : > { %13259 = vmatprep.subr.mxu0 %v8603_v35  ;;  %13294 = vmatpush3.msra.mxu1 %v8621_v32 }
 0x560   : > { %13260 = vmatpush3.msra.mxu0 %v8587_v30  ;;  %13295 = vmatprep.subr.mxu1 %v8636_v53 }
 0x561   : > { %13261 = vmatprep.subr.mxu0 %v8602_v33  ;;  %13296 = vmatpush3.msra.mxu1 %v8620_v36 }
 0x562   : > { %13262 = vmatpush3.msra.mxu0 %v8586_v11  ;;  %13297 = vmatprep.subr.mxu1 %v8635_v28 }
 0x563   : > { %13263 = vmatprep.subr.mxu0 %v8601_v1  ;;  %13298 = vmatpush3.msra.mxu1 %v8619_v39 }
 0x564   : > { %13264 = vmatpush3.msra.mxu0 %v8585_v43  ;;  %13299 = vmatprep.subr.mxu1 %v8634_v19 }
 0x565   : > { %13265 = vmatprep.subr.mxu0 %v8600_v50  ;;  %13300 = vmatpush3.msra.mxu1 %v8618_v40 }
 0x566   : > { %13266 = vmatpush3.msra.mxu0 %v8584_v2  ;;  %13301 = vmatprep.subr.mxu1 %v8633_v45  ;;  %v13720_v45 = vld [vmem:[#allocation10 + $0x74] ss:$8 sps:$4 sm:$0xff]  }
 0x567   : > { %13267 = vmatprep.subr.mxu0 %v8599_v31 }
 0x568   : > { %13268 = vmatpush3.msra.mxu0 %v8583_v38  ;;  %v8294_v41 = vpop.f32.mrf.mxu0  ;;  %v8335_v15 = vpop.f32.mrf.mxu1 }
 0x569   : > { %13269 = vmatprep.subr.mxu0 %v8598_v6  ;;  %v8295_v29 = vadd.f32 %v8294_v41, %v15127_v17  ;;  %v8617_v17 = vld [vmem:[%s16023_s20 + $0x318] sm:$0xff]  ;;  %v8953_v6 = vld [vmem:[#allocation8] sm:$0xff] }
 0x56a   : > { %13270 = vmatpush3.msra.mxu0 %v8582_v55  ;;  %v8296_v63 = vpop.f32.mrf.mxu0  ;;  %v8337_v58 = vpop.f32.mrf.mxu1  ;;  %13302 = vmatpush3.msra.mxu1 %v8617_v17  ;;  %v8955_v55 = vld [vmem:[#allocation8 + $0x10] sm:$0xff]  ;;  %v8961_v41 = vcombine.high %v8953_v6, %v8953_v6 }
 0x56b   : > { %v8336_v49 = vadd.f32 %v8335_v15, %v8295_v29  ;;  %8861 = vmatmul.mubr.f32.vlgmr.msra.gmra.mxu0 %v15082_v47  ;;  %v8297_v14 = vadd.f32 %v8296_v63, %v15142_v25  ;;  %13303 = vmatprep.subr.mxu1 %v8632_v18  ;;  %v8616_v25 = vld [vmem:[%s16023_s20 + $0x310] sm:$0xff]  ;;  %v8963_v29 = vcombine.high %v8955_v55, %v8955_v55  ;;  %v14489_v15 = vmov 0.0  }
 0x56c   : > { %8865 = vmatprep.mubr.f32.mxu0 %v8515_v52  ;;  %v8298_v4 = vpop.f32.mrf.mxu0  ;;  %v8339_v26 = vpop.f32.mrf.mxu1  ;;  %13304 = vmatpush3.msra.mxu1 %v8616_v25  ;;  %v8954_v52 = vld [vmem:[#allocation8 + $0x8] sm:$0xff] }
 0x56d   : > { %v8338_v51 = vadd.f32 %v8337_v58, %v8297_v14  ;;  %13305 = vmatprep.subr.mxu1 %v8631_v9  ;;  %12961 = vmatprep.subr.msk.mxu0 %vm8972_vm0, %v8963_v29  ;;  %v8962_v63 = vcombine.high %v8954_v52, %v8954_v52  ;;  %v13732_v29 = vld [vmem:[#allocation10 + $0x44] ss:$8 sps:$4 sm:$0xff]  }
 0x56e   : > { %v8299_v42 = vpop.f32.mrf.mxu0  ;;  %v8340_v34 = vpop.f32.mrf.mxu1  ;;  %13306 = vmatpush3.msra.mxu1 %v8615_v59  ;;  %12962 = vmatpush1.msk.msra.mxu0 %vm8972_vm0, %v8955_v55  ;;  %v13724_v55 = vld [vmem:[#allocation10 + $0x50] ss:$8 sps:$4 sm:$0xff]  }
 0x56f   : > { %8866 = vmatmul.mubr.f32.gmra.mxu0 %v8514_v8  ;;  %13307 = vmatprep.subr.mxu1 %v8630_v57 }
 0x570   : > { %13308 = vmatpush3.msra.mxu1 %v8614_v12  ;;  %9207 = vmatprep.mubr.f32.mxu0 %v14489_v15 }
 0x571   : > { %12953 = vmatprep.subr.msk.mxu1 %vm8972_vm0, %v8961_v41  ;;  %10207 = vmatprep.subr.bf16.mxu0 %v13720_v45  ;;  %v13736_v45 = vld [vmem:[#allocation10 + $0x30] ss:$8 sps:$4 sm:$0xff]  }
 0x5a8   : > { %v8376_v48 = vpop.f32.mrf.mxu0  ;;  %v8417_v54 = vpop.f32.mrf.mxu1 }
 0x5a9   : > { %v8377_v13 = vadd.f32 %v8376_v48, %v8336_v49 }
 0x5aa   : > { %v8378_v21 = vpop.f32.mrf.mxu0  ;;  %v8419_v16 = vpop.f32.mrf.mxu1 }
 0x5ab   : > { %v8418_v23 = vadd.f32 %v8417_v54, %v8377_v13  ;;  %v8379_v30 = vadd.f32 %v8378_v21, %v8338_v51 }
 0x5ac   : > { %v8380_v7 = vpop.f32.mrf.mxu0  ;;  %v8421_v24 = vpop.f32.mrf.mxu1 }
 0x5ad   : > { %v8420_v33 = vadd.f32 %v8419_v16, %v8379_v30 }
 0x5ae   : > { %v8381_v35 = vpop.f32.mrf.mxu0  ;;  %v8422_v20 = vpop.f32.mrf.mxu1 }
 0x5af   : > { %v8956_v35 = vld [vmem:[#allocation8 + $0x18] sm:$0xff] }
 0x5e8   : > { %v8458_v32 = vpop.f32.mrf.mxu0  ;;  %v8499_v53 = vpop.f32.mrf.mxu1 }
 0x5e9   : > { %v8459_v11 = vadd.f32 %v8458_v32, %v8418_v23 }
 0x5ea   : > { %v8460_v36 = vpop.f32.mrf.mxu0  ;;  %v8501_v28 = vpop.f32.mrf.mxu1 }
 0x5eb   : > { %v8461_v1 = vadd.f32 %v8460_v36, %v8420_v33  ;;  %v15509_v19 = vadd.f32 %v8499_v53, %v8459_v11  ;;  %v8964_v36 = vcombine.high %v8956_v35, %v8956_v35 }
 0x5ec   : > { %v8462_v43 = vpop.f32.mrf.mxu0  ;;  %v8503_v50 = vpop.f32.mrf.mxu1 }
 0x5ed   : > { %v15507_v39 = vadd.f32 %v8501_v28, %v8461_v1  ;;  %v8516_v38 = vmul.f32 %v15509_v19, %v15509_v19  ;;  %v13718_v1 = vld [vmem:[#allocation10 + $0x70] ss:$8 sps:$4 sm:$0xff]   ;;  %v13723_v43 = vld [vmem:[#allocation10 + $0x64] ss:$8 sps:$4 sm:$0xff]  }
 0x5ee   : > { %v8463_v2 = vpop.f32.mrf.mxu0  ;;  %v8504_v40 = vpop.f32.mrf.mxu1 }
 0x5ef   : > { %8935 = vmatprep.mubr.f32.mxu1 %v15507_v39  ;;  %v8517_v31 = vmul.f32 %v15507_v39, %v15507_v39  ;;  %v13721_v40 = vld [vmem:[#allocation10 + $0x60] ss:$8 sps:$4 sm:$0xff]  }
 0x5f0   : > { %8936 = vmatmul.mubr.f32.vlgmr.msra.gmra.mxu1 %v15509_v19 }
 0x5f1   : > { %8940 = vmatprep.mubr.f32.mxu1 %v8517_v31  ;;  %12954 = vmatpush1.msk.msra.mxu1 %vm8972_vm0, %v8953_v6 }
 0x5f2   : > { %12957 = vmatprep.subr.msk.mxu1 %vm8972_vm0, %v8962_v63  ;;  %v13738_v63 = vld [vmem:[#allocation10 + $0x34] ss:$8 sps:$4 sm:$0xff]  }
 0x5f4   : > { %8941 = vmatmul.mubr.f32.gmra.mxu1 %v8516_v38  ;;  %v13726_v38 = vld [vmem:[#allocation10 + $0x54] ss:$8 sps:$4 sm:$0xff]  }
 0x5f5   : > { %9053 = vmatprep.mubr.f32.mxu1 %v14489_v15 }
 0x609   : > { %v13195_v49 = vpop.f32.mrf.mxu0  ;;  %v13233_v17 = vpop.f32.mrf.mxu1 }
 0x60b   : > { %v13196_v14 = vpop.f32.mrf.mxu0  ;;  %v13234_v51 = vpop.f32.mrf.mxu1 }
 0x60c   : > { %v13197_v9 = vadd.f32 %v13196_v14, %v13195_v49  ;;  %v13235_v59 = vadd.f32 %v13234_v51, %v13233_v17  ;;  %v13744_v49 = vld [vmem:[#allocation10 + $0x24] ss:$8 sps:$4 sm:$0xff]   ;;  %v13742_v14 = vld [vmem:[#allocation10 + $0x20] ss:$8 sps:$4 sm:$0xff]   ;;  %v13727_v51 = vld [vmem:[#allocation10 + $0x170] ss:$8 sps:$4 sm:$0xff]  }
 0x60d   : > { %v13198_v58 = vpop.f32.mrf.mxu0  ;;  %v13236_v8 = vpop.f32.mrf.mxu1 }
 0x60e   : > { %v8788_v48 = vadd.f32 %v13235_v59, %v13197_v9  ;;  %v13739_v9 = vld [vmem:[#allocation10 + $0x150] ss:$8 sps:$4 sm:$0xff]   ;;  %v13747_v59 = vld [vmem:[#allocation10 + $0x144] ss:$8 sps:$4 sm:$0xff]  }
 0x60f   : > { %v13199_v4 = vpop.f32.mrf.mxu0  ;;  %v13237_v42 = vpop.f32.mrf.mxu1 }
 0x610   : > { %v13200_v13 = vadd.f32 %v13199_v4, %v13198_v58  ;;  %v13238_v54 = vadd.f32 %v13237_v42, %v13236_v8  ;;  %v13750_v58 = vld [vmem:[#allocation10 + $0x14] ss:$8 sps:$4 sm:$0xff]   ;;  %v13748_v4 = vld [vmem:[#allocation10 + $0x10] ss:$8 sps:$4 sm:$0xff]   ;;  %v13733_v8 = vld [vmem:[#allocation10 + $0x160] ss:$8 sps:$4 sm:$0xff]  }
 0x611   : > { %v13745_v42 = vld [vmem:[#allocation10 + $0x140] ss:$8 sps:$4 sm:$0xff]  }
 0x612   : > { %v8793_v20 = vadd.f32 %v13238_v54, %v13200_v13  ;;  %v13757_v13 = vld [vmem:[#allocation10 + $0x120] ss:$8 sps:$4 sm:$0xff]   ;;  %v13759_v54 = vld [vmem:[#allocation10 + $0x124] ss:$8 sps:$4 sm:$0xff]  }
 0x62b   : > { %v13271_v18 = vpop.f32.mrf.mxu0 }
 0x62d   : > { %v13272_v26 = vpop.f32.mrf.mxu0 }
 0x62e   : > { %v13273_v34 = vadd.f32 %v13272_v26, %v13271_v18  ;;  %v13729_v18 = vld [vmem:[#allocation10 + $0x174] ss:$8 sps:$4 sm:$0xff]   ;;  %v13735_v26 = vld [vmem:[#allocation10 + $0x164] ss:$8 sps:$4 sm:$0xff]  }
 0x62f   : > { %v13274_v25 = vpop.f32.mrf.mxu0 }
 0x630   : > { %v8863_v23 = vadd.f32 %v13273_v34, %v8788_v48  ;;  %v13753_v34 = vld [vmem:[#allocation10 + $0x134] ss:$8 sps:$4 sm:$0xff]   ;;  %v13756_v48 = vld [vmem:[#allocation10 + $0x4] ss:$8 sps:$4 sm:$0xff]  }
 0x631   : > { %v13275_v57 = vpop.f32.mrf.mxu0 }
 0x632   : > { %v13276_v16 = vadd.f32 %v13275_v57, %v13274_v25  ;;  %v13741_v25 = vld [vmem:[#allocation10 + $0x154] ss:$8 sps:$4 sm:$0xff]   ;;  %v13751_v57 = vld [vmem:[#allocation10 + $0x130] ss:$8 sps:$4 sm:$0xff]  }
 0x634   : > { %v8868_v33 = vadd.f32 %v13276_v16, %v8793_v20  ;;  %v13765_v16 = vld [vmem:[#allocation10 + $0x114] ss:$8 sps:$4 sm:$0xff]   ;;  %v13766_v20 = vld [vmem:[#allocation10 + $0xe0] ss:$8 sps:$4 sm:$0xff]  }
 0x6b0   : > { %v13309_v12 = vpop.f32.mrf.mxu1 }
 0x6b2   : > { %v13310_v21 = vpop.f32.mrf.mxu1 }
 0x6b3   : > { %v13311_v7 = vadd.f32 %v13310_v21, %v13309_v12  ;;  %v13754_v12 = vld [vmem:[#allocation10] ss:$8 sps:$4 sm:$0xff]   ;;  %v13762_v21 = vld [vmem:[#allocation10 + $0xf4] ss:$8 sps:$4 sm:$0xff]  }
 0x6b4   : > { %v13312_v24 = vpop.f32.mrf.mxu1 }
 0x6b5   : > { %v8938_v30 = vadd.f32 %v13311_v7, %v8863_v23  ;;  %v13760_v23 = vld [vmem:[#allocation10 + $0xf0] ss:$8 sps:$4 sm:$0xff]  }
 0x6b6   : > { %v13313_v32 = vpop.f32.mrf.mxu1  ;;  %v13763_v7 = vld [vmem:[#allocation10 + $0x110] ss:$8 sps:$4 sm:$0xff]  }
 0x6b7   : > { %v8946_v53 = vmul.f32 0.00390625, %v8938_v30  ;;  %v13314_v11 = vadd.f32 %v13313_v32, %v13312_v24  ;;  %v13768_v24 = vld [vmem:[#allocation10 + $0xe4] ss:$8 sps:$4 sm:$0xff]   ;;  %v13769_v30 = vld [vmem:[#allocation10 + $0x100] ss:$8 sps:$4 sm:$0xff]  }
 0x6b8   : > { %v13774_v32 = vld [vmem:[#allocation10 + $0xd4] ss:$8 sps:$4 sm:$0xff]  }
 0x6b9   : > { %v8943_v28 = vadd.f32 %v13314_v11, %v8868_v33  ;;  %12955 = vmatmul.mubr.msk.f32.vlgmr.msra.gmra.mxu1 %vm8965_vm1, %v8946_v53  ;;  %12963 = vmatmul.mubr.msk.f32.vlgmr.msra.gmra.mxu0 %vm8965_vm1, %v8946_v53  ;;  %v8948_v2 = vmul.f32 %v8946_v53, %v8946_v53  ;;  %v13777_v33 = vld [vmem:[#allocation10 + $0x1f4] ss:$8 sps:$4 sm:$0xff]   ;;  %v13775_v11 = vld [vmem:[#allocation10 + $0x1f0] ss:$8 sps:$4 sm:$0xff]  }
 0x6ba   : > { %12958 = vmatpush1.msk.msra.mxu1 %vm8972_vm0, %v8954_v52  ;;  %9059 = vmatprep.mubr.f32.mxu1 %v14489_v15  ;;  %v13730_v52 = vld [vmem:[#allocation10 + $0x40] ss:$8 sps:$4 sm:$0xff]  }
 0x6bb   : > { %v8947_v50 = vmul.f32 0.00390625, %v8943_v28  ;;  %9213 = vmatprep.mubr.f32.mxu0 %v14489_v15  ;;  %12965 = vmatprep.subr.msk.mxu1 %vm8972_vm0, %v8964_v36  ;;  %v13780_v36 = vld [vmem:[#allocation10 + $0xc4] ss:$8 sps:$4 sm:$0xff]   ;;  %v13778_v28 = vld [vmem:[#allocation10 + $0xc0] ss:$8 sps:$4 sm:$0xff]  }
 0x6bc   : > { %10208 = vmatpush1.bf16.msra.mxu0 %v13718_v1  ;;  %v13783_v1 = vld [vmem:[#allocation10 + $0x1e4] ss:$8 sps:$4 sm:$0xff]  }
 0x6bd   : > { %v8949_v31 = vsub.f32 %v8947_v50, %v8948_v2  ;;  %10209 = vmatprep.subr.bf16.mxu0 %v13723_v43  ;;  %v13781_v43 = vld [vmem:[#allocation10 + $0x1e0] ss:$8 sps:$4 sm:$0xff]   ;;  %v13786_v50 = vld [vmem:[#allocation10 + $0xb4] ss:$8 sps:$4 sm:$0xff]  }
 0x6be   : > { %v13789_v2 = vld [vmem:[#allocation10 + $0x1d4] ss:$8 sps:$4 sm:$0xff]  }
 0x6bf   : > { %v8950_v6 = vmax.f32 %v8949_v31, 0.0  ;;  %v13787_v31 = vld [vmem:[#allocation10 + $0x1d0] ss:$8 sps:$4 sm:$0xff]  }
 0x6c0   : > { %10210 = vmatpush1.bf16.msra.mxu0 %v13721_v40  ;;  %v13784_v40 = vld [vmem:[#allocation10 + $0xb0] ss:$8 sps:$4 sm:$0xff]  }
 0x6c1   : > { %v8951_v41 = vadd.f32 1e-05, %v8950_v6  ;;  %10211 = vmatprep.subr.bf16.mxu0 %v13726_v38  ;;  %v13792_v38 = vld [vmem:[#allocation10 + $0xa4] ss:$8 sps:$4 sm:$0xff]  }
 0x6c2   : > { %v13795_v6 = vld [vmem:[#allocation10 + $0x1c4] ss:$8 sps:$4 sm:$0xff]  }
 0x6c3   : > { %13938 = vrsqrt.f32 %v8951_v41  ;;  %v13793_v41 = vld [vmem:[#allocation10 + $0x1c0] ss:$8 sps:$4 sm:$0xff]  }
 0x6c4   : > { %10212 = vmatpush1.bf16.msra.mxu0 %v13724_v55  ;;  %v13790_v55 = vld [vmem:[#allocation10 + $0xa0] ss:$8 sps:$4 sm:$0xff]  }
 0x6c5   : > { %10213 = vmatprep.subr.bf16.mxu0 %v13732_v29  ;;  %v13798_v29 = vld [vmem:[#allocation10 + $0x94] ss:$8 sps:$4 sm:$0xff]  }
 0x6c8   : > { %10214 = vmatpush1.bf16.msra.mxu0 %v13730_v52  ;;  %v13801_v52 = vld [vmem:[#allocation10 + $0x1b4] ss:$8 sps:$4 sm:$0xff]  }
 0x6c9   : > { %10215 = vmatprep.subr.bf16.mxu0 %v13738_v63  ;;  %v13796_v63 = vld [vmem:[#allocation10 + $0x90] ss:$8 sps:$4 sm:$0xff]  }
 0x6cc   : > { %10216 = vmatpush1.bf16.msra.mxu0 %v13736_v45  ;;  %v13799_v45 = vld [vmem:[#allocation10 + $0x1b0] ss:$8 sps:$4 sm:$0xff]  }
 0x6cd   : > { %10217 = vmatprep.subr.bf16.mxu0 %v13744_v49  ;;  %v13804_v49 = vld [vmem:[#allocation10 + $0x84] ss:$8 sps:$4 sm:$0xff]  }
 0x6d0   : > { %v13939_v17 = vpop.eup %13938  ;;  %10218 = vmatpush1.bf16.msra.mxu0 %v13742_v14  ;;  %v13807_v14 = vld [vmem:[#allocation10 + $0x1a4] ss:$8 sps:$4 sm:$0xff]  }
 0x6d1   : > { %12956 = vmatmul.mubr.msk.f32.gmra.mxu1 %vm8965_vm1, %v13939_v17  ;;  %12964 = vmatmul.mubr.msk.f32.gmra.mxu0 %vm8965_vm1, %v13939_v17 }
 0x6d2   : > { %9130 = vmatprep.mubr.f32.mxu1 %v14489_v15  ;;  %10219 = vmatprep.subr.bf16.mxu0 %v13750_v58  ;;  %v13802_v58 = vld [vmem:[#allocation10 + $0x80] ss:$8 sps:$4 sm:$0xff]  }
 0x6d4   : > { %10220 = vmatpush1.bf16.msra.mxu0 %v13748_v4  ;;  %v13810_v4 = vld [vmem:[#allocation10 + $0x194] ss:$8 sps:$4 sm:$0xff]  }
 0x6d5   : > { %12959 = vmatmul.mubr.msk.f32.vlgmr.msra.gmra.mxu1 %vm8965_vm1, %v8946_v53  ;;  %10221 = vmatprep.subr.bf16.mxu0 %v13756_v48 }
 0x6d6   : > { %9136 = vmatprep.mubr.f32.mxu1 %v14489_v15  ;;  %12966 = vmatpush1.msk.msra.mxu1 %vm8972_vm0, %v8956_v35  ;;  %v13771_v35 = vld [vmem:[#allocation10 + $0x104] ss:$8 sps:$4 sm:$0xff]  }
 0x6d7   : > { %10248 = vmatprep.subr.bf16.mxu1 %v13729_v18  ;;  %v13813_v18 = vld [vmem:[#allocation10 + $0x274] ss:$8 sps:$4 sm:$0xff]  }
 0x6d8   : > { %10222 = vmatpush1.bf16.msra.mxu0 %v13754_v12 }
 0x6d9   : > { %12960 = vmatmul.mubr.msk.f32.gmra.mxu1 %vm8965_vm1, %v13939_v17  ;;  %10223 = vmatprep.subr.bf16.mxu0 %v13762_v21 }
 0x6da   : > { %9284 = vmatprep.mubr.f32.mxu1 %v14489_v15 }
 0x6dc   : > { %10224 = vmatpush2.bf16.msra.mxu0 %v13760_v23 }
 0x6dd   : > { %12967 = vmatmul.mubr.msk.f32.vlgmr.msra.gmra.mxu1 %vm8965_vm1, %v8946_v53  ;;  %10225 = vmatprep.subr.bf16.mxu0 %v13768_v24  ;;  %v13772_v53 = vld [vmem:[#allocation10 + $0xd0] ss:$8 sps:$4 sm:$0xff]  }
 0x6de   : > { %9290 = vmatprep.mubr.f32.mxu1 %v14489_v15  ;;  %10249 = vmatpush1.bf16.msra.mxu1 %v13727_v51  ;;  %v13808_v51 = vld [vmem:[#allocation10 + $0x190] ss:$8 sps:$4 sm:$0xff]  }
 0x6df   : > { %10250 = vmatprep.subr.bf16.mxu1 %v13735_v26  ;;  %v13816_v26 = vld [vmem:[#allocation10 + $0x184] ss:$8 sps:$4 sm:$0xff]  }
 0x6e0   : > { %10226 = vmatpush2.bf16.msra.mxu0 %v13766_v20 }
 0x6e1   : > { %12968 = vmatmul.mubr.msk.f32.gmra.mxu1 %vm8965_vm1, %v13939_v17  ;;  %10227 = vmatprep.subr.bf16.mxu0 %v13774_v32  ;;  %v13805_v17 = vld [vmem:[#allocation10 + $0x1a0] ss:$8 sps:$4 sm:$0xff]  }
 0x6e2   : > { %10251 = vmatpush1.bf16.msra.mxu1 %v13733_v8  ;;  %v13814_v8 = vld [vmem:[#allocation10 + $0x180] ss:$8 sps:$4 sm:$0xff]  }
 0x6e3   : > { %10252 = vmatprep.subr.bf16.mxu1 %v13741_v25  ;;  %v13825_v25 = vld [vmem:[#allocation10 + $0x374] ss:$8 sps:$4 sm:$0xff]  }
 0x6e4   : > { %10228 = vmatpush2.bf16.msra.mxu0 %v13772_v53 }
 0x6e5   : > { %10229 = vmatprep.subr.bf16.mxu0 %v13780_v36 }
 0x6e6   : > { %10253 = vmatpush1.bf16.msra.mxu1 %v13739_v9 }
 0x6e7   : > { %10254 = vmatprep.subr.bf16.mxu1 %v13747_v59 }
 0x6e8   : > { %10230 = vmatpush2.bf16.msra.mxu0 %v13778_v28 }
 0x6e9   : > { %10231 = vmatprep.subr.bf16.mxu0 %v13786_v50 }
 0x6ea   : > { %10255 = vmatpush1.bf16.msra.mxu1 %v13745_v42  ;;  %v15541_v42 = vld [vmem:[#allocation7 + $0x1] ss:$4 sm:$0xff] }
 0x6eb   : > { %10256 = vmatprep.subr.bf16.mxu1 %v13753_v34  ;;  %v15543_v34 = vld [vmem:[#allocation7 + $0x2] ss:$4 sm:$0xff]  ;;  %v9325_v12 = vrot.slane %v15541_v42, %v15044_v60  ;;  %v9329_v21 = vrot.slane %v15541_v42, %v15047_v0 }
 0x6ec   : > { %10232 = vmatpush2.bf16.msra.mxu0 %v13784_v40  ;;  %v9382_v24 = vrot.slane %v15543_v34, %v15044_v60  ;;  %v9370_v36 = vrot.slane %v15543_v34, %v14962_v44  ;;  %v9386_v28 = vrot.slane %v15543_v34, %v15047_v0 }
 0x6ed   : > { %10233 = vmatprep.subr.bf16.mxu0 %v13792_v38 }
 0x6ee   : > { %10257 = vmatpush1.bf16.msra.mxu1 %v13751_v57  ;;  %v9309_v57 = vrot.slane %v15541_v42, %v14939_v37 }
 0x6ef   : > { %10258 = vmatprep.subr.bf16.mxu1 %v13759_v54  ;;  %v9313_v54 = vrot.slane %v15541_v42, %v14962_v44 }
 0x6f0   : > { %10234 = vmatpush2.bf16.msra.mxu0 %v13790_v55 }
 0x6f1   : > { %10235 = vmatprep.subr.bf16.mxu0 %v13798_v29 }
 0x6f2   : > { %10259 = vmatpush1.bf16.msra.mxu1 %v13757_v13 }
 0x6f3   : > { %10260 = vmatprep.subr.bf16.mxu1 %v13765_v16  ;;  %v9366_v16 = vrot.slane %v15543_v34, %v14939_v37 }
 0x6f4   : > { %10236 = vmatpush2.bf16.msra.mxu0 %v13796_v63 }
 0x6f5   : > { %10237 = vmatprep.subr.bf16.mxu0 %v13804_v49 }
 0x6f6   : > { %10261 = vmatpush1.bf16.msra.mxu1 %v13763_v7 }
 0x6f7   : > { %10262 = vmatprep.subr.bf16.mxu1 %v13771_v35 }
 0x6f8   : > { %10238 = vmatpush2.bf16.msra.mxu0 %v13802_v58  ;;  %v9378_v58 = vrot.slane %v15543_v34, %v15001_v46 }
 0x6f9   : > { %10289 = vmatprep.subr.bf16.mxu0 %v13813_v18 }
 0x6fa   : > { %10263 = vmatpush1.bf16.msra.mxu1 %v13769_v30 }
 0x6fb   : > { %10264 = vmatprep.subr.bf16.mxu1 %v13777_v33 }
 0x6fe   : > { %10265 = vmatpush2.bf16.msra.mxu1 %v13775_v11 }
 0x6ff   : > { %10266 = vmatprep.subr.bf16.mxu1 %v13783_v1 }
 0x702   : > { %10267 = vmatpush2.bf16.msra.mxu1 %v13781_v43 }
 0x703   : > { %10268 = vmatprep.subr.bf16.mxu1 %v13789_v2 }
 0x706   : > { %10269 = vmatpush2.bf16.msra.mxu1 %v13787_v31 }
 0x707   : > { %10270 = vmatprep.subr.bf16.mxu1 %v13795_v6 }
 0x70a   : > { %10271 = vmatpush2.bf16.msra.mxu1 %v13793_v41  ;;  %v9321_v41 = vrot.slane %v15541_v42, %v15001_v46 }
 0x70b   : > { %10272 = vmatprep.subr.bf16.mxu1 %v13801_v52 }
 0x70e   : > { %10273 = vmatpush2.bf16.msra.mxu1 %v13799_v45  ;;  %v9374_v45 = vrot.slane %v15543_v34, %v14998_v10 }
 0x70f   : > { %10274 = vmatprep.subr.bf16.mxu1 %v13807_v14 }
 0x712   : > { %10275 = vmatpush2.bf16.msra.mxu1 %v13805_v17 }
 0x713   : > { %10276 = vmatprep.subr.bf16.mxu1 %v13810_v4 }
 0x716   : > { %10277 = vmatpush2.bf16.msra.mxu1 %v13808_v51 }
 0x717   : > { %10278 = vmatprep.subr.bf16.mxu1 %v13816_v26 }
 0x71a   : > { %10279 = vmatpush2.bf16.msra.mxu1 %v13814_v8  ;;  %v13811_v8 = vld [vmem:[#allocation10 + $0x270] ss:$8 sps:$4 sm:$0xff]  }
 0x71b   : > { %10330 = vmatprep.subr.bf16.mxu1 %v13825_v25 }
 0x779   : > { %v9055_v9 = vpop.f32.mrf.mxu1  ;;  %v9209_v59 = vpop.f32.mrf.mxu0 }
 0x77a   : > { %v9297_v35 = vsub.f32 %v14990_v61, %v9055_v9  ;;  %v9301_v20 = vsub.f32 %v15082_v47, %v9209_v59  ;;  %v9317_v47 = vrot.slane %v15541_v42, %v14998_v10  ;;  %v13819_v59 = vld [vmem:[#allocation10 + $0x264] ss:$8 sps:$4 sm:$0xff]   ;;  %v9333_v10 = vrot.slane %v15541_v42, %v15090_v22 }
 0x77b   : > { %v9057_v48 = vpop.f32.mrf.mxu1  ;;  %v9211_v13 = vpop.f32.mrf.mxu0 }
 0x77c   : > { %v9298_v33 = vsub.f32 %v14995_v5, %v9057_v48  ;;  %v9302_v53 = vsub.f32 %v15087_v56, %v9211_v13  ;;  %v9337_v13 = vrot.slane %v15541_v42, %v15096_v3 }
 0x791   : > { %v9061_v23 = vpop.f32.mrf.mxu1  ;;  %v9215_v7 = vpop.f32.mrf.mxu0 }
 0x792   : > { %v9346_v30 = vmul.f32 %v9309_v57, %v9061_v23  ;;  %v9350_v32 = vmul.f32 %v9325_v12, %v9215_v7  ;;  %v13822_v23 = vld [vmem:[#allocation10 + $0x254] ss:$8 sps:$4 sm:$0xff]  }
 0x793   : > { %v9063_v11 = vpop.f32.mrf.mxu1  ;;  %v9217_v1 = vpop.f32.mrf.mxu0 }
 0x794   : > { %v9354_v43 = vmul.f32 %v9346_v30, %v9297_v35  ;;  %v9358_v60 = vmul.f32 %v9350_v32, %v9301_v20  ;;  %v9347_v50 = vmul.f32 %v9313_v54, %v9063_v11  ;;  %v9351_v61 = vmul.f32 %v9329_v21, %v9217_v1  ;;  %v13820_v11 = vld [vmem:[#allocation10 + $0x250] ss:$8 sps:$4 sm:$0xff]  }
 0x795   : > { %v9132_v2 = vpop.f32.mrf.mxu1  ;;  %v9394_v30 = vrot.slane %v15543_v34, %v15096_v3  ;;  %v13826_v3 = vld [vmem:[#allocation10 + $0x240] ss:$8 sps:$4 sm:$0xff]  }
 0x796   : > { %v9403_v40 = vadd.f32 %v9366_v16, %v9354_v43  ;;  %v15567_v5 = vadd.f32 %v9382_v24, %v9358_v60  ;;  %v9355_v56 = vmul.f32 %v9347_v50, %v9298_v33  ;;  %v9359_v31 = vmul.f32 %v9351_v61, %v9302_v53  ;;  %v13837_v50 = vld [vmem:[#allocation10 + $0x354] ss:$8 sps:$4 sm:$0xff]  }
 0x797   : > { %v9134_v38 = vpop.f32.mrf.mxu1  ;;  %v9299_v52 = vsub.f32 %v15036_v62, %v9132_v2  ;;  %v9390_v24 = vrot.slane %v15543_v34, %v15090_v22  ;;  %v13834_v34 = vld [vmem:[#allocation10 + $0x234] ss:$8 sps:$4 sm:$0xff]   ;;  %v13832_v2 = vld [vmem:[#allocation10 + $0x230] ss:$8 sps:$4 sm:$0xff]  }
 0x798   : > { %v9404_v6 = vadd.f32 %v9370_v36, %v9355_v56  ;;  %v9408_v55 = vadd.f32 %v9386_v28, %v9359_v31  ;;  %v9411_v0 = vmax.f32 %v9403_v40, 0.0  ;;  %v9300_v4 = vsub.f32 %v15041_v27, %v9134_v38  ;;  %v13817_v27 = vld [vmem:[#allocation10 + $0x260] ss:$8 sps:$4 sm:$0xff]   ;;  %v13823_v36 = vld [vmem:[#allocation10 + $0x370] ss:$8 sps:$4 sm:$0xff]  }
 0x799   : > { %v9138_v29 = vpop.f32.mrf.mxu1  ;;  %v13831_v28 = vld [vmem:[#allocation10 + $0x364] ss:$8 sps:$4 sm:$0xff]   ;;  %v13838_v38 = vld [vmem:[#allocation10 + $0x220] ss:$8 sps:$4 sm:$0xff]  }
 0x79a   : > { %v9348_v63 = vmul.f32 %v9317_v47, %v9138_v29  ;;  %v9412_v49 = vmax.f32 %v9404_v6, 0.0  ;;  %v9416_v17 = vmax.f32 %v9408_v55, 0.0  ;;  %v9419_v25 = vpack.c.bf16 %v9411_v0, %v9411_v0  ;;  %v13835_v47 = vld [vmem:[#allocation10 + $0x350] ss:$8 sps:$4 sm:$0xff]   ;;  %v13840_v56 = vld [vmem:[#allocation10 + $0x224] ss:$8 sps:$4 sm:$0xff]  }
 0x79b   : > { %v9140_v14 = vpop.f32.mrf.mxu1  ;;  %v13843_v31 = vld [vmem:[#allocation10 + $0x344] ss:$8 sps:$4 sm:$0xff]   ;;  %v13841_v6 = vld [vmem:[#allocation10 + $0x340] ss:$8 sps:$4 sm:$0xff]   ;;  %v13846_v55 = vld [vmem:[#allocation10 + $0x214] ss:$8 sps:$4 sm:$0xff]  }
 0x79c   : > { %v9356_v18 = vmul.f32 %v9348_v63, %v9299_v52  ;;  %v9349_v51 = vmul.f32 %v9321_v41, %v9140_v14  ;;  %v9420_v26 = vpack.c.bf16 %v9412_v49, %v9412_v49  ;;  %v9424_v12 = vpack.c.bf16 %v9416_v17, %v9416_v17  ;;  %v13849_v41 = vld [vmem:[#allocation10 + $0x334] ss:$8 sps:$4 sm:$0xff]   ;;  %v13844_v0 = vld [vmem:[#allocation10 + $0x210] ss:$8 sps:$4 sm:$0xff]   ;;  %v13852_v52 = vld [vmem:[#allocation10 + $0x204] ss:$8 sps:$4 sm:$0xff]  }
 0x79d   : > { %v9286_v9 = vpop.f32.mrf.mxu1  ;;  %v13847_v29 = vld [vmem:[#allocation10 + $0x330] ss:$8 sps:$4 sm:$0xff]   ;;  %v13855_v63 = vld [vmem:[#allocation10 + $0x324] ss:$8 sps:$4 sm:$0xff]   ;;  %v13853_v49 = vld [vmem:[#allocation10 + $0x320] ss:$8 sps:$4 sm:$0xff]  }
 0x79e   : > { %v9405_v62 = vadd.f32 %v9374_v45, %v9356_v18  ;;  %v9357_v57 = vmul.f32 %v9349_v51, %v9300_v4  ;;  %10239 = vmatprep.mubr.bf16.mxu0 %v9420_v26  ;;  %v9303_v16 = vsub.f32 %v15509_v19, %v9286_v9  ;;  %v13828_v19 = vld [vmem:[#allocation10 + $0x244] ss:$8 sps:$4 sm:$0xff]   ;;  %v13850_v45 = vld [vmem:[#allocation10 + $0x200] ss:$8 sps:$4 sm:$0xff]   ;;  %v13858_v14 = vld [vmem:[#allocation10 + $0x2f4] ss:$8 sps:$4 sm:$0xff]  }
 0x79f   : > { %v9288_v48 = vpop.f32.mrf.mxu1  ;;  %10240 = vmatmul.mubr.bf16.vlgmr.msra.gmra.mxu0 %v9419_v25  ;;  %v13856_v17 = vld [vmem:[#allocation10 + $0x2f0] ss:$8 sps:$4 sm:$0xff]   ;;  %v13864_v18 = vld [vmem:[#allocation10 + $0x2e4] ss:$8 sps:$4 sm:$0xff]   ;;  %v13862_v26 = vld [vmem:[#allocation10 + $0x2e0] ss:$8 sps:$4 sm:$0xff]  }
 0x7a0   : > { %v9406_v46 = vadd.f32 %v9378_v58, %v9357_v57  ;;  %10290 = vmatpush1.bf16.msra.mxu0 %v13811_v8  ;;  %10321 = vmatprep.mubr.bf16.mxu0 %v9424_v12  ;;  %v9413_v54 = vmax.f32 %v9405_v62, 0.0  ;;  %v9304_v32 = vsub.f32 %v15507_v39, %v9288_v48  ;;  %v13829_v39 = vld [vmem:[#allocation10 + $0x360] ss:$8 sps:$4 sm:$0xff]   ;;  %v13861_v58 = vld [vmem:[#allocation10 + $0x314] ss:$8 sps:$4 sm:$0xff]  }
 0x7a1   : > { %v9292_v21 = vpop.f32.mrf.mxu1  ;;  %10291 = vmatprep.subr.bf16.mxu0 %v13819_v59  ;;  %v13859_v4 = vld [vmem:[#allocation10 + $0x310] ss:$8 sps:$4 sm:$0xff]   ;;  %v13867_v51 = vld [vmem:[#allocation10 + $0x304] ss:$8 sps:$4 sm:$0xff]   ;;  %v13865_v8 = vld [vmem:[#allocation10 + $0x300] ss:$8 sps:$4 sm:$0xff]  }
 0x7a2   : > { %v9352_v7 = vmul.f32 %v9333_v10, %v9292_v21  ;;  %v9414_v35 = vmax.f32 %v9406_v46, 0.0  ;;  %v9421_v1 = vpack.c.bf16 %v9413_v54, %v9413_v54  ;;  %v13870_v25 = vld [vmem:[#allocation10 + $0x2d4] ss:$8 sps:$4 sm:$0xff]   ;;  %v13868_v59 = vld [vmem:[#allocation10 + $0x2d0] ss:$8 sps:$4 sm:$0xff]  }
 0x7a3   : > { %v9294_v20 = vpop.f32.mrf.mxu1  ;;  %v13873_v9 = vld [vmem:[#allocation10 + $0x3f4] ss:$8 sps:$4 sm:$0xff]   ;;  %v13871_v62 = vld [vmem:[#allocation10 + $0x3f0] ss:$8 sps:$4 sm:$0xff]   ;;  %v13876_v57 = vld [vmem:[#allocation10 + $0x2c4] ss:$8 sps:$4 sm:$0xff]  }
 0x7a4   : > { %v9360_v33 = vmul.f32 %v9352_v7, %v9303_v16  ;;  %v9353_v53 = vmul.f32 %v9337_v13, %v9294_v20  ;;  %10292 = vmatpush1.bf16.msra.mxu0 %v13817_v27  ;;  %v9422_v42 = vpack.c.bf16 %v9414_v35, %v9414_v35  ;;  %v13879_v12 = vld [vmem:[#allocation10 + $0x3e4] ss:$8 sps:$4 sm:$0xff]   ;;  %v13874_v10 = vld [vmem:[#allocation10 + $0x2c0] ss:$8 sps:$4 sm:$0xff]   ;;  %v13882_v46 = vld [vmem:[#allocation10 + $0x2b4] ss:$8 sps:$4 sm:$0xff]  }
 0x7a5   : > { %10293 = vmatprep.subr.bf16.mxu0 %v13822_v23  ;;  %v13877_v48 = vld [vmem:[#allocation10 + $0x3e0] ss:$8 sps:$4 sm:$0xff]   ;;  %v13885_v27 = vld [vmem:[#allocation10 + $0x3d4] ss:$8 sps:$4 sm:$0xff]   ;;  %v13880_v13 = vld [vmem:[#allocation10 + $0x2b0] ss:$8 sps:$4 sm:$0xff]  }
 0x7a6   : > { %v15587_v43 = vadd.f32 %v9390_v24, %v9360_v33  ;;  %v9361_v22 = vmul.f32 %v9353_v53, %v9304_v32  ;;  %10280 = vmatprep.mubr.bf16.mxu1 %v9422_v42  ;;  %v13883_v54 = vld [vmem:[#allocation10 + $0x3d0] ss:$8 sps:$4 sm:$0xff]   ;;  %v13888_v21 = vld [vmem:[#allocation10 + $0x2a4] ss:$8 sps:$4 sm:$0xff]   ;;  %v13886_v16 = vld [vmem:[#allocation10 + $0x2a0] ss:$8 sps:$4 sm:$0xff]  }
 0x7a7   : > { %10281 = vmatmul.mubr.bf16.vlgmr.msra.gmra.mxu1 %v9421_v1  ;;  %v13891_v23 = vld [vmem:[#allocation10 + $0x3c4] ss:$8 sps:$4 sm:$0xff]   ;;  %v13889_v7 = vld [vmem:[#allocation10 + $0x3c0] ss:$8 sps:$4 sm:$0xff]   ;;  %v13894_v24 = vld [vmem:[#allocation10 + $0x294] ss:$8 sps:$4 sm:$0xff]  }
 0x7a8   : > { %v9410_v60 = vadd.f32 %v9394_v30, %v9361_v22  ;;  %10294 = vmatpush1.bf16.msra.mxu0 %v13820_v11  ;;  %10331 = vmatpush1.bf16.msra.mxu1 %v13823_v36  ;;  %v13897_v35 = vld [vmem:[#allocation10 + $0x3b4] ss:$8 sps:$4 sm:$0xff]   ;;  %v13892_v20 = vld [vmem:[#allocation10 + $0x290] ss:$8 sps:$4 sm:$0xff]   ;;  %v13900_v32 = vld [vmem:[#allocation10 + $0x284] ss:$8 sps:$4 sm:$0xff]  }
 0x7a9   : > { %10295 = vmatprep.subr.bf16.mxu0 %v13828_v19  ;;  %10332 = vmatprep.subr.bf16.mxu1 %v13831_v28  ;;  %v13895_v30 = vld [vmem:[#allocation10 + $0x3b0] ss:$8 sps:$4 sm:$0xff]   ;;  %v13903_v33 = vld [vmem:[#allocation10 + $0x3a4] ss:$8 sps:$4 sm:$0xff]   ;;  %v13898_v53 = vld [vmem:[#allocation10 + $0x280] ss:$8 sps:$4 sm:$0xff]  }
 0x7aa   : > { %v9418_v61 = vmax.f32 %v9410_v60, 0.0  ;;  %v13901_v42 = vld [vmem:[#allocation10 + $0x3a0] ss:$8 sps:$4 sm:$0xff]   ;;  %v9415_v11 = vmax.f32 %v15567_v5, 0.0  ;;  %v13906_v36 = vld [vmem:[#allocation10 + $0x394] ss:$8 sps:$4 sm:$0xff]  }
 0x7ab   : > { %v13904_v1 = vld [vmem:[#allocation10 + $0x390] ss:$8 sps:$4 sm:$0xff]   ;;  %v13909_v28 = vld [vmem:[#allocation10 + $0x384] ss:$8 sps:$4 sm:$0xff]   ;;  %v13907_v22 = vld [vmem:[#allocation10 + $0x380] ss:$8 sps:$4 sm:$0xff]  }
 0x7ac   : > { %10296 = vmatpush1.bf16.msra.mxu0 %v13826_v3  ;;  %10333 = vmatpush1.bf16.msra.mxu1 %v13829_v39  ;;  %v9426_v40 = vpack.c.bf16 %v9418_v61, %v9418_v61  ;;  %v9423_v19 = vpack.c.bf16 %v9415_v11, %v9415_v11  ;;  %v9417_v60 = vmax.f32 %v15587_v43, 0.0  ;;  %v10408_v5 = vld [vmem:[%s16024_s7 + $0xf8] sm:$0xff]  ;;  %v10391_v43 = vld [vmem:[%s16024_s7 + $0x70] sm:$0xff]  ;;  %v10390_v61 = vld [vmem:[%s16024_s7 + $0x68] sm:$0xff] }
 0x7ad   : > { %10297 = vmatprep.subr.bf16.mxu0 %v13834_v34  ;;  %10334 = vmatprep.subr.bf16.mxu1 %v13837_v50  ;;  %v10392_v39 = vld [vmem:[%s16024_s7 + $0x78] sm:$0xff]  ;;  %v10407_v34 = vld [vmem:[%s16024_s7 + $0xf0] sm:$0xff]  ;;  %v10406_v50 = vld [vmem:[%s16024_s7 + $0xe8] sm:$0xff] }
 0x7ae   : > { %10362 = vmatprep.mubr.bf16.mxu1 %v9426_v40  ;;  %v9425_v3 = vpack.c.bf16 %v9417_v60, %v9417_v60  ;;  %v10404_v40 = vld [vmem:[%s16024_s7 + $0xd8] sm:$0xff] }
 0x7b0   : > { %10298 = vmatpush1.bf16.msra.mxu0 %v13832_v2  ;;  %10335 = vmatpush1.bf16.msra.mxu1 %v13835_v47  ;;  %v10405_v2 = vld [vmem:[%s16024_s7 + $0xe0] sm:$0xff] }
 0x7b1   : > { %10299 = vmatprep.subr.bf16.mxu0 %v13840_v56  ;;  %10336 = vmatprep.subr.bf16.mxu1 %v13843_v31  ;;  %v10389_v47 = vld [vmem:[%s16024_s7 + $0x60] sm:$0xff]  ;;  %v10388_v56 = vld [vmem:[%s16024_s7 + $0x58] sm:$0xff]  ;;  %v10403_v31 = vld [vmem:[%s16024_s7 + $0xd0] sm:$0xff] }
 0x7b4   : > { %10300 = vmatpush1.bf16.msra.mxu0 %v13838_v38  ;;  %10337 = vmatpush1.bf16.msra.mxu1 %v13841_v6  ;;  %v10387_v38 = vld [vmem:[%s16024_s7 + $0x50] sm:$0xff]  ;;  %v10402_v6 = vld [vmem:[%s16024_s7 + $0xc8] sm:$0xff] }
 0x7b5   : > { %10301 = vmatprep.subr.bf16.mxu0 %v13846_v55  ;;  %10338 = vmatprep.subr.bf16.mxu1 %v13849_v41  ;;  %v10386_v55 = vld [vmem:[%s16024_s7 + $0x48] sm:$0xff]  ;;  %v10401_v41 = vld [vmem:[%s16024_s7 + $0xc0] sm:$0xff] }
 0x7b8   : > { %10302 = vmatpush1.bf16.msra.mxu0 %v13844_v0  ;;  %10339 = vmatpush1.bf16.msra.mxu1 %v13847_v29  ;;  %v10385_v0 = vld [vmem:[%s16024_s7 + $0x40] sm:$0xff]  ;;  %v10400_v29 = vld [vmem:[%s16024_s7 + $0xb8] sm:$0xff] }
 0x7b9   : > { %10303 = vmatprep.subr.bf16.mxu0 %v13852_v52  ;;  %10340 = vmatprep.subr.bf16.mxu1 %v13855_v63  ;;  %v10384_v52 = vld [vmem:[%s16024_s7 + $0x38] sm:$0xff]  ;;  %v10399_v63 = vld [vmem:[%s16024_s7 + $0xb0] sm:$0xff] }
 0x7bc   : > { %10304 = vmatpush1.bf16.msra.mxu0 %v13850_v45  ;;  %10341 = vmatpush1.bf16.msra.mxu1 %v13853_v49  ;;  %v10383_v45 = vld [vmem:[%s16024_s7 + $0x30] sm:$0xff]  ;;  %v10398_v49 = vld [vmem:[%s16024_s7 + $0xa8] sm:$0xff] }
 0x7bd   : > { %10305 = vmatprep.subr.bf16.mxu0 %v13858_v14  ;;  %10342 = vmatprep.subr.bf16.mxu1 %v13861_v58  ;;  %v10382_v14 = vld [vmem:[%s16024_s7 + $0x28] sm:$0xff]  ;;  %v10397_v58 = vld [vmem:[%s16024_s7 + $0xa0] sm:$0xff] }
 0x7c0   : > { %10306 = vmatpush2.bf16.msra.mxu0 %v13856_v17  ;;  %10343 = vmatpush1.bf16.msra.mxu1 %v13859_v4  ;;  %v10381_v17 = vld [vmem:[%s16024_s7 + $0x20] sm:$0xff]  ;;  %v10396_v4 = vld [vmem:[%s16024_s7 + $0x98] sm:$0xff] }
 0x7c1   : > { %10307 = vmatprep.subr.bf16.mxu0 %v13864_v18  ;;  %10344 = vmatprep.subr.bf16.mxu1 %v13867_v51  ;;  %v10380_v18 = vld [vmem:[%s16024_s7 + $0x18] sm:$0xff]  ;;  %v10395_v51 = vld [vmem:[%s16024_s7 + $0x90] sm:$0xff] }
 0x7c4   : > { %10308 = vmatpush2.bf16.msra.mxu0 %v13862_v26  ;;  %10345 = vmatpush1.bf16.msra.mxu1 %v13865_v8  ;;  %v10379_v26 = vld [vmem:[%s16024_s7 + $0x10] sm:$0xff]  ;;  %v10394_v8 = vld [vmem:[%s16024_s7 + $0x88] sm:$0xff] }
 0x7c5   : > { %10309 = vmatprep.subr.bf16.mxu0 %v13870_v25  ;;  %10346 = vmatprep.subr.bf16.mxu1 %v13873_v9  ;;  %v10378_v25 = vld [vmem:[%s16024_s7 + $0x8] sm:$0xff]  ;;  %v10393_v9 = vld [vmem:[%s16024_s7 + $0x80] sm:$0xff] }
 0x7c8   : > { %10310 = vmatpush2.bf16.msra.mxu0 %v13868_v59  ;;  %10347 = vmatpush2.bf16.msra.mxu1 %v13871_v62  ;;  %v10377_v59 = vld [vmem:[%s16024_s7] sm:$0xff] }
 0x7c9   : > { %10311 = vmatprep.subr.bf16.mxu0 %v13876_v57  ;;  %10348 = vmatprep.subr.bf16.mxu1 %v13879_v12 }
 0x7cc   : > { %10312 = vmatpush2.bf16.msra.mxu0 %v13874_v10  ;;  %10349 = vmatpush2.bf16.msra.mxu1 %v13877_v48 }
 0x7cd   : > { %10313 = vmatprep.subr.bf16.mxu0 %v13882_v46  ;;  %10350 = vmatprep.subr.bf16.mxu1 %v13885_v27 }
 0x7d0   : > { %10314 = vmatpush2.bf16.msra.mxu0 %v13880_v13  ;;  %10351 = vmatpush2.bf16.msra.mxu1 %v13883_v54  ;;  %v9555_v54 = vld [vmem:[#allocation11] ss:$4 sm:$0x3] }
 0x7d1   : > { %10315 = vmatprep.subr.bf16.mxu0 %v13888_v21  ;;  %10352 = vmatprep.subr.bf16.mxu1 %v13891_v23  ;;  %v9564_v23 = vrot.slane %v9555_v54, %v14962_v44 }
 0x7d4   : > { %10316 = vmatpush2.bf16.msra.mxu0 %v13886_v16  ;;  %10353 = vmatpush2.bf16.msra.mxu1 %v13889_v7  ;;  %v9560_v16 = vrot.slane %v9555_v54, %v14939_v37 }
 0x7d5   : > { %10317 = vmatprep.subr.bf16.mxu0 %v13894_v24  ;;  %10354 = vmatprep.subr.bf16.mxu1 %v13897_v35 }
 0x7d8   : > { %10318 = vmatpush2.bf16.msra.mxu0 %v13892_v20  ;;  %10355 = vmatpush2.bf16.msra.mxu1 %v13895_v30 }
 0x7d9   : > { %10319 = vmatprep.subr.bf16.mxu0 %v13900_v32  ;;  %10356 = vmatprep.subr.bf16.mxu1 %v13903_v33 }
 0x7dc   : > { %10320 = vmatpush2.bf16.msra.mxu0 %v13898_v53  ;;  %10357 = vmatpush2.bf16.msra.mxu1 %v13901_v42 }
 0x7dd   : > { %10358 = vmatprep.subr.bf16.mxu1 %v13906_v36  ;;  %13315 = vmatprep.subr.mxu0 %v10408_v5  ;;  %v10491_v5 = vld [vmem:[#allocation13] sm:$0xff] }
 0x7df   : > { %10322 = vmatmul.mubr.bf16.vlgmr.msra.gmra.mxu0 %v9423_v19 }
 0x7e0   : > { %10359 = vmatpush2.bf16.msra.mxu1 %v13904_v1  ;;  %13316 = vmatpush3.msra.mxu0 %v10392_v39  ;;  %v10493_v39 = vcombine.high %v10491_v5, %v10491_v5 }
 0x7e1   : > { %10360 = vmatprep.subr.bf16.mxu1 %v13909_v28  ;;  %13317 = vmatprep.subr.mxu0 %v10407_v34 }
 0x7e2   : > { %13318 = vmatpush3.msra.mxu0 %v10391_v43 }
 0x7e3   : > { %13319 = vmatprep.subr.mxu0 %v10406_v50 }
 0x7e4   : > { %10361 = vmatpush2.bf16.msra.mxu1 %v13907_v22  ;;  %13320 = vmatpush3.msra.mxu0 %v10390_v61 }
 0x7e5   : > { %13321 = vmatprep.subr.mxu0 %v10405_v2  ;;  %13097 = vmatprep.subr.msk.mxu1 %vm8972_vm0, %v10493_v39 }
 0x7e6   : > { %13322 = vmatpush3.msra.mxu0 %v10389_v47 }
 0x7e7   : > { %10363 = vmatmul.mubr.bf16.vlgmr.msra.gmra.mxu1 %v9425_v3  ;;  %13323 = vmatprep.subr.mxu0 %v10404_v40 }
 0x7e8   : > { %10568 = vmatprep.mubr.f32.mxu1 %v14489_v15  ;;  %13324 = vmatpush3.msra.mxu0 %v10388_v56 }
 0x7e9   : > { %13325 = vmatprep.subr.mxu0 %v10403_v31  ;;  %13098 = vmatpush1.msk.msra.mxu1 %vm8972_vm0, %v10491_v5 }
 0x7ea   : > { %13326 = vmatpush3.msra.mxu0 %v10387_v38 }
 0x7eb   : > { %13327 = vmatprep.subr.mxu0 %v10402_v6 }
 0x7ec   : > { %13328 = vmatpush3.msra.mxu0 %v10386_v55 }
 0x7ed   : > { %13329 = vmatprep.subr.mxu0 %v10401_v41 }
 0x7ee   : > { %13330 = vmatpush3.msra.mxu0 %v10385_v0  ;;  %v13911_v0 = vld [vmem:[%s16025_s5 + $0x78] sm:$0xff]  }
 0x7ef   : > { %13331 = vmatprep.subr.mxu0 %v10400_v29  ;;  %v13912_v29 = vld [vmem:[%s16025_s5 + $0x38] sm:$0xff]   ;;  %13353 = vmatprep.subr.bf16.mxu1 %v13911_v0 }
 0x7f0   : > { %13332 = vmatpush3.msra.mxu0 %v10384_v52  ;;  %v13913_v52 = vld [vmem:[%s16025_s5 + $0x70] sm:$0xff]  }
 0x7f1   : > { %13333 = vmatprep.subr.mxu0 %v10399_v63  ;;  %v13914_v63 = vld [vmem:[%s16025_s5 + $0x30] sm:$0xff]  }
 0x7f2   : > { %13334 = vmatpush3.msra.mxu0 %v10383_v45  ;;  %v13915_v45 = vld [vmem:[%s16025_s5 + $0x68] sm:$0xff]  }
 0x7f3   : > { %13335 = vmatprep.subr.mxu0 %v10398_v49  ;;  %v13916_v49 = vld [vmem:[%s16025_s5 + $0x28] sm:$0xff]  }
 0x7f4   : > { %13336 = vmatpush3.msra.mxu0 %v10382_v14  ;;  %v13917_v14 = vld [vmem:[%s16025_s5 + $0x60] sm:$0xff]  }
 0x7f5   : > { %13337 = vmatprep.subr.mxu0 %v10397_v58  ;;  %v13918_v58 = vld [vmem:[%s16025_s5 + $0x20] sm:$0xff]  }
 0x7f6   : > { %13338 = vmatpush3.msra.mxu0 %v10381_v17  ;;  %v13919_v17 = vld [vmem:[%s16025_s5 + $0x58] sm:$0xff]  }
 0x7f7   : > { %13339 = vmatprep.subr.mxu0 %v10396_v4  ;;  %v13920_v4 = vld [vmem:[%s16025_s5 + $0x18] sm:$0xff]  }
 0x7f8   : > { %13340 = vmatpush3.msra.mxu0 %v10380_v18  ;;  %v13921_v18 = vld [vmem:[%s16025_s5 + $0x50] sm:$0xff]  }
 0x7f9   : > { %13341 = vmatprep.subr.mxu0 %v10395_v51  ;;  %v13922_v51 = vld [vmem:[%s16025_s5 + $0x10] sm:$0xff]  }
 0x7fa   : > { %13342 = vmatpush3.msra.mxu0 %v10379_v26  ;;  %v13923_v26 = vld [vmem:[%s16025_s5 + $0x48] sm:$0xff]  }
 0x7fb   : > { %13343 = vmatprep.subr.mxu0 %v10394_v8  ;;  %v13924_v8 = vld [vmem:[%s16025_s5 + $0x8] sm:$0xff]  }
 0x7fc   : > { %13344 = vmatpush3.msra.mxu0 %v10378_v25  ;;  %v13925_v25 = vld [vmem:[%s16025_s5 + $0x40] sm:$0xff]  }
 0x7fd   : > { %13345 = vmatprep.subr.mxu0 %v10393_v9  ;;  %v13926_v9 = vld [vmem:[%s16025_s5] sm:$0xff]   ;;  %s14491_s5 = smov [#allocation28]  }
 0x7fe   : > { %13346 = vmatpush3.msra.mxu0 %v10377_v59  ;;  %v10798_v59 = vld [vmem:[%s15932_s11 + $0x38] sm:$0xff]  ;;  %s14373_s7 = sshll.u32 %s14491_s5, 4  ;;  %s14374_s7 = int_to_ptr.vmem [resolvable:$false] %s14373_s7 }
 0x7ff   : > { %13419 = vmatprep.subr.mxu0 %v10798_v59  ;;  %s14375_s3 = scalar_lea.vmem %s14374_s7, 256  ;;  %p14376_p10 = scmp.lt.s32.totalorder %s15879_s10, %s14374_s7 }
 0x800   : > { %p14377_p12 = scmp.lt.s32.totalorder %s14375_s3, %s14369_s19 }
 0x802   : > { %p14378_p3 = por %p14377_p12, %p14376_p10 }
 0x804   : > { %p14379_p0 = pnand %p14378_p3, %p14372_p11 }
 0x85f   : > { %v10241_v62 = vpop.f32.mrf.mxu0 }
 0x860   : > { %v10242_v20 = vadd.f32 %v10241_v62, %v9560_v16  ;;  %v10797_v62 = vld [vmem:[%s15932_s11 + $0x30] sm:$0xff] }
 0x861   : > { %v10243_v57 = vpop.f32.mrf.mxu0 }
 0x862   : > { %v10244_v35 = vadd.f32 %v10243_v57, %v9564_v23  ;;  %v10796_v57 = vld [vmem:[%s15932_s11 + $0x28] sm:$0xff] }
 0x863   : > { %v10245_v12 = vpop.f32.mrf.mxu0 }
 0x864   : > { %v10795_v12 = vld [vmem:[%s15932_s11 + $0x20] sm:$0xff] }
 0x865   : > { %v10246_v10 = vpop.f32.mrf.mxu0 }
 0x867   : > { %v10282_v48 = vpop.f32.mrf.mxu1 }
 0x868   : > { %v10283_v33 = vadd.f32 %v10282_v48, %v10242_v20  ;;  %v10372_v48 = vld [vmem:[#allocation11 + $0x1] ss:$4 sm:$0x3] }
 0x869   : > { %v10284_v46 = vpop.f32.mrf.mxu1  ;;  %v10591_v54 = vrot.slane %v10372_v48, %v14962_v44 }
 0x86a   : > { %v10285_v32 = vadd.f32 %v10284_v46, %v10244_v35  ;;  %v10587_v46 = vrot.slane %v10372_v48, %v14939_v37 }
 0x86b   : > { %v10286_v27 = vpop.f32.mrf.mxu1 }
 0x86d   : > { %v10287_v13 = vpop.f32.mrf.mxu1 }
 0x86e   : > { %v10374_v13 = vld [vmem:[#allocation11 + $0x2] ss:$4 sm:$0x3] }
 0x89f   : > { %v10323_v21 = vpop.f32.mrf.mxu0 }
 0x8a0   : > { %v10324_v11 = vadd.f32 %v10323_v21, %v10283_v33 }
 0x8a1   : > { %v10325_v7 = vpop.f32.mrf.mxu0 }
 0x8a2   : > { %v10326_v42 = vadd.f32 %v10325_v7, %v10285_v32  ;;  %v10602_v7 = vrot.slane %v10374_v13, %v14939_v37  ;;  %v10606_v32 = vrot.slane %v10374_v13, %v14962_v44  ;;  %v10794_v37 = vld [vmem:[%s15932_s11 + $0x18] sm:$0xff]  ;;  %v10792_v44 = vld [vmem:[%s15932_s11 + $0x8] sm:$0xff] }
 0x8a3   : > { %v10327_v24 = vpop.f32.mrf.mxu0 }
 0x8a5   : > { %v10328_v30 = vpop.f32.mrf.mxu0 }
 0x8a7   : > { %v10364_v53 = vpop.f32.mrf.mxu1 }
 0x8a8   : > { %v15692_v19 = vadd.f32 %v10364_v53, %v10324_v11 }
 0x8a9   : > { %v10366_v36 = vpop.f32.mrf.mxu1 }
 0x8aa   : > { %v15690_v1 = vadd.f32 %v10366_v36, %v10326_v42  ;;  %v10375_v3 = vmul.f32 %v15692_v19, %v15692_v19 }
 0x8ab   : > { %v10368_v28 = vpop.f32.mrf.mxu1 }
 0x8ac   : > { %10473 = vmatprep.mubr.f32.mxu0 %v15690_v1  ;;  %v10376_v22 = vmul.f32 %v15690_v1, %v15690_v1 }
 0x8ad   : > { %v10369_v60 = vpop.f32.mrf.mxu1  ;;  %10474 = vmatmul.mubr.f32.vlgmr.msra.gmra.mxu0 %v15692_v19 }
 0x8ae   : > { %10478 = vmatprep.mubr.f32.mxu0 %v10376_v22  ;;  %13420 = vmatpush3.msra.mxu0 %v10798_v59 }
 0x8af   : > { %13421 = vmatprep.subr.mxu0 %v10797_v62 }
 0x8b0   : > { %13422 = vmatpush3.msra.mxu0 %v10797_v62  ;;  %v11071_v62 = vld [vmem:[%s16026_s12 + $0x8] sm:$0xff] }
 0x8b1   : > { %10479 = vmatmul.mubr.f32.gmra.mxu0 %v10375_v3  ;;  %13423 = vmatprep.subr.mxu0 %v10796_v57  ;;  %v13101_v3 = vld [vmem:[#allocation14] ss:$0 sm:$0xff] }
 0x8b2   : > { %13424 = vmatpush3.msra.mxu0 %v10796_v57  ;;  %v11070_v57 = vld [vmem:[%s16026_s12] sm:$0xff] }
 0x8b3   : > { %13425 = vmatprep.subr.mxu0 %v10795_v12 }
 0x8b4   : > { %13426 = vmatpush3.msra.mxu0 %v10795_v12  ;;  %v13125_v12 = vld [vmem:[#allocation17] ss:$0 sm:$0xff] }
 0x8b5   : > { %13427 = vmatprep.subr.mxu0 %v10794_v37 }
 0x8b6   : > { %13428 = vmatpush3.msra.mxu0 %v10794_v37 }
 0x96d   : > { %v13347_v34 = vpop.f32.mrf.mxu0 }
 0x96f   : > { %v13348_v43 = vpop.f32.mrf.mxu0 }
 0x970   : > { %v13349_v50 = vadd.f32 %v13348_v43, %v13347_v34 }
 0x971   : > { %v13350_v61 = vpop.f32.mrf.mxu0 }
 0x972   : > { %v10484_v2 = vmul.f32 0.015625, %v13349_v50 }
 0x973   : > { %v13351_v47 = vpop.f32.mrf.mxu0 }
 0x974   : > { %v13352_v40 = vadd.f32 %v13351_v47, %v13350_v61  ;;  %13099 = vmatmul.mubr.msk.f32.vlgmr.msra.gmra.mxu1 %vm8965_vm1, %v10484_v2  ;;  %v10486_v56 = vmul.f32 %v10484_v2, %v10484_v2  ;;  %v10888_v2 = vld [vmem:[#allocation16] sm:$0xf]  ;;  %v13927_v47 = vld [vmem:[%s15934_s13 + $0x18] sm:$0xff]  }
 0x975   : > { %10574 = vmatprep.mubr.f32.mxu1 %v14489_v15  ;;  %13354 = vmatpush3.bf16.msra.mxu1 %v13912_v29 }
 0x976   : > { %v10485_v31 = vmul.f32 0.015625, %v13352_v40  ;;  %13355 = vmatprep.subr.bf16.mxu1 %v13913_v52  ;;  %v13928_v52 = vld [vmem:[%s15934_s13 + $0x10] sm:$0xff]  }
 0x978   : > { %v10487_v38 = vsub.f32 %v10485_v31, %v10486_v56 }
 0x979   : > { %13356 = vmatpush3.bf16.msra.mxu1 %v13914_v63  ;;  %v13929_v63 = vld [vmem:[%s15934_s13 + $0x8] sm:$0xff]  }
 0x97a   : > { %v10488_v6 = vmax.f32 %v10487_v38, 0.0  ;;  %13357 = vmatprep.subr.bf16.mxu1 %v13915_v45  ;;  %v13930_v45 = vld [vmem:[%s15934_s13] sm:$0xff]  }
 0x97c   : > { %v10489_v55 = vadd.f32 1e-05, %v10488_v6 }
 0x97d   : > { %13358 = vmatpush3.bf16.msra.mxu1 %v13916_v49  ;;  %v11073_v49 = vld [vmem:[%s16026_s12 + $0x18] sm:$0xff] }
 0x97e   : > { %13940 = vrsqrt.f32 %v10489_v55  ;;  %13359 = vmatprep.subr.bf16.mxu1 %v13917_v14  ;;  %v11072_v14 = vld [vmem:[%s16026_s12 + $0x10] sm:$0xff] }
 0x981   : > { %13360 = vmatpush3.bf16.msra.mxu1 %v13918_v58  ;;  %v13123_v58 = vld [vmem:[#allocation14 + $0x1] ss:$0 sm:$0xff] }
 0x982   : > { %13361 = vmatprep.subr.bf16.mxu1 %v13919_v17 }
 0x985   : > { %13362 = vmatpush3.bf16.msra.mxu1 %v13920_v4 }
 0x986   : > { %13363 = vmatprep.subr.bf16.mxu1 %v13921_v18 }
 0x989   : > { %13364 = vmatpush3.bf16.msra.mxu1 %v13922_v51 }
 0x98a   : > { %13365 = vmatprep.subr.bf16.mxu1 %v13923_v26  ;;  %v13124_v26 = vld [vmem:[#allocation14 + $0x2] ss:$0 sm:$0xff] }
 0x98b   : > { %v13941_v41 = vpop.eup %13940 }
 0x98c   : > { %13100 = vmatmul.mubr.msk.f32.gmra.mxu1 %vm8965_vm1, %v13941_v41 }
 0x98d   : > { %13366 = vmatpush3.bf16.msra.mxu1 %v13924_v8 }
 0x98e   : > { %13367 = vmatprep.subr.bf16.mxu1 %v13925_v25 }
 0x991   : > { %13368 = vmatpush3.bf16.msra.mxu1 %v13926_v9 }
 0x992   : > { %13438 = vmatprep.subr.msk.mxu1 %vm8972_vm0, %v10888_v2 }
 0xa34   : > { %v10570_v10 = vpop.f32.mrf.mxu1 }
 0xa35   : > { %v10581_v23 = vsub.f32 %v15692_v19, %v10570_v10  ;;  %v10791_v19 = vld [vmem:[%s15932_s11] sm:$0xff] }
 0xa36   : > { %v10572_v27 = vpop.f32.mrf.mxu1 }
 0xa37   : > { %v10582_v35 = vsub.f32 %v15690_v1, %v10572_v27  ;;  %v10793_v1 = vld [vmem:[%s15932_s11 + $0x10] sm:$0xff] }
 0xa38   : > { %13429 = vmatprep.subr.mxu0 %v10793_v1 }
 0xa39   : > { %13430 = vmatpush3.msra.mxu0 %v10793_v1 }
 0xa3a   : > { %13431 = vmatprep.subr.mxu0 %v10792_v44 }
 0xa3b   : > { %13432 = vmatpush3.msra.mxu0 %v10792_v44  ;;  %v13137_v44 = vld [vmem:[#allocation17 + $0x2] ss:$0 sm:$0xff] }
 0xa3c   : > { %13433 = vmatprep.subr.mxu0 %v10791_v19 }
 0xa3d   : > { %13434 = vmatpush3.msra.mxu0 %v10791_v19 }
 0xa3e   : > { %13443 = vmatprep.subr.bf16.mxu0 %v14489_v15 }
 0xa4c   : > { %v10576_v21 = vpop.f32.mrf.mxu1 }
 0xa4d   : > { %v10594_v16 = vmul.f32 %v10587_v46, %v10576_v21  ;;  %v11163_v21 = vld [vmem:[#allocation19] sm:$0xf] }
 0xa4e   : > { %v10578_v24 = vpop.f32.mrf.mxu1 }
 0xa4f   : > { %v10596_v20 = vmul.f32 %v10594_v16, %v10581_v23  ;;  %v10595_v30 = vmul.f32 %v10591_v54, %v10578_v24 }
 0xa51   : > { %v10609_v33 = vadd.f32 %v10602_v7, %v10596_v20  ;;  %v10597_v53 = vmul.f32 %v10595_v30, %v10582_v35 }
 0xa53   : > { %v10610_v42 = vadd.f32 %v10606_v32, %v10597_v53  ;;  %v10611_v11 = vmax.f32 %v10609_v33, 0.0  ;;  %v13931_v53 = vld [vmem:[%s16027_s17 + $0x8] sm:$0xff]  }
 0xa55   : > { %v10612_v36 = vmax.f32 %v10610_v42, 0.0  ;;  %v10613_v22 = vpack.c.bf16 %v10611_v11, %v10611_v11  ;;  %v13932_v42 = vld [vmem:[%s16027_s17] sm:$0xff]   ;;  %v11330_v11 = vld [vmem:[%s16028_s23 + $0x8] sm:$0xff] }
 0xa57   : > { %v10614_v28 = vpack.c.bf16 %v10612_v36, %v10612_v36  ;;  %v13136_v36 = vld [vmem:[#allocation17 + $0x1] ss:$0 sm:$0xff] }
 0xa59   : > { %10780 = vmatprep.mubr.bf16.mxu1 %v10614_v28 }
 0xa5a   : > { %10781 = vmatmul.mubr.bf16.vlgmr.msra.gmra.mxu1 %v10613_v22 }
 0xa5b   : > { %13439 = vmatpush3.msk.msra.mxu1 %vm8972_vm0, %v10888_v2 }
 0xa5c   : > { %13455 = vmatprep.subr.mxu1 %v11073_v49 }
 0xb1a   : > { %v13369_v60 = vpop.f32.mrf.mxu1 }
 0xb1c   : > { %v13370_v5 = vpop.f32.mrf.mxu1 }
 0xb1d   : > { %v13371_v39 = vadd.f32 %v13370_v5, %v13369_v60 }
 0xb1e   : > { %v13372_v34 = vpop.f32.mrf.mxu1 }
 0xb1f   : > { %v10783_v43 = vadd.f32 %v13371_v39, %v13101_v3  ;;  %v11329_v39 = vld [vmem:[%s16028_s23] sm:$0xff] }
 0xb20   : > { %v13373_v50 = vpop.f32.mrf.mxu1  ;;  %v13138_v34 = vld [vmem:[#allocation20] ss:$0 sm:$0xff] }
 0xb21   : > { %v10790_v61 = vmul.f32 %v10783_v43, %v10783_v43  ;;  %13435 = vmatprep.mubr.msk.f32.mxu0 %vm10799_vm2, %v10783_v43 }
 0xb23   : > { %13436 = vmatmul.mubr.msk.f32.vlgmr.msra.gmra.mxu0 %vm10799_vm2, %v10790_v61 }
 0xb24   : > { %13444 = vmatpush3.bf16.msra.mxu0 %v13927_v47  ;;  %13451 = vmatprep.mubr.msk.bf16.mxu0 %vm14490_vm3, %v14489_v15 }
 0xb25   : > { %13445 = vmatprep.subr.bf16.mxu0 %v14489_v15 }
 0xb28   : > { %13446 = vmatpush3.bf16.msra.mxu0 %v13928_v52 }
 0xb29   : > { %13447 = vmatprep.subr.bf16.mxu0 %v14489_v15 }
 0xb2c   : > { %13448 = vmatpush3.bf16.msra.mxu0 %v13929_v63 }
 0xb2d   : > { %13449 = vmatprep.subr.bf16.mxu0 %v14489_v15 }
 0xb30   : > { %13450 = vmatpush3.bf16.msra.mxu0 %v13930_v45  ;;  %v13933_v45 = vld [vmem:[#allocation23] sm:$0xff]  }
 0xb31   : > { %13479 = vmatprep.subr.mxu0 %v11330_v11 }
 0xbe3   : > { %v13437_v40 = vpop.f32.mrf.mxu0 }
 0xbe4   : > { %v10882_v38 = vmul.f32 0.0625, %v13437_v40 }
 0xbe5   : > { %v10872_v56 = vpop.f32.mrf.mxu0 }
 0xbe6   : > { %v10881_v31 = vmul.f32 0.0625, %v10872_v56  ;;  %v11420_v56 = vld [vmem:[#allocation22] sm:$0xf] }
 0xbe8   : > { %v10883_v6 = vmul.f32 %v10881_v31, %v10881_v31  ;;  %13440 = vmatprep.mubr.msk.f32.mxu1 %vm8965_vm1, %v10881_v31 }
 0xbea   : > { %v10884_v55 = vsub.f32 %v10882_v38, %v10883_v6 }
 0xbec   : > { %v10885_v41 = vmax.f32 %v10884_v55, 0.0 }
 0xbee   : > { %v10886_v0 = vadd.f32 1e-05, %v10885_v41 }
 0xbf0   : > { %13942 = vrsqrt.f32 %v10886_v0 }
 0xbfd   : > { %v13943_v29 = vpop.eup %13942 }
 0xbfe   : > { %13441 = vmatmul.mubr.msk.f32.vlgmr.msra.gmra.mxu1 %vm8965_vm1, %v13943_v29 }
 0xbff   : > { %13456 = vmatpush3.msra.mxu1 %v11073_v49  ;;  %v13934_v49 = vld [vmem:[%s16029_s16 + $0x18] sm:$0xff]  }
 0xc00   : > { %13457 = vmatprep.subr.mxu1 %v11072_v14 }
 0xc01   : > { %13458 = vmatpush3.msra.mxu1 %v11072_v14  ;;  %v13935_v14 = vld [vmem:[%s16029_s16 + $0x10] sm:$0xff]  }
 0xc02   : > { %13459 = vmatprep.subr.mxu1 %v11071_v62 }
 0xc03   : > { %13460 = vmatpush3.msra.mxu1 %v11071_v62  ;;  %v13936_v62 = vld [vmem:[%s16029_s16 + $0x8] sm:$0xff]  }
 0xc04   : > { %13461 = vmatprep.subr.mxu1 %v11070_v57 }
 0xc05   : > { %13462 = vmatpush3.msra.mxu1 %v11070_v57  ;;  %v13937_v57 = vld [vmem:[%s16029_s16] sm:$0xff]  }
 0xc06   : > { %13466 = vmatprep.subr.msk.mxu1 %vm8972_vm0, %v11163_v21 }
 0xcbe   : > { %v13442_v17 = vpop.f32.mrf.mxu1 }
 0xcbf   : > { %v10978_v18 = vmul.f32 %v13442_v17, %v13123_v58  ;;  %v13147_v58 = vld [vmem:[#allocation20 + $0x1] ss:$0 sm:$0xff] }
 0xcc0   : > { %v10964_v4 = vpop.f32.mrf.mxu1 }
 0xcc1   : > { %v10973_v51 = vsub.f32 %v10783_v43, %v10964_v4 }
 0xcc3   : > { %v10979_v8 = vmul.f32 %v10978_v18, %v10973_v51 }
 0xcc5   : > { %v10984_v25 = vadd.f32 %v13124_v26, %v10979_v8  ;;  %v13148_v26 = vld [vmem:[#allocation20 + $0x2] ss:$0 sm:$0xff] }
 0xcc7   : > { %v10985_v9 = vmax.f32 %v10984_v25, 0.0 }
 0xcc9   : > { %v10986_v59 = vpack.c.bf16 %v10985_v9, %v10985_v9 }
 0xccb   : > { %13452 = vmatmul.mubr.msk.bf16.vlgmr.msra.gmra.mxu0 %vm10799_vm2, %v10986_v59 }
 0xccc   : > { %13480 = vmatpush3.msra.mxu0 %v11330_v11 }
 0xccd   : > { %13481 = vmatprep.subr.mxu0 %v11329_v39 }
 0xcce   : > { %13482 = vmatpush3.msra.mxu0 %v11329_v39 }
 0xccf   : > { %13486 = vmatprep.subr.msk.mxu0 %vm8972_vm0, %v11420_v56 }
 0xd8b   : > { %v11061_v10 = vpop.f32.mrf.mxu0 }
 0xd8c   : > { %v11062_v48 = vadd.f32 %v13125_v12, %v11061_v10  ;;  %v13149_v12 = vld [vmem:[#allocation25] ss:$0 sm:$0xff] }
 0xd8d   : > { %v13453_v46 = vpop.f32.mrf.mxu0 }
 0xd8e   : > { %v11069_v27 = vmul.f32 %v11062_v48, %v11062_v48  ;;  %13463 = vmatprep.mubr.msk.f32.mxu1 %vm11074_vm4, %v11062_v48 }
 0xd8f   : > { %v11064_v13 = vpop.f32.mrf.mxu0 }
 0xd90   : > { %13464 = vmatmul.mubr.msk.f32.vlgmr.msra.gmra.mxu1 %vm11074_vm4, %v11069_v27 }
 0xd91   : > { %v13454_v54 = vpop.f32.mrf.mxu0  ;;  %13467 = vmatpush3.msk.msra.mxu1 %vm8972_vm0, %v11163_v21 }
 0xd92   : > { %13471 = vmatprep.subr.bf16.mxu1 %v14489_v15 }
 0xe50   : > { %v13465_v23 = vpop.f32.mrf.mxu1 }
 0xe51   : > { %v11157_v24 = vmul.f32 0.125, %v13465_v23  ;;  %v13152_v23 = vld [vmem:[#allocation26] ss:$0 sm:$0xff] }
 0xe52   : > { %v11147_v16 = vpop.f32.mrf.mxu1 }
 0xe53   : > { %v11156_v7 = vmul.f32 0.125, %v11147_v16 }
 0xe55   : > { %v11158_v35 = vmul.f32 %v11156_v7, %v11156_v7  ;;  %13468 = vmatprep.mubr.msk.f32.mxu1 %vm8965_vm1, %v11156_v7 }
 0xe57   : > { %v11159_v20 = vsub.f32 %v11157_v24, %v11158_v35 }
 0xe59   : > { %v11160_v30 = vmax.f32 %v11159_v20, 0.0 }
 0xe5b   : > { %v11161_v32 = vadd.f32 1e-05, %v11160_v30 }
 0xe5d   : > { %13944 = vrsqrt.f32 %v11161_v32 }
 0xe6a   : > { %v13945_v33 = vpop.eup %13944 }
 0xe6b   : > { %13469 = vmatmul.mubr.msk.f32.vlgmr.msra.gmra.mxu1 %vm8965_vm1, %v13945_v33 }
 0xe6c   : > { %13475 = vmatprep.mubr.msk.bf16.mxu1 %vm14490_vm3, %v14489_v15  ;;  %13472 = vmatpush3.bf16.msra.mxu1 %v13931_v53 }
 0xe6d   : > { %13473 = vmatprep.subr.bf16.mxu1 %v14489_v15 }
 0xe70   : > { %13474 = vmatpush3.bf16.msra.mxu1 %v13932_v42 }
 0xe71   : > { %13491 = vmatprep.subr.bf16.mxu1 %v14489_v15 }
 0xf2b   : > { %v13470_v28 = vpop.f32.mrf.mxu1 }
 0xf2c   : > { %v11253_v37 = vmul.f32 %v13470_v28, %v13136_v36 }
 0xf2d   : > { %v11239_v22 = vpop.f32.mrf.mxu1 }
 0xf2e   : > { %v11248_v1 = vsub.f32 %v11062_v48, %v11239_v22 }
 0xf30   : > { %v11254_v19 = vmul.f32 %v11253_v37, %v11248_v1 }
 0xf32   : > { %v11259_v60 = vadd.f32 %v13137_v44, %v11254_v19 }
 0xf34   : > { %v11260_v3 = vmax.f32 %v11259_v60, 0.0 }
 0xf36   : > { %v11261_v5 = vpack.c.bf16 %v11260_v3, %v11260_v3 }
 0xf38   : > { %13476 = vmatmul.mubr.msk.bf16.vlgmr.msra.gmra.mxu1 %vm11074_vm4, %v11261_v5 }
 0xf39   : > { %13493 = vmatprep.mubr.msk.bf16.mxu1 %vm14490_vm3, %v14489_v15  ;;  %13492 = vmatpush3.bf16.msra.mxu1 %v13933_v45 }
 0xff8   : > { %v11320_v43 = vpop.f32.mrf.mxu1 }
 0xff9   : > { %v11321_v50 = vadd.f32 %v13138_v34, %v11320_v43 }
 0xffa   : > { %v13477_v61 = vpop.f32.mrf.mxu1 }
 0xffb   : > { %v11328_v2 = vmul.f32 %v11321_v50, %v11321_v50  ;;  %13483 = vmatprep.mubr.msk.f32.mxu0 %vm11331_vm5, %v11321_v50 }
 0xffc   : > { %v11323_v47 = vpop.f32.mrf.mxu1 }
 0xffd   : > { %13484 = vmatmul.mubr.msk.f32.vlgmr.msra.gmra.mxu0 %vm11331_vm5, %v11328_v2 }
 0xffe   : > { %v13478_v40 = vpop.f32.mrf.mxu1  ;;  %13487 = vmatpush3.msk.msra.mxu0 %vm8972_vm0, %v11420_v56 }
 0xfff   : > { %13497 = vmatprep.subr.bf16.mxu0 %v14489_v15 }
0x10bd   : > { %v13485_v31 = vpop.f32.mrf.mxu0 }
0x10be   : > { %v11414_v55 = vmul.f32 0.25, %v13485_v31 }
0x10bf   : > { %v11404_v38 = vpop.f32.mrf.mxu0 }
0x10c0   : > { %v11413_v6 = vmul.f32 0.25, %v11404_v38 }
0x10c2   : > { %v11415_v41 = vmul.f32 %v11413_v6, %v11413_v6  ;;  %13488 = vmatprep.mubr.msk.f32.mxu0 %vm8965_vm1, %v11413_v6 }
0x10c4   : > { %v11416_v0 = vsub.f32 %v11414_v55, %v11415_v41 }
0x10c6   : > { %v11417_v29 = vmax.f32 %v11416_v0, 0.0 }
0x10c8   : > { %v11418_v52 = vadd.f32 1e-05, %v11417_v29 }
0x10ca   : > { %13946 = vrsqrt.f32 %v11418_v52 }
0x10d7   : > { %v13947_v63 = vpop.eup %13946 }
0x10d8   : > { %13489 = vmatmul.mubr.msk.f32.vlgmr.msra.gmra.mxu0 %vm8965_vm1, %v13947_v63 }
0x10d9   : > { %13505 = vmatprep.mubr.msk.bf16.mxu0 %vm14490_vm3, %v14489_v15  ;;  %13498 = vmatpush3.bf16.msra.mxu0 %v13934_v49 }
0x10da   : > { %13499 = vmatprep.subr.bf16.mxu0 %v14489_v15 }
0x10dd   : > { %13500 = vmatpush3.bf16.msra.mxu0 %v13935_v14 }
0x10de   : > { %13501 = vmatprep.subr.bf16.mxu0 %v14489_v15 }
0x10e1   : > { %13502 = vmatpush3.bf16.msra.mxu0 %v13936_v62 }
0x10e2   : > { %13503 = vmatprep.subr.bf16.mxu0 %v14489_v15 }
0x10e5   : > { %13504 = vmatpush3.bf16.msra.mxu0 %v13937_v57 }
0x1198   : > { %v13490_v17 = vpop.f32.mrf.mxu0 }
0x1199   : > { %v11510_v18 = vmul.f32 %v13490_v17, %v13147_v58 }
0x119a   : > { %v11496_v4 = vpop.f32.mrf.mxu0 }
0x119b   : > { %v11505_v51 = vsub.f32 %v11321_v50, %v11496_v4 }
0x119d   : > { %v11511_v8 = vmul.f32 %v11510_v18, %v11505_v51 }
0x119f   : > { %v11516_v25 = vadd.f32 %v13148_v26, %v11511_v8 }
0x11a1   : > { %v11517_v9 = vmax.f32 %v11516_v25, 0.0 }
0x11a3   : > { %v11518_v59 = vpack.c.bf16 %v11517_v9, %v11517_v9 }
0x11a5   : > { %13494 = vmatmul.mubr.msk.bf16.vlgmr.msra.gmra.mxu1 %vm11331_vm5, %v11518_v59 }
0x1265   : > { %v11571_v10 = vpop.f32.mrf.mxu1 }
0x1266   : > { %v11572_v48 = vadd.f32 %v13149_v12, %v11571_v10 }
0x1267   : > { %v13495_v46 = vpop.f32.mrf.mxu1 }
0x1268   : > { %v11577_v27 = vmax.f32 %v11572_v48, 0.0 }
0x1269   : > { %v11574_v13 = vpop.f32.mrf.mxu1 }
0x126a   : > { %v11578_v54 = vpack.c.bf16 %v11577_v27, %v11577_v27 }
0x126b   : > { %v13496_v21 = vpop.f32.mrf.mxu1 }
0x126c   : > { %13506 = vmatmul.mubr.msk.bf16.vlgmr.msra.gmra.mxu0 %vm10799_vm2, %v11578_v54 }
0x132c   : > { %v11655_v15 = vpop.f32.mrf.mxu0 }
0x132d   : > { %v11656_v16 = vadd.f32 %v13152_v23, %v11655_v15 }
0x132e   : > { %v13507_v7 = vpop.f32.mrf.mxu0 }
0x132f   : > { %v11661_v24 = vmax.f32 %v11656_v16, 0.0 }
0x1330   : > { %v11658_v35 = vpop.f32.mrf.mxu0 }
0x1331   : > { %11662 = vst.msk [vmem:[%s974_s18] sm:$0xff] %vm11074_vm4, %v11661_v24 }
0x1332   : > { %v13508_v20 = vpop.f32.mrf.mxu0 }
0x1333   : > { %14382 = shalt.err (!%p14379_p0)
}
0x1334   : > { %s14383_s18 = scalar_lea.hbm %s15877_s28, 128  ;;  %s14387_s5 = scalar_lea.hbm %s16030_s27, 256 }
0x1335   : > { %p14384_p2 = scmp.ne.s32.totalorder %s15877_s28, %s14383_s18  ;;  %p14388_p7 = scmp.lt.s32.totalorder %s15877_s28, %s16030_s27 }
0x1336   : > { %p14389_p13 = scmp.lt.s32.totalorder %s14387_s5, %s14383_s18 }
0x1337   : > { %p14385_p5 = pnand %p14384_p2, %p16031_p1 }
0x1338   : > { %p14390_p6 = por %p14389_p13, %p14388_p7 }
0x1339   : > { %p14386_p8 = pneg %p14385_p5 }
0x133b   : > { %p14391_p4 = pnand %p14390_p6, %p14386_p8 }
0x133d   : > { %14394 = shalt.err (!%p14391_p4)
}
0x133e   : > { %13571 = dma.vmem_to_hbm [thread:$0]  (%p16031_p1), %s15879_s10, 128, %s15877_s28, %s11664_s26  }
0x133f PF: > { %s11689_s7 = sand.u32 1, %s14453_s29   ;;  %p16032_p9 = scmp.ne.s32.totalorder %s16002_s0, 0 }
0x1340   : > { %p16033_p11 = scmp.ge.s32.totalorder %s14465_s30, 2  ;;  %s11690_s9 = scalar_lea.sflag [#allocation4], %s11689_s7 }
0x1342   : > { %p13624_p10 = pnand %p16033_p11, %p16032_p9 }
0x1344   : > { %p13625_p12 = pneg %p13624_p10 }
0x1346   : > { %14448 = dma.done.wait (%p13625_p12), %s11690_s9, 128  }
0x1347   : > { %14450 = vsyncadd (%p13625_p12), %s11690_s9, 4294967168  ;;  %p46_p3 = scmp.ge.s32.totalorder %s14781_s4, 4   ;;  %s16034_s29 = smov %s14457_s2 }
0x1348   : > { %s16035_s2 = smov %s14461_s6  ;;  %s16036_s6 = smov %s14793_s15 }
0x1349   : > { %s16037_s30 = smov %s14781_s4  ;;  %48 = sbr.rel (!%p46_p3) target bundleno = 35 (0x23), region = 229 }
0x134e   :  { %11695 = vsyncpa [#allocation3], 1 }
0x134f   :  { %11697 = vsyncpa [#allocation3 + $0x1], 1 }
0x1350   :  { %11698 = vsyncpa [#allocation6], 1 }
0x1351   :  { %11699 = vsyncpa [#allocation9], 1 }
0x1352   :  { %11700 = vsyncpa [#allocation12], 1 }
0x1353   :  { %11701 = vsyncpa [#allocation15], 1 }
0x1354   :  { %11702 = vsyncpa [#allocation18], 1 }
0x1355   :  { %11703 = vsyncpa [#allocation21], 1 }
0x1356   :  { %11704 = vsyncpa [#allocation24], 1 }
0x1357   :  { %11705 = vsyncpa [#allocation27], 1 }
0x1358   :  { %11706 = vsyncpa [#allocation4], 1 }
0x1359   :  { %11708 = vsyncpa [#allocation4 + $0x1], 1 }

</bundles_post_ra>
